<compile_context>
chip_gen: v7x
topology: tpu7x:2x2x1
jax: 0.10.0
libtpu: 0.0.40
codegen_flags: <defaults>
</compile_context>

<pallas_src>
import math

import numpy as np

import jax
import jax.numpy as jnp
from jax.experimental import pallas as pl
from jax.experimental.pallas import tpu as pltpu

D_MODEL = 32
NHEAD = 4
DIM_FF = 64
NUM_LAYERS = 3
LN_EPS = 1e-5
NEG_INF = -1e30

VMEM_SPEC = pl.BlockSpec(memory_space=pltpu.MemorySpace.VMEM)


def _make_decoder_kernel(B, R, S, H, L, D, DFF):
    """Fully-fused decoder kernel for static sizes B, R, S, H, L, D, DFF."""
    dh = D // H
    scale = 1.0 / math.sqrt(dh)
    inv_d = 1.0 / D
    N = B * R   # query tokens, batch-major
    M = B * S   # memory tokens, batch-major

    def layernorm(x, g, b):
        # Independent sum / sum-of-squares -> the two lane reductions can issue
        # back-to-back; one rsqrt, no dependent divides.
        s1 = jnp.sum(x, axis=-1, keepdims=True)
        s2 = jnp.sum(x * x, axis=-1, keepdims=True)
        mu = s1 * inv_d
        var = s2 * inv_d - mu * mu
        return (x - mu) * jax.lax.rsqrt(var + LN_EPS) * g + b

    def kernel(x0_ref, mem_ref, masks_ref, attn_w_ref, ffn_w_ref, qkv_b_ref,
               vec_ref, o_ref):

        def attend(y_q, src_kv, l, a, bias):
            """Multi-head attention.  Per-head Q/K/V/Wo weights come from static
            ref slices; the head concat is folded into the Wo projection."""
            wbase = (l * 2 + a) * 4   # rows in attn_w slab: q, k, v, o
            bbase = (l * 2 + a) * 3   # rows in qkv_b slab: q, k, v
            o = None
            for h in range(H):
                lo, hi = h * dh, (h + 1) * dh
                wq = attn_w_ref[wbase + 0, :, lo:hi]          # (D, dh)
                wk = attn_w_ref[wbase + 1, :, lo:hi]          # (D, dh)
                wv = attn_w_ref[wbase + 2, :, lo:hi]          # (D, dh)
                wo = attn_w_ref[wbase + 3, lo:hi, :]          # (dh, D)
                bq = qkv_b_ref[bbase + 0, h:h + 1, :]         # (1, dh)
                bk = qkv_b_ref[bbase + 1, h:h + 1, :]
                bv = qkv_b_ref[bbase + 2, h:h + 1, :]

                q_h = jnp.dot(y_q, wq, preferred_element_type=jnp.float32) + bq
                k_h = jnp.dot(src_kv, wk, preferred_element_type=jnp.float32) + bk
                v_h = jnp.dot(src_kv, wv, preferred_element_type=jnp.float32) + bv

                s = jax.lax.dot_general(q_h, k_h, (((1,), (1,)), ((), ())),
                                        preferred_element_type=jnp.float32)
                s = s * scale + bias
                s = s - jnp.max(s, axis=-1, keepdims=True)
                p = jnp.exp(s)
                p = p * pl.reciprocal(jnp.sum(p, axis=-1, keepdims=True), approx=True)

                pv = jnp.dot(p, v_h, preferred_element_type=jnp.float32)      # (N, dh)
                contrib = jnp.dot(pv, wo, preferred_element_type=jnp.float32)  # (N, D)
                o = contrib if o is None else o + contrib
            return o

        x = x0_ref[...].astype(jnp.float32)                     # (N, D) queries
        self_bias = masks_ref[0, :, 0:N]                        # (N, N)
        cross_bias = masks_ref[1, :, 0:M]                       # (N, M)

        # Memory LayerNorm: computed once, reused by every layer's cross-attn.
        mem = layernorm(mem_ref[...].astype(jnp.float32),
                        vec_ref[0:1, 0:D], vec_ref[1:2, 0:D])   # (M, D)

        for l in range(L):
            base = 4 + l * 10

            # ---------- self-attention block (pre-norm) ----------
            y = layernorm(x, vec_ref[base + 0:base + 1, 0:D],
                          vec_ref[base + 1:base + 2, 0:D])
            a = attend(y, y, l, 0, self_bias) + vec_ref[base + 6:base + 7, 0:D]
            x = x + a          # dropout1: inference no-op

            # ---------- cross-attention block ----------
            y = layernorm(x, vec_ref[base + 2:base + 3, 0:D],
                          vec_ref[base + 3:base + 4, 0:D])
            a = attend(y, mem, l, 1, cross_bias) + vec_ref[base + 7:base + 8, 0:D]
            x = x + a          # dropout2: inference no-op

            # ---------- feed-forward block ----------
            y = layernorm(x, vec_ref[base + 4:base + 5, 0:D],
                          vec_ref[base + 5:base + 6, 0:D])
            h1 = jnp.maximum(
                jnp.dot(y, ffn_w_ref[l, 0:D, :], preferred_element_type=jnp.float32)
                + vec_ref[base + 8:base + 9, 0:DFF], 0.0)
            y2 = (jnp.dot(h1, ffn_w_ref[l, D:D + DFF, 0:D],
                          preferred_element_type=jnp.float32)
                  + vec_ref[base + 9:base + 10, 0:D])
            x = x + y2         # dropout3: inference no-op

        # final LayerNorm + single dense (N, D) writeback
        o_ref[...] = layernorm(x, vec_ref[2:3, 0:D],
                               vec_ref[3:4, 0:D]).astype(o_ref.dtype)

    return kernel


# ------------------------------- forward ----------------------------------

def transformer_forward(params, aggregated_feature, verb_token_embed,
                        role_token_embed, targets):
    bs, s_mem, d = aggregated_feature.shape
    roles = targets['roles'].astype(jnp.int32)
    num_r = int(roles.shape[0])

    attn_w, qkv_b = params['attn_w'], params['qkv_b']
    ffn_w, vec = params['ffn_w'], params['vec']
    num_layers = int(attn_w.shape[0]) // 8
    nhead = int(qkv_b.shape[1])
    dff = int(ffn_w.shape[2])

    # Query construction in XLA (trivial 4-row gather; overlaps with arg DMAs).
    verb = jnp.reshape(targets['verbs'], ()).astype(jnp.int32)
    q0 = role_token_embed[roles] + verb_token_embed[verb][None, :]   # (R, D)
    x0 = jnp.tile(q0, (bs, 1))                                       # (B*R, D)
    mem_flat = aggregated_feature.reshape(bs * s_mem, d)             # (B*S, D)

    # Batch-separation additive biases, packed into ONE small input.
    n_q, n_m = bs * num_r, bs * s_mem
    q_bid = np.arange(n_q) // num_r
    m_bid = np.arange(n_m) // s_mem
    maxk = max(n_q, n_m)
    masks_np = np.full((2, n_q, maxk), NEG_INF, np.float32)
    masks_np[0, :, :n_q] = np.where(q_bid[:, None] == q_bid[None, :], 0.0, NEG_INF)
    masks_np[1, :, :n_m] = np.where(q_bid[:, None] == m_bid[None, :], 0.0, NEG_INF)
    masks = jnp.asarray(masks_np)

    kernel = _make_decoder_kernel(B=bs, R=num_r, S=s_mem, H=nhead,
                                  L=num_layers, D=d, DFF=dff)

    # Advisory cost estimate so XLA does not over-serialize around the call.
    flops_layer = (2 * n_q * d * d * 4 + 2 * n_q * n_q * d * 2            # self
                   + 2 * n_q * d * d * 2 + 2 * n_m * d * d * 2
                   + 2 * n_q * n_m * d * 2                                # cross
                   + 2 * n_q * d * dff * 2)                               # ffn
    in_arrays = (x0, mem_flat, masks, attn_w, ffn_w, qkv_b, vec)
    bytes_accessed = sum(int(np.prod(a.shape)) * 4 for a in in_arrays) + n_q * d * 4
    cost = pl.CostEstimate(
        flops=num_layers * flops_layer,
        transcendentals=num_layers * (n_q * n_q + n_q * n_m) + 12 * n_q,
        bytes_accessed=bytes_accessed)

    out = pl.pallas_call(
        kernel,
        out_shape=jax.ShapeDtypeStruct((n_q, d), jnp.float32),
        in_specs=[VMEM_SPEC] * len(in_arrays),
        out_specs=VMEM_SPEC,
        cost_estimate=cost,
    )(*in_arrays)

    final_rhs = out.reshape(1, bs, num_r, d)   # (1, bs, R, D), same as reference
    return final_rhs, targets['roles']


# ----------------------------- parameter init -----------------------------

def xavier_uniform(key, shape):
    fan_in, fan_out = shape[0], shape[1]
    limit = math.sqrt(6.0 / (fan_in + fan_out))
    return jax.random.uniform(key, shape, jnp.float32, -limit, limit)


def make_params(key, d, dff, num_layers, nhead):
    """Builds parameters already packed into 4 contiguous slabs."""
    dh = d // nhead
    layer_keys = jax.random.split(key, num_layers)

    def attn(k):
        ks = jax.random.split(k, 4)
        w = jnp.stack([xavier_uniform(ks[i], (d, d)) for i in range(4)], 0)  # q,k,v,o
        b_qkv = jnp.zeros((3, nhead, dh), jnp.float32)
        bo = jnp.zeros((d,), jnp.float32)
        return w, b_qkv, bo

    def pad_row(v):
        return jnp.pad(v, (0, dff - v.shape[0]))

    attn_w_layers, qkv_b_layers, ffn_layers, vec_rows_layers = [], [], [], []
    for lk in layer_keys:
        ks = jax.random.split(lk, 4)
        sw, sb_qkv, sbo = attn(ks[0])
        cw, cb_qkv, cbo = attn(ks[1])
        w1 = xavier_uniform(ks[2], (d, dff))
        w2 = xavier_uniform(ks[3], (dff, d))
        b1 = jnp.zeros((dff,), jnp.float32)
        b2 = jnp.zeros((d,), jnp.float32)

        attn_w_layers.append(jnp.stack([sw, cw], axis=0))          # (2, 4, d, d)
        qkv_b_layers.append(jnp.stack([sb_qkv, cb_qkv], axis=0))   # (2, 3, H, dh)
        ffn_layers.append(jnp.concatenate(
            [w1, jnp.pad(w2, ((0, 0), (0, dff - d)))], axis=0))    # (d+dff, dff)

        ones, zeros = jnp.ones((d,), jnp.float32), jnp.zeros((d,), jnp.float32)
        rows = [ones, zeros,      # norm1 (self-attn pre-norm)
                ones, zeros,      # norm2 (cross-attn pre-norm)
                ones, zeros,      # norm3 (ffn pre-norm)
                sbo, cbo, b1, b2]
        vec_rows_layers.extend(pad_row(r) for r in rows)

    g_ones, g_zeros = jnp.ones((d,), jnp.float32), jnp.zeros((d,), jnp.float32)
    vec_rows = [pad_row(g_ones), pad_row(g_zeros),     # ln1 (memory LN)
                pad_row(g_ones), pad_row(g_zeros)]     # ln2 (final LN)
    vec_rows += vec_rows_layers

    return {
        'attn_w': jnp.stack(attn_w_layers, 0).reshape(num_layers * 8, d, d),
        'qkv_b': jnp.stack(qkv_b_layers, 0).reshape(num_layers * 6, nhead, dh),
        'ffn_w': jnp.stack(ffn_layers, 0),                     # (L, d+dff, dff)
        'vec': jnp.stack(vec_rows, 0),                         # (4 + 10L, dff)
    }


if __name__ == "__main__":
    key = jax.random.PRNGKey(0)
    k_params, k_feat, k_verb, k_role = jax.random.split(key, 4)

    params = make_params(k_params, D_MODEL, DIM_FF, NUM_LAYERS, NHEAD)

    bs, s_mem = 2, 8
    num_verbs, num_roles, num_sel_roles = 6, 10, 3

    aggregated_feature = jax.random.normal(k_feat, (bs, s_mem, D_MODEL), jnp.float32)
    verb_token_embed = jax.random.normal(k_verb, (num_verbs, D_MODEL), jnp.float32)
    role_token_embed = jax.random.normal(k_role, (num_roles, D_MODEL), jnp.float32)
    targets = {'verbs': jnp.int32(2), 'roles': jnp.array([1, 3, 5], jnp.int32)}

    final_rhs, selected_roles = transformer_forward(
        params, aggregated_feature, verb_token_embed, role_token_embed, targets)
    jax.block_until_ready(final_rhs)

    assert final_rhs.shape == (1, bs, num_sel_roles, D_MODEL), final_rhs.shape
    assert selected_roles.shape == (num_sel_roles,)
    assert bool(jnp.all(jnp.isfinite(final_rhs)))
    print("KERNEL_OK")
</pallas_src>

<mosaic_0001>
module attributes {stable_mosaic.version = 11 : i64} {
  func.func @kernel(%arg0: memref<6x32xf32, #tpu.memory_space<vmem>>, %arg1: memref<16x32xf32, #tpu.memory_space<vmem>>, %arg2: memref<2x6x16xf32, #tpu.memory_space<vmem>>, %arg3: memref<24x32x32xf32, #tpu.memory_space<vmem>>, %arg4: memref<3x96x64xf32, #tpu.memory_space<vmem>>, %arg5: memref<18x4x8xf32, #tpu.memory_space<vmem>>, %arg6: memref<34x64xf32, #tpu.memory_space<vmem>>, %arg7: memref<6x32xf32, #tpu.memory_space<vmem>>) attributes {dimension_semantics = [], scalar_prefetch = 0 : i64, scratch_operands = 0 : i64, tpu.core_type = #tpu.core_type<tc>} {
    %c0 = arith.constant 0 : index
    %c0_0 = arith.constant 0 : index
    %0 = vector.load %arg0[%c0, %c0_0] : memref<6x32xf32, #tpu.memory_space<vmem>>, vector<6x32xf32>
    %c0_1 = arith.constant 0 : index
    %c0_2 = arith.constant 0 : index
    %c0_3 = arith.constant 0 : index
    %1 = vector.load %arg2[%c0_1, %c0_2, %c0_3] : memref<2x6x16xf32, #tpu.memory_space<vmem>>, vector<1x6x6xf32>
    %2 = vector.shape_cast %1 : vector<1x6x6xf32> to vector<6x6xf32>
    %c1 = arith.constant 1 : index
    %c0_4 = arith.constant 0 : index
    %c0_5 = arith.constant 0 : index
    %3 = vector.load %arg2[%c1, %c0_4, %c0_5] : memref<2x6x16xf32, #tpu.memory_space<vmem>>, vector<1x6x16xf32>
    %4 = vector.shape_cast %3 : vector<1x6x16xf32> to vector<6x16xf32>
    %c0_6 = arith.constant 0 : index
    %c0_7 = arith.constant 0 : index
    %5 = vector.load %arg1[%c0_6, %c0_7] : memref<16x32xf32, #tpu.memory_space<vmem>>, vector<16x32xf32>
    %c0_8 = arith.constant 0 : index
    %c0_9 = arith.constant 0 : index
    %6 = vector.load %arg6[%c0_8, %c0_9] : memref<34x64xf32, #tpu.memory_space<vmem>>, vector<1x32xf32>
    %c1_10 = arith.constant 1 : index
    %c0_11 = arith.constant 0 : index
    %7 = vector.load %arg6[%c1_10, %c0_11] : memref<34x64xf32, #tpu.memory_space<vmem>>, vector<1x32xf32>
    %cst = arith.constant dense<0.000000e+00> : vector<16xf32>
    %8 = vector.multi_reduction <add>, %5, %cst [1] : vector<16x32xf32> to vector<16xf32>
    %9 = vector.shape_cast %8 : vector<16xf32> to vector<16x1xf32>
    %10 = arith.mulf %5, %5 : vector<16x32xf32>
    %cst_12 = arith.constant dense<0.000000e+00> : vector<16xf32>
    %11 = vector.multi_reduction <add>, %10, %cst_12 [1] : vector<16x32xf32> to vector<16xf32>
    %12 = vector.shape_cast %11 : vector<16xf32> to vector<16x1xf32>
    %cst_13 = arith.constant 3.125000e-02 : f32
    %13 = vector.broadcast %cst_13 : f32 to vector<16x1xf32>
    %14 = arith.mulf %9, %13 : vector<16x1xf32>
    %cst_14 = arith.constant 3.125000e-02 : f32
    %15 = vector.broadcast %cst_14 : f32 to vector<16x1xf32>
    %16 = arith.mulf %12, %15 : vector<16x1xf32>
    %17 = arith.mulf %14, %14 : vector<16x1xf32>
    %18 = arith.subf %16, %17 : vector<16x1xf32>
    %19 = vector.broadcast %14 : vector<16x1xf32> to vector<16x32xf32>
    %20 = arith.subf %5, %19 : vector<16x32xf32>
    %cst_15 = arith.constant 9.99999974E-6 : f32
    %21 = vector.broadcast %cst_15 : f32 to vector<16x1xf32>
    %22 = arith.addf %18, %21 : vector<16x1xf32>
    %23 = math.rsqrt %22 : vector<16x1xf32>
    %24 = vector.broadcast %23 : vector<16x1xf32> to vector<16x32xf32>
    %25 = arith.mulf %20, %24 : vector<16x32xf32>
    %26 = vector.broadcast %6 : vector<1x32xf32> to vector<16x32xf32>
    %27 = arith.mulf %25, %26 : vector<16x32xf32>
    %28 = vector.broadcast %7 : vector<1x32xf32> to vector<16x32xf32>
    %29 = arith.addf %27, %28 : vector<16x32xf32>
    %c4 = arith.constant 4 : index
    %c0_16 = arith.constant 0 : index
    %30 = vector.load %arg6[%c4, %c0_16] : memref<34x64xf32, #tpu.memory_space<vmem>>, vector<1x32xf32>
    %c5 = arith.constant 5 : index
    %c0_17 = arith.constant 0 : index
    %31 = vector.load %arg6[%c5, %c0_17] : memref<34x64xf32, #tpu.memory_space<vmem>>, vector<1x32xf32>
    %cst_18 = arith.constant dense<0.000000e+00> : vector<6xf32>
    %32 = vector.multi_reduction <add>, %0, %cst_18 [1] : vector<6x32xf32> to vector<6xf32>
    %33 = vector.shape_cast %32 : vector<6xf32> to vector<6x1xf32>
    %34 = arith.mulf %0, %0 : vector<6x32xf32>
    %cst_19 = arith.constant dense<0.000000e+00> : vector<6xf32>
    %35 = vector.multi_reduction <add>, %34, %cst_19 [1] : vector<6x32xf32> to vector<6xf32>
    %36 = vector.shape_cast %35 : vector<6xf32> to vector<6x1xf32>
    %cst_20 = arith.constant 3.125000e-02 : f32
    %37 = vector.broadcast %cst_20 : f32 to vector<6x1xf32>
    %38 = arith.mulf %33, %37 : vector<6x1xf32>
    %cst_21 = arith.constant 3.125000e-02 : f32
    %39 = vector.broadcast %cst_21 : f32 to vector<6x1xf32>
    %40 = arith.mulf %36, %39 : vector<6x1xf32>
    %41 = arith.mulf %38, %38 : vector<6x1xf32>
    %42 = arith.subf %40, %41 : vector<6x1xf32>
    %43 = vector.broadcast %38 : vector<6x1xf32> to vector<6x32xf32>
    %44 = arith.subf %0, %43 : vector<6x32xf32>
    %cst_22 = arith.constant 9.99999974E-6 : f32
    %45 = vector.broadcast %cst_22 : f32 to vector<6x1xf32>
    %46 = arith.addf %42, %45 : vector<6x1xf32>
    %47 = math.rsqrt %46 : vector<6x1xf32>
    %48 = vector.broadcast %47 : vector<6x1xf32> to vector<6x32xf32>
    %49 = arith.mulf %44, %48 : vector<6x32xf32>
    %50 = vector.broadcast %30 : vector<1x32xf32> to vector<6x32xf32>
    %51 = arith.mulf %49, %50 : vector<6x32xf32>
    %52 = vector.broadcast %31 : vector<1x32xf32> to vector<6x32xf32>
    %53 = arith.addf %51, %52 : vector<6x32xf32>
    %c0_23 = arith.constant 0 : index
    %c0_24 = arith.constant 0 : index
    %c0_25 = arith.constant 0 : index
    %54 = vector.load %arg3[%c0_23, %c0_24, %c0_25] : memref<24x32x32xf32, #tpu.memory_space<vmem>>, vector<1x32x8xf32>
    %55 = vector.shape_cast %54 : vector<1x32x8xf32> to vector<32x8xf32>
    %c1_26 = arith.constant 1 : index
    %c0_27 = arith.constant 0 : index
    %c0_28 = arith.constant 0 : index
    %56 = vector.load %arg3[%c1_26, %c0_27, %c0_28] : memref<24x32x32xf32, #tpu.memory_space<vmem>>, vector<1x32x8xf32>
    %57 = vector.shape_cast %56 : vector<1x32x8xf32> to vector<32x8xf32>
    %c2 = arith.constant 2 : index
    %c0_29 = arith.constant 0 : index
    %c0_30 = arith.constant 0 : index
    %58 = vector.load %arg3[%c2, %c0_29, %c0_30] : memref<24x32x32xf32, #tpu.memory_space<vmem>>, vector<1x32x8xf32>
    %59 = vector.shape_cast %58 : vector<1x32x8xf32> to vector<32x8xf32>
    %c3 = arith.constant 3 : index
    %c0_31 = arith.constant 0 : index
    %c0_32 = arith.constant 0 : index
    %60 = vector.load %arg3[%c3, %c0_31, %c0_32] : memref<24x32x32xf32, #tpu.memory_space<vmem>>, vector<1x8x32xf32>
    %61 = vector.shape_cast %60 : vector<1x8x32xf32> to vector<8x32xf32>
    %c0_33 = arith.constant 0 : index
    %c0_34 = arith.constant 0 : index
    %c0_35 = arith.constant 0 : index
    %62 = vector.load %arg5[%c0_33, %c0_34, %c0_35] : memref<18x4x8xf32, #tpu.memory_space<vmem>>, vector<1x1x8xf32>
    %63 = vector.shape_cast %62 : vector<1x1x8xf32> to vector<1x8xf32>
    %c1_36 = arith.constant 1 : index
    %c0_37 = arith.constant 0 : index
    %c0_38 = arith.constant 0 : index
    %64 = vector.load %arg5[%c1_36, %c0_37, %c0_38] : memref<18x4x8xf32, #tpu.memory_space<vmem>>, vector<1x1x8xf32>
    %65 = vector.shape_cast %64 : vector<1x1x8xf32> to vector<1x8xf32>
    %c2_39 = arith.constant 2 : index
    %c0_40 = arith.constant 0 : index
    %c0_41 = arith.constant 0 : index
    %66 = vector.load %arg5[%c2_39, %c0_40, %c0_41] : memref<18x4x8xf32, #tpu.memory_space<vmem>>, vector<1x1x8xf32>
    %67 = vector.shape_cast %66 : vector<1x1x8xf32> to vector<1x8xf32>
    %cst_42 = arith.constant dense<0.000000e+00> : vector<6x8xf32>
    %68 = tpu.matmul %53, %55, %cst_42 {dimension_numbers = #tpu.dot_dimension_numbers<[1], [0], [0], [1], [0, 0, 1, 1], [], []>} : vector<6x32xf32>, vector<32x8xf32>, vector<6x8xf32> -> vector<6x8xf32>
    %69 = vector.broadcast %63 : vector<1x8xf32> to vector<6x8xf32>
    %70 = arith.addf %68, %69 : vector<6x8xf32>
    %cst_43 = arith.constant dense<0.000000e+00> : vector<6x8xf32>
    %71 = tpu.matmul %53, %57, %cst_43 {dimension_numbers = #tpu.dot_dimension_numbers<[1], [0], [0], [1], [0, 0, 1, 1], [], []>} : vector<6x32xf32>, vector<32x8xf32>, vector<6x8xf32> -> vector<6x8xf32>
    %72 = vector.broadcast %65 : vector<1x8xf32> to vector<6x8xf32>
    %73 = arith.addf %71, %72 : vector<6x8xf32>
    %cst_44 = arith.constant dense<0.000000e+00> : vector<6x8xf32>
    %74 = tpu.matmul %53, %59, %cst_44 {dimension_numbers = #tpu.dot_dimension_numbers<[1], [0], [0], [1], [0, 0, 1, 1], [], []>} : vector<6x32xf32>, vector<32x8xf32>, vector<6x8xf32> -> vector<6x8xf32>
    %75 = vector.broadcast %67 : vector<1x8xf32> to vector<6x8xf32>
    %76 = arith.addf %74, %75 : vector<6x8xf32>
    %cst_45 = arith.constant dense<0.000000e+00> : vector<6x6xf32>
    %77 = tpu.matmul %70, %73, %cst_45 {dimension_numbers = #tpu.dot_dimension_numbers<[1], [1], [0], [0], [0, 0, 1, 0], [], []>} : vector<6x8xf32>, vector<6x8xf32>, vector<6x6xf32> -> vector<6x6xf32>
    %cst_46 = arith.constant 0.353553385 : f32
    %78 = vector.broadcast %cst_46 : f32 to vector<6x6xf32>
    %79 = arith.mulf %77, %78 : vector<6x6xf32>
    %80 = arith.addf %79, %2 : vector<6x6xf32>
    %cst_47 = arith.constant dense<0xFF800000> : vector<6xf32>
    %81 = vector.multi_reduction <maximumf>, %80, %cst_47 [1] : vector<6x6xf32> to vector<6xf32>
    %82 = vector.shape_cast %81 : vector<6xf32> to vector<6x1xf32>
    %83 = vector.broadcast %82 : vector<6x1xf32> to vector<6x6xf32>
    %84 = arith.subf %80, %83 : vector<6x6xf32>
    %85 = math.exp %84 : vector<6x6xf32>
    %cst_48 = arith.constant dense<0.000000e+00> : vector<6xf32>
    %86 = vector.multi_reduction <add>, %85, %cst_48 [1] : vector<6x6xf32> to vector<6xf32>
    %87 = vector.shape_cast %86 : vector<6xf32> to vector<6x1xf32>
    %88 = tpu.reciprocal %87 {approx = true} : vector<6x1xf32> -> vector<6x1xf32>
    %89 = vector.broadcast %88 : vector<6x1xf32> to vector<6x6xf32>
    %90 = arith.mulf %85, %89 : vector<6x6xf32>
    %cst_49 = arith.constant dense<0.000000e+00> : vector<6x8xf32>
    %91 = tpu.matmul %90, %76, %cst_49 {dimension_numbers = #tpu.dot_dimension_numbers<[1], [0], [0], [1], [0, 0, 1, 1], [], []>} : vector<6x6xf32>, vector<6x8xf32>, vector<6x8xf32> -> vector<6x8xf32>
    %cst_50 = arith.constant dense<0.000000e+00> : vector<6x32xf32>
    %92 = tpu.matmul %91, %61, %cst_50 {dimension_numbers = #tpu.dot_dimension_numbers<[1], [0], [0], [1], [0, 0, 1, 1], [], []>} : vector<6x8xf32>, vector<8x32xf32>, vector<6x32xf32> -> vector<6x32xf32>
    %c0_51 = arith.constant 0 : index
    %c0_52 = arith.constant 0 : index
    %c8 = arith.constant 8 : index
    %93 = vector.load %arg3[%c0_51, %c0_52, %c8] : memref<24x32x32xf32, #tpu.memory_space<vmem>>, vector<1x32x8xf32>
    %94 = vector.shape_cast %93 : vector<1x32x8xf32> to vector<32x8xf32>
    %c1_53 = arith.constant 1 : index
    %c0_54 = arith.constant 0 : index
    %c8_55 = arith.constant 8 : index
    %95 = vector.load %arg3[%c1_53, %c0_54, %c8_55] : memref<24x32x32xf32, #tpu.memory_space<vmem>>, vector<1x32x8xf32>
    %96 = vector.shape_cast %95 : vector<1x32x8xf32> to vector<32x8xf32>
    %c2_56 = arith.constant 2 : index
    %c0_57 = arith.constant 0 : index
    %c8_58 = arith.constant 8 : index
    %97 = vector.load %arg3[%c2_56, %c0_57, %c8_58] : memref<24x32x32xf32, #tpu.memory_space<vmem>>, vector<1x32x8xf32>
    %98 = vector.shape_cast %97 : vector<1x32x8xf32> to vector<32x8xf32>
    %c3_59 = arith.constant 3 : index
    %c8_60 = arith.constant 8 : index
    %c0_61 = arith.constant 0 : index
    %99 = vector.load %arg3[%c3_59, %c8_60, %c0_61] : memref<24x32x32xf32, #tpu.memory_space<vmem>>, vector<1x8x32xf32>
    %100 = vector.shape_cast %99 : vector<1x8x32xf32> to vector<8x32xf32>
    %c0_62 = arith.constant 0 : index
    %c1_63 = arith.constant 1 : index
    %c0_64 = arith.constant 0 : index
    %101 = vector.load %arg5[%c0_62, %c1_63, %c0_64] : memref<18x4x8xf32, #tpu.memory_space<vmem>>, vector<1x1x8xf32>
    %102 = vector.shape_cast %101 : vector<1x1x8xf32> to vector<1x8xf32>
    %c1_65 = arith.constant 1 : index
    %c1_66 = arith.constant 1 : index
    %c0_67 = arith.constant 0 : index
    %103 = vector.load %arg5[%c1_65, %c1_66, %c0_67] : memref<18x4x8xf32, #tpu.memory_space<vmem>>, vector<1x1x8xf32>
    %104 = vector.shape_cast %103 : vector<1x1x8xf32> to vector<1x8xf32>
    %c2_68 = arith.constant 2 : index
    %c1_69 = arith.constant 1 : index
    %c0_70 = arith.constant 0 : index
    %105 = vector.load %arg5[%c2_68, %c1_69, %c0_70] : memref<18x4x8xf32, #tpu.memory_space<vmem>>, vector<1x1x8xf32>
    %106 = vector.shape_cast %105 : vector<1x1x8xf32> to vector<1x8xf32>
    %cst_71 = arith.constant dense<0.000000e+00> : vector<6x8xf32>
    %107 = tpu.matmul %53, %94, %cst_71 {dimension_numbers = #tpu.dot_dimension_numbers<[1], [0], [0], [1], [0, 0, 1, 1], [], []>} : vector<6x32xf32>, vector<32x8xf32>, vector<6x8xf32> -> vector<6x8xf32>
    %108 = vector.broadcast %102 : vector<1x8xf32> to vector<6x8xf32>
    %109 = arith.addf %107, %108 : vector<6x8xf32>
    %cst_72 = arith.constant dense<0.000000e+00> : vector<6x8xf32>
    %110 = tpu.matmul %53, %96, %cst_72 {dimension_numbers = #tpu.dot_dimension_numbers<[1], [0], [0], [1], [0, 0, 1, 1], [], []>} : vector<6x32xf32>, vector<32x8xf32>, vector<6x8xf32> -> vector<6x8xf32>
    %111 = vector.broadcast %104 : vector<1x8xf32> to vector<6x8xf32>
    %112 = arith.addf %110, %111 : vector<6x8xf32>
    %cst_73 = arith.constant dense<0.000000e+00> : vector<6x8xf32>
    %113 = tpu.matmul %53, %98, %cst_73 {dimension_numbers = #tpu.dot_dimension_numbers<[1], [0], [0], [1], [0, 0, 1, 1], [], []>} : vector<6x32xf32>, vector<32x8xf32>, vector<6x8xf32> -> vector<6x8xf32>
    %114 = vector.broadcast %106 : vector<1x8xf32> to vector<6x8xf32>
    %115 = arith.addf %113, %114 : vector<6x8xf32>
    %cst_74 = arith.constant dense<0.000000e+00> : vector<6x6xf32>
    %116 = tpu.matmul %109, %112, %cst_74 {dimension_numbers = #tpu.dot_dimension_numbers<[1], [1], [0], [0], [0, 0, 1, 0], [], []>} : vector<6x8xf32>, vector<6x8xf32>, vector<6x6xf32> -> vector<6x6xf32>
    %cst_75 = arith.constant 0.353553385 : f32
    %117 = vector.broadcast %cst_75 : f32 to vector<6x6xf32>
    %118 = arith.mulf %116, %117 : vector<6x6xf32>
    %119 = arith.addf %118, %2 : vector<6x6xf32>
    %cst_76 = arith.constant dense<0xFF800000> : vector<6xf32>
    %120 = vector.multi_reduction <maximumf>, %119, %cst_76 [1] : vector<6x6xf32> to vector<6xf32>
    %121 = vector.shape_cast %120 : vector<6xf32> to vector<6x1xf32>
    %122 = vector.broadcast %121 : vector<6x1xf32> to vector<6x6xf32>
    %123 = arith.subf %119, %122 : vector<6x6xf32>
    %124 = math.exp %123 : vector<6x6xf32>
    %cst_77 = arith.constant dense<0.000000e+00> : vector<6xf32>
    %125 = vector.multi_reduction <add>, %124, %cst_77 [1] : vector<6x6xf32> to vector<6xf32>
    %126 = vector.shape_cast %125 : vector<6xf32> to vector<6x1xf32>
    %127 = tpu.reciprocal %126 {approx = true} : vector<6x1xf32> -> vector<6x1xf32>
    %128 = vector.broadcast %127 : vector<6x1xf32> to vector<6x6xf32>
    %129 = arith.mulf %124, %128 : vector<6x6xf32>
    %cst_78 = arith.constant dense<0.000000e+00> : vector<6x8xf32>
    %130 = tpu.matmul %129, %115, %cst_78 {dimension_numbers = #tpu.dot_dimension_numbers<[1], [0], [0], [1], [0, 0, 1, 1], [], []>} : vector<6x6xf32>, vector<6x8xf32>, vector<6x8xf32> -> vector<6x8xf32>
    %cst_79 = arith.constant dense<0.000000e+00> : vector<6x32xf32>
    %131 = tpu.matmul %130, %100, %cst_79 {dimension_numbers = #tpu.dot_dimension_numbers<[1], [0], [0], [1], [0, 0, 1, 1], [], []>} : vector<6x8xf32>, vector<8x32xf32>, vector<6x32xf32> -> vector<6x32xf32>
    %132 = arith.addf %92, %131 : vector<6x32xf32>
    %c0_80 = arith.constant 0 : index
    %c0_81 = arith.constant 0 : index
    %c16 = arith.constant 16 : index
    %133 = vector.load %arg3[%c0_80, %c0_81, %c16] : memref<24x32x32xf32, #tpu.memory_space<vmem>>, vector<1x32x8xf32>
    %134 = vector.shape_cast %133 : vector<1x32x8xf32> to vector<32x8xf32>
    %c1_82 = arith.constant 1 : index
    %c0_83 = arith.constant 0 : index
    %c16_84 = arith.constant 16 : index
    %135 = vector.load %arg3[%c1_82, %c0_83, %c16_84] : memref<24x32x32xf32, #tpu.memory_space<vmem>>, vector<1x32x8xf32>
    %136 = vector.shape_cast %135 : vector<1x32x8xf32> to vector<32x8xf32>
    %c2_85 = arith.constant 2 : index
    %c0_86 = arith.constant 0 : index
    %c16_87 = arith.constant 16 : index
    %137 = vector.load %arg3[%c2_85, %c0_86, %c16_87] : memref<24x32x32xf32, #tpu.memory_space<vmem>>, vector<1x32x8xf32>
    %138 = vector.shape_cast %137 : vector<1x32x8xf32> to vector<32x8xf32>
    %c3_88 = arith.constant 3 : index
    %c16_89 = arith.constant 16 : index
    %c0_90 = arith.constant 0 : index
    %139 = vector.load %arg3[%c3_88, %c16_89, %c0_90] : memref<24x32x32xf32, #tpu.memory_space<vmem>>, vector<1x8x32xf32>
    %140 = vector.shape_cast %139 : vector<1x8x32xf32> to vector<8x32xf32>
    %c0_91 = arith.constant 0 : index
    %c2_92 = arith.constant 2 : index
    %c0_93 = arith.constant 0 : index
    %141 = vector.load %arg5[%c0_91, %c2_92, %c0_93] : memref<18x4x8xf32, #tpu.memory_space<vmem>>, vector<1x1x8xf32>
    %142 = vector.shape_cast %141 : vector<1x1x8xf32> to vector<1x8xf32>
    %c1_94 = arith.constant 1 : index
    %c2_95 = arith.constant 2 : index
    %c0_96 = arith.constant 0 : index
    %143 = vector.load %arg5[%c1_94, %c2_95, %c0_96] : memref<18x4x8xf32, #tpu.memory_space<vmem>>, vector<1x1x8xf32>
    %144 = vector.shape_cast %143 : vector<1x1x8xf32> to vector<1x8xf32>
    %c2_97 = arith.constant 2 : index
    %c2_98 = arith.constant 2 : index
    %c0_99 = arith.constant 0 : index
    %145 = vector.load %arg5[%c2_97, %c2_98, %c0_99] : memref<18x4x8xf32, #tpu.memory_space<vmem>>, vector<1x1x8xf32>
    %146 = vector.shape_cast %145 : vector<1x1x8xf32> to vector<1x8xf32>
    %cst_100 = arith.constant dense<0.000000e+00> : vector<6x8xf32>
    %147 = tpu.matmul %53, %134, %cst_100 {dimension_numbers = #tpu.dot_dimension_numbers<[1], [0], [0], [1], [0, 0, 1, 1], [], []>} : vector<6x32xf32>, vector<32x8xf32>, vector<6x8xf32> -> vector<6x8xf32>
    %148 = vector.broadcast %142 : vector<1x8xf32> to vector<6x8xf32>
    %149 = arith.addf %147, %148 : vector<6x8xf32>
    %cst_101 = arith.constant dense<0.000000e+00> : vector<6x8xf32>
    %150 = tpu.matmul %53, %136, %cst_101 {dimension_numbers = #tpu.dot_dimension_numbers<[1], [0], [0], [1], [0, 0, 1, 1], [], []>} : vector<6x32xf32>, vector<32x8xf32>, vector<6x8xf32> -> vector<6x8xf32>
    %151 = vector.broadcast %144 : vector<1x8xf32> to vector<6x8xf32>
    %152 = arith.addf %150, %151 : vector<6x8xf32>
    %cst_102 = arith.constant dense<0.000000e+00> : vector<6x8xf32>
    %153 = tpu.matmul %53, %138, %cst_102 {dimension_numbers = #tpu.dot_dimension_numbers<[1], [0], [0], [1], [0, 0, 1, 1], [], []>} : vector<6x32xf32>, vector<32x8xf32>, vector<6x8xf32> -> vector<6x8xf32>
    %154 = vector.broadcast %146 : vector<1x8xf32> to vector<6x8xf32>
    %155 = arith.addf %153, %154 : vector<6x8xf32>
    %cst_103 = arith.constant dense<0.000000e+00> : vector<6x6xf32>
    %156 = tpu.matmul %149, %152, %cst_103 {dimension_numbers = #tpu.dot_dimension_numbers<[1], [1], [0], [0], [0, 0, 1, 0], [], []>} : vector<6x8xf32>, vector<6x8xf32>, vector<6x6xf32> -> vector<6x6xf32>
    %cst_104 = arith.constant 0.353553385 : f32
    %157 = vector.broadcast %cst_104 : f32 to vector<6x6xf32>
    %158 = arith.mulf %156, %157 : vector<6x6xf32>
    %159 = arith.addf %158, %2 : vector<6x6xf32>
    %cst_105 = arith.constant dense<0xFF800000> : vector<6xf32>
    %160 = vector.multi_reduction <maximumf>, %159, %cst_105 [1] : vector<6x6xf32> to vector<6xf32>
    %161 = vector.shape_cast %160 : vector<6xf32> to vector<6x1xf32>
    %162 = vector.broadcast %161 : vector<6x1xf32> to vector<6x6xf32>
    %163 = arith.subf %159, %162 : vector<6x6xf32>
    %164 = math.exp %163 : vector<6x6xf32>
    %cst_106 = arith.constant dense<0.000000e+00> : vector<6xf32>
    %165 = vector.multi_reduction <add>, %164, %cst_106 [1] : vector<6x6xf32> to vector<6xf32>
    %166 = vector.shape_cast %165 : vector<6xf32> to vector<6x1xf32>
    %167 = tpu.reciprocal %166 {approx = true} : vector<6x1xf32> -> vector<6x1xf32>
    %168 = vector.broadcast %167 : vector<6x1xf32> to vector<6x6xf32>
    %169 = arith.mulf %164, %168 : vector<6x6xf32>
    %cst_107 = arith.constant dense<0.000000e+00> : vector<6x8xf32>
    %170 = tpu.matmul %169, %155, %cst_107 {dimension_numbers = #tpu.dot_dimension_numbers<[1], [0], [0], [1], [0, 0, 1, 1], [], []>} : vector<6x6xf32>, vector<6x8xf32>, vector<6x8xf32> -> vector<6x8xf32>
    %cst_108 = arith.constant dense<0.000000e+00> : vector<6x32xf32>
    %171 = tpu.matmul %170, %140, %cst_108 {dimension_numbers = #tpu.dot_dimension_numbers<[1], [0], [0], [1], [0, 0, 1, 1], [], []>} : vector<6x8xf32>, vector<8x32xf32>, vector<6x32xf32> -> vector<6x32xf32>
    %172 = arith.addf %132, %171 : vector<6x32xf32>
    %c0_109 = arith.constant 0 : index
    %c0_110 = arith.constant 0 : index
    %c24 = arith.constant 24 : index
    %173 = vector.load %arg3[%c0_109, %c0_110, %c24] : memref<24x32x32xf32, #tpu.memory_space<vmem>>, vector<1x32x8xf32>
    %174 = vector.shape_cast %173 : vector<1x32x8xf32> to vector<32x8xf32>
    %c1_111 = arith.constant 1 : index
    %c0_112 = arith.constant 0 : index
    %c24_113 = arith.constant 24 : index
    %175 = vector.load %arg3[%c1_111, %c0_112, %c24_113] : memref<24x32x32xf32, #tpu.memory_space<vmem>>, vector<1x32x8xf32>
    %176 = vector.shape_cast %175 : vector<1x32x8xf32> to vector<32x8xf32>
    %c2_114 = arith.constant 2 : index
    %c0_115 = arith.constant 0 : index
    %c24_116 = arith.constant 24 : index
    %177 = vector.load %arg3[%c2_114, %c0_115, %c24_116] : memref<24x32x32xf32, #tpu.memory_space<vmem>>, vector<1x32x8xf32>
    %178 = vector.shape_cast %177 : vector<1x32x8xf32> to vector<32x8xf32>
    %c3_117 = arith.constant 3 : index
    %c24_118 = arith.constant 24 : index
    %c0_119 = arith.constant 0 : index
    %179 = vector.load %arg3[%c3_117, %c24_118, %c0_119] : memref<24x32x32xf32, #tpu.memory_space<vmem>>, vector<1x8x32xf32>
    %180 = vector.shape_cast %179 : vector<1x8x32xf32> to vector<8x32xf32>
    %c0_120 = arith.constant 0 : index
    %c3_121 = arith.constant 3 : index
    %c0_122 = arith.constant 0 : index
    %181 = vector.load %arg5[%c0_120, %c3_121, %c0_122] : memref<18x4x8xf32, #tpu.memory_space<vmem>>, vector<1x1x8xf32>
    %182 = vector.shape_cast %181 : vector<1x1x8xf32> to vector<1x8xf32>
    %c1_123 = arith.constant 1 : index
    %c3_124 = arith.constant 3 : index
    %c0_125 = arith.constant 0 : index
    %183 = vector.load %arg5[%c1_123, %c3_124, %c0_125] : memref<18x4x8xf32, #tpu.memory_space<vmem>>, vector<1x1x8xf32>
    %184 = vector.shape_cast %183 : vector<1x1x8xf32> to vector<1x8xf32>
    %c2_126 = arith.constant 2 : index
    %c3_127 = arith.constant 3 : index
    %c0_128 = arith.constant 0 : index
    %185 = vector.load %arg5[%c2_126, %c3_127, %c0_128] : memref<18x4x8xf32, #tpu.memory_space<vmem>>, vector<1x1x8xf32>
    %186 = vector.shape_cast %185 : vector<1x1x8xf32> to vector<1x8xf32>
    %cst_129 = arith.constant dense<0.000000e+00> : vector<6x8xf32>
    %187 = tpu.matmul %53, %174, %cst_129 {dimension_numbers = #tpu.dot_dimension_numbers<[1], [0], [0], [1], [0, 0, 1, 1], [], []>} : vector<6x32xf32>, vector<32x8xf32>, vector<6x8xf32> -> vector<6x8xf32>
    %188 = vector.broadcast %182 : vector<1x8xf32> to vector<6x8xf32>
    %189 = arith.addf %187, %188 : vector<6x8xf32>
    %cst_130 = arith.constant dense<0.000000e+00> : vector<6x8xf32>
    %190 = tpu.matmul %53, %176, %cst_130 {dimension_numbers = #tpu.dot_dimension_numbers<[1], [0], [0], [1], [0, 0, 1, 1], [], []>} : vector<6x32xf32>, vector<32x8xf32>, vector<6x8xf32> -> vector<6x8xf32>
    %191 = vector.broadcast %184 : vector<1x8xf32> to vector<6x8xf32>
    %192 = arith.addf %190, %191 : vector<6x8xf32>
    %cst_131 = arith.constant dense<0.000000e+00> : vector<6x8xf32>
    %193 = tpu.matmul %53, %178, %cst_131 {dimension_numbers = #tpu.dot_dimension_numbers<[1], [0], [0], [1], [0, 0, 1, 1], [], []>} : vector<6x32xf32>, vector<32x8xf32>, vector<6x8xf32> -> vector<6x8xf32>
    %194 = vector.broadcast %186 : vector<1x8xf32> to vector<6x8xf32>
    %195 = arith.addf %193, %194 : vector<6x8xf32>
    %cst_132 = arith.constant dense<0.000000e+00> : vector<6x6xf32>
    %196 = tpu.matmul %189, %192, %cst_132 {dimension_numbers = #tpu.dot_dimension_numbers<[1], [1], [0], [0], [0, 0, 1, 0], [], []>} : vector<6x8xf32>, vector<6x8xf32>, vector<6x6xf32> -> vector<6x6xf32>
    %cst_133 = arith.constant 0.353553385 : f32
    %197 = vector.broadcast %cst_133 : f32 to vector<6x6xf32>
    %198 = arith.mulf %196, %197 : vector<6x6xf32>
    %199 = arith.addf %198, %2 : vector<6x6xf32>
    %cst_134 = arith.constant dense<0xFF800000> : vector<6xf32>
    %200 = vector.multi_reduction <maximumf>, %199, %cst_134 [1] : vector<6x6xf32> to vector<6xf32>
    %201 = vector.shape_cast %200 : vector<6xf32> to vector<6x1xf32>
    %202 = vector.broadcast %201 : vector<6x1xf32> to vector<6x6xf32>
    %203 = arith.subf %199, %202 : vector<6x6xf32>
    %204 = math.exp %203 : vector<6x6xf32>
    %cst_135 = arith.constant dense<0.000000e+00> : vector<6xf32>
    %205 = vector.multi_reduction <add>, %204, %cst_135 [1] : vector<6x6xf32> to vector<6xf32>
    %206 = vector.shape_cast %205 : vector<6xf32> to vector<6x1xf32>
    %207 = tpu.reciprocal %206 {approx = true} : vector<6x1xf32> -> vector<6x1xf32>
    %208 = vector.broadcast %207 : vector<6x1xf32> to vector<6x6xf32>
    %209 = arith.mulf %204, %208 : vector<6x6xf32>
    %cst_136 = arith.constant dense<0.000000e+00> : vector<6x8xf32>
    %210 = tpu.matmul %209, %195, %cst_136 {dimension_numbers = #tpu.dot_dimension_numbers<[1], [0], [0], [1], [0, 0, 1, 1], [], []>} : vector<6x6xf32>, vector<6x8xf32>, vector<6x8xf32> -> vector<6x8xf32>
    %cst_137 = arith.constant dense<0.000000e+00> : vector<6x32xf32>
    %211 = tpu.matmul %210, %180, %cst_137 {dimension_numbers = #tpu.dot_dimension_numbers<[1], [0], [0], [1], [0, 0, 1, 1], [], []>} : vector<6x8xf32>, vector<8x32xf32>, vector<6x32xf32> -> vector<6x32xf32>
    %212 = arith.addf %172, %211 : vector<6x32xf32>
    %c10 = arith.constant 10 : index
    %c0_138 = arith.constant 0 : index
    %213 = vector.load %arg6[%c10, %c0_138] : memref<34x64xf32, #tpu.memory_space<vmem>>, vector<1x32xf32>
    %214 = vector.broadcast %213 : vector<1x32xf32> to vector<6x32xf32>
    %215 = arith.addf %212, %214 : vector<6x32xf32>
    %216 = arith.addf %0, %215 : vector<6x32xf32>
    %c6 = arith.constant 6 : index
    %c0_139 = arith.constant 0 : index
    %217 = vector.load %arg6[%c6, %c0_139] : memref<34x64xf32, #tpu.memory_space<vmem>>, vector<1x32xf32>
    %c7 = arith.constant 7 : index
    %c0_140 = arith.constant 0 : index
    %218 = vector.load %arg6[%c7, %c0_140] : memref<34x64xf32, #tpu.memory_space<vmem>>, vector<1x32xf32>
    %cst_141 = arith.constant dense<0.000000e+00> : vector<6xf32>
    %219 = vector.multi_reduction <add>, %216, %cst_141 [1] : vector<6x32xf32> to vector<6xf32>
    %220 = vector.shape_cast %219 : vector<6xf32> to vector<6x1xf32>
    %221 = arith.mulf %216, %216 : vector<6x32xf32>
    %cst_142 = arith.constant dense<0.000000e+00> : vector<6xf32>
    %222 = vector.multi_reduction <add>, %221, %cst_142 [1] : vector<6x32xf32> to vector<6xf32>
    %223 = vector.shape_cast %222 : vector<6xf32> to vector<6x1xf32>
    %cst_143 = arith.constant 3.125000e-02 : f32
    %224 = vector.broadcast %cst_143 : f32 to vector<6x1xf32>
    %225 = arith.mulf %220, %224 : vector<6x1xf32>
    %cst_144 = arith.constant 3.125000e-02 : f32
    %226 = vector.broadcast %cst_144 : f32 to vector<6x1xf32>
    %227 = arith.mulf %223, %226 : vector<6x1xf32>
    %228 = arith.mulf %225, %225 : vector<6x1xf32>
    %229 = arith.subf %227, %228 : vector<6x1xf32>
    %230 = vector.broadcast %225 : vector<6x1xf32> to vector<6x32xf32>
    %231 = arith.subf %216, %230 : vector<6x32xf32>
    %cst_145 = arith.constant 9.99999974E-6 : f32
    %232 = vector.broadcast %cst_145 : f32 to vector<6x1xf32>
    %233 = arith.addf %229, %232 : vector<6x1xf32>
    %234 = math.rsqrt %233 : vector<6x1xf32>
    %235 = vector.broadcast %234 : vector<6x1xf32> to vector<6x32xf32>
    %236 = arith.mulf %231, %235 : vector<6x32xf32>
    %237 = vector.broadcast %217 : vector<1x32xf32> to vector<6x32xf32>
    %238 = arith.mulf %236, %237 : vector<6x32xf32>
    %239 = vector.broadcast %218 : vector<1x32xf32> to vector<6x32xf32>
    %240 = arith.addf %238, %239 : vector<6x32xf32>
    %c4_146 = arith.constant 4 : index
    %c0_147 = arith.constant 0 : index
    %c0_148 = arith.constant 0 : index
    %241 = vector.load %arg3[%c4_146, %c0_147, %c0_148] : memref<24x32x32xf32, #tpu.memory_space<vmem>>, vector<1x32x8xf32>
    %242 = vector.shape_cast %241 : vector<1x32x8xf32> to vector<32x8xf32>
    %c5_149 = arith.constant 5 : index
    %c0_150 = arith.constant 0 : index
    %c0_151 = arith.constant 0 : index
    %243 = vector.load %arg3[%c5_149, %c0_150, %c0_151] : memref<24x32x32xf32, #tpu.memory_space<vmem>>, vector<1x32x8xf32>
    %244 = vector.shape_cast %243 : vector<1x32x8xf32> to vector<32x8xf32>
    %c6_152 = arith.constant 6 : index
    %c0_153 = arith.constant 0 : index
    %c0_154 = arith.constant 0 : index
    %245 = vector.load %arg3[%c6_152, %c0_153, %c0_154] : memref<24x32x32xf32, #tpu.memory_space<vmem>>, vector<1x32x8xf32>
    %246 = vector.shape_cast %245 : vector<1x32x8xf32> to vector<32x8xf32>
    %c7_155 = arith.constant 7 : index
    %c0_156 = arith.constant 0 : index
    %c0_157 = arith.constant 0 : index
    %247 = vector.load %arg3[%c7_155, %c0_156, %c0_157] : memref<24x32x32xf32, #tpu.memory_space<vmem>>, vector<1x8x32xf32>
    %248 = vector.shape_cast %247 : vector<1x8x32xf32> to vector<8x32xf32>
    %c3_158 = arith.constant 3 : index
    %c0_159 = arith.constant 0 : index
    %c0_160 = arith.constant 0 : index
    %249 = vector.load %arg5[%c3_158, %c0_159, %c0_160] : memref<18x4x8xf32, #tpu.memory_space<vmem>>, vector<1x1x8xf32>
    %250 = vector.shape_cast %249 : vector<1x1x8xf32> to vector<1x8xf32>
    %c4_161 = arith.constant 4 : index
    %c0_162 = arith.constant 0 : index
    %c0_163 = arith.constant 0 : index
    %251 = vector.load %arg5[%c4_161, %c0_162, %c0_163] : memref<18x4x8xf32, #tpu.memory_space<vmem>>, vector<1x1x8xf32>
    %252 = vector.shape_cast %251 : vector<1x1x8xf32> to vector<1x8xf32>
    %c5_164 = arith.constant 5 : index
    %c0_165 = arith.constant 0 : index
    %c0_166 = arith.constant 0 : index
    %253 = vector.load %arg5[%c5_164, %c0_165, %c0_166] : memref<18x4x8xf32, #tpu.memory_space<vmem>>, vector<1x1x8xf32>
    %254 = vector.shape_cast %253 : vector<1x1x8xf32> to vector<1x8xf32>
    %cst_167 = arith.constant dense<0.000000e+00> : vector<6x8xf32>
    %255 = tpu.matmul %240, %242, %cst_167 {dimension_numbers = #tpu.dot_dimension_numbers<[1], [0], [0], [1], [0, 0, 1, 1], [], []>} : vector<6x32xf32>, vector<32x8xf32>, vector<6x8xf32> -> vector<6x8xf32>
    %256 = vector.broadcast %250 : vector<1x8xf32> to vector<6x8xf32>
    %257 = arith.addf %255, %256 : vector<6x8xf32>
    %cst_168 = arith.constant dense<0.000000e+00> : vector<16x8xf32>
    %258 = tpu.matmul %29, %244, %cst_168 {dimension_numbers = #tpu.dot_dimension_numbers<[1], [0], [0], [1], [0, 0, 1, 1], [], []>} : vector<16x32xf32>, vector<32x8xf32>, vector<16x8xf32> -> vector<16x8xf32>
    %259 = vector.broadcast %252 : vector<1x8xf32> to vector<16x8xf32>
    %260 = arith.addf %258, %259 : vector<16x8xf32>
    %cst_169 = arith.constant dense<0.000000e+00> : vector<16x8xf32>
    %261 = tpu.matmul %29, %246, %cst_169 {dimension_numbers = #tpu.dot_dimension_numbers<[1], [0], [0], [1], [0, 0, 1, 1], [], []>} : vector<16x32xf32>, vector<32x8xf32>, vector<16x8xf32> -> vector<16x8xf32>
    %262 = vector.broadcast %254 : vector<1x8xf32> to vector<16x8xf32>
    %263 = arith.addf %261, %262 : vector<16x8xf32>
    %cst_170 = arith.constant dense<0.000000e+00> : vector<6x16xf32>
    %264 = tpu.matmul %257, %260, %cst_170 {dimension_numbers = #tpu.dot_dimension_numbers<[1], [1], [0], [0], [0, 0, 1, 0], [], []>} : vector<6x8xf32>, vector<16x8xf32>, vector<6x16xf32> -> vector<6x16xf32>
    %cst_171 = arith.constant 0.353553385 : f32
    %265 = vector.broadcast %cst_171 : f32 to vector<6x16xf32>
    %266 = arith.mulf %264, %265 : vector<6x16xf32>
    %267 = arith.addf %266, %4 : vector<6x16xf32>
    %cst_172 = arith.constant dense<0xFF800000> : vector<6xf32>
    %268 = vector.multi_reduction <maximumf>, %267, %cst_172 [1] : vector<6x16xf32> to vector<6xf32>
    %269 = vector.shape_cast %268 : vector<6xf32> to vector<6x1xf32>
    %270 = vector.broadcast %269 : vector<6x1xf32> to vector<6x16xf32>
    %271 = arith.subf %267, %270 : vector<6x16xf32>
    %272 = math.exp %271 : vector<6x16xf32>
    %cst_173 = arith.constant dense<0.000000e+00> : vector<6xf32>
    %273 = vector.multi_reduction <add>, %272, %cst_173 [1] : vector<6x16xf32> to vector<6xf32>
    %274 = vector.shape_cast %273 : vector<6xf32> to vector<6x1xf32>
    %275 = tpu.reciprocal %274 {approx = true} : vector<6x1xf32> -> vector<6x1xf32>
    %276 = vector.broadcast %275 : vector<6x1xf32> to vector<6x16xf32>
    %277 = arith.mulf %272, %276 : vector<6x16xf32>
    %cst_174 = arith.constant dense<0.000000e+00> : vector<6x8xf32>
    %278 = tpu.matmul %277, %263, %cst_174 {dimension_numbers = #tpu.dot_dimension_numbers<[1], [0], [0], [1], [0, 0, 1, 1], [], []>} : vector<6x16xf32>, vector<16x8xf32>, vector<6x8xf32> -> vector<6x8xf32>
    %cst_175 = arith.constant dense<0.000000e+00> : vector<6x32xf32>
    %279 = tpu.matmul %278, %248, %cst_175 {dimension_numbers = #tpu.dot_dimension_numbers<[1], [0], [0], [1], [0, 0, 1, 1], [], []>} : vector<6x8xf32>, vector<8x32xf32>, vector<6x32xf32> -> vector<6x32xf32>
    %c4_176 = arith.constant 4 : index
    %c0_177 = arith.constant 0 : index
    %c8_178 = arith.constant 8 : index
    %280 = vector.load %arg3[%c4_176, %c0_177, %c8_178] : memref<24x32x32xf32, #tpu.memory_space<vmem>>, vector<1x32x8xf32>
    %281 = vector.shape_cast %280 : vector<1x32x8xf32> to vector<32x8xf32>
    %c5_179 = arith.constant 5 : index
    %c0_180 = arith.constant 0 : index
    %c8_181 = arith.constant 8 : index
    %282 = vector.load %arg3[%c5_179, %c0_180, %c8_181] : memref<24x32x32xf32, #tpu.memory_space<vmem>>, vector<1x32x8xf32>
    %283 = vector.shape_cast %282 : vector<1x32x8xf32> to vector<32x8xf32>
    %c6_182 = arith.constant 6 : index
    %c0_183 = arith.constant 0 : index
    %c8_184 = arith.constant 8 : index
    %284 = vector.load %arg3[%c6_182, %c0_183, %c8_184] : memref<24x32x32xf32, #tpu.memory_space<vmem>>, vector<1x32x8xf32>
    %285 = vector.shape_cast %284 : vector<1x32x8xf32> to vector<32x8xf32>
    %c7_185 = arith.constant 7 : index
    %c8_186 = arith.constant 8 : index
    %c0_187 = arith.constant 0 : index
    %286 = vector.load %arg3[%c7_185, %c8_186, %c0_187] : memref<24x32x32xf32, #tpu.memory_space<vmem>>, vector<1x8x32xf32>
    %287 = vector.shape_cast %286 : vector<1x8x32xf32> to vector<8x32xf32>
    %c3_188 = arith.constant 3 : index
    %c1_189 = arith.constant 1 : index
    %c0_190 = arith.constant 0 : index
    %288 = vector.load %arg5[%c3_188, %c1_189, %c0_190] : memref<18x4x8xf32, #tpu.memory_space<vmem>>, vector<1x1x8xf32>
    %289 = vector.shape_cast %288 : vector<1x1x8xf32> to vector<1x8xf32>
    %c4_191 = arith.constant 4 : index
    %c1_192 = arith.constant 1 : index
    %c0_193 = arith.constant 0 : index
    %290 = vector.load %arg5[%c4_191, %c1_192, %c0_193] : memref<18x4x8xf32, #tpu.memory_space<vmem>>, vector<1x1x8xf32>
    %291 = vector.shape_cast %290 : vector<1x1x8xf32> to vector<1x8xf32>
    %c5_194 = arith.constant 5 : index
    %c1_195 = arith.constant 1 : index
    %c0_196 = arith.constant 0 : index
    %292 = vector.load %arg5[%c5_194, %c1_195, %c0_196] : memref<18x4x8xf32, #tpu.memory_space<vmem>>, vector<1x1x8xf32>
    %293 = vector.shape_cast %292 : vector<1x1x8xf32> to vector<1x8xf32>
    %cst_197 = arith.constant dense<0.000000e+00> : vector<6x8xf32>
    %294 = tpu.matmul %240, %281, %cst_197 {dimension_numbers = #tpu.dot_dimension_numbers<[1], [0], [0], [1], [0, 0, 1, 1], [], []>} : vector<6x32xf32>, vector<32x8xf32>, vector<6x8xf32> -> vector<6x8xf32>
    %295 = vector.broadcast %289 : vector<1x8xf32> to vector<6x8xf32>
    %296 = arith.addf %294, %295 : vector<6x8xf32>
    %cst_198 = arith.constant dense<0.000000e+00> : vector<16x8xf32>
    %297 = tpu.matmul %29, %283, %cst_198 {dimension_numbers = #tpu.dot_dimension_numbers<[1], [0], [0], [1], [0, 0, 1, 1], [], []>} : vector<16x32xf32>, vector<32x8xf32>, vector<16x8xf32> -> vector<16x8xf32>
    %298 = vector.broadcast %291 : vector<1x8xf32> to vector<16x8xf32>
    %299 = arith.addf %297, %298 : vector<16x8xf32>
    %cst_199 = arith.constant dense<0.000000e+00> : vector<16x8xf32>
    %300 = tpu.matmul %29, %285, %cst_199 {dimension_numbers = #tpu.dot_dimension_numbers<[1], [0], [0], [1], [0, 0, 1, 1], [], []>} : vector<16x32xf32>, vector<32x8xf32>, vector<16x8xf32> -> vector<16x8xf32>
    %301 = vector.broadcast %293 : vector<1x8xf32> to vector<16x8xf32>
    %302 = arith.addf %300, %301 : vector<16x8xf32>
    %cst_200 = arith.constant dense<0.000000e+00> : vector<6x16xf32>
    %303 = tpu.matmul %296, %299, %cst_200 {dimension_numbers = #tpu.dot_dimension_numbers<[1], [1], [0], [0], [0, 0, 1, 0], [], []>} : vector<6x8xf32>, vector<16x8xf32>, vector<6x16xf32> -> vector<6x16xf32>
    %cst_201 = arith.constant 0.353553385 : f32
    %304 = vector.broadcast %cst_201 : f32 to vector<6x16xf32>
    %305 = arith.mulf %303, %304 : vector<6x16xf32>
    %306 = arith.addf %305, %4 : vector<6x16xf32>
    %cst_202 = arith.constant dense<0xFF800000> : vector<6xf32>
    %307 = vector.multi_reduction <maximumf>, %306, %cst_202 [1] : vector<6x16xf32> to vector<6xf32>
    %308 = vector.shape_cast %307 : vector<6xf32> to vector<6x1xf32>
    %309 = vector.broadcast %308 : vector<6x1xf32> to vector<6x16xf32>
    %310 = arith.subf %306, %309 : vector<6x16xf32>
    %311 = math.exp %310 : vector<6x16xf32>
    %cst_203 = arith.constant dense<0.000000e+00> : vector<6xf32>
    %312 = vector.multi_reduction <add>, %311, %cst_203 [1] : vector<6x16xf32> to vector<6xf32>
    %313 = vector.shape_cast %312 : vector<6xf32> to vector<6x1xf32>
    %314 = tpu.reciprocal %313 {approx = true} : vector<6x1xf32> -> vector<6x1xf32>
    %315 = vector.broadcast %314 : vector<6x1xf32> to vector<6x16xf32>
    %316 = arith.mulf %311, %315 : vector<6x16xf32>
    %cst_204 = arith.constant dense<0.000000e+00> : vector<6x8xf32>
    %317 = tpu.matmul %316, %302, %cst_204 {dimension_numbers = #tpu.dot_dimension_numbers<[1], [0], [0], [1], [0, 0, 1, 1], [], []>} : vector<6x16xf32>, vector<16x8xf32>, vector<6x8xf32> -> vector<6x8xf32>
    %cst_205 = arith.constant dense<0.000000e+00> : vector<6x32xf32>
    %318 = tpu.matmul %317, %287, %cst_205 {dimension_numbers = #tpu.dot_dimension_numbers<[1], [0], [0], [1], [0, 0, 1, 1], [], []>} : vector<6x8xf32>, vector<8x32xf32>, vector<6x32xf32> -> vector<6x32xf32>
    %319 = arith.addf %279, %318 : vector<6x32xf32>
    %c4_206 = arith.constant 4 : index
    %c0_207 = arith.constant 0 : index
    %c16_208 = arith.constant 16 : index
    %320 = vector.load %arg3[%c4_206, %c0_207, %c16_208] : memref<24x32x32xf32, #tpu.memory_space<vmem>>, vector<1x32x8xf32>
    %321 = vector.shape_cast %320 : vector<1x32x8xf32> to vector<32x8xf32>
    %c5_209 = arith.constant 5 : index
    %c0_210 = arith.constant 0 : index
    %c16_211 = arith.constant 16 : index
    %322 = vector.load %arg3[%c5_209, %c0_210, %c16_211] : memref<24x32x32xf32, #tpu.memory_space<vmem>>, vector<1x32x8xf32>
    %323 = vector.shape_cast %322 : vector<1x32x8xf32> to vector<32x8xf32>
    %c6_212 = arith.constant 6 : index
    %c0_213 = arith.constant 0 : index
    %c16_214 = arith.constant 16 : index
    %324 = vector.load %arg3[%c6_212, %c0_213, %c16_214] : memref<24x32x32xf32, #tpu.memory_space<vmem>>, vector<1x32x8xf32>
    %325 = vector.shape_cast %324 : vector<1x32x8xf32> to vector<32x8xf32>
    %c7_215 = arith.constant 7 : index
    %c16_216 = arith.constant 16 : index
    %c0_217 = arith.constant 0 : index
    %326 = vector.load %arg3[%c7_215, %c16_216, %c0_217] : memref<24x32x32xf32, #tpu.memory_space<vmem>>, vector<1x8x32xf32>
    %327 = vector.shape_cast %326 : vector<1x8x32xf32> to vector<8x32xf32>
    %c3_218 = arith.constant 3 : index
    %c2_219 = arith.constant 2 : index
    %c0_220 = arith.constant 0 : index
    %328 = vector.load %arg5[%c3_218, %c2_219, %c0_220] : memref<18x4x8xf32, #tpu.memory_space<vmem>>, vector<1x1x8xf32>
    %329 = vector.shape_cast %328 : vector<1x1x8xf32> to vector<1x8xf32>
    %c4_221 = arith.constant 4 : index
    %c2_222 = arith.constant 2 : index
    %c0_223 = arith.constant 0 : index
    %330 = vector.load %arg5[%c4_221, %c2_222, %c0_223] : memref<18x4x8xf32, #tpu.memory_space<vmem>>, vector<1x1x8xf32>
    %331 = vector.shape_cast %330 : vector<1x1x8xf32> to vector<1x8xf32>
    %c5_224 = arith.constant 5 : index
    %c2_225 = arith.constant 2 : index
    %c0_226 = arith.constant 0 : index
    %332 = vector.load %arg5[%c5_224, %c2_225, %c0_226] : memref<18x4x8xf32, #tpu.memory_space<vmem>>, vector<1x1x8xf32>
    %333 = vector.shape_cast %332 : vector<1x1x8xf32> to vector<1x8xf32>
    %cst_227 = arith.constant dense<0.000000e+00> : vector<6x8xf32>
    %334 = tpu.matmul %240, %321, %cst_227 {dimension_numbers = #tpu.dot_dimension_numbers<[1], [0], [0], [1], [0, 0, 1, 1], [], []>} : vector<6x32xf32>, vector<32x8xf32>, vector<6x8xf32> -> vector<6x8xf32>
    %335 = vector.broadcast %329 : vector<1x8xf32> to vector<6x8xf32>
    %336 = arith.addf %334, %335 : vector<6x8xf32>
    %cst_228 = arith.constant dense<0.000000e+00> : vector<16x8xf32>
    %337 = tpu.matmul %29, %323, %cst_228 {dimension_numbers = #tpu.dot_dimension_numbers<[1], [0], [0], [1], [0, 0, 1, 1], [], []>} : vector<16x32xf32>, vector<32x8xf32>, vector<16x8xf32> -> vector<16x8xf32>
    %338 = vector.broadcast %331 : vector<1x8xf32> to vector<16x8xf32>
    %339 = arith.addf %337, %338 : vector<16x8xf32>
    %cst_229 = arith.constant dense<0.000000e+00> : vector<16x8xf32>
    %340 = tpu.matmul %29, %325, %cst_229 {dimension_numbers = #tpu.dot_dimension_numbers<[1], [0], [0], [1], [0, 0, 1, 1], [], []>} : vector<16x32xf32>, vector<32x8xf32>, vector<16x8xf32> -> vector<16x8xf32>
    %341 = vector.broadcast %333 : vector<1x8xf32> to vector<16x8xf32>
    %342 = arith.addf %340, %341 : vector<16x8xf32>
    %cst_230 = arith.constant dense<0.000000e+00> : vector<6x16xf32>
    %343 = tpu.matmul %336, %339, %cst_230 {dimension_numbers = #tpu.dot_dimension_numbers<[1], [1], [0], [0], [0, 0, 1, 0], [], []>} : vector<6x8xf32>, vector<16x8xf32>, vector<6x16xf32> -> vector<6x16xf32>
    %cst_231 = arith.constant 0.353553385 : f32
    %344 = vector.broadcast %cst_231 : f32 to vector<6x16xf32>
    %345 = arith.mulf %343, %344 : vector<6x16xf32>
    %346 = arith.addf %345, %4 : vector<6x16xf32>
    %cst_232 = arith.constant dense<0xFF800000> : vector<6xf32>
    %347 = vector.multi_reduction <maximumf>, %346, %cst_232 [1] : vector<6x16xf32> to vector<6xf32>
    %348 = vector.shape_cast %347 : vector<6xf32> to vector<6x1xf32>
    %349 = vector.broadcast %348 : vector<6x1xf32> to vector<6x16xf32>
    %350 = arith.subf %346, %349 : vector<6x16xf32>
    %351 = math.exp %350 : vector<6x16xf32>
    %cst_233 = arith.constant dense<0.000000e+00> : vector<6xf32>
    %352 = vector.multi_reduction <add>, %351, %cst_233 [1] : vector<6x16xf32> to vector<6xf32>
    %353 = vector.shape_cast %352 : vector<6xf32> to vector<6x1xf32>
    %354 = tpu.reciprocal %353 {approx = true} : vector<6x1xf32> -> vector<6x1xf32>
    %355 = vector.broadcast %354 : vector<6x1xf32> to vector<6x16xf32>
    %356 = arith.mulf %351, %355 : vector<6x16xf32>
    %cst_234 = arith.constant dense<0.000000e+00> : vector<6x8xf32>
    %357 = tpu.matmul %356, %342, %cst_234 {dimension_numbers = #tpu.dot_dimension_numbers<[1], [0], [0], [1], [0, 0, 1, 1], [], []>} : vector<6x16xf32>, vector<16x8xf32>, vector<6x8xf32> -> vector<6x8xf32>
    %cst_235 = arith.constant dense<0.000000e+00> : vector<6x32xf32>
    %358 = tpu.matmul %357, %327, %cst_235 {dimension_numbers = #tpu.dot_dimension_numbers<[1], [0], [0], [1], [0, 0, 1, 1], [], []>} : vector<6x8xf32>, vector<8x32xf32>, vector<6x32xf32> -> vector<6x32xf32>
    %359 = arith.addf %319, %358 : vector<6x32xf32>
    %c4_236 = arith.constant 4 : index
    %c0_237 = arith.constant 0 : index
    %c24_238 = arith.constant 24 : index
    %360 = vector.load %arg3[%c4_236, %c0_237, %c24_238] : memref<24x32x32xf32, #tpu.memory_space<vmem>>, vector<1x32x8xf32>
    %361 = vector.shape_cast %360 : vector<1x32x8xf32> to vector<32x8xf32>
    %c5_239 = arith.constant 5 : index
    %c0_240 = arith.constant 0 : index
    %c24_241 = arith.constant 24 : index
    %362 = vector.load %arg3[%c5_239, %c0_240, %c24_241] : memref<24x32x32xf32, #tpu.memory_space<vmem>>, vector<1x32x8xf32>
    %363 = vector.shape_cast %362 : vector<1x32x8xf32> to vector<32x8xf32>
    %c6_242 = arith.constant 6 : index
    %c0_243 = arith.constant 0 : index
    %c24_244 = arith.constant 24 : index
    %364 = vector.load %arg3[%c6_242, %c0_243, %c24_244] : memref<24x32x32xf32, #tpu.memory_space<vmem>>, vector<1x32x8xf32>
    %365 = vector.shape_cast %364 : vector<1x32x8xf32> to vector<32x8xf32>
    %c7_245 = arith.constant 7 : index
    %c24_246 = arith.constant 24 : index
    %c0_247 = arith.constant 0 : index
    %366 = vector.load %arg3[%c7_245, %c24_246, %c0_247] : memref<24x32x32xf32, #tpu.memory_space<vmem>>, vector<1x8x32xf32>
    %367 = vector.shape_cast %366 : vector<1x8x32xf32> to vector<8x32xf32>
    %c3_248 = arith.constant 3 : index
    %c3_249 = arith.constant 3 : index
    %c0_250 = arith.constant 0 : index
    %368 = vector.load %arg5[%c3_248, %c3_249, %c0_250] : memref<18x4x8xf32, #tpu.memory_space<vmem>>, vector<1x1x8xf32>
    %369 = vector.shape_cast %368 : vector<1x1x8xf32> to vector<1x8xf32>
    %c4_251 = arith.constant 4 : index
    %c3_252 = arith.constant 3 : index
    %c0_253 = arith.constant 0 : index
    %370 = vector.load %arg5[%c4_251, %c3_252, %c0_253] : memref<18x4x8xf32, #tpu.memory_space<vmem>>, vector<1x1x8xf32>
    %371 = vector.shape_cast %370 : vector<1x1x8xf32> to vector<1x8xf32>
    %c5_254 = arith.constant 5 : index
    %c3_255 = arith.constant 3 : index
    %c0_256 = arith.constant 0 : index
    %372 = vector.load %arg5[%c5_254, %c3_255, %c0_256] : memref<18x4x8xf32, #tpu.memory_space<vmem>>, vector<1x1x8xf32>
    %373 = vector.shape_cast %372 : vector<1x1x8xf32> to vector<1x8xf32>
    %cst_257 = arith.constant dense<0.000000e+00> : vector<6x8xf32>
    %374 = tpu.matmul %240, %361, %cst_257 {dimension_numbers = #tpu.dot_dimension_numbers<[1], [0], [0], [1], [0, 0, 1, 1], [], []>} : vector<6x32xf32>, vector<32x8xf32>, vector<6x8xf32> -> vector<6x8xf32>
    %375 = vector.broadcast %369 : vector<1x8xf32> to vector<6x8xf32>
    %376 = arith.addf %374, %375 : vector<6x8xf32>
    %cst_258 = arith.constant dense<0.000000e+00> : vector<16x8xf32>
    %377 = tpu.matmul %29, %363, %cst_258 {dimension_numbers = #tpu.dot_dimension_numbers<[1], [0], [0], [1], [0, 0, 1, 1], [], []>} : vector<16x32xf32>, vector<32x8xf32>, vector<16x8xf32> -> vector<16x8xf32>
    %378 = vector.broadcast %371 : vector<1x8xf32> to vector<16x8xf32>
    %379 = arith.addf %377, %378 : vector<16x8xf32>
    %cst_259 = arith.constant dense<0.000000e+00> : vector<16x8xf32>
    %380 = tpu.matmul %29, %365, %cst_259 {dimension_numbers = #tpu.dot_dimension_numbers<[1], [0], [0], [1], [0, 0, 1, 1], [], []>} : vector<16x32xf32>, vector<32x8xf32>, vector<16x8xf32> -> vector<16x8xf32>
    %381 = vector.broadcast %373 : vector<1x8xf32> to vector<16x8xf32>
    %382 = arith.addf %380, %381 : vector<16x8xf32>
    %cst_260 = arith.constant dense<0.000000e+00> : vector<6x16xf32>
    %383 = tpu.matmul %376, %379, %cst_260 {dimension_numbers = #tpu.dot_dimension_numbers<[1], [1], [0], [0], [0, 0, 1, 0], [], []>} : vector<6x8xf32>, vector<16x8xf32>, vector<6x16xf32> -> vector<6x16xf32>
    %cst_261 = arith.constant 0.353553385 : f32
    %384 = vector.broadcast %cst_261 : f32 to vector<6x16xf32>
    %385 = arith.mulf %383, %384 : vector<6x16xf32>
    %386 = arith.addf %385, %4 : vector<6x16xf32>
    %cst_262 = arith.constant dense<0xFF800000> : vector<6xf32>
    %387 = vector.multi_reduction <maximumf>, %386, %cst_262 [1] : vector<6x16xf32> to vector<6xf32>
    %388 = vector.shape_cast %387 : vector<6xf32> to vector<6x1xf32>
    %389 = vector.broadcast %388 : vector<6x1xf32> to vector<6x16xf32>
    %390 = arith.subf %386, %389 : vector<6x16xf32>
    %391 = math.exp %390 : vector<6x16xf32>
    %cst_263 = arith.constant dense<0.000000e+00> : vector<6xf32>
    %392 = vector.multi_reduction <add>, %391, %cst_263 [1] : vector<6x16xf32> to vector<6xf32>
    %393 = vector.shape_cast %392 : vector<6xf32> to vector<6x1xf32>
    %394 = tpu.reciprocal %393 {approx = true} : vector<6x1xf32> -> vector<6x1xf32>
    %395 = vector.broadcast %394 : vector<6x1xf32> to vector<6x16xf32>
    %396 = arith.mulf %391, %395 : vector<6x16xf32>
    %cst_264 = arith.constant dense<0.000000e+00> : vector<6x8xf32>
    %397 = tpu.matmul %396, %382, %cst_264 {dimension_numbers = #tpu.dot_dimension_numbers<[1], [0], [0], [1], [0, 0, 1, 1], [], []>} : vector<6x16xf32>, vector<16x8xf32>, vector<6x8xf32> -> vector<6x8xf32>
    %cst_265 = arith.constant dense<0.000000e+00> : vector<6x32xf32>
    %398 = tpu.matmul %397, %367, %cst_265 {dimension_numbers = #tpu.dot_dimension_numbers<[1], [0], [0], [1], [0, 0, 1, 1], [], []>} : vector<6x8xf32>, vector<8x32xf32>, vector<6x32xf32> -> vector<6x32xf32>
    %399 = arith.addf %359, %398 : vector<6x32xf32>
    %c11 = arith.constant 11 : index
    %c0_266 = arith.constant 0 : index
    %400 = vector.load %arg6[%c11, %c0_266] : memref<34x64xf32, #tpu.memory_space<vmem>>, vector<1x32xf32>
    %401 = vector.broadcast %400 : vector<1x32xf32> to vector<6x32xf32>
    %402 = arith.addf %399, %401 : vector<6x32xf32>
    %403 = arith.addf %216, %402 : vector<6x32xf32>
    %c8_267 = arith.constant 8 : index
    %c0_268 = arith.constant 0 : index
    %404 = vector.load %arg6[%c8_267, %c0_268] : memref<34x64xf32, #tpu.memory_space<vmem>>, vector<1x32xf32>
    %c9 = arith.constant 9 : index
    %c0_269 = arith.constant 0 : index
    %405 = vector.load %arg6[%c9, %c0_269] : memref<34x64xf32, #tpu.memory_space<vmem>>, vector<1x32xf32>
    %cst_270 = arith.constant dense<0.000000e+00> : vector<6xf32>
    %406 = vector.multi_reduction <add>, %403, %cst_270 [1] : vector<6x32xf32> to vector<6xf32>
    %407 = vector.shape_cast %406 : vector<6xf32> to vector<6x1xf32>
    %408 = arith.mulf %403, %403 : vector<6x32xf32>
    %cst_271 = arith.constant dense<0.000000e+00> : vector<6xf32>
    %409 = vector.multi_reduction <add>, %408, %cst_271 [1] : vector<6x32xf32> to vector<6xf32>
    %410 = vector.shape_cast %409 : vector<6xf32> to vector<6x1xf32>
    %cst_272 = arith.constant 3.125000e-02 : f32
    %411 = vector.broadcast %cst_272 : f32 to vector<6x1xf32>
    %412 = arith.mulf %407, %411 : vector<6x1xf32>
    %cst_273 = arith.constant 3.125000e-02 : f32
    %413 = vector.broadcast %cst_273 : f32 to vector<6x1xf32>
    %414 = arith.mulf %410, %413 : vector<6x1xf32>
    %415 = arith.mulf %412, %412 : vector<6x1xf32>
    %416 = arith.subf %414, %415 : vector<6x1xf32>
    %417 = vector.broadcast %412 : vector<6x1xf32> to vector<6x32xf32>
    %418 = arith.subf %403, %417 : vector<6x32xf32>
    %cst_274 = arith.constant 9.99999974E-6 : f32
    %419 = vector.broadcast %cst_274 : f32 to vector<6x1xf32>
    %420 = arith.addf %416, %419 : vector<6x1xf32>
    %421 = math.rsqrt %420 : vector<6x1xf32>
    %422 = vector.broadcast %421 : vector<6x1xf32> to vector<6x32xf32>
    %423 = arith.mulf %418, %422 : vector<6x32xf32>
    %424 = vector.broadcast %404 : vector<1x32xf32> to vector<6x32xf32>
    %425 = arith.mulf %423, %424 : vector<6x32xf32>
    %426 = vector.broadcast %405 : vector<1x32xf32> to vector<6x32xf32>
    %427 = arith.addf %425, %426 : vector<6x32xf32>
    %c0_275 = arith.constant 0 : index
    %c0_276 = arith.constant 0 : index
    %c0_277 = arith.constant 0 : index
    %428 = vector.load %arg4[%c0_275, %c0_276, %c0_277] : memref<3x96x64xf32, #tpu.memory_space<vmem>>, vector<1x32x64xf32>
    %429 = vector.shape_cast %428 : vector<1x32x64xf32> to vector<32x64xf32>
    %cst_278 = arith.constant dense<0.000000e+00> : vector<6x64xf32>
    %430 = tpu.matmul %427, %429, %cst_278 {dimension_numbers = #tpu.dot_dimension_numbers<[1], [0], [0], [1], [0, 0, 1, 1], [], []>} : vector<6x32xf32>, vector<32x64xf32>, vector<6x64xf32> -> vector<6x64xf32>
    %c12 = arith.constant 12 : index
    %c0_279 = arith.constant 0 : index
    %431 = vector.load %arg6[%c12, %c0_279] : memref<34x64xf32, #tpu.memory_space<vmem>>, vector<1x64xf32>
    %432 = vector.broadcast %431 : vector<1x64xf32> to vector<6x64xf32>
    %433 = arith.addf %430, %432 : vector<6x64xf32>
    %cst_280 = arith.constant 0.000000e+00 : f32
    %434 = vector.broadcast %cst_280 : f32 to vector<6x64xf32>
    %435 = arith.maximumf %433, %434 : vector<6x64xf32>
    %c0_281 = arith.constant 0 : index
    %c32 = arith.constant 32 : index
    %c0_282 = arith.constant 0 : index
    %436 = vector.load %arg4[%c0_281, %c32, %c0_282] : memref<3x96x64xf32, #tpu.memory_space<vmem>>, vector<1x64x32xf32>
    %437 = vector.shape_cast %436 : vector<1x64x32xf32> to vector<64x32xf32>
    %cst_283 = arith.constant dense<0.000000e+00> : vector<6x32xf32>
    %438 = tpu.matmul %435, %437, %cst_283 {dimension_numbers = #tpu.dot_dimension_numbers<[1], [0], [0], [1], [0, 0, 1, 1], [], []>} : vector<6x64xf32>, vector<64x32xf32>, vector<6x32xf32> -> vector<6x32xf32>
    %c13 = arith.constant 13 : index
    %c0_284 = arith.constant 0 : index
    %439 = vector.load %arg6[%c13, %c0_284] : memref<34x64xf32, #tpu.memory_space<vmem>>, vector<1x32xf32>
    %440 = vector.broadcast %439 : vector<1x32xf32> to vector<6x32xf32>
    %441 = arith.addf %438, %440 : vector<6x32xf32>
    %442 = arith.addf %403, %441 : vector<6x32xf32>
    %c14 = arith.constant 14 : index
    %c0_285 = arith.constant 0 : index
    %443 = vector.load %arg6[%c14, %c0_285] : memref<34x64xf32, #tpu.memory_space<vmem>>, vector<1x32xf32>
    %c15 = arith.constant 15 : index
    %c0_286 = arith.constant 0 : index
    %444 = vector.load %arg6[%c15, %c0_286] : memref<34x64xf32, #tpu.memory_space<vmem>>, vector<1x32xf32>
    %cst_287 = arith.constant dense<0.000000e+00> : vector<6xf32>
    %445 = vector.multi_reduction <add>, %442, %cst_287 [1] : vector<6x32xf32> to vector<6xf32>
    %446 = vector.shape_cast %445 : vector<6xf32> to vector<6x1xf32>
    %447 = arith.mulf %442, %442 : vector<6x32xf32>
    %cst_288 = arith.constant dense<0.000000e+00> : vector<6xf32>
    %448 = vector.multi_reduction <add>, %447, %cst_288 [1] : vector<6x32xf32> to vector<6xf32>
    %449 = vector.shape_cast %448 : vector<6xf32> to vector<6x1xf32>
    %cst_289 = arith.constant 3.125000e-02 : f32
    %450 = vector.broadcast %cst_289 : f32 to vector<6x1xf32>
    %451 = arith.mulf %446, %450 : vector<6x1xf32>
    %cst_290 = arith.constant 3.125000e-02 : f32
    %452 = vector.broadcast %cst_290 : f32 to vector<6x1xf32>
    %453 = arith.mulf %449, %452 : vector<6x1xf32>
    %454 = arith.mulf %451, %451 : vector<6x1xf32>
    %455 = arith.subf %453, %454 : vector<6x1xf32>
    %456 = vector.broadcast %451 : vector<6x1xf32> to vector<6x32xf32>
    %457 = arith.subf %442, %456 : vector<6x32xf32>
    %cst_291 = arith.constant 9.99999974E-6 : f32
    %458 = vector.broadcast %cst_291 : f32 to vector<6x1xf32>
    %459 = arith.addf %455, %458 : vector<6x1xf32>
    %460 = math.rsqrt %459 : vector<6x1xf32>
    %461 = vector.broadcast %460 : vector<6x1xf32> to vector<6x32xf32>
    %462 = arith.mulf %457, %461 : vector<6x32xf32>
    %463 = vector.broadcast %443 : vector<1x32xf32> to vector<6x32xf32>
    %464 = arith.mulf %462, %463 : vector<6x32xf32>
    %465 = vector.broadcast %444 : vector<1x32xf32> to vector<6x32xf32>
    %466 = arith.addf %464, %465 : vector<6x32xf32>
    %c8_292 = arith.constant 8 : index
    %c0_293 = arith.constant 0 : index
    %c0_294 = arith.constant 0 : index
    %467 = vector.load %arg3[%c8_292, %c0_293, %c0_294] : memref<24x32x32xf32, #tpu.memory_space<vmem>>, vector<1x32x8xf32>
    %468 = vector.shape_cast %467 : vector<1x32x8xf32> to vector<32x8xf32>
    %c9_295 = arith.constant 9 : index
    %c0_296 = arith.constant 0 : index
    %c0_297 = arith.constant 0 : index
    %469 = vector.load %arg3[%c9_295, %c0_296, %c0_297] : memref<24x32x32xf32, #tpu.memory_space<vmem>>, vector<1x32x8xf32>
    %470 = vector.shape_cast %469 : vector<1x32x8xf32> to vector<32x8xf32>
    %c10_298 = arith.constant 10 : index
    %c0_299 = arith.constant 0 : index
    %c0_300 = arith.constant 0 : index
    %471 = vector.load %arg3[%c10_298, %c0_299, %c0_300] : memref<24x32x32xf32, #tpu.memory_space<vmem>>, vector<1x32x8xf32>
    %472 = vector.shape_cast %471 : vector<1x32x8xf32> to vector<32x8xf32>
    %c11_301 = arith.constant 11 : index
    %c0_302 = arith.constant 0 : index
    %c0_303 = arith.constant 0 : index
    %473 = vector.load %arg3[%c11_301, %c0_302, %c0_303] : memref<24x32x32xf32, #tpu.memory_space<vmem>>, vector<1x8x32xf32>
    %474 = vector.shape_cast %473 : vector<1x8x32xf32> to vector<8x32xf32>
    %c6_304 = arith.constant 6 : index
    %c0_305 = arith.constant 0 : index
    %c0_306 = arith.constant 0 : index
    %475 = vector.load %arg5[%c6_304, %c0_305, %c0_306] : memref<18x4x8xf32, #tpu.memory_space<vmem>>, vector<1x1x8xf32>
    %476 = vector.shape_cast %475 : vector<1x1x8xf32> to vector<1x8xf32>
    %c7_307 = arith.constant 7 : index
    %c0_308 = arith.constant 0 : index
    %c0_309 = arith.constant 0 : index
    %477 = vector.load %arg5[%c7_307, %c0_308, %c0_309] : memref<18x4x8xf32, #tpu.memory_space<vmem>>, vector<1x1x8xf32>
    %478 = vector.shape_cast %477 : vector<1x1x8xf32> to vector<1x8xf32>
    %c8_310 = arith.constant 8 : index
    %c0_311 = arith.constant 0 : index
    %c0_312 = arith.constant 0 : index
    %479 = vector.load %arg5[%c8_310, %c0_311, %c0_312] : memref<18x4x8xf32, #tpu.memory_space<vmem>>, vector<1x1x8xf32>
    %480 = vector.shape_cast %479 : vector<1x1x8xf32> to vector<1x8xf32>
    %cst_313 = arith.constant dense<0.000000e+00> : vector<6x8xf32>
    %481 = tpu.matmul %466, %468, %cst_313 {dimension_numbers = #tpu.dot_dimension_numbers<[1], [0], [0], [1], [0, 0, 1, 1], [], []>} : vector<6x32xf32>, vector<32x8xf32>, vector<6x8xf32> -> vector<6x8xf32>
    %482 = vector.broadcast %476 : vector<1x8xf32> to vector<6x8xf32>
    %483 = arith.addf %481, %482 : vector<6x8xf32>
    %cst_314 = arith.constant dense<0.000000e+00> : vector<6x8xf32>
    %484 = tpu.matmul %466, %470, %cst_314 {dimension_numbers = #tpu.dot_dimension_numbers<[1], [0], [0], [1], [0, 0, 1, 1], [], []>} : vector<6x32xf32>, vector<32x8xf32>, vector<6x8xf32> -> vector<6x8xf32>
    %485 = vector.broadcast %478 : vector<1x8xf32> to vector<6x8xf32>
    %486 = arith.addf %484, %485 : vector<6x8xf32>
    %cst_315 = arith.constant dense<0.000000e+00> : vector<6x8xf32>
    %487 = tpu.matmul %466, %472, %cst_315 {dimension_numbers = #tpu.dot_dimension_numbers<[1], [0], [0], [1], [0, 0, 1, 1], [], []>} : vector<6x32xf32>, vector<32x8xf32>, vector<6x8xf32> -> vector<6x8xf32>
    %488 = vector.broadcast %480 : vector<1x8xf32> to vector<6x8xf32>
    %489 = arith.addf %487, %488 : vector<6x8xf32>
    %cst_316 = arith.constant dense<0.000000e+00> : vector<6x6xf32>
    %490 = tpu.matmul %483, %486, %cst_316 {dimension_numbers = #tpu.dot_dimension_numbers<[1], [1], [0], [0], [0, 0, 1, 0], [], []>} : vector<6x8xf32>, vector<6x8xf32>, vector<6x6xf32> -> vector<6x6xf32>
    %cst_317 = arith.constant 0.353553385 : f32
    %491 = vector.broadcast %cst_317 : f32 to vector<6x6xf32>
    %492 = arith.mulf %490, %491 : vector<6x6xf32>
    %493 = arith.addf %492, %2 : vector<6x6xf32>
    %cst_318 = arith.constant dense<0xFF800000> : vector<6xf32>
    %494 = vector.multi_reduction <maximumf>, %493, %cst_318 [1] : vector<6x6xf32> to vector<6xf32>
    %495 = vector.shape_cast %494 : vector<6xf32> to vector<6x1xf32>
    %496 = vector.broadcast %495 : vector<6x1xf32> to vector<6x6xf32>
    %497 = arith.subf %493, %496 : vector<6x6xf32>
    %498 = math.exp %497 : vector<6x6xf32>
    %cst_319 = arith.constant dense<0.000000e+00> : vector<6xf32>
    %499 = vector.multi_reduction <add>, %498, %cst_319 [1] : vector<6x6xf32> to vector<6xf32>
    %500 = vector.shape_cast %499 : vector<6xf32> to vector<6x1xf32>
    %501 = tpu.reciprocal %500 {approx = true} : vector<6x1xf32> -> vector<6x1xf32>
    %502 = vector.broadcast %501 : vector<6x1xf32> to vector<6x6xf32>
    %503 = arith.mulf %498, %502 : vector<6x6xf32>
    %cst_320 = arith.constant dense<0.000000e+00> : vector<6x8xf32>
    %504 = tpu.matmul %503, %489, %cst_320 {dimension_numbers = #tpu.dot_dimension_numbers<[1], [0], [0], [1], [0, 0, 1, 1], [], []>} : vector<6x6xf32>, vector<6x8xf32>, vector<6x8xf32> -> vector<6x8xf32>
    %cst_321 = arith.constant dense<0.000000e+00> : vector<6x32xf32>
    %505 = tpu.matmul %504, %474, %cst_321 {dimension_numbers = #tpu.dot_dimension_numbers<[1], [0], [0], [1], [0, 0, 1, 1], [], []>} : vector<6x8xf32>, vector<8x32xf32>, vector<6x32xf32> -> vector<6x32xf32>
    %c8_322 = arith.constant 8 : index
    %c0_323 = arith.constant 0 : index
    %c8_324 = arith.constant 8 : index
    %506 = vector.load %arg3[%c8_322, %c0_323, %c8_324] : memref<24x32x32xf32, #tpu.memory_space<vmem>>, vector<1x32x8xf32>
    %507 = vector.shape_cast %506 : vector<1x32x8xf32> to vector<32x8xf32>
    %c9_325 = arith.constant 9 : index
    %c0_326 = arith.constant 0 : index
    %c8_327 = arith.constant 8 : index
    %508 = vector.load %arg3[%c9_325, %c0_326, %c8_327] : memref<24x32x32xf32, #tpu.memory_space<vmem>>, vector<1x32x8xf32>
    %509 = vector.shape_cast %508 : vector<1x32x8xf32> to vector<32x8xf32>
    %c10_328 = arith.constant 10 : index
    %c0_329 = arith.constant 0 : index
    %c8_330 = arith.constant 8 : index
    %510 = vector.load %arg3[%c10_328, %c0_329, %c8_330] : memref<24x32x32xf32, #tpu.memory_space<vmem>>, vector<1x32x8xf32>
    %511 = vector.shape_cast %510 : vector<1x32x8xf32> to vector<32x8xf32>
    %c11_331 = arith.constant 11 : index
    %c8_332 = arith.constant 8 : index
    %c0_333 = arith.constant 0 : index
    %512 = vector.load %arg3[%c11_331, %c8_332, %c0_333] : memref<24x32x32xf32, #tpu.memory_space<vmem>>, vector<1x8x32xf32>
    %513 = vector.shape_cast %512 : vector<1x8x32xf32> to vector<8x32xf32>
    %c6_334 = arith.constant 6 : index
    %c1_335 = arith.constant 1 : index
    %c0_336 = arith.constant 0 : index
    %514 = vector.load %arg5[%c6_334, %c1_335, %c0_336] : memref<18x4x8xf32, #tpu.memory_space<vmem>>, vector<1x1x8xf32>
    %515 = vector.shape_cast %514 : vector<1x1x8xf32> to vector<1x8xf32>
    %c7_337 = arith.constant 7 : index
    %c1_338 = arith.constant 1 : index
    %c0_339 = arith.constant 0 : index
    %516 = vector.load %arg5[%c7_337, %c1_338, %c0_339] : memref<18x4x8xf32, #tpu.memory_space<vmem>>, vector<1x1x8xf32>
    %517 = vector.shape_cast %516 : vector<1x1x8xf32> to vector<1x8xf32>
    %c8_340 = arith.constant 8 : index
    %c1_341 = arith.constant 1 : index
    %c0_342 = arith.constant 0 : index
    %518 = vector.load %arg5[%c8_340, %c1_341, %c0_342] : memref<18x4x8xf32, #tpu.memory_space<vmem>>, vector<1x1x8xf32>
    %519 = vector.shape_cast %518 : vector<1x1x8xf32> to vector<1x8xf32>
    %cst_343 = arith.constant dense<0.000000e+00> : vector<6x8xf32>
    %520 = tpu.matmul %466, %507, %cst_343 {dimension_numbers = #tpu.dot_dimension_numbers<[1], [0], [0], [1], [0, 0, 1, 1], [], []>} : vector<6x32xf32>, vector<32x8xf32>, vector<6x8xf32> -> vector<6x8xf32>
    %521 = vector.broadcast %515 : vector<1x8xf32> to vector<6x8xf32>
    %522 = arith.addf %520, %521 : vector<6x8xf32>
    %cst_344 = arith.constant dense<0.000000e+00> : vector<6x8xf32>
    %523 = tpu.matmul %466, %509, %cst_344 {dimension_numbers = #tpu.dot_dimension_numbers<[1], [0], [0], [1], [0, 0, 1, 1], [], []>} : vector<6x32xf32>, vector<32x8xf32>, vector<6x8xf32> -> vector<6x8xf32>
    %524 = vector.broadcast %517 : vector<1x8xf32> to vector<6x8xf32>
    %525 = arith.addf %523, %524 : vector<6x8xf32>
    %cst_345 = arith.constant dense<0.000000e+00> : vector<6x8xf32>
    %526 = tpu.matmul %466, %511, %cst_345 {dimension_numbers = #tpu.dot_dimension_numbers<[1], [0], [0], [1], [0, 0, 1, 1], [], []>} : vector<6x32xf32>, vector<32x8xf32>, vector<6x8xf32> -> vector<6x8xf32>
    %527 = vector.broadcast %519 : vector<1x8xf32> to vector<6x8xf32>
    %528 = arith.addf %526, %527 : vector<6x8xf32>
    %cst_346 = arith.constant dense<0.000000e+00> : vector<6x6xf32>
    %529 = tpu.matmul %522, %525, %cst_346 {dimension_numbers = #tpu.dot_dimension_numbers<[1], [1], [0], [0], [0, 0, 1, 0], [], []>} : vector<6x8xf32>, vector<6x8xf32>, vector<6x6xf32> -> vector<6x6xf32>
    %cst_347 = arith.constant 0.353553385 : f32
    %530 = vector.broadcast %cst_347 : f32 to vector<6x6xf32>
    %531 = arith.mulf %529, %530 : vector<6x6xf32>
    %532 = arith.addf %531, %2 : vector<6x6xf32>
    %cst_348 = arith.constant dense<0xFF800000> : vector<6xf32>
    %533 = vector.multi_reduction <maximumf>, %532, %cst_348 [1] : vector<6x6xf32> to vector<6xf32>
    %534 = vector.shape_cast %533 : vector<6xf32> to vector<6x1xf32>
    %535 = vector.broadcast %534 : vector<6x1xf32> to vector<6x6xf32>
    %536 = arith.subf %532, %535 : vector<6x6xf32>
    %537 = math.exp %536 : vector<6x6xf32>
    %cst_349 = arith.constant dense<0.000000e+00> : vector<6xf32>
    %538 = vector.multi_reduction <add>, %537, %cst_349 [1] : vector<6x6xf32> to vector<6xf32>
    %539 = vector.shape_cast %538 : vector<6xf32> to vector<6x1xf32>
    %540 = tpu.reciprocal %539 {approx = true} : vector<6x1xf32> -> vector<6x1xf32>
    %541 = vector.broadcast %540 : vector<6x1xf32> to vector<6x6xf32>
    %542 = arith.mulf %537, %541 : vector<6x6xf32>
    %cst_350 = arith.constant dense<0.000000e+00> : vector<6x8xf32>
    %543 = tpu.matmul %542, %528, %cst_350 {dimension_numbers = #tpu.dot_dimension_numbers<[1], [0], [0], [1], [0, 0, 1, 1], [], []>} : vector<6x6xf32>, vector<6x8xf32>, vector<6x8xf32> -> vector<6x8xf32>
    %cst_351 = arith.constant dense<0.000000e+00> : vector<6x32xf32>
    %544 = tpu.matmul %543, %513, %cst_351 {dimension_numbers = #tpu.dot_dimension_numbers<[1], [0], [0], [1], [0, 0, 1, 1], [], []>} : vector<6x8xf32>, vector<8x32xf32>, vector<6x32xf32> -> vector<6x32xf32>
    %545 = arith.addf %505, %544 : vector<6x32xf32>
    %c8_352 = arith.constant 8 : index
    %c0_353 = arith.constant 0 : index
    %c16_354 = arith.constant 16 : index
    %546 = vector.load %arg3[%c8_352, %c0_353, %c16_354] : memref<24x32x32xf32, #tpu.memory_space<vmem>>, vector<1x32x8xf32>
    %547 = vector.shape_cast %546 : vector<1x32x8xf32> to vector<32x8xf32>
    %c9_355 = arith.constant 9 : index
    %c0_356 = arith.constant 0 : index
    %c16_357 = arith.constant 16 : index
    %548 = vector.load %arg3[%c9_355, %c0_356, %c16_357] : memref<24x32x32xf32, #tpu.memory_space<vmem>>, vector<1x32x8xf32>
    %549 = vector.shape_cast %548 : vector<1x32x8xf32> to vector<32x8xf32>
    %c10_358 = arith.constant 10 : index
    %c0_359 = arith.constant 0 : index
    %c16_360 = arith.constant 16 : index
    %550 = vector.load %arg3[%c10_358, %c0_359, %c16_360] : memref<24x32x32xf32, #tpu.memory_space<vmem>>, vector<1x32x8xf32>
    %551 = vector.shape_cast %550 : vector<1x32x8xf32> to vector<32x8xf32>
    %c11_361 = arith.constant 11 : index
    %c16_362 = arith.constant 16 : index
    %c0_363 = arith.constant 0 : index
    %552 = vector.load %arg3[%c11_361, %c16_362, %c0_363] : memref<24x32x32xf32, #tpu.memory_space<vmem>>, vector<1x8x32xf32>
    %553 = vector.shape_cast %552 : vector<1x8x32xf32> to vector<8x32xf32>
    %c6_364 = arith.constant 6 : index
    %c2_365 = arith.constant 2 : index
    %c0_366 = arith.constant 0 : index
    %554 = vector.load %arg5[%c6_364, %c2_365, %c0_366] : memref<18x4x8xf32, #tpu.memory_space<vmem>>, vector<1x1x8xf32>
    %555 = vector.shape_cast %554 : vector<1x1x8xf32> to vector<1x8xf32>
    %c7_367 = arith.constant 7 : index
    %c2_368 = arith.constant 2 : index
    %c0_369 = arith.constant 0 : index
    %556 = vector.load %arg5[%c7_367, %c2_368, %c0_369] : memref<18x4x8xf32, #tpu.memory_space<vmem>>, vector<1x1x8xf32>
    %557 = vector.shape_cast %556 : vector<1x1x8xf32> to vector<1x8xf32>
    %c8_370 = arith.constant 8 : index
    %c2_371 = arith.constant 2 : index
    %c0_372 = arith.constant 0 : index
    %558 = vector.load %arg5[%c8_370, %c2_371, %c0_372] : memref<18x4x8xf32, #tpu.memory_space<vmem>>, vector<1x1x8xf32>
    %559 = vector.shape_cast %558 : vector<1x1x8xf32> to vector<1x8xf32>
    %cst_373 = arith.constant dense<0.000000e+00> : vector<6x8xf32>
    %560 = tpu.matmul %466, %547, %cst_373 {dimension_numbers = #tpu.dot_dimension_numbers<[1], [0], [0], [1], [0, 0, 1, 1], [], []>} : vector<6x32xf32>, vector<32x8xf32>, vector<6x8xf32> -> vector<6x8xf32>
    %561 = vector.broadcast %555 : vector<1x8xf32> to vector<6x8xf32>
    %562 = arith.addf %560, %561 : vector<6x8xf32>
    %cst_374 = arith.constant dense<0.000000e+00> : vector<6x8xf32>
    %563 = tpu.matmul %466, %549, %cst_374 {dimension_numbers = #tpu.dot_dimension_numbers<[1], [0], [0], [1], [0, 0, 1, 1], [], []>} : vector<6x32xf32>, vector<32x8xf32>, vector<6x8xf32> -> vector<6x8xf32>
    %564 = vector.broadcast %557 : vector<1x8xf32> to vector<6x8xf32>
    %565 = arith.addf %563, %564 : vector<6x8xf32>
    %cst_375 = arith.constant dense<0.000000e+00> : vector<6x8xf32>
    %566 = tpu.matmul %466, %551, %cst_375 {dimension_numbers = #tpu.dot_dimension_numbers<[1], [0], [0], [1], [0, 0, 1, 1], [], []>} : vector<6x32xf32>, vector<32x8xf32>, vector<6x8xf32> -> vector<6x8xf32>
    %567 = vector.broadcast %559 : vector<1x8xf32> to vector<6x8xf32>
    %568 = arith.addf %566, %567 : vector<6x8xf32>
    %cst_376 = arith.constant dense<0.000000e+00> : vector<6x6xf32>
    %569 = tpu.matmul %562, %565, %cst_376 {dimension_numbers = #tpu.dot_dimension_numbers<[1], [1], [0], [0], [0, 0, 1, 0], [], []>} : vector<6x8xf32>, vector<6x8xf32>, vector<6x6xf32> -> vector<6x6xf32>
    %cst_377 = arith.constant 0.353553385 : f32
    %570 = vector.broadcast %cst_377 : f32 to vector<6x6xf32>
    %571 = arith.mulf %569, %570 : vector<6x6xf32>
    %572 = arith.addf %571, %2 : vector<6x6xf32>
    %cst_378 = arith.constant dense<0xFF800000> : vector<6xf32>
    %573 = vector.multi_reduction <maximumf>, %572, %cst_378 [1] : vector<6x6xf32> to vector<6xf32>
    %574 = vector.shape_cast %573 : vector<6xf32> to vector<6x1xf32>
    %575 = vector.broadcast %574 : vector<6x1xf32> to vector<6x6xf32>
    %576 = arith.subf %572, %575 : vector<6x6xf32>
    %577 = math.exp %576 : vector<6x6xf32>
    %cst_379 = arith.constant dense<0.000000e+00> : vector<6xf32>
    %578 = vector.multi_reduction <add>, %577, %cst_379 [1] : vector<6x6xf32> to vector<6xf32>
    %579 = vector.shape_cast %578 : vector<6xf32> to vector<6x1xf32>
    %580 = tpu.reciprocal %579 {approx = true} : vector<6x1xf32> -> vector<6x1xf32>
    %581 = vector.broadcast %580 : vector<6x1xf32> to vector<6x6xf32>
    %582 = arith.mulf %577, %581 : vector<6x6xf32>
    %cst_380 = arith.constant dense<0.000000e+00> : vector<6x8xf32>
    %583 = tpu.matmul %582, %568, %cst_380 {dimension_numbers = #tpu.dot_dimension_numbers<[1], [0], [0], [1], [0, 0, 1, 1], [], []>} : vector<6x6xf32>, vector<6x8xf32>, vector<6x8xf32> -> vector<6x8xf32>
    %cst_381 = arith.constant dense<0.000000e+00> : vector<6x32xf32>
    %584 = tpu.matmul %583, %553, %cst_381 {dimension_numbers = #tpu.dot_dimension_numbers<[1], [0], [0], [1], [0, 0, 1, 1], [], []>} : vector<6x8xf32>, vector<8x32xf32>, vector<6x32xf32> -> vector<6x32xf32>
    %585 = arith.addf %545, %584 : vector<6x32xf32>
    %c8_382 = arith.constant 8 : index
    %c0_383 = arith.constant 0 : index
    %c24_384 = arith.constant 24 : index
    %586 = vector.load %arg3[%c8_382, %c0_383, %c24_384] : memref<24x32x32xf32, #tpu.memory_space<vmem>>, vector<1x32x8xf32>
    %587 = vector.shape_cast %586 : vector<1x32x8xf32> to vector<32x8xf32>
    %c9_385 = arith.constant 9 : index
    %c0_386 = arith.constant 0 : index
    %c24_387 = arith.constant 24 : index
    %588 = vector.load %arg3[%c9_385, %c0_386, %c24_387] : memref<24x32x32xf32, #tpu.memory_space<vmem>>, vector<1x32x8xf32>
    %589 = vector.shape_cast %588 : vector<1x32x8xf32> to vector<32x8xf32>
    %c10_388 = arith.constant 10 : index
    %c0_389 = arith.constant 0 : index
    %c24_390 = arith.constant 24 : index
    %590 = vector.load %arg3[%c10_388, %c0_389, %c24_390] : memref<24x32x32xf32, #tpu.memory_space<vmem>>, vector<1x32x8xf32>
    %591 = vector.shape_cast %590 : vector<1x32x8xf32> to vector<32x8xf32>
    %c11_391 = arith.constant 11 : index
    %c24_392 = arith.constant 24 : index
    %c0_393 = arith.constant 0 : index
    %592 = vector.load %arg3[%c11_391, %c24_392, %c0_393] : memref<24x32x32xf32, #tpu.memory_space<vmem>>, vector<1x8x32xf32>
    %593 = vector.shape_cast %592 : vector<1x8x32xf32> to vector<8x32xf32>
    %c6_394 = arith.constant 6 : index
    %c3_395 = arith.constant 3 : index
    %c0_396 = arith.constant 0 : index
    %594 = vector.load %arg5[%c6_394, %c3_395, %c0_396] : memref<18x4x8xf32, #tpu.memory_space<vmem>>, vector<1x1x8xf32>
    %595 = vector.shape_cast %594 : vector<1x1x8xf32> to vector<1x8xf32>
    %c7_397 = arith.constant 7 : index
    %c3_398 = arith.constant 3 : index
    %c0_399 = arith.constant 0 : index
    %596 = vector.load %arg5[%c7_397, %c3_398, %c0_399] : memref<18x4x8xf32, #tpu.memory_space<vmem>>, vector<1x1x8xf32>
    %597 = vector.shape_cast %596 : vector<1x1x8xf32> to vector<1x8xf32>
    %c8_400 = arith.constant 8 : index
    %c3_401 = arith.constant 3 : index
    %c0_402 = arith.constant 0 : index
    %598 = vector.load %arg5[%c8_400, %c3_401, %c0_402] : memref<18x4x8xf32, #tpu.memory_space<vmem>>, vector<1x1x8xf32>
    %599 = vector.shape_cast %598 : vector<1x1x8xf32> to vector<1x8xf32>
    %cst_403 = arith.constant dense<0.000000e+00> : vector<6x8xf32>
    %600 = tpu.matmul %466, %587, %cst_403 {dimension_numbers = #tpu.dot_dimension_numbers<[1], [0], [0], [1], [0, 0, 1, 1], [], []>} : vector<6x32xf32>, vector<32x8xf32>, vector<6x8xf32> -> vector<6x8xf32>
    %601 = vector.broadcast %595 : vector<1x8xf32> to vector<6x8xf32>
    %602 = arith.addf %600, %601 : vector<6x8xf32>
    %cst_404 = arith.constant dense<0.000000e+00> : vector<6x8xf32>
    %603 = tpu.matmul %466, %589, %cst_404 {dimension_numbers = #tpu.dot_dimension_numbers<[1], [0], [0], [1], [0, 0, 1, 1], [], []>} : vector<6x32xf32>, vector<32x8xf32>, vector<6x8xf32> -> vector<6x8xf32>
    %604 = vector.broadcast %597 : vector<1x8xf32> to vector<6x8xf32>
    %605 = arith.addf %603, %604 : vector<6x8xf32>
    %cst_405 = arith.constant dense<0.000000e+00> : vector<6x8xf32>
    %606 = tpu.matmul %466, %591, %cst_405 {dimension_numbers = #tpu.dot_dimension_numbers<[1], [0], [0], [1], [0, 0, 1, 1], [], []>} : vector<6x32xf32>, vector<32x8xf32>, vector<6x8xf32> -> vector<6x8xf32>
    %607 = vector.broadcast %599 : vector<1x8xf32> to vector<6x8xf32>
    %608 = arith.addf %606, %607 : vector<6x8xf32>
    %cst_406 = arith.constant dense<0.000000e+00> : vector<6x6xf32>
    %609 = tpu.matmul %602, %605, %cst_406 {dimension_numbers = #tpu.dot_dimension_numbers<[1], [1], [0], [0], [0, 0, 1, 0], [], []>} : vector<6x8xf32>, vector<6x8xf32>, vector<6x6xf32> -> vector<6x6xf32>
    %cst_407 = arith.constant 0.353553385 : f32
    %610 = vector.broadcast %cst_407 : f32 to vector<6x6xf32>
    %611 = arith.mulf %609, %610 : vector<6x6xf32>
    %612 = arith.addf %611, %2 : vector<6x6xf32>
    %cst_408 = arith.constant dense<0xFF800000> : vector<6xf32>
    %613 = vector.multi_reduction <maximumf>, %612, %cst_408 [1] : vector<6x6xf32> to vector<6xf32>
    %614 = vector.shape_cast %613 : vector<6xf32> to vector<6x1xf32>
    %615 = vector.broadcast %614 : vector<6x1xf32> to vector<6x6xf32>
    %616 = arith.subf %612, %615 : vector<6x6xf32>
    %617 = math.exp %616 : vector<6x6xf32>
    %cst_409 = arith.constant dense<0.000000e+00> : vector<6xf32>
    %618 = vector.multi_reduction <add>, %617, %cst_409 [1] : vector<6x6xf32> to vector<6xf32>
    %619 = vector.shape_cast %618 : vector<6xf32> to vector<6x1xf32>
    %620 = tpu.reciprocal %619 {approx = true} : vector<6x1xf32> -> vector<6x1xf32>
    %621 = vector.broadcast %620 : vector<6x1xf32> to vector<6x6xf32>
    %622 = arith.mulf %617, %621 : vector<6x6xf32>
    %cst_410 = arith.constant dense<0.000000e+00> : vector<6x8xf32>
    %623 = tpu.matmul %622, %608, %cst_410 {dimension_numbers = #tpu.dot_dimension_numbers<[1], [0], [0], [1], [0, 0, 1, 1], [], []>} : vector<6x6xf32>, vector<6x8xf32>, vector<6x8xf32> -> vector<6x8xf32>
    %cst_411 = arith.constant dense<0.000000e+00> : vector<6x32xf32>
    %624 = tpu.matmul %623, %593, %cst_411 {dimension_numbers = #tpu.dot_dimension_numbers<[1], [0], [0], [1], [0, 0, 1, 1], [], []>} : vector<6x8xf32>, vector<8x32xf32>, vector<6x32xf32> -> vector<6x32xf32>
    %625 = arith.addf %585, %624 : vector<6x32xf32>
    %c20 = arith.constant 20 : index
    %c0_412 = arith.constant 0 : index
    %626 = vector.load %arg6[%c20, %c0_412] : memref<34x64xf32, #tpu.memory_space<vmem>>, vector<1x32xf32>
    %627 = vector.broadcast %626 : vector<1x32xf32> to vector<6x32xf32>
    %628 = arith.addf %625, %627 : vector<6x32xf32>
    %629 = arith.addf %442, %628 : vector<6x32xf32>
    %c16_413 = arith.constant 16 : index
    %c0_414 = arith.constant 0 : index
    %630 = vector.load %arg6[%c16_413, %c0_414] : memref<34x64xf32, #tpu.memory_space<vmem>>, vector<1x32xf32>
    %c17 = arith.constant 17 : index
    %c0_415 = arith.constant 0 : index
    %631 = vector.load %arg6[%c17, %c0_415] : memref<34x64xf32, #tpu.memory_space<vmem>>, vector<1x32xf32>
    %cst_416 = arith.constant dense<0.000000e+00> : vector<6xf32>
    %632 = vector.multi_reduction <add>, %629, %cst_416 [1] : vector<6x32xf32> to vector<6xf32>
    %633 = vector.shape_cast %632 : vector<6xf32> to vector<6x1xf32>
    %634 = arith.mulf %629, %629 : vector<6x32xf32>
    %cst_417 = arith.constant dense<0.000000e+00> : vector<6xf32>
    %635 = vector.multi_reduction <add>, %634, %cst_417 [1] : vector<6x32xf32> to vector<6xf32>
    %636 = vector.shape_cast %635 : vector<6xf32> to vector<6x1xf32>
    %cst_418 = arith.constant 3.125000e-02 : f32
    %637 = vector.broadcast %cst_418 : f32 to vector<6x1xf32>
    %638 = arith.mulf %633, %637 : vector<6x1xf32>
    %cst_419 = arith.constant 3.125000e-02 : f32
    %639 = vector.broadcast %cst_419 : f32 to vector<6x1xf32>
    %640 = arith.mulf %636, %639 : vector<6x1xf32>
    %641 = arith.mulf %638, %638 : vector<6x1xf32>
    %642 = arith.subf %640, %641 : vector<6x1xf32>
    %643 = vector.broadcast %638 : vector<6x1xf32> to vector<6x32xf32>
    %644 = arith.subf %629, %643 : vector<6x32xf32>
    %cst_420 = arith.constant 9.99999974E-6 : f32
    %645 = vector.broadcast %cst_420 : f32 to vector<6x1xf32>
    %646 = arith.addf %642, %645 : vector<6x1xf32>
    %647 = math.rsqrt %646 : vector<6x1xf32>
    %648 = vector.broadcast %647 : vector<6x1xf32> to vector<6x32xf32>
    %649 = arith.mulf %644, %648 : vector<6x32xf32>
    %650 = vector.broadcast %630 : vector<1x32xf32> to vector<6x32xf32>
    %651 = arith.mulf %649, %650 : vector<6x32xf32>
    %652 = vector.broadcast %631 : vector<1x32xf32> to vector<6x32xf32>
    %653 = arith.addf %651, %652 : vector<6x32xf32>
    %c12_421 = arith.constant 12 : index
    %c0_422 = arith.constant 0 : index
    %c0_423 = arith.constant 0 : index
    %654 = vector.load %arg3[%c12_421, %c0_422, %c0_423] : memref<24x32x32xf32, #tpu.memory_space<vmem>>, vector<1x32x8xf32>
    %655 = vector.shape_cast %654 : vector<1x32x8xf32> to vector<32x8xf32>
    %c13_424 = arith.constant 13 : index
    %c0_425 = arith.constant 0 : index
    %c0_426 = arith.constant 0 : index
    %656 = vector.load %arg3[%c13_424, %c0_425, %c0_426] : memref<24x32x32xf32, #tpu.memory_space<vmem>>, vector<1x32x8xf32>
    %657 = vector.shape_cast %656 : vector<1x32x8xf32> to vector<32x8xf32>
    %c14_427 = arith.constant 14 : index
    %c0_428 = arith.constant 0 : index
    %c0_429 = arith.constant 0 : index
    %658 = vector.load %arg3[%c14_427, %c0_428, %c0_429] : memref<24x32x32xf32, #tpu.memory_space<vmem>>, vector<1x32x8xf32>
    %659 = vector.shape_cast %658 : vector<1x32x8xf32> to vector<32x8xf32>
    %c15_430 = arith.constant 15 : index
    %c0_431 = arith.constant 0 : index
    %c0_432 = arith.constant 0 : index
    %660 = vector.load %arg3[%c15_430, %c0_431, %c0_432] : memref<24x32x32xf32, #tpu.memory_space<vmem>>, vector<1x8x32xf32>
    %661 = vector.shape_cast %660 : vector<1x8x32xf32> to vector<8x32xf32>
    %c9_433 = arith.constant 9 : index
    %c0_434 = arith.constant 0 : index
    %c0_435 = arith.constant 0 : index
    %662 = vector.load %arg5[%c9_433, %c0_434, %c0_435] : memref<18x4x8xf32, #tpu.memory_space<vmem>>, vector<1x1x8xf32>
    %663 = vector.shape_cast %662 : vector<1x1x8xf32> to vector<1x8xf32>
    %c10_436 = arith.constant 10 : index
    %c0_437 = arith.constant 0 : index
    %c0_438 = arith.constant 0 : index
    %664 = vector.load %arg5[%c10_436, %c0_437, %c0_438] : memref<18x4x8xf32, #tpu.memory_space<vmem>>, vector<1x1x8xf32>
    %665 = vector.shape_cast %664 : vector<1x1x8xf32> to vector<1x8xf32>
    %c11_439 = arith.constant 11 : index
    %c0_440 = arith.constant 0 : index
    %c0_441 = arith.constant 0 : index
    %666 = vector.load %arg5[%c11_439, %c0_440, %c0_441] : memref<18x4x8xf32, #tpu.memory_space<vmem>>, vector<1x1x8xf32>
    %667 = vector.shape_cast %666 : vector<1x1x8xf32> to vector<1x8xf32>
    %cst_442 = arith.constant dense<0.000000e+00> : vector<6x8xf32>
    %668 = tpu.matmul %653, %655, %cst_442 {dimension_numbers = #tpu.dot_dimension_numbers<[1], [0], [0], [1], [0, 0, 1, 1], [], []>} : vector<6x32xf32>, vector<32x8xf32>, vector<6x8xf32> -> vector<6x8xf32>
    %669 = vector.broadcast %663 : vector<1x8xf32> to vector<6x8xf32>
    %670 = arith.addf %668, %669 : vector<6x8xf32>
    %cst_443 = arith.constant dense<0.000000e+00> : vector<16x8xf32>
    %671 = tpu.matmul %29, %657, %cst_443 {dimension_numbers = #tpu.dot_dimension_numbers<[1], [0], [0], [1], [0, 0, 1, 1], [], []>} : vector<16x32xf32>, vector<32x8xf32>, vector<16x8xf32> -> vector<16x8xf32>
    %672 = vector.broadcast %665 : vector<1x8xf32> to vector<16x8xf32>
    %673 = arith.addf %671, %672 : vector<16x8xf32>
    %cst_444 = arith.constant dense<0.000000e+00> : vector<16x8xf32>
    %674 = tpu.matmul %29, %659, %cst_444 {dimension_numbers = #tpu.dot_dimension_numbers<[1], [0], [0], [1], [0, 0, 1, 1], [], []>} : vector<16x32xf32>, vector<32x8xf32>, vector<16x8xf32> -> vector<16x8xf32>
    %675 = vector.broadcast %667 : vector<1x8xf32> to vector<16x8xf32>
    %676 = arith.addf %674, %675 : vector<16x8xf32>
    %cst_445 = arith.constant dense<0.000000e+00> : vector<6x16xf32>
    %677 = tpu.matmul %670, %673, %cst_445 {dimension_numbers = #tpu.dot_dimension_numbers<[1], [1], [0], [0], [0, 0, 1, 0], [], []>} : vector<6x8xf32>, vector<16x8xf32>, vector<6x16xf32> -> vector<6x16xf32>
    %cst_446 = arith.constant 0.353553385 : f32
    %678 = vector.broadcast %cst_446 : f32 to vector<6x16xf32>
    %679 = arith.mulf %677, %678 : vector<6x16xf32>
    %680 = arith.addf %679, %4 : vector<6x16xf32>
    %cst_447 = arith.constant dense<0xFF800000> : vector<6xf32>
    %681 = vector.multi_reduction <maximumf>, %680, %cst_447 [1] : vector<6x16xf32> to vector<6xf32>
    %682 = vector.shape_cast %681 : vector<6xf32> to vector<6x1xf32>
    %683 = vector.broadcast %682 : vector<6x1xf32> to vector<6x16xf32>
    %684 = arith.subf %680, %683 : vector<6x16xf32>
    %685 = math.exp %684 : vector<6x16xf32>
    %cst_448 = arith.constant dense<0.000000e+00> : vector<6xf32>
    %686 = vector.multi_reduction <add>, %685, %cst_448 [1] : vector<6x16xf32> to vector<6xf32>
    %687 = vector.shape_cast %686 : vector<6xf32> to vector<6x1xf32>
    %688 = tpu.reciprocal %687 {approx = true} : vector<6x1xf32> -> vector<6x1xf32>
    %689 = vector.broadcast %688 : vector<6x1xf32> to vector<6x16xf32>
    %690 = arith.mulf %685, %689 : vector<6x16xf32>
    %cst_449 = arith.constant dense<0.000000e+00> : vector<6x8xf32>
    %691 = tpu.matmul %690, %676, %cst_449 {dimension_numbers = #tpu.dot_dimension_numbers<[1], [0], [0], [1], [0, 0, 1, 1], [], []>} : vector<6x16xf32>, vector<16x8xf32>, vector<6x8xf32> -> vector<6x8xf32>
    %cst_450 = arith.constant dense<0.000000e+00> : vector<6x32xf32>
    %692 = tpu.matmul %691, %661, %cst_450 {dimension_numbers = #tpu.dot_dimension_numbers<[1], [0], [0], [1], [0, 0, 1, 1], [], []>} : vector<6x8xf32>, vector<8x32xf32>, vector<6x32xf32> -> vector<6x32xf32>
    %c12_451 = arith.constant 12 : index
    %c0_452 = arith.constant 0 : index
    %c8_453 = arith.constant 8 : index
    %693 = vector.load %arg3[%c12_451, %c0_452, %c8_453] : memref<24x32x32xf32, #tpu.memory_space<vmem>>, vector<1x32x8xf32>
    %694 = vector.shape_cast %693 : vector<1x32x8xf32> to vector<32x8xf32>
    %c13_454 = arith.constant 13 : index
    %c0_455 = arith.constant 0 : index
    %c8_456 = arith.constant 8 : index
    %695 = vector.load %arg3[%c13_454, %c0_455, %c8_456] : memref<24x32x32xf32, #tpu.memory_space<vmem>>, vector<1x32x8xf32>
    %696 = vector.shape_cast %695 : vector<1x32x8xf32> to vector<32x8xf32>
    %c14_457 = arith.constant 14 : index
    %c0_458 = arith.constant 0 : index
    %c8_459 = arith.constant 8 : index
    %697 = vector.load %arg3[%c14_457, %c0_458, %c8_459] : memref<24x32x32xf32, #tpu.memory_space<vmem>>, vector<1x32x8xf32>
    %698 = vector.shape_cast %697 : vector<1x32x8xf32> to vector<32x8xf32>
    %c15_460 = arith.constant 15 : index
    %c8_461 = arith.constant 8 : index
    %c0_462 = arith.constant 0 : index
    %699 = vector.load %arg3[%c15_460, %c8_461, %c0_462] : memref<24x32x32xf32, #tpu.memory_space<vmem>>, vector<1x8x32xf32>
    %700 = vector.shape_cast %699 : vector<1x8x32xf32> to vector<8x32xf32>
    %c9_463 = arith.constant 9 : index
    %c1_464 = arith.constant 1 : index
    %c0_465 = arith.constant 0 : index
    %701 = vector.load %arg5[%c9_463, %c1_464, %c0_465] : memref<18x4x8xf32, #tpu.memory_space<vmem>>, vector<1x1x8xf32>
    %702 = vector.shape_cast %701 : vector<1x1x8xf32> to vector<1x8xf32>
    %c10_466 = arith.constant 10 : index
    %c1_467 = arith.constant 1 : index
    %c0_468 = arith.constant 0 : index
    %703 = vector.load %arg5[%c10_466, %c1_467, %c0_468] : memref<18x4x8xf32, #tpu.memory_space<vmem>>, vector<1x1x8xf32>
    %704 = vector.shape_cast %703 : vector<1x1x8xf32> to vector<1x8xf32>
    %c11_469 = arith.constant 11 : index
    %c1_470 = arith.constant 1 : index
    %c0_471 = arith.constant 0 : index
    %705 = vector.load %arg5[%c11_469, %c1_470, %c0_471] : memref<18x4x8xf32, #tpu.memory_space<vmem>>, vector<1x1x8xf32>
    %706 = vector.shape_cast %705 : vector<1x1x8xf32> to vector<1x8xf32>
    %cst_472 = arith.constant dense<0.000000e+00> : vector<6x8xf32>
    %707 = tpu.matmul %653, %694, %cst_472 {dimension_numbers = #tpu.dot_dimension_numbers<[1], [0], [0], [1], [0, 0, 1, 1], [], []>} : vector<6x32xf32>, vector<32x8xf32>, vector<6x8xf32> -> vector<6x8xf32>
    %708 = vector.broadcast %702 : vector<1x8xf32> to vector<6x8xf32>
    %709 = arith.addf %707, %708 : vector<6x8xf32>
    %cst_473 = arith.constant dense<0.000000e+00> : vector<16x8xf32>
    %710 = tpu.matmul %29, %696, %cst_473 {dimension_numbers = #tpu.dot_dimension_numbers<[1], [0], [0], [1], [0, 0, 1, 1], [], []>} : vector<16x32xf32>, vector<32x8xf32>, vector<16x8xf32> -> vector<16x8xf32>
    %711 = vector.broadcast %704 : vector<1x8xf32> to vector<16x8xf32>
    %712 = arith.addf %710, %711 : vector<16x8xf32>
    %cst_474 = arith.constant dense<0.000000e+00> : vector<16x8xf32>
    %713 = tpu.matmul %29, %698, %cst_474 {dimension_numbers = #tpu.dot_dimension_numbers<[1], [0], [0], [1], [0, 0, 1, 1], [], []>} : vector<16x32xf32>, vector<32x8xf32>, vector<16x8xf32> -> vector<16x8xf32>
    %714 = vector.broadcast %706 : vector<1x8xf32> to vector<16x8xf32>
    %715 = arith.addf %713, %714 : vector<16x8xf32>
    %cst_475 = arith.constant dense<0.000000e+00> : vector<6x16xf32>
    %716 = tpu.matmul %709, %712, %cst_475 {dimension_numbers = #tpu.dot_dimension_numbers<[1], [1], [0], [0], [0, 0, 1, 0], [], []>} : vector<6x8xf32>, vector<16x8xf32>, vector<6x16xf32> -> vector<6x16xf32>
    %cst_476 = arith.constant 0.353553385 : f32
    %717 = vector.broadcast %cst_476 : f32 to vector<6x16xf32>
    %718 = arith.mulf %716, %717 : vector<6x16xf32>
    %719 = arith.addf %718, %4 : vector<6x16xf32>
    %cst_477 = arith.constant dense<0xFF800000> : vector<6xf32>
    %720 = vector.multi_reduction <maximumf>, %719, %cst_477 [1] : vector<6x16xf32> to vector<6xf32>
    %721 = vector.shape_cast %720 : vector<6xf32> to vector<6x1xf32>
    %722 = vector.broadcast %721 : vector<6x1xf32> to vector<6x16xf32>
    %723 = arith.subf %719, %722 : vector<6x16xf32>
    %724 = math.exp %723 : vector<6x16xf32>
    %cst_478 = arith.constant dense<0.000000e+00> : vector<6xf32>
    %725 = vector.multi_reduction <add>, %724, %cst_478 [1] : vector<6x16xf32> to vector<6xf32>
    %726 = vector.shape_cast %725 : vector<6xf32> to vector<6x1xf32>
    %727 = tpu.reciprocal %726 {approx = true} : vector<6x1xf32> -> vector<6x1xf32>
    %728 = vector.broadcast %727 : vector<6x1xf32> to vector<6x16xf32>
    %729 = arith.mulf %724, %728 : vector<6x16xf32>
    %cst_479 = arith.constant dense<0.000000e+00> : vector<6x8xf32>
    %730 = tpu.matmul %729, %715, %cst_479 {dimension_numbers = #tpu.dot_dimension_numbers<[1], [0], [0], [1], [0, 0, 1, 1], [], []>} : vector<6x16xf32>, vector<16x8xf32>, vector<6x8xf32> -> vector<6x8xf32>
    %cst_480 = arith.constant dense<0.000000e+00> : vector<6x32xf32>
    %731 = tpu.matmul %730, %700, %cst_480 {dimension_numbers = #tpu.dot_dimension_numbers<[1], [0], [0], [1], [0, 0, 1, 1], [], []>} : vector<6x8xf32>, vector<8x32xf32>, vector<6x32xf32> -> vector<6x32xf32>
    %732 = arith.addf %692, %731 : vector<6x32xf32>
    %c12_481 = arith.constant 12 : index
    %c0_482 = arith.constant 0 : index
    %c16_483 = arith.constant 16 : index
    %733 = vector.load %arg3[%c12_481, %c0_482, %c16_483] : memref<24x32x32xf32, #tpu.memory_space<vmem>>, vector<1x32x8xf32>
    %734 = vector.shape_cast %733 : vector<1x32x8xf32> to vector<32x8xf32>
    %c13_484 = arith.constant 13 : index
    %c0_485 = arith.constant 0 : index
    %c16_486 = arith.constant 16 : index
    %735 = vector.load %arg3[%c13_484, %c0_485, %c16_486] : memref<24x32x32xf32, #tpu.memory_space<vmem>>, vector<1x32x8xf32>
    %736 = vector.shape_cast %735 : vector<1x32x8xf32> to vector<32x8xf32>
    %c14_487 = arith.constant 14 : index
    %c0_488 = arith.constant 0 : index
    %c16_489 = arith.constant 16 : index
    %737 = vector.load %arg3[%c14_487, %c0_488, %c16_489] : memref<24x32x32xf32, #tpu.memory_space<vmem>>, vector<1x32x8xf32>
    %738 = vector.shape_cast %737 : vector<1x32x8xf32> to vector<32x8xf32>
    %c15_490 = arith.constant 15 : index
    %c16_491 = arith.constant 16 : index
    %c0_492 = arith.constant 0 : index
    %739 = vector.load %arg3[%c15_490, %c16_491, %c0_492] : memref<24x32x32xf32, #tpu.memory_space<vmem>>, vector<1x8x32xf32>
    %740 = vector.shape_cast %739 : vector<1x8x32xf32> to vector<8x32xf32>
    %c9_493 = arith.constant 9 : index
    %c2_494 = arith.constant 2 : index
    %c0_495 = arith.constant 0 : index
    %741 = vector.load %arg5[%c9_493, %c2_494, %c0_495] : memref<18x4x8xf32, #tpu.memory_space<vmem>>, vector<1x1x8xf32>
    %742 = vector.shape_cast %741 : vector<1x1x8xf32> to vector<1x8xf32>
    %c10_496 = arith.constant 10 : index
    %c2_497 = arith.constant 2 : index
    %c0_498 = arith.constant 0 : index
    %743 = vector.load %arg5[%c10_496, %c2_497, %c0_498] : memref<18x4x8xf32, #tpu.memory_space<vmem>>, vector<1x1x8xf32>
    %744 = vector.shape_cast %743 : vector<1x1x8xf32> to vector<1x8xf32>
    %c11_499 = arith.constant 11 : index
    %c2_500 = arith.constant 2 : index
    %c0_501 = arith.constant 0 : index
    %745 = vector.load %arg5[%c11_499, %c2_500, %c0_501] : memref<18x4x8xf32, #tpu.memory_space<vmem>>, vector<1x1x8xf32>
    %746 = vector.shape_cast %745 : vector<1x1x8xf32> to vector<1x8xf32>
    %cst_502 = arith.constant dense<0.000000e+00> : vector<6x8xf32>
    %747 = tpu.matmul %653, %734, %cst_502 {dimension_numbers = #tpu.dot_dimension_numbers<[1], [0], [0], [1], [0, 0, 1, 1], [], []>} : vector<6x32xf32>, vector<32x8xf32>, vector<6x8xf32> -> vector<6x8xf32>
    %748 = vector.broadcast %742 : vector<1x8xf32> to vector<6x8xf32>
    %749 = arith.addf %747, %748 : vector<6x8xf32>
    %cst_503 = arith.constant dense<0.000000e+00> : vector<16x8xf32>
    %750 = tpu.matmul %29, %736, %cst_503 {dimension_numbers = #tpu.dot_dimension_numbers<[1], [0], [0], [1], [0, 0, 1, 1], [], []>} : vector<16x32xf32>, vector<32x8xf32>, vector<16x8xf32> -> vector<16x8xf32>
    %751 = vector.broadcast %744 : vector<1x8xf32> to vector<16x8xf32>
    %752 = arith.addf %750, %751 : vector<16x8xf32>
    %cst_504 = arith.constant dense<0.000000e+00> : vector<16x8xf32>
    %753 = tpu.matmul %29, %738, %cst_504 {dimension_numbers = #tpu.dot_dimension_numbers<[1], [0], [0], [1], [0, 0, 1, 1], [], []>} : vector<16x32xf32>, vector<32x8xf32>, vector<16x8xf32> -> vector<16x8xf32>
    %754 = vector.broadcast %746 : vector<1x8xf32> to vector<16x8xf32>
    %755 = arith.addf %753, %754 : vector<16x8xf32>
    %cst_505 = arith.constant dense<0.000000e+00> : vector<6x16xf32>
    %756 = tpu.matmul %749, %752, %cst_505 {dimension_numbers = #tpu.dot_dimension_numbers<[1], [1], [0], [0], [0, 0, 1, 0], [], []>} : vector<6x8xf32>, vector<16x8xf32>, vector<6x16xf32> -> vector<6x16xf32>
    %cst_506 = arith.constant 0.353553385 : f32
    %757 = vector.broadcast %cst_506 : f32 to vector<6x16xf32>
    %758 = arith.mulf %756, %757 : vector<6x16xf32>
    %759 = arith.addf %758, %4 : vector<6x16xf32>
    %cst_507 = arith.constant dense<0xFF800000> : vector<6xf32>
    %760 = vector.multi_reduction <maximumf>, %759, %cst_507 [1] : vector<6x16xf32> to vector<6xf32>
    %761 = vector.shape_cast %760 : vector<6xf32> to vector<6x1xf32>
    %762 = vector.broadcast %761 : vector<6x1xf32> to vector<6x16xf32>
    %763 = arith.subf %759, %762 : vector<6x16xf32>
    %764 = math.exp %763 : vector<6x16xf32>
    %cst_508 = arith.constant dense<0.000000e+00> : vector<6xf32>
    %765 = vector.multi_reduction <add>, %764, %cst_508 [1] : vector<6x16xf32> to vector<6xf32>
    %766 = vector.shape_cast %765 : vector<6xf32> to vector<6x1xf32>
    %767 = tpu.reciprocal %766 {approx = true} : vector<6x1xf32> -> vector<6x1xf32>
    %768 = vector.broadcast %767 : vector<6x1xf32> to vector<6x16xf32>
    %769 = arith.mulf %764, %768 : vector<6x16xf32>
    %cst_509 = arith.constant dense<0.000000e+00> : vector<6x8xf32>
    %770 = tpu.matmul %769, %755, %cst_509 {dimension_numbers = #tpu.dot_dimension_numbers<[1], [0], [0], [1], [0, 0, 1, 1], [], []>} : vector<6x16xf32>, vector<16x8xf32>, vector<6x8xf32> -> vector<6x8xf32>
    %cst_510 = arith.constant dense<0.000000e+00> : vector<6x32xf32>
    %771 = tpu.matmul %770, %740, %cst_510 {dimension_numbers = #tpu.dot_dimension_numbers<[1], [0], [0], [1], [0, 0, 1, 1], [], []>} : vector<6x8xf32>, vector<8x32xf32>, vector<6x32xf32> -> vector<6x32xf32>
    %772 = arith.addf %732, %771 : vector<6x32xf32>
    %c12_511 = arith.constant 12 : index
    %c0_512 = arith.constant 0 : index
    %c24_513 = arith.constant 24 : index
    %773 = vector.load %arg3[%c12_511, %c0_512, %c24_513] : memref<24x32x32xf32, #tpu.memory_space<vmem>>, vector<1x32x8xf32>
    %774 = vector.shape_cast %773 : vector<1x32x8xf32> to vector<32x8xf32>
    %c13_514 = arith.constant 13 : index
    %c0_515 = arith.constant 0 : index
    %c24_516 = arith.constant 24 : index
    %775 = vector.load %arg3[%c13_514, %c0_515, %c24_516] : memref<24x32x32xf32, #tpu.memory_space<vmem>>, vector<1x32x8xf32>
    %776 = vector.shape_cast %775 : vector<1x32x8xf32> to vector<32x8xf32>
    %c14_517 = arith.constant 14 : index
    %c0_518 = arith.constant 0 : index
    %c24_519 = arith.constant 24 : index
    %777 = vector.load %arg3[%c14_517, %c0_518, %c24_519] : memref<24x32x32xf32, #tpu.memory_space<vmem>>, vector<1x32x8xf32>
    %778 = vector.shape_cast %777 : vector<1x32x8xf32> to vector<32x8xf32>
    %c15_520 = arith.constant 15 : index
    %c24_521 = arith.constant 24 : index
    %c0_522 = arith.constant 0 : index
    %779 = vector.load %arg3[%c15_520, %c24_521, %c0_522] : memref<24x32x32xf32, #tpu.memory_space<vmem>>, vector<1x8x32xf32>
    %780 = vector.shape_cast %779 : vector<1x8x32xf32> to vector<8x32xf32>
    %c9_523 = arith.constant 9 : index
    %c3_524 = arith.constant 3 : index
    %c0_525 = arith.constant 0 : index
    %781 = vector.load %arg5[%c9_523, %c3_524, %c0_525] : memref<18x4x8xf32, #tpu.memory_space<vmem>>, vector<1x1x8xf32>
    %782 = vector.shape_cast %781 : vector<1x1x8xf32> to vector<1x8xf32>
    %c10_526 = arith.constant 10 : index
    %c3_527 = arith.constant 3 : index
    %c0_528 = arith.constant 0 : index
    %783 = vector.load %arg5[%c10_526, %c3_527, %c0_528] : memref<18x4x8xf32, #tpu.memory_space<vmem>>, vector<1x1x8xf32>
    %784 = vector.shape_cast %783 : vector<1x1x8xf32> to vector<1x8xf32>
    %c11_529 = arith.constant 11 : index
    %c3_530 = arith.constant 3 : index
    %c0_531 = arith.constant 0 : index
    %785 = vector.load %arg5[%c11_529, %c3_530, %c0_531] : memref<18x4x8xf32, #tpu.memory_space<vmem>>, vector<1x1x8xf32>
    %786 = vector.shape_cast %785 : vector<1x1x8xf32> to vector<1x8xf32>
    %cst_532 = arith.constant dense<0.000000e+00> : vector<6x8xf32>
    %787 = tpu.matmul %653, %774, %cst_532 {dimension_numbers = #tpu.dot_dimension_numbers<[1], [0], [0], [1], [0, 0, 1, 1], [], []>} : vector<6x32xf32>, vector<32x8xf32>, vector<6x8xf32> -> vector<6x8xf32>
    %788 = vector.broadcast %782 : vector<1x8xf32> to vector<6x8xf32>
    %789 = arith.addf %787, %788 : vector<6x8xf32>
    %cst_533 = arith.constant dense<0.000000e+00> : vector<16x8xf32>
    %790 = tpu.matmul %29, %776, %cst_533 {dimension_numbers = #tpu.dot_dimension_numbers<[1], [0], [0], [1], [0, 0, 1, 1], [], []>} : vector<16x32xf32>, vector<32x8xf32>, vector<16x8xf32> -> vector<16x8xf32>
    %791 = vector.broadcast %784 : vector<1x8xf32> to vector<16x8xf32>
    %792 = arith.addf %790, %791 : vector<16x8xf32>
    %cst_534 = arith.constant dense<0.000000e+00> : vector<16x8xf32>
    %793 = tpu.matmul %29, %778, %cst_534 {dimension_numbers = #tpu.dot_dimension_numbers<[1], [0], [0], [1], [0, 0, 1, 1], [], []>} : vector<16x32xf32>, vector<32x8xf32>, vector<16x8xf32> -> vector<16x8xf32>
    %794 = vector.broadcast %786 : vector<1x8xf32> to vector<16x8xf32>
    %795 = arith.addf %793, %794 : vector<16x8xf32>
    %cst_535 = arith.constant dense<0.000000e+00> : vector<6x16xf32>
    %796 = tpu.matmul %789, %792, %cst_535 {dimension_numbers = #tpu.dot_dimension_numbers<[1], [1], [0], [0], [0, 0, 1, 0], [], []>} : vector<6x8xf32>, vector<16x8xf32>, vector<6x16xf32> -> vector<6x16xf32>
    %cst_536 = arith.constant 0.353553385 : f32
    %797 = vector.broadcast %cst_536 : f32 to vector<6x16xf32>
    %798 = arith.mulf %796, %797 : vector<6x16xf32>
    %799 = arith.addf %798, %4 : vector<6x16xf32>
    %cst_537 = arith.constant dense<0xFF800000> : vector<6xf32>
    %800 = vector.multi_reduction <maximumf>, %799, %cst_537 [1] : vector<6x16xf32> to vector<6xf32>
    %801 = vector.shape_cast %800 : vector<6xf32> to vector<6x1xf32>
    %802 = vector.broadcast %801 : vector<6x1xf32> to vector<6x16xf32>
    %803 = arith.subf %799, %802 : vector<6x16xf32>
    %804 = math.exp %803 : vector<6x16xf32>
    %cst_538 = arith.constant dense<0.000000e+00> : vector<6xf32>
    %805 = vector.multi_reduction <add>, %804, %cst_538 [1] : vector<6x16xf32> to vector<6xf32>
    %806 = vector.shape_cast %805 : vector<6xf32> to vector<6x1xf32>
    %807 = tpu.reciprocal %806 {approx = true} : vector<6x1xf32> -> vector<6x1xf32>
    %808 = vector.broadcast %807 : vector<6x1xf32> to vector<6x16xf32>
    %809 = arith.mulf %804, %808 : vector<6x16xf32>
    %cst_539 = arith.constant dense<0.000000e+00> : vector<6x8xf32>
    %810 = tpu.matmul %809, %795, %cst_539 {dimension_numbers = #tpu.dot_dimension_numbers<[1], [0], [0], [1], [0, 0, 1, 1], [], []>} : vector<6x16xf32>, vector<16x8xf32>, vector<6x8xf32> -> vector<6x8xf32>
    %cst_540 = arith.constant dense<0.000000e+00> : vector<6x32xf32>
    %811 = tpu.matmul %810, %780, %cst_540 {dimension_numbers = #tpu.dot_dimension_numbers<[1], [0], [0], [1], [0, 0, 1, 1], [], []>} : vector<6x8xf32>, vector<8x32xf32>, vector<6x32xf32> -> vector<6x32xf32>
    %812 = arith.addf %772, %811 : vector<6x32xf32>
    %c21 = arith.constant 21 : index
    %c0_541 = arith.constant 0 : index
    %813 = vector.load %arg6[%c21, %c0_541] : memref<34x64xf32, #tpu.memory_space<vmem>>, vector<1x32xf32>
    %814 = vector.broadcast %813 : vector<1x32xf32> to vector<6x32xf32>
    %815 = arith.addf %812, %814 : vector<6x32xf32>
    %816 = arith.addf %629, %815 : vector<6x32xf32>
    %c18 = arith.constant 18 : index
    %c0_542 = arith.constant 0 : index
    %817 = vector.load %arg6[%c18, %c0_542] : memref<34x64xf32, #tpu.memory_space<vmem>>, vector<1x32xf32>
    %c19 = arith.constant 19 : index
    %c0_543 = arith.constant 0 : index
    %818 = vector.load %arg6[%c19, %c0_543] : memref<34x64xf32, #tpu.memory_space<vmem>>, vector<1x32xf32>
    %cst_544 = arith.constant dense<0.000000e+00> : vector<6xf32>
    %819 = vector.multi_reduction <add>, %816, %cst_544 [1] : vector<6x32xf32> to vector<6xf32>
    %820 = vector.shape_cast %819 : vector<6xf32> to vector<6x1xf32>
    %821 = arith.mulf %816, %816 : vector<6x32xf32>
    %cst_545 = arith.constant dense<0.000000e+00> : vector<6xf32>
    %822 = vector.multi_reduction <add>, %821, %cst_545 [1] : vector<6x32xf32> to vector<6xf32>
    %823 = vector.shape_cast %822 : vector<6xf32> to vector<6x1xf32>
    %cst_546 = arith.constant 3.125000e-02 : f32
    %824 = vector.broadcast %cst_546 : f32 to vector<6x1xf32>
    %825 = arith.mulf %820, %824 : vector<6x1xf32>
    %cst_547 = arith.constant 3.125000e-02 : f32
    %826 = vector.broadcast %cst_547 : f32 to vector<6x1xf32>
    %827 = arith.mulf %823, %826 : vector<6x1xf32>
    %828 = arith.mulf %825, %825 : vector<6x1xf32>
    %829 = arith.subf %827, %828 : vector<6x1xf32>
    %830 = vector.broadcast %825 : vector<6x1xf32> to vector<6x32xf32>
    %831 = arith.subf %816, %830 : vector<6x32xf32>
    %cst_548 = arith.constant 9.99999974E-6 : f32
    %832 = vector.broadcast %cst_548 : f32 to vector<6x1xf32>
    %833 = arith.addf %829, %832 : vector<6x1xf32>
    %834 = math.rsqrt %833 : vector<6x1xf32>
    %835 = vector.broadcast %834 : vector<6x1xf32> to vector<6x32xf32>
    %836 = arith.mulf %831, %835 : vector<6x32xf32>
    %837 = vector.broadcast %817 : vector<1x32xf32> to vector<6x32xf32>
    %838 = arith.mulf %836, %837 : vector<6x32xf32>
    %839 = vector.broadcast %818 : vector<1x32xf32> to vector<6x32xf32>
    %840 = arith.addf %838, %839 : vector<6x32xf32>
    %c1_549 = arith.constant 1 : index
    %c0_550 = arith.constant 0 : index
    %c0_551 = arith.constant 0 : index
    %841 = vector.load %arg4[%c1_549, %c0_550, %c0_551] : memref<3x96x64xf32, #tpu.memory_space<vmem>>, vector<1x32x64xf32>
    %842 = vector.shape_cast %841 : vector<1x32x64xf32> to vector<32x64xf32>
    %cst_552 = arith.constant dense<0.000000e+00> : vector<6x64xf32>
    %843 = tpu.matmul %840, %842, %cst_552 {dimension_numbers = #tpu.dot_dimension_numbers<[1], [0], [0], [1], [0, 0, 1, 1], [], []>} : vector<6x32xf32>, vector<32x64xf32>, vector<6x64xf32> -> vector<6x64xf32>
    %c22 = arith.constant 22 : index
    %c0_553 = arith.constant 0 : index
    %844 = vector.load %arg6[%c22, %c0_553] : memref<34x64xf32, #tpu.memory_space<vmem>>, vector<1x64xf32>
    %845 = vector.broadcast %844 : vector<1x64xf32> to vector<6x64xf32>
    %846 = arith.addf %843, %845 : vector<6x64xf32>
    %cst_554 = arith.constant 0.000000e+00 : f32
    %847 = vector.broadcast %cst_554 : f32 to vector<6x64xf32>
    %848 = arith.maximumf %846, %847 : vector<6x64xf32>
    %c1_555 = arith.constant 1 : index
    %c32_556 = arith.constant 32 : index
    %c0_557 = arith.constant 0 : index
    %849 = vector.load %arg4[%c1_555, %c32_556, %c0_557] : memref<3x96x64xf32, #tpu.memory_space<vmem>>, vector<1x64x32xf32>
    %850 = vector.shape_cast %849 : vector<1x64x32xf32> to vector<64x32xf32>
    %cst_558 = arith.constant dense<0.000000e+00> : vector<6x32xf32>
    %851 = tpu.matmul %848, %850, %cst_558 {dimension_numbers = #tpu.dot_dimension_numbers<[1], [0], [0], [1], [0, 0, 1, 1], [], []>} : vector<6x64xf32>, vector<64x32xf32>, vector<6x32xf32> -> vector<6x32xf32>
    %c23 = arith.constant 23 : index
    %c0_559 = arith.constant 0 : index
    %852 = vector.load %arg6[%c23, %c0_559] : memref<34x64xf32, #tpu.memory_space<vmem>>, vector<1x32xf32>
    %853 = vector.broadcast %852 : vector<1x32xf32> to vector<6x32xf32>
    %854 = arith.addf %851, %853 : vector<6x32xf32>
    %855 = arith.addf %816, %854 : vector<6x32xf32>
    %c24_560 = arith.constant 24 : index
    %c0_561 = arith.constant 0 : index
    %856 = vector.load %arg6[%c24_560, %c0_561] : memref<34x64xf32, #tpu.memory_space<vmem>>, vector<1x32xf32>
    %c25 = arith.constant 25 : index
    %c0_562 = arith.constant 0 : index
    %857 = vector.load %arg6[%c25, %c0_562] : memref<34x64xf32, #tpu.memory_space<vmem>>, vector<1x32xf32>
    %cst_563 = arith.constant dense<0.000000e+00> : vector<6xf32>
    %858 = vector.multi_reduction <add>, %855, %cst_563 [1] : vector<6x32xf32> to vector<6xf32>
    %859 = vector.shape_cast %858 : vector<6xf32> to vector<6x1xf32>
    %860 = arith.mulf %855, %855 : vector<6x32xf32>
    %cst_564 = arith.constant dense<0.000000e+00> : vector<6xf32>
    %861 = vector.multi_reduction <add>, %860, %cst_564 [1] : vector<6x32xf32> to vector<6xf32>
    %862 = vector.shape_cast %861 : vector<6xf32> to vector<6x1xf32>
    %cst_565 = arith.constant 3.125000e-02 : f32
    %863 = vector.broadcast %cst_565 : f32 to vector<6x1xf32>
    %864 = arith.mulf %859, %863 : vector<6x1xf32>
    %cst_566 = arith.constant 3.125000e-02 : f32
    %865 = vector.broadcast %cst_566 : f32 to vector<6x1xf32>
    %866 = arith.mulf %862, %865 : vector<6x1xf32>
    %867 = arith.mulf %864, %864 : vector<6x1xf32>
    %868 = arith.subf %866, %867 : vector<6x1xf32>
    %869 = vector.broadcast %864 : vector<6x1xf32> to vector<6x32xf32>
    %870 = arith.subf %855, %869 : vector<6x32xf32>
    %cst_567 = arith.constant 9.99999974E-6 : f32
    %871 = vector.broadcast %cst_567 : f32 to vector<6x1xf32>
    %872 = arith.addf %868, %871 : vector<6x1xf32>
    %873 = math.rsqrt %872 : vector<6x1xf32>
    %874 = vector.broadcast %873 : vector<6x1xf32> to vector<6x32xf32>
    %875 = arith.mulf %870, %874 : vector<6x32xf32>
    %876 = vector.broadcast %856 : vector<1x32xf32> to vector<6x32xf32>
    %877 = arith.mulf %875, %876 : vector<6x32xf32>
    %878 = vector.broadcast %857 : vector<1x32xf32> to vector<6x32xf32>
    %879 = arith.addf %877, %878 : vector<6x32xf32>
    %c16_568 = arith.constant 16 : index
    %c0_569 = arith.constant 0 : index
    %c0_570 = arith.constant 0 : index
    %880 = vector.load %arg3[%c16_568, %c0_569, %c0_570] : memref<24x32x32xf32, #tpu.memory_space<vmem>>, vector<1x32x8xf32>
    %881 = vector.shape_cast %880 : vector<1x32x8xf32> to vector<32x8xf32>
    %c17_571 = arith.constant 17 : index
    %c0_572 = arith.constant 0 : index
    %c0_573 = arith.constant 0 : index
    %882 = vector.load %arg3[%c17_571, %c0_572, %c0_573] : memref<24x32x32xf32, #tpu.memory_space<vmem>>, vector<1x32x8xf32>
    %883 = vector.shape_cast %882 : vector<1x32x8xf32> to vector<32x8xf32>
    %c18_574 = arith.constant 18 : index
    %c0_575 = arith.constant 0 : index
    %c0_576 = arith.constant 0 : index
    %884 = vector.load %arg3[%c18_574, %c0_575, %c0_576] : memref<24x32x32xf32, #tpu.memory_space<vmem>>, vector<1x32x8xf32>
    %885 = vector.shape_cast %884 : vector<1x32x8xf32> to vector<32x8xf32>
    %c19_577 = arith.constant 19 : index
    %c0_578 = arith.constant 0 : index
    %c0_579 = arith.constant 0 : index
    %886 = vector.load %arg3[%c19_577, %c0_578, %c0_579] : memref<24x32x32xf32, #tpu.memory_space<vmem>>, vector<1x8x32xf32>
    %887 = vector.shape_cast %886 : vector<1x8x32xf32> to vector<8x32xf32>
    %c12_580 = arith.constant 12 : index
    %c0_581 = arith.constant 0 : index
    %c0_582 = arith.constant 0 : index
    %888 = vector.load %arg5[%c12_580, %c0_581, %c0_582] : memref<18x4x8xf32, #tpu.memory_space<vmem>>, vector<1x1x8xf32>
    %889 = vector.shape_cast %888 : vector<1x1x8xf32> to vector<1x8xf32>
    %c13_583 = arith.constant 13 : index
    %c0_584 = arith.constant 0 : index
    %c0_585 = arith.constant 0 : index
    %890 = vector.load %arg5[%c13_583, %c0_584, %c0_585] : memref<18x4x8xf32, #tpu.memory_space<vmem>>, vector<1x1x8xf32>
    %891 = vector.shape_cast %890 : vector<1x1x8xf32> to vector<1x8xf32>
    %c14_586 = arith.constant 14 : index
    %c0_587 = arith.constant 0 : index
    %c0_588 = arith.constant 0 : index
    %892 = vector.load %arg5[%c14_586, %c0_587, %c0_588] : memref<18x4x8xf32, #tpu.memory_space<vmem>>, vector<1x1x8xf32>
    %893 = vector.shape_cast %892 : vector<1x1x8xf32> to vector<1x8xf32>
    %cst_589 = arith.constant dense<0.000000e+00> : vector<6x8xf32>
    %894 = tpu.matmul %879, %881, %cst_589 {dimension_numbers = #tpu.dot_dimension_numbers<[1], [0], [0], [1], [0, 0, 1, 1], [], []>} : vector<6x32xf32>, vector<32x8xf32>, vector<6x8xf32> -> vector<6x8xf32>
    %895 = vector.broadcast %889 : vector<1x8xf32> to vector<6x8xf32>
    %896 = arith.addf %894, %895 : vector<6x8xf32>
    %cst_590 = arith.constant dense<0.000000e+00> : vector<6x8xf32>
    %897 = tpu.matmul %879, %883, %cst_590 {dimension_numbers = #tpu.dot_dimension_numbers<[1], [0], [0], [1], [0, 0, 1, 1], [], []>} : vector<6x32xf32>, vector<32x8xf32>, vector<6x8xf32> -> vector<6x8xf32>
    %898 = vector.broadcast %891 : vector<1x8xf32> to vector<6x8xf32>
    %899 = arith.addf %897, %898 : vector<6x8xf32>
    %cst_591 = arith.constant dense<0.000000e+00> : vector<6x8xf32>
    %900 = tpu.matmul %879, %885, %cst_591 {dimension_numbers = #tpu.dot_dimension_numbers<[1], [0], [0], [1], [0, 0, 1, 1], [], []>} : vector<6x32xf32>, vector<32x8xf32>, vector<6x8xf32> -> vector<6x8xf32>
    %901 = vector.broadcast %893 : vector<1x8xf32> to vector<6x8xf32>
    %902 = arith.addf %900, %901 : vector<6x8xf32>
    %cst_592 = arith.constant dense<0.000000e+00> : vector<6x6xf32>
    %903 = tpu.matmul %896, %899, %cst_592 {dimension_numbers = #tpu.dot_dimension_numbers<[1], [1], [0], [0], [0, 0, 1, 0], [], []>} : vector<6x8xf32>, vector<6x8xf32>, vector<6x6xf32> -> vector<6x6xf32>
    %cst_593 = arith.constant 0.353553385 : f32
    %904 = vector.broadcast %cst_593 : f32 to vector<6x6xf32>
    %905 = arith.mulf %903, %904 : vector<6x6xf32>
    %906 = arith.addf %905, %2 : vector<6x6xf32>
    %cst_594 = arith.constant dense<0xFF800000> : vector<6xf32>
    %907 = vector.multi_reduction <maximumf>, %906, %cst_594 [1] : vector<6x6xf32> to vector<6xf32>
    %908 = vector.shape_cast %907 : vector<6xf32> to vector<6x1xf32>
    %909 = vector.broadcast %908 : vector<6x1xf32> to vector<6x6xf32>
    %910 = arith.subf %906, %909 : vector<6x6xf32>
    %911 = math.exp %910 : vector<6x6xf32>
    %cst_595 = arith.constant dense<0.000000e+00> : vector<6xf32>
    %912 = vector.multi_reduction <add>, %911, %cst_595 [1] : vector<6x6xf32> to vector<6xf32>
    %913 = vector.shape_cast %912 : vector<6xf32> to vector<6x1xf32>
    %914 = tpu.reciprocal %913 {approx = true} : vector<6x1xf32> -> vector<6x1xf32>
    %915 = vector.broadcast %914 : vector<6x1xf32> to vector<6x6xf32>
    %916 = arith.mulf %911, %915 : vector<6x6xf32>
    %cst_596 = arith.constant dense<0.000000e+00> : vector<6x8xf32>
    %917 = tpu.matmul %916, %902, %cst_596 {dimension_numbers = #tpu.dot_dimension_numbers<[1], [0], [0], [1], [0, 0, 1, 1], [], []>} : vector<6x6xf32>, vector<6x8xf32>, vector<6x8xf32> -> vector<6x8xf32>
    %cst_597 = arith.constant dense<0.000000e+00> : vector<6x32xf32>
    %918 = tpu.matmul %917, %887, %cst_597 {dimension_numbers = #tpu.dot_dimension_numbers<[1], [0], [0], [1], [0, 0, 1, 1], [], []>} : vector<6x8xf32>, vector<8x32xf32>, vector<6x32xf32> -> vector<6x32xf32>
    %c16_598 = arith.constant 16 : index
    %c0_599 = arith.constant 0 : index
    %c8_600 = arith.constant 8 : index
    %919 = vector.load %arg3[%c16_598, %c0_599, %c8_600] : memref<24x32x32xf32, #tpu.memory_space<vmem>>, vector<1x32x8xf32>
    %920 = vector.shape_cast %919 : vector<1x32x8xf32> to vector<32x8xf32>
    %c17_601 = arith.constant 17 : index
    %c0_602 = arith.constant 0 : index
    %c8_603 = arith.constant 8 : index
    %921 = vector.load %arg3[%c17_601, %c0_602, %c8_603] : memref<24x32x32xf32, #tpu.memory_space<vmem>>, vector<1x32x8xf32>
    %922 = vector.shape_cast %921 : vector<1x32x8xf32> to vector<32x8xf32>
    %c18_604 = arith.constant 18 : index
    %c0_605 = arith.constant 0 : index
    %c8_606 = arith.constant 8 : index
    %923 = vector.load %arg3[%c18_604, %c0_605, %c8_606] : memref<24x32x32xf32, #tpu.memory_space<vmem>>, vector<1x32x8xf32>
    %924 = vector.shape_cast %923 : vector<1x32x8xf32> to vector<32x8xf32>
    %c19_607 = arith.constant 19 : index
    %c8_608 = arith.constant 8 : index
    %c0_609 = arith.constant 0 : index
    %925 = vector.load %arg3[%c19_607, %c8_608, %c0_609] : memref<24x32x32xf32, #tpu.memory_space<vmem>>, vector<1x8x32xf32>
    %926 = vector.shape_cast %925 : vector<1x8x32xf32> to vector<8x32xf32>
    %c12_610 = arith.constant 12 : index
    %c1_611 = arith.constant 1 : index
    %c0_612 = arith.constant 0 : index
    %927 = vector.load %arg5[%c12_610, %c1_611, %c0_612] : memref<18x4x8xf32, #tpu.memory_space<vmem>>, vector<1x1x8xf32>
    %928 = vector.shape_cast %927 : vector<1x1x8xf32> to vector<1x8xf32>
    %c13_613 = arith.constant 13 : index
    %c1_614 = arith.constant 1 : index
    %c0_615 = arith.constant 0 : index
    %929 = vector.load %arg5[%c13_613, %c1_614, %c0_615] : memref<18x4x8xf32, #tpu.memory_space<vmem>>, vector<1x1x8xf32>
    %930 = vector.shape_cast %929 : vector<1x1x8xf32> to vector<1x8xf32>
    %c14_616 = arith.constant 14 : index
    %c1_617 = arith.constant 1 : index
    %c0_618 = arith.constant 0 : index
    %931 = vector.load %arg5[%c14_616, %c1_617, %c0_618] : memref<18x4x8xf32, #tpu.memory_space<vmem>>, vector<1x1x8xf32>
    %932 = vector.shape_cast %931 : vector<1x1x8xf32> to vector<1x8xf32>
    %cst_619 = arith.constant dense<0.000000e+00> : vector<6x8xf32>
    %933 = tpu.matmul %879, %920, %cst_619 {dimension_numbers = #tpu.dot_dimension_numbers<[1], [0], [0], [1], [0, 0, 1, 1], [], []>} : vector<6x32xf32>, vector<32x8xf32>, vector<6x8xf32> -> vector<6x8xf32>
    %934 = vector.broadcast %928 : vector<1x8xf32> to vector<6x8xf32>
    %935 = arith.addf %933, %934 : vector<6x8xf32>
    %cst_620 = arith.constant dense<0.000000e+00> : vector<6x8xf32>
    %936 = tpu.matmul %879, %922, %cst_620 {dimension_numbers = #tpu.dot_dimension_numbers<[1], [0], [0], [1], [0, 0, 1, 1], [], []>} : vector<6x32xf32>, vector<32x8xf32>, vector<6x8xf32> -> vector<6x8xf32>
    %937 = vector.broadcast %930 : vector<1x8xf32> to vector<6x8xf32>
    %938 = arith.addf %936, %937 : vector<6x8xf32>
    %cst_621 = arith.constant dense<0.000000e+00> : vector<6x8xf32>
    %939 = tpu.matmul %879, %924, %cst_621 {dimension_numbers = #tpu.dot_dimension_numbers<[1], [0], [0], [1], [0, 0, 1, 1], [], []>} : vector<6x32xf32>, vector<32x8xf32>, vector<6x8xf32> -> vector<6x8xf32>
    %940 = vector.broadcast %932 : vector<1x8xf32> to vector<6x8xf32>
    %941 = arith.addf %939, %940 : vector<6x8xf32>
    %cst_622 = arith.constant dense<0.000000e+00> : vector<6x6xf32>
    %942 = tpu.matmul %935, %938, %cst_622 {dimension_numbers = #tpu.dot_dimension_numbers<[1], [1], [0], [0], [0, 0, 1, 0], [], []>} : vector<6x8xf32>, vector<6x8xf32>, vector<6x6xf32> -> vector<6x6xf32>
    %cst_623 = arith.constant 0.353553385 : f32
    %943 = vector.broadcast %cst_623 : f32 to vector<6x6xf32>
    %944 = arith.mulf %942, %943 : vector<6x6xf32>
    %945 = arith.addf %944, %2 : vector<6x6xf32>
    %cst_624 = arith.constant dense<0xFF800000> : vector<6xf32>
    %946 = vector.multi_reduction <maximumf>, %945, %cst_624 [1] : vector<6x6xf32> to vector<6xf32>
    %947 = vector.shape_cast %946 : vector<6xf32> to vector<6x1xf32>
    %948 = vector.broadcast %947 : vector<6x1xf32> to vector<6x6xf32>
    %949 = arith.subf %945, %948 : vector<6x6xf32>
    %950 = math.exp %949 : vector<6x6xf32>
    %cst_625 = arith.constant dense<0.000000e+00> : vector<6xf32>
    %951 = vector.multi_reduction <add>, %950, %cst_625 [1] : vector<6x6xf32> to vector<6xf32>
    %952 = vector.shape_cast %951 : vector<6xf32> to vector<6x1xf32>
    %953 = tpu.reciprocal %952 {approx = true} : vector<6x1xf32> -> vector<6x1xf32>
    %954 = vector.broadcast %953 : vector<6x1xf32> to vector<6x6xf32>
    %955 = arith.mulf %950, %954 : vector<6x6xf32>
    %cst_626 = arith.constant dense<0.000000e+00> : vector<6x8xf32>
    %956 = tpu.matmul %955, %941, %cst_626 {dimension_numbers = #tpu.dot_dimension_numbers<[1], [0], [0], [1], [0, 0, 1, 1], [], []>} : vector<6x6xf32>, vector<6x8xf32>, vector<6x8xf32> -> vector<6x8xf32>
    %cst_627 = arith.constant dense<0.000000e+00> : vector<6x32xf32>
    %957 = tpu.matmul %956, %926, %cst_627 {dimension_numbers = #tpu.dot_dimension_numbers<[1], [0], [0], [1], [0, 0, 1, 1], [], []>} : vector<6x8xf32>, vector<8x32xf32>, vector<6x32xf32> -> vector<6x32xf32>
    %958 = arith.addf %918, %957 : vector<6x32xf32>
    %c16_628 = arith.constant 16 : index
    %c0_629 = arith.constant 0 : index
    %c16_630 = arith.constant 16 : index
    %959 = vector.load %arg3[%c16_628, %c0_629, %c16_630] : memref<24x32x32xf32, #tpu.memory_space<vmem>>, vector<1x32x8xf32>
    %960 = vector.shape_cast %959 : vector<1x32x8xf32> to vector<32x8xf32>
    %c17_631 = arith.constant 17 : index
    %c0_632 = arith.constant 0 : index
    %c16_633 = arith.constant 16 : index
    %961 = vector.load %arg3[%c17_631, %c0_632, %c16_633] : memref<24x32x32xf32, #tpu.memory_space<vmem>>, vector<1x32x8xf32>
    %962 = vector.shape_cast %961 : vector<1x32x8xf32> to vector<32x8xf32>
    %c18_634 = arith.constant 18 : index
    %c0_635 = arith.constant 0 : index
    %c16_636 = arith.constant 16 : index
    %963 = vector.load %arg3[%c18_634, %c0_635, %c16_636] : memref<24x32x32xf32, #tpu.memory_space<vmem>>, vector<1x32x8xf32>
    %964 = vector.shape_cast %963 : vector<1x32x8xf32> to vector<32x8xf32>
    %c19_637 = arith.constant 19 : index
    %c16_638 = arith.constant 16 : index
    %c0_639 = arith.constant 0 : index
    %965 = vector.load %arg3[%c19_637, %c16_638, %c0_639] : memref<24x32x32xf32, #tpu.memory_space<vmem>>, vector<1x8x32xf32>
    %966 = vector.shape_cast %965 : vector<1x8x32xf32> to vector<8x32xf32>
    %c12_640 = arith.constant 12 : index
    %c2_641 = arith.constant 2 : index
    %c0_642 = arith.constant 0 : index
    %967 = vector.load %arg5[%c12_640, %c2_641, %c0_642] : memref<18x4x8xf32, #tpu.memory_space<vmem>>, vector<1x1x8xf32>
    %968 = vector.shape_cast %967 : vector<1x1x8xf32> to vector<1x8xf32>
    %c13_643 = arith.constant 13 : index
    %c2_644 = arith.constant 2 : index
    %c0_645 = arith.constant 0 : index
    %969 = vector.load %arg5[%c13_643, %c2_644, %c0_645] : memref<18x4x8xf32, #tpu.memory_space<vmem>>, vector<1x1x8xf32>
    %970 = vector.shape_cast %969 : vector<1x1x8xf32> to vector<1x8xf32>
    %c14_646 = arith.constant 14 : index
    %c2_647 = arith.constant 2 : index
    %c0_648 = arith.constant 0 : index
    %971 = vector.load %arg5[%c14_646, %c2_647, %c0_648] : memref<18x4x8xf32, #tpu.memory_space<vmem>>, vector<1x1x8xf32>
    %972 = vector.shape_cast %971 : vector<1x1x8xf32> to vector<1x8xf32>
    %cst_649 = arith.constant dense<0.000000e+00> : vector<6x8xf32>
    %973 = tpu.matmul %879, %960, %cst_649 {dimension_numbers = #tpu.dot_dimension_numbers<[1], [0], [0], [1], [0, 0, 1, 1], [], []>} : vector<6x32xf32>, vector<32x8xf32>, vector<6x8xf32> -> vector<6x8xf32>
    %974 = vector.broadcast %968 : vector<1x8xf32> to vector<6x8xf32>
    %975 = arith.addf %973, %974 : vector<6x8xf32>
    %cst_650 = arith.constant dense<0.000000e+00> : vector<6x8xf32>
    %976 = tpu.matmul %879, %962, %cst_650 {dimension_numbers = #tpu.dot_dimension_numbers<[1], [0], [0], [1], [0, 0, 1, 1], [], []>} : vector<6x32xf32>, vector<32x8xf32>, vector<6x8xf32> -> vector<6x8xf32>
    %977 = vector.broadcast %970 : vector<1x8xf32> to vector<6x8xf32>
    %978 = arith.addf %976, %977 : vector<6x8xf32>
    %cst_651 = arith.constant dense<0.000000e+00> : vector<6x8xf32>
    %979 = tpu.matmul %879, %964, %cst_651 {dimension_numbers = #tpu.dot_dimension_numbers<[1], [0], [0], [1], [0, 0, 1, 1], [], []>} : vector<6x32xf32>, vector<32x8xf32>, vector<6x8xf32> -> vector<6x8xf32>
    %980 = vector.broadcast %972 : vector<1x8xf32> to vector<6x8xf32>
    %981 = arith.addf %979, %980 : vector<6x8xf32>
    %cst_652 = arith.constant dense<0.000000e+00> : vector<6x6xf32>
    %982 = tpu.matmul %975, %978, %cst_652 {dimension_numbers = #tpu.dot_dimension_numbers<[1], [1], [0], [0], [0, 0, 1, 0], [], []>} : vector<6x8xf32>, vector<6x8xf32>, vector<6x6xf32> -> vector<6x6xf32>
    %cst_653 = arith.constant 0.353553385 : f32
    %983 = vector.broadcast %cst_653 : f32 to vector<6x6xf32>
    %984 = arith.mulf %982, %983 : vector<6x6xf32>
    %985 = arith.addf %984, %2 : vector<6x6xf32>
    %cst_654 = arith.constant dense<0xFF800000> : vector<6xf32>
    %986 = vector.multi_reduction <maximumf>, %985, %cst_654 [1] : vector<6x6xf32> to vector<6xf32>
    %987 = vector.shape_cast %986 : vector<6xf32> to vector<6x1xf32>
    %988 = vector.broadcast %987 : vector<6x1xf32> to vector<6x6xf32>
    %989 = arith.subf %985, %988 : vector<6x6xf32>
    %990 = math.exp %989 : vector<6x6xf32>
    %cst_655 = arith.constant dense<0.000000e+00> : vector<6xf32>
    %991 = vector.multi_reduction <add>, %990, %cst_655 [1] : vector<6x6xf32> to vector<6xf32>
    %992 = vector.shape_cast %991 : vector<6xf32> to vector<6x1xf32>
    %993 = tpu.reciprocal %992 {approx = true} : vector<6x1xf32> -> vector<6x1xf32>
    %994 = vector.broadcast %993 : vector<6x1xf32> to vector<6x6xf32>
    %995 = arith.mulf %990, %994 : vector<6x6xf32>
    %cst_656 = arith.constant dense<0.000000e+00> : vector<6x8xf32>
    %996 = tpu.matmul %995, %981, %cst_656 {dimension_numbers = #tpu.dot_dimension_numbers<[1], [0], [0], [1], [0, 0, 1, 1], [], []>} : vector<6x6xf32>, vector<6x8xf32>, vector<6x8xf32> -> vector<6x8xf32>
    %cst_657 = arith.constant dense<0.000000e+00> : vector<6x32xf32>
    %997 = tpu.matmul %996, %966, %cst_657 {dimension_numbers = #tpu.dot_dimension_numbers<[1], [0], [0], [1], [0, 0, 1, 1], [], []>} : vector<6x8xf32>, vector<8x32xf32>, vector<6x32xf32> -> vector<6x32xf32>
    %998 = arith.addf %958, %997 : vector<6x32xf32>
    %c16_658 = arith.constant 16 : index
    %c0_659 = arith.constant 0 : index
    %c24_660 = arith.constant 24 : index
    %999 = vector.load %arg3[%c16_658, %c0_659, %c24_660] : memref<24x32x32xf32, #tpu.memory_space<vmem>>, vector<1x32x8xf32>
    %1000 = vector.shape_cast %999 : vector<1x32x8xf32> to vector<32x8xf32>
    %c17_661 = arith.constant 17 : index
    %c0_662 = arith.constant 0 : index
    %c24_663 = arith.constant 24 : index
    %1001 = vector.load %arg3[%c17_661, %c0_662, %c24_663] : memref<24x32x32xf32, #tpu.memory_space<vmem>>, vector<1x32x8xf32>
    %1002 = vector.shape_cast %1001 : vector<1x32x8xf32> to vector<32x8xf32>
    %c18_664 = arith.constant 18 : index
    %c0_665 = arith.constant 0 : index
    %c24_666 = arith.constant 24 : index
    %1003 = vector.load %arg3[%c18_664, %c0_665, %c24_666] : memref<24x32x32xf32, #tpu.memory_space<vmem>>, vector<1x32x8xf32>
    %1004 = vector.shape_cast %1003 : vector<1x32x8xf32> to vector<32x8xf32>
    %c19_667 = arith.constant 19 : index
    %c24_668 = arith.constant 24 : index
    %c0_669 = arith.constant 0 : index
    %1005 = vector.load %arg3[%c19_667, %c24_668, %c0_669] : memref<24x32x32xf32, #tpu.memory_space<vmem>>, vector<1x8x32xf32>
    %1006 = vector.shape_cast %1005 : vector<1x8x32xf32> to vector<8x32xf32>
    %c12_670 = arith.constant 12 : index
    %c3_671 = arith.constant 3 : index
    %c0_672 = arith.constant 0 : index
    %1007 = vector.load %arg5[%c12_670, %c3_671, %c0_672] : memref<18x4x8xf32, #tpu.memory_space<vmem>>, vector<1x1x8xf32>
    %1008 = vector.shape_cast %1007 : vector<1x1x8xf32> to vector<1x8xf32>
    %c13_673 = arith.constant 13 : index
    %c3_674 = arith.constant 3 : index
    %c0_675 = arith.constant 0 : index
    %1009 = vector.load %arg5[%c13_673, %c3_674, %c0_675] : memref<18x4x8xf32, #tpu.memory_space<vmem>>, vector<1x1x8xf32>
    %1010 = vector.shape_cast %1009 : vector<1x1x8xf32> to vector<1x8xf32>
    %c14_676 = arith.constant 14 : index
    %c3_677 = arith.constant 3 : index
    %c0_678 = arith.constant 0 : index
    %1011 = vector.load %arg5[%c14_676, %c3_677, %c0_678] : memref<18x4x8xf32, #tpu.memory_space<vmem>>, vector<1x1x8xf32>
    %1012 = vector.shape_cast %1011 : vector<1x1x8xf32> to vector<1x8xf32>
    %cst_679 = arith.constant dense<0.000000e+00> : vector<6x8xf32>
    %1013 = tpu.matmul %879, %1000, %cst_679 {dimension_numbers = #tpu.dot_dimension_numbers<[1], [0], [0], [1], [0, 0, 1, 1], [], []>} : vector<6x32xf32>, vector<32x8xf32>, vector<6x8xf32> -> vector<6x8xf32>
    %1014 = vector.broadcast %1008 : vector<1x8xf32> to vector<6x8xf32>
    %1015 = arith.addf %1013, %1014 : vector<6x8xf32>
    %cst_680 = arith.constant dense<0.000000e+00> : vector<6x8xf32>
    %1016 = tpu.matmul %879, %1002, %cst_680 {dimension_numbers = #tpu.dot_dimension_numbers<[1], [0], [0], [1], [0, 0, 1, 1], [], []>} : vector<6x32xf32>, vector<32x8xf32>, vector<6x8xf32> -> vector<6x8xf32>
    %1017 = vector.broadcast %1010 : vector<1x8xf32> to vector<6x8xf32>
    %1018 = arith.addf %1016, %1017 : vector<6x8xf32>
    %cst_681 = arith.constant dense<0.000000e+00> : vector<6x8xf32>
    %1019 = tpu.matmul %879, %1004, %cst_681 {dimension_numbers = #tpu.dot_dimension_numbers<[1], [0], [0], [1], [0, 0, 1, 1], [], []>} : vector<6x32xf32>, vector<32x8xf32>, vector<6x8xf32> -> vector<6x8xf32>
    %1020 = vector.broadcast %1012 : vector<1x8xf32> to vector<6x8xf32>
    %1021 = arith.addf %1019, %1020 : vector<6x8xf32>
    %cst_682 = arith.constant dense<0.000000e+00> : vector<6x6xf32>
    %1022 = tpu.matmul %1015, %1018, %cst_682 {dimension_numbers = #tpu.dot_dimension_numbers<[1], [1], [0], [0], [0, 0, 1, 0], [], []>} : vector<6x8xf32>, vector<6x8xf32>, vector<6x6xf32> -> vector<6x6xf32>
    %cst_683 = arith.constant 0.353553385 : f32
    %1023 = vector.broadcast %cst_683 : f32 to vector<6x6xf32>
    %1024 = arith.mulf %1022, %1023 : vector<6x6xf32>
    %1025 = arith.addf %1024, %2 : vector<6x6xf32>
    %cst_684 = arith.constant dense<0xFF800000> : vector<6xf32>
    %1026 = vector.multi_reduction <maximumf>, %1025, %cst_684 [1] : vector<6x6xf32> to vector<6xf32>
    %1027 = vector.shape_cast %1026 : vector<6xf32> to vector<6x1xf32>
    %1028 = vector.broadcast %1027 : vector<6x1xf32> to vector<6x6xf32>
    %1029 = arith.subf %1025, %1028 : vector<6x6xf32>
    %1030 = math.exp %1029 : vector<6x6xf32>
    %cst_685 = arith.constant dense<0.000000e+00> : vector<6xf32>
    %1031 = vector.multi_reduction <add>, %1030, %cst_685 [1] : vector<6x6xf32> to vector<6xf32>
    %1032 = vector.shape_cast %1031 : vector<6xf32> to vector<6x1xf32>
    %1033 = tpu.reciprocal %1032 {approx = true} : vector<6x1xf32> -> vector<6x1xf32>
    %1034 = vector.broadcast %1033 : vector<6x1xf32> to vector<6x6xf32>
    %1035 = arith.mulf %1030, %1034 : vector<6x6xf32>
    %cst_686 = arith.constant dense<0.000000e+00> : vector<6x8xf32>
    %1036 = tpu.matmul %1035, %1021, %cst_686 {dimension_numbers = #tpu.dot_dimension_numbers<[1], [0], [0], [1], [0, 0, 1, 1], [], []>} : vector<6x6xf32>, vector<6x8xf32>, vector<6x8xf32> -> vector<6x8xf32>
    %cst_687 = arith.constant dense<0.000000e+00> : vector<6x32xf32>
    %1037 = tpu.matmul %1036, %1006, %cst_687 {dimension_numbers = #tpu.dot_dimension_numbers<[1], [0], [0], [1], [0, 0, 1, 1], [], []>} : vector<6x8xf32>, vector<8x32xf32>, vector<6x32xf32> -> vector<6x32xf32>
    %1038 = arith.addf %998, %1037 : vector<6x32xf32>
    %c30 = arith.constant 30 : index
    %c0_688 = arith.constant 0 : index
    %1039 = vector.load %arg6[%c30, %c0_688] : memref<34x64xf32, #tpu.memory_space<vmem>>, vector<1x32xf32>
    %1040 = vector.broadcast %1039 : vector<1x32xf32> to vector<6x32xf32>
    %1041 = arith.addf %1038, %1040 : vector<6x32xf32>
    %1042 = arith.addf %855, %1041 : vector<6x32xf32>
    %c26 = arith.constant 26 : index
    %c0_689 = arith.constant 0 : index
    %1043 = vector.load %arg6[%c26, %c0_689] : memref<34x64xf32, #tpu.memory_space<vmem>>, vector<1x32xf32>
    %c27 = arith.constant 27 : index
    %c0_690 = arith.constant 0 : index
    %1044 = vector.load %arg6[%c27, %c0_690] : memref<34x64xf32, #tpu.memory_space<vmem>>, vector<1x32xf32>
    %cst_691 = arith.constant dense<0.000000e+00> : vector<6xf32>
    %1045 = vector.multi_reduction <add>, %1042, %cst_691 [1] : vector<6x32xf32> to vector<6xf32>
    %1046 = vector.shape_cast %1045 : vector<6xf32> to vector<6x1xf32>
    %1047 = arith.mulf %1042, %1042 : vector<6x32xf32>
    %cst_692 = arith.constant dense<0.000000e+00> : vector<6xf32>
    %1048 = vector.multi_reduction <add>, %1047, %cst_692 [1] : vector<6x32xf32> to vector<6xf32>
    %1049 = vector.shape_cast %1048 : vector<6xf32> to vector<6x1xf32>
    %cst_693 = arith.constant 3.125000e-02 : f32
    %1050 = vector.broadcast %cst_693 : f32 to vector<6x1xf32>
    %1051 = arith.mulf %1046, %1050 : vector<6x1xf32>
    %cst_694 = arith.constant 3.125000e-02 : f32
    %1052 = vector.broadcast %cst_694 : f32 to vector<6x1xf32>
    %1053 = arith.mulf %1049, %1052 : vector<6x1xf32>
    %1054 = arith.mulf %1051, %1051 : vector<6x1xf32>
    %1055 = arith.subf %1053, %1054 : vector<6x1xf32>
    %1056 = vector.broadcast %1051 : vector<6x1xf32> to vector<6x32xf32>
    %1057 = arith.subf %1042, %1056 : vector<6x32xf32>
    %cst_695 = arith.constant 9.99999974E-6 : f32
    %1058 = vector.broadcast %cst_695 : f32 to vector<6x1xf32>
    %1059 = arith.addf %1055, %1058 : vector<6x1xf32>
    %1060 = math.rsqrt %1059 : vector<6x1xf32>
    %1061 = vector.broadcast %1060 : vector<6x1xf32> to vector<6x32xf32>
    %1062 = arith.mulf %1057, %1061 : vector<6x32xf32>
    %1063 = vector.broadcast %1043 : vector<1x32xf32> to vector<6x32xf32>
    %1064 = arith.mulf %1062, %1063 : vector<6x32xf32>
    %1065 = vector.broadcast %1044 : vector<1x32xf32> to vector<6x32xf32>
    %1066 = arith.addf %1064, %1065 : vector<6x32xf32>
    %c20_696 = arith.constant 20 : index
    %c0_697 = arith.constant 0 : index
    %c0_698 = arith.constant 0 : index
    %1067 = vector.load %arg3[%c20_696, %c0_697, %c0_698] : memref<24x32x32xf32, #tpu.memory_space<vmem>>, vector<1x32x8xf32>
    %1068 = vector.shape_cast %1067 : vector<1x32x8xf32> to vector<32x8xf32>
    %c21_699 = arith.constant 21 : index
    %c0_700 = arith.constant 0 : index
    %c0_701 = arith.constant 0 : index
    %1069 = vector.load %arg3[%c21_699, %c0_700, %c0_701] : memref<24x32x32xf32, #tpu.memory_space<vmem>>, vector<1x32x8xf32>
    %1070 = vector.shape_cast %1069 : vector<1x32x8xf32> to vector<32x8xf32>
    %c22_702 = arith.constant 22 : index
    %c0_703 = arith.constant 0 : index
    %c0_704 = arith.constant 0 : index
    %1071 = vector.load %arg3[%c22_702, %c0_703, %c0_704] : memref<24x32x32xf32, #tpu.memory_space<vmem>>, vector<1x32x8xf32>
    %1072 = vector.shape_cast %1071 : vector<1x32x8xf32> to vector<32x8xf32>
    %c23_705 = arith.constant 23 : index
    %c0_706 = arith.constant 0 : index
    %c0_707 = arith.constant 0 : index
    %1073 = vector.load %arg3[%c23_705, %c0_706, %c0_707] : memref<24x32x32xf32, #tpu.memory_space<vmem>>, vector<1x8x32xf32>
    %1074 = vector.shape_cast %1073 : vector<1x8x32xf32> to vector<8x32xf32>
    %c15_708 = arith.constant 15 : index
    %c0_709 = arith.constant 0 : index
    %c0_710 = arith.constant 0 : index
    %1075 = vector.load %arg5[%c15_708, %c0_709, %c0_710] : memref<18x4x8xf32, #tpu.memory_space<vmem>>, vector<1x1x8xf32>
    %1076 = vector.shape_cast %1075 : vector<1x1x8xf32> to vector<1x8xf32>
    %c16_711 = arith.constant 16 : index
    %c0_712 = arith.constant 0 : index
    %c0_713 = arith.constant 0 : index
    %1077 = vector.load %arg5[%c16_711, %c0_712, %c0_713] : memref<18x4x8xf32, #tpu.memory_space<vmem>>, vector<1x1x8xf32>
    %1078 = vector.shape_cast %1077 : vector<1x1x8xf32> to vector<1x8xf32>
    %c17_714 = arith.constant 17 : index
    %c0_715 = arith.constant 0 : index
    %c0_716 = arith.constant 0 : index
    %1079 = vector.load %arg5[%c17_714, %c0_715, %c0_716] : memref<18x4x8xf32, #tpu.memory_space<vmem>>, vector<1x1x8xf32>
    %1080 = vector.shape_cast %1079 : vector<1x1x8xf32> to vector<1x8xf32>
    %cst_717 = arith.constant dense<0.000000e+00> : vector<6x8xf32>
    %1081 = tpu.matmul %1066, %1068, %cst_717 {dimension_numbers = #tpu.dot_dimension_numbers<[1], [0], [0], [1], [0, 0, 1, 1], [], []>} : vector<6x32xf32>, vector<32x8xf32>, vector<6x8xf32> -> vector<6x8xf32>
    %1082 = vector.broadcast %1076 : vector<1x8xf32> to vector<6x8xf32>
    %1083 = arith.addf %1081, %1082 : vector<6x8xf32>
    %cst_718 = arith.constant dense<0.000000e+00> : vector<16x8xf32>
    %1084 = tpu.matmul %29, %1070, %cst_718 {dimension_numbers = #tpu.dot_dimension_numbers<[1], [0], [0], [1], [0, 0, 1, 1], [], []>} : vector<16x32xf32>, vector<32x8xf32>, vector<16x8xf32> -> vector<16x8xf32>
    %1085 = vector.broadcast %1078 : vector<1x8xf32> to vector<16x8xf32>
    %1086 = arith.addf %1084, %1085 : vector<16x8xf32>
    %cst_719 = arith.constant dense<0.000000e+00> : vector<16x8xf32>
    %1087 = tpu.matmul %29, %1072, %cst_719 {dimension_numbers = #tpu.dot_dimension_numbers<[1], [0], [0], [1], [0, 0, 1, 1], [], []>} : vector<16x32xf32>, vector<32x8xf32>, vector<16x8xf32> -> vector<16x8xf32>
    %1088 = vector.broadcast %1080 : vector<1x8xf32> to vector<16x8xf32>
    %1089 = arith.addf %1087, %1088 : vector<16x8xf32>
    %cst_720 = arith.constant dense<0.000000e+00> : vector<6x16xf32>
    %1090 = tpu.matmul %1083, %1086, %cst_720 {dimension_numbers = #tpu.dot_dimension_numbers<[1], [1], [0], [0], [0, 0, 1, 0], [], []>} : vector<6x8xf32>, vector<16x8xf32>, vector<6x16xf32> -> vector<6x16xf32>
    %cst_721 = arith.constant 0.353553385 : f32
    %1091 = vector.broadcast %cst_721 : f32 to vector<6x16xf32>
    %1092 = arith.mulf %1090, %1091 : vector<6x16xf32>
    %1093 = arith.addf %1092, %4 : vector<6x16xf32>
    %cst_722 = arith.constant dense<0xFF800000> : vector<6xf32>
    %1094 = vector.multi_reduction <maximumf>, %1093, %cst_722 [1] : vector<6x16xf32> to vector<6xf32>
    %1095 = vector.shape_cast %1094 : vector<6xf32> to vector<6x1xf32>
    %1096 = vector.broadcast %1095 : vector<6x1xf32> to vector<6x16xf32>
    %1097 = arith.subf %1093, %1096 : vector<6x16xf32>
    %1098 = math.exp %1097 : vector<6x16xf32>
    %cst_723 = arith.constant dense<0.000000e+00> : vector<6xf32>
    %1099 = vector.multi_reduction <add>, %1098, %cst_723 [1] : vector<6x16xf32> to vector<6xf32>
    %1100 = vector.shape_cast %1099 : vector<6xf32> to vector<6x1xf32>
    %1101 = tpu.reciprocal %1100 {approx = true} : vector<6x1xf32> -> vector<6x1xf32>
    %1102 = vector.broadcast %1101 : vector<6x1xf32> to vector<6x16xf32>
    %1103 = arith.mulf %1098, %1102 : vector<6x16xf32>
    %cst_724 = arith.constant dense<0.000000e+00> : vector<6x8xf32>
    %1104 = tpu.matmul %1103, %1089, %cst_724 {dimension_numbers = #tpu.dot_dimension_numbers<[1], [0], [0], [1], [0, 0, 1, 1], [], []>} : vector<6x16xf32>, vector<16x8xf32>, vector<6x8xf32> -> vector<6x8xf32>
    %cst_725 = arith.constant dense<0.000000e+00> : vector<6x32xf32>
    %1105 = tpu.matmul %1104, %1074, %cst_725 {dimension_numbers = #tpu.dot_dimension_numbers<[1], [0], [0], [1], [0, 0, 1, 1], [], []>} : vector<6x8xf32>, vector<8x32xf32>, vector<6x32xf32> -> vector<6x32xf32>
    %c20_726 = arith.constant 20 : index
    %c0_727 = arith.constant 0 : index
    %c8_728 = arith.constant 8 : index
    %1106 = vector.load %arg3[%c20_726, %c0_727, %c8_728] : memref<24x32x32xf32, #tpu.memory_space<vmem>>, vector<1x32x8xf32>
    %1107 = vector.shape_cast %1106 : vector<1x32x8xf32> to vector<32x8xf32>
    %c21_729 = arith.constant 21 : index
    %c0_730 = arith.constant 0 : index
    %c8_731 = arith.constant 8 : index
    %1108 = vector.load %arg3[%c21_729, %c0_730, %c8_731] : memref<24x32x32xf32, #tpu.memory_space<vmem>>, vector<1x32x8xf32>
    %1109 = vector.shape_cast %1108 : vector<1x32x8xf32> to vector<32x8xf32>
    %c22_732 = arith.constant 22 : index
    %c0_733 = arith.constant 0 : index
    %c8_734 = arith.constant 8 : index
    %1110 = vector.load %arg3[%c22_732, %c0_733, %c8_734] : memref<24x32x32xf32, #tpu.memory_space<vmem>>, vector<1x32x8xf32>
    %1111 = vector.shape_cast %1110 : vector<1x32x8xf32> to vector<32x8xf32>
    %c23_735 = arith.constant 23 : index
    %c8_736 = arith.constant 8 : index
    %c0_737 = arith.constant 0 : index
    %1112 = vector.load %arg3[%c23_735, %c8_736, %c0_737] : memref<24x32x32xf32, #tpu.memory_space<vmem>>, vector<1x8x32xf32>
    %1113 = vector.shape_cast %1112 : vector<1x8x32xf32> to vector<8x32xf32>
    %c15_738 = arith.constant 15 : index
    %c1_739 = arith.constant 1 : index
    %c0_740 = arith.constant 0 : index
    %1114 = vector.load %arg5[%c15_738, %c1_739, %c0_740] : memref<18x4x8xf32, #tpu.memory_space<vmem>>, vector<1x1x8xf32>
    %1115 = vector.shape_cast %1114 : vector<1x1x8xf32> to vector<1x8xf32>
    %c16_741 = arith.constant 16 : index
    %c1_742 = arith.constant 1 : index
    %c0_743 = arith.constant 0 : index
    %1116 = vector.load %arg5[%c16_741, %c1_742, %c0_743] : memref<18x4x8xf32, #tpu.memory_space<vmem>>, vector<1x1x8xf32>
    %1117 = vector.shape_cast %1116 : vector<1x1x8xf32> to vector<1x8xf32>
    %c17_744 = arith.constant 17 : index
    %c1_745 = arith.constant 1 : index
    %c0_746 = arith.constant 0 : index
    %1118 = vector.load %arg5[%c17_744, %c1_745, %c0_746] : memref<18x4x8xf32, #tpu.memory_space<vmem>>, vector<1x1x8xf32>
    %1119 = vector.shape_cast %1118 : vector<1x1x8xf32> to vector<1x8xf32>
    %cst_747 = arith.constant dense<0.000000e+00> : vector<6x8xf32>
    %1120 = tpu.matmul %1066, %1107, %cst_747 {dimension_numbers = #tpu.dot_dimension_numbers<[1], [0], [0], [1], [0, 0, 1, 1], [], []>} : vector<6x32xf32>, vector<32x8xf32>, vector<6x8xf32> -> vector<6x8xf32>
    %1121 = vector.broadcast %1115 : vector<1x8xf32> to vector<6x8xf32>
    %1122 = arith.addf %1120, %1121 : vector<6x8xf32>
    %cst_748 = arith.constant dense<0.000000e+00> : vector<16x8xf32>
    %1123 = tpu.matmul %29, %1109, %cst_748 {dimension_numbers = #tpu.dot_dimension_numbers<[1], [0], [0], [1], [0, 0, 1, 1], [], []>} : vector<16x32xf32>, vector<32x8xf32>, vector<16x8xf32> -> vector<16x8xf32>
    %1124 = vector.broadcast %1117 : vector<1x8xf32> to vector<16x8xf32>
    %1125 = arith.addf %1123, %1124 : vector<16x8xf32>
    %cst_749 = arith.constant dense<0.000000e+00> : vector<16x8xf32>
    %1126 = tpu.matmul %29, %1111, %cst_749 {dimension_numbers = #tpu.dot_dimension_numbers<[1], [0], [0], [1], [0, 0, 1, 1], [], []>} : vector<16x32xf32>, vector<32x8xf32>, vector<16x8xf32> -> vector<16x8xf32>
    %1127 = vector.broadcast %1119 : vector<1x8xf32> to vector<16x8xf32>
    %1128 = arith.addf %1126, %1127 : vector<16x8xf32>
    %cst_750 = arith.constant dense<0.000000e+00> : vector<6x16xf32>
    %1129 = tpu.matmul %1122, %1125, %cst_750 {dimension_numbers = #tpu.dot_dimension_numbers<[1], [1], [0], [0], [0, 0, 1, 0], [], []>} : vector<6x8xf32>, vector<16x8xf32>, vector<6x16xf32> -> vector<6x16xf32>
    %cst_751 = arith.constant 0.353553385 : f32
    %1130 = vector.broadcast %cst_751 : f32 to vector<6x16xf32>
    %1131 = arith.mulf %1129, %1130 : vector<6x16xf32>
    %1132 = arith.addf %1131, %4 : vector<6x16xf32>
    %cst_752 = arith.constant dense<0xFF800000> : vector<6xf32>
    %1133 = vector.multi_reduction <maximumf>, %1132, %cst_752 [1] : vector<6x16xf32> to vector<6xf32>
    %1134 = vector.shape_cast %1133 : vector<6xf32> to vector<6x1xf32>
    %1135 = vector.broadcast %1134 : vector<6x1xf32> to vector<6x16xf32>
    %1136 = arith.subf %1132, %1135 : vector<6x16xf32>
    %1137 = math.exp %1136 : vector<6x16xf32>
    %cst_753 = arith.constant dense<0.000000e+00> : vector<6xf32>
    %1138 = vector.multi_reduction <add>, %1137, %cst_753 [1] : vector<6x16xf32> to vector<6xf32>
    %1139 = vector.shape_cast %1138 : vector<6xf32> to vector<6x1xf32>
    %1140 = tpu.reciprocal %1139 {approx = true} : vector<6x1xf32> -> vector<6x1xf32>
    %1141 = vector.broadcast %1140 : vector<6x1xf32> to vector<6x16xf32>
    %1142 = arith.mulf %1137, %1141 : vector<6x16xf32>
    %cst_754 = arith.constant dense<0.000000e+00> : vector<6x8xf32>
    %1143 = tpu.matmul %1142, %1128, %cst_754 {dimension_numbers = #tpu.dot_dimension_numbers<[1], [0], [0], [1], [0, 0, 1, 1], [], []>} : vector<6x16xf32>, vector<16x8xf32>, vector<6x8xf32> -> vector<6x8xf32>
    %cst_755 = arith.constant dense<0.000000e+00> : vector<6x32xf32>
    %1144 = tpu.matmul %1143, %1113, %cst_755 {dimension_numbers = #tpu.dot_dimension_numbers<[1], [0], [0], [1], [0, 0, 1, 1], [], []>} : vector<6x8xf32>, vector<8x32xf32>, vector<6x32xf32> -> vector<6x32xf32>
    %1145 = arith.addf %1105, %1144 : vector<6x32xf32>
    %c20_756 = arith.constant 20 : index
    %c0_757 = arith.constant 0 : index
    %c16_758 = arith.constant 16 : index
    %1146 = vector.load %arg3[%c20_756, %c0_757, %c16_758] : memref<24x32x32xf32, #tpu.memory_space<vmem>>, vector<1x32x8xf32>
    %1147 = vector.shape_cast %1146 : vector<1x32x8xf32> to vector<32x8xf32>
    %c21_759 = arith.constant 21 : index
    %c0_760 = arith.constant 0 : index
    %c16_761 = arith.constant 16 : index
    %1148 = vector.load %arg3[%c21_759, %c0_760, %c16_761] : memref<24x32x32xf32, #tpu.memory_space<vmem>>, vector<1x32x8xf32>
    %1149 = vector.shape_cast %1148 : vector<1x32x8xf32> to vector<32x8xf32>
    %c22_762 = arith.constant 22 : index
    %c0_763 = arith.constant 0 : index
    %c16_764 = arith.constant 16 : index
    %1150 = vector.load %arg3[%c22_762, %c0_763, %c16_764] : memref<24x32x32xf32, #tpu.memory_space<vmem>>, vector<1x32x8xf32>
    %1151 = vector.shape_cast %1150 : vector<1x32x8xf32> to vector<32x8xf32>
    %c23_765 = arith.constant 23 : index
    %c16_766 = arith.constant 16 : index
    %c0_767 = arith.constant 0 : index
    %1152 = vector.load %arg3[%c23_765, %c16_766, %c0_767] : memref<24x32x32xf32, #tpu.memory_space<vmem>>, vector<1x8x32xf32>
    %1153 = vector.shape_cast %1152 : vector<1x8x32xf32> to vector<8x32xf32>
    %c15_768 = arith.constant 15 : index
    %c2_769 = arith.constant 2 : index
    %c0_770 = arith.constant 0 : index
    %1154 = vector.load %arg5[%c15_768, %c2_769, %c0_770] : memref<18x4x8xf32, #tpu.memory_space<vmem>>, vector<1x1x8xf32>
    %1155 = vector.shape_cast %1154 : vector<1x1x8xf32> to vector<1x8xf32>
    %c16_771 = arith.constant 16 : index
    %c2_772 = arith.constant 2 : index
    %c0_773 = arith.constant 0 : index
    %1156 = vector.load %arg5[%c16_771, %c2_772, %c0_773] : memref<18x4x8xf32, #tpu.memory_space<vmem>>, vector<1x1x8xf32>
    %1157 = vector.shape_cast %1156 : vector<1x1x8xf32> to vector<1x8xf32>
    %c17_774 = arith.constant 17 : index
    %c2_775 = arith.constant 2 : index
    %c0_776 = arith.constant 0 : index
    %1158 = vector.load %arg5[%c17_774, %c2_775, %c0_776] : memref<18x4x8xf32, #tpu.memory_space<vmem>>, vector<1x1x8xf32>
    %1159 = vector.shape_cast %1158 : vector<1x1x8xf32> to vector<1x8xf32>
    %cst_777 = arith.constant dense<0.000000e+00> : vector<6x8xf32>
    %1160 = tpu.matmul %1066, %1147, %cst_777 {dimension_numbers = #tpu.dot_dimension_numbers<[1], [0], [0], [1], [0, 0, 1, 1], [], []>} : vector<6x32xf32>, vector<32x8xf32>, vector<6x8xf32> -> vector<6x8xf32>
    %1161 = vector.broadcast %1155 : vector<1x8xf32> to vector<6x8xf32>
    %1162 = arith.addf %1160, %1161 : vector<6x8xf32>
    %cst_778 = arith.constant dense<0.000000e+00> : vector<16x8xf32>
    %1163 = tpu.matmul %29, %1149, %cst_778 {dimension_numbers = #tpu.dot_dimension_numbers<[1], [0], [0], [1], [0, 0, 1, 1], [], []>} : vector<16x32xf32>, vector<32x8xf32>, vector<16x8xf32> -> vector<16x8xf32>
    %1164 = vector.broadcast %1157 : vector<1x8xf32> to vector<16x8xf32>
    %1165 = arith.addf %1163, %1164 : vector<16x8xf32>
    %cst_779 = arith.constant dense<0.000000e+00> : vector<16x8xf32>
    %1166 = tpu.matmul %29, %1151, %cst_779 {dimension_numbers = #tpu.dot_dimension_numbers<[1], [0], [0], [1], [0, 0, 1, 1], [], []>} : vector<16x32xf32>, vector<32x8xf32>, vector<16x8xf32> -> vector<16x8xf32>
    %1167 = vector.broadcast %1159 : vector<1x8xf32> to vector<16x8xf32>
    %1168 = arith.addf %1166, %1167 : vector<16x8xf32>
    %cst_780 = arith.constant dense<0.000000e+00> : vector<6x16xf32>
    %1169 = tpu.matmul %1162, %1165, %cst_780 {dimension_numbers = #tpu.dot_dimension_numbers<[1], [1], [0], [0], [0, 0, 1, 0], [], []>} : vector<6x8xf32>, vector<16x8xf32>, vector<6x16xf32> -> vector<6x16xf32>
    %cst_781 = arith.constant 0.353553385 : f32
    %1170 = vector.broadcast %cst_781 : f32 to vector<6x16xf32>
    %1171 = arith.mulf %1169, %1170 : vector<6x16xf32>
    %1172 = arith.addf %1171, %4 : vector<6x16xf32>
    %cst_782 = arith.constant dense<0xFF800000> : vector<6xf32>
    %1173 = vector.multi_reduction <maximumf>, %1172, %cst_782 [1] : vector<6x16xf32> to vector<6xf32>
    %1174 = vector.shape_cast %1173 : vector<6xf32> to vector<6x1xf32>
    %1175 = vector.broadcast %1174 : vector<6x1xf32> to vector<6x16xf32>
    %1176 = arith.subf %1172, %1175 : vector<6x16xf32>
    %1177 = math.exp %1176 : vector<6x16xf32>
    %cst_783 = arith.constant dense<0.000000e+00> : vector<6xf32>
    %1178 = vector.multi_reduction <add>, %1177, %cst_783 [1] : vector<6x16xf32> to vector<6xf32>
    %1179 = vector.shape_cast %1178 : vector<6xf32> to vector<6x1xf32>
    %1180 = tpu.reciprocal %1179 {approx = true} : vector<6x1xf32> -> vector<6x1xf32>
    %1181 = vector.broadcast %1180 : vector<6x1xf32> to vector<6x16xf32>
    %1182 = arith.mulf %1177, %1181 : vector<6x16xf32>
    %cst_784 = arith.constant dense<0.000000e+00> : vector<6x8xf32>
    %1183 = tpu.matmul %1182, %1168, %cst_784 {dimension_numbers = #tpu.dot_dimension_numbers<[1], [0], [0], [1], [0, 0, 1, 1], [], []>} : vector<6x16xf32>, vector<16x8xf32>, vector<6x8xf32> -> vector<6x8xf32>
    %cst_785 = arith.constant dense<0.000000e+00> : vector<6x32xf32>
    %1184 = tpu.matmul %1183, %1153, %cst_785 {dimension_numbers = #tpu.dot_dimension_numbers<[1], [0], [0], [1], [0, 0, 1, 1], [], []>} : vector<6x8xf32>, vector<8x32xf32>, vector<6x32xf32> -> vector<6x32xf32>
    %1185 = arith.addf %1145, %1184 : vector<6x32xf32>
    %c20_786 = arith.constant 20 : index
    %c0_787 = arith.constant 0 : index
    %c24_788 = arith.constant 24 : index
    %1186 = vector.load %arg3[%c20_786, %c0_787, %c24_788] : memref<24x32x32xf32, #tpu.memory_space<vmem>>, vector<1x32x8xf32>
    %1187 = vector.shape_cast %1186 : vector<1x32x8xf32> to vector<32x8xf32>
    %c21_789 = arith.constant 21 : index
    %c0_790 = arith.constant 0 : index
    %c24_791 = arith.constant 24 : index
    %1188 = vector.load %arg3[%c21_789, %c0_790, %c24_791] : memref<24x32x32xf32, #tpu.memory_space<vmem>>, vector<1x32x8xf32>
    %1189 = vector.shape_cast %1188 : vector<1x32x8xf32> to vector<32x8xf32>
    %c22_792 = arith.constant 22 : index
    %c0_793 = arith.constant 0 : index
    %c24_794 = arith.constant 24 : index
    %1190 = vector.load %arg3[%c22_792, %c0_793, %c24_794] : memref<24x32x32xf32, #tpu.memory_space<vmem>>, vector<1x32x8xf32>
    %1191 = vector.shape_cast %1190 : vector<1x32x8xf32> to vector<32x8xf32>
    %c23_795 = arith.constant 23 : index
    %c24_796 = arith.constant 24 : index
    %c0_797 = arith.constant 0 : index
    %1192 = vector.load %arg3[%c23_795, %c24_796, %c0_797] : memref<24x32x32xf32, #tpu.memory_space<vmem>>, vector<1x8x32xf32>
    %1193 = vector.shape_cast %1192 : vector<1x8x32xf32> to vector<8x32xf32>
    %c15_798 = arith.constant 15 : index
    %c3_799 = arith.constant 3 : index
    %c0_800 = arith.constant 0 : index
    %1194 = vector.load %arg5[%c15_798, %c3_799, %c0_800] : memref<18x4x8xf32, #tpu.memory_space<vmem>>, vector<1x1x8xf32>
    %1195 = vector.shape_cast %1194 : vector<1x1x8xf32> to vector<1x8xf32>
    %c16_801 = arith.constant 16 : index
    %c3_802 = arith.constant 3 : index
    %c0_803 = arith.constant 0 : index
    %1196 = vector.load %arg5[%c16_801, %c3_802, %c0_803] : memref<18x4x8xf32, #tpu.memory_space<vmem>>, vector<1x1x8xf32>
    %1197 = vector.shape_cast %1196 : vector<1x1x8xf32> to vector<1x8xf32>
    %c17_804 = arith.constant 17 : index
    %c3_805 = arith.constant 3 : index
    %c0_806 = arith.constant 0 : index
    %1198 = vector.load %arg5[%c17_804, %c3_805, %c0_806] : memref<18x4x8xf32, #tpu.memory_space<vmem>>, vector<1x1x8xf32>
    %1199 = vector.shape_cast %1198 : vector<1x1x8xf32> to vector<1x8xf32>
    %cst_807 = arith.constant dense<0.000000e+00> : vector<6x8xf32>
    %1200 = tpu.matmul %1066, %1187, %cst_807 {dimension_numbers = #tpu.dot_dimension_numbers<[1], [0], [0], [1], [0, 0, 1, 1], [], []>} : vector<6x32xf32>, vector<32x8xf32>, vector<6x8xf32> -> vector<6x8xf32>
    %1201 = vector.broadcast %1195 : vector<1x8xf32> to vector<6x8xf32>
    %1202 = arith.addf %1200, %1201 : vector<6x8xf32>
    %cst_808 = arith.constant dense<0.000000e+00> : vector<16x8xf32>
    %1203 = tpu.matmul %29, %1189, %cst_808 {dimension_numbers = #tpu.dot_dimension_numbers<[1], [0], [0], [1], [0, 0, 1, 1], [], []>} : vector<16x32xf32>, vector<32x8xf32>, vector<16x8xf32> -> vector<16x8xf32>
    %1204 = vector.broadcast %1197 : vector<1x8xf32> to vector<16x8xf32>
    %1205 = arith.addf %1203, %1204 : vector<16x8xf32>
    %cst_809 = arith.constant dense<0.000000e+00> : vector<16x8xf32>
    %1206 = tpu.matmul %29, %1191, %cst_809 {dimension_numbers = #tpu.dot_dimension_numbers<[1], [0], [0], [1], [0, 0, 1, 1], [], []>} : vector<16x32xf32>, vector<32x8xf32>, vector<16x8xf32> -> vector<16x8xf32>
    %1207 = vector.broadcast %1199 : vector<1x8xf32> to vector<16x8xf32>
    %1208 = arith.addf %1206, %1207 : vector<16x8xf32>
    %cst_810 = arith.constant dense<0.000000e+00> : vector<6x16xf32>
    %1209 = tpu.matmul %1202, %1205, %cst_810 {dimension_numbers = #tpu.dot_dimension_numbers<[1], [1], [0], [0], [0, 0, 1, 0], [], []>} : vector<6x8xf32>, vector<16x8xf32>, vector<6x16xf32> -> vector<6x16xf32>
    %cst_811 = arith.constant 0.353553385 : f32
    %1210 = vector.broadcast %cst_811 : f32 to vector<6x16xf32>
    %1211 = arith.mulf %1209, %1210 : vector<6x16xf32>
    %1212 = arith.addf %1211, %4 : vector<6x16xf32>
    %cst_812 = arith.constant dense<0xFF800000> : vector<6xf32>
    %1213 = vector.multi_reduction <maximumf>, %1212, %cst_812 [1] : vector<6x16xf32> to vector<6xf32>
    %1214 = vector.shape_cast %1213 : vector<6xf32> to vector<6x1xf32>
    %1215 = vector.broadcast %1214 : vector<6x1xf32> to vector<6x16xf32>
    %1216 = arith.subf %1212, %1215 : vector<6x16xf32>
    %1217 = math.exp %1216 : vector<6x16xf32>
    %cst_813 = arith.constant dense<0.000000e+00> : vector<6xf32>
    %1218 = vector.multi_reduction <add>, %1217, %cst_813 [1] : vector<6x16xf32> to vector<6xf32>
    %1219 = vector.shape_cast %1218 : vector<6xf32> to vector<6x1xf32>
    %1220 = tpu.reciprocal %1219 {approx = true} : vector<6x1xf32> -> vector<6x1xf32>
    %1221 = vector.broadcast %1220 : vector<6x1xf32> to vector<6x16xf32>
    %1222 = arith.mulf %1217, %1221 : vector<6x16xf32>
    %cst_814 = arith.constant dense<0.000000e+00> : vector<6x8xf32>
    %1223 = tpu.matmul %1222, %1208, %cst_814 {dimension_numbers = #tpu.dot_dimension_numbers<[1], [0], [0], [1], [0, 0, 1, 1], [], []>} : vector<6x16xf32>, vector<16x8xf32>, vector<6x8xf32> -> vector<6x8xf32>
    %cst_815 = arith.constant dense<0.000000e+00> : vector<6x32xf32>
    %1224 = tpu.matmul %1223, %1193, %cst_815 {dimension_numbers = #tpu.dot_dimension_numbers<[1], [0], [0], [1], [0, 0, 1, 1], [], []>} : vector<6x8xf32>, vector<8x32xf32>, vector<6x32xf32> -> vector<6x32xf32>
    %1225 = arith.addf %1185, %1224 : vector<6x32xf32>
    %c31 = arith.constant 31 : index
    %c0_816 = arith.constant 0 : index
    %1226 = vector.load %arg6[%c31, %c0_816] : memref<34x64xf32, #tpu.memory_space<vmem>>, vector<1x32xf32>
    %1227 = vector.broadcast %1226 : vector<1x32xf32> to vector<6x32xf32>
    %1228 = arith.addf %1225, %1227 : vector<6x32xf32>
    %1229 = arith.addf %1042, %1228 : vector<6x32xf32>
    %c28 = arith.constant 28 : index
    %c0_817 = arith.constant 0 : index
    %1230 = vector.load %arg6[%c28, %c0_817] : memref<34x64xf32, #tpu.memory_space<vmem>>, vector<1x32xf32>
    %c29 = arith.constant 29 : index
    %c0_818 = arith.constant 0 : index
    %1231 = vector.load %arg6[%c29, %c0_818] : memref<34x64xf32, #tpu.memory_space<vmem>>, vector<1x32xf32>
    %cst_819 = arith.constant dense<0.000000e+00> : vector<6xf32>
    %1232 = vector.multi_reduction <add>, %1229, %cst_819 [1] : vector<6x32xf32> to vector<6xf32>
    %1233 = vector.shape_cast %1232 : vector<6xf32> to vector<6x1xf32>
    %1234 = arith.mulf %1229, %1229 : vector<6x32xf32>
    %cst_820 = arith.constant dense<0.000000e+00> : vector<6xf32>
    %1235 = vector.multi_reduction <add>, %1234, %cst_820 [1] : vector<6x32xf32> to vector<6xf32>
    %1236 = vector.shape_cast %1235 : vector<6xf32> to vector<6x1xf32>
    %cst_821 = arith.constant 3.125000e-02 : f32
    %1237 = vector.broadcast %cst_821 : f32 to vector<6x1xf32>
    %1238 = arith.mulf %1233, %1237 : vector<6x1xf32>
    %cst_822 = arith.constant 3.125000e-02 : f32
    %1239 = vector.broadcast %cst_822 : f32 to vector<6x1xf32>
    %1240 = arith.mulf %1236, %1239 : vector<6x1xf32>
    %1241 = arith.mulf %1238, %1238 : vector<6x1xf32>
    %1242 = arith.subf %1240, %1241 : vector<6x1xf32>
    %1243 = vector.broadcast %1238 : vector<6x1xf32> to vector<6x32xf32>
    %1244 = arith.subf %1229, %1243 : vector<6x32xf32>
    %cst_823 = arith.constant 9.99999974E-6 : f32
    %1245 = vector.broadcast %cst_823 : f32 to vector<6x1xf32>
    %1246 = arith.addf %1242, %1245 : vector<6x1xf32>
    %1247 = math.rsqrt %1246 : vector<6x1xf32>
    %1248 = vector.broadcast %1247 : vector<6x1xf32> to vector<6x32xf32>
    %1249 = arith.mulf %1244, %1248 : vector<6x32xf32>
    %1250 = vector.broadcast %1230 : vector<1x32xf32> to vector<6x32xf32>
    %1251 = arith.mulf %1249, %1250 : vector<6x32xf32>
    %1252 = vector.broadcast %1231 : vector<1x32xf32> to vector<6x32xf32>
    %1253 = arith.addf %1251, %1252 : vector<6x32xf32>
    %c2_824 = arith.constant 2 : index
    %c0_825 = arith.constant 0 : index
    %c0_826 = arith.constant 0 : index
    %1254 = vector.load %arg4[%c2_824, %c0_825, %c0_826] : memref<3x96x64xf32, #tpu.memory_space<vmem>>, vector<1x32x64xf32>
    %1255 = vector.shape_cast %1254 : vector<1x32x64xf32> to vector<32x64xf32>
    %cst_827 = arith.constant dense<0.000000e+00> : vector<6x64xf32>
    %1256 = tpu.matmul %1253, %1255, %cst_827 {dimension_numbers = #tpu.dot_dimension_numbers<[1], [0], [0], [1], [0, 0, 1, 1], [], []>} : vector<6x32xf32>, vector<32x64xf32>, vector<6x64xf32> -> vector<6x64xf32>
    %c32_828 = arith.constant 32 : index
    %c0_829 = arith.constant 0 : index
    %1257 = vector.load %arg6[%c32_828, %c0_829] : memref<34x64xf32, #tpu.memory_space<vmem>>, vector<1x64xf32>
    %1258 = vector.broadcast %1257 : vector<1x64xf32> to vector<6x64xf32>
    %1259 = arith.addf %1256, %1258 : vector<6x64xf32>
    %cst_830 = arith.constant 0.000000e+00 : f32
    %1260 = vector.broadcast %cst_830 : f32 to vector<6x64xf32>
    %1261 = arith.maximumf %1259, %1260 : vector<6x64xf32>
    %c2_831 = arith.constant 2 : index
    %c32_832 = arith.constant 32 : index
    %c0_833 = arith.constant 0 : index
    %1262 = vector.load %arg4[%c2_831, %c32_832, %c0_833] : memref<3x96x64xf32, #tpu.memory_space<vmem>>, vector<1x64x32xf32>
    %1263 = vector.shape_cast %1262 : vector<1x64x32xf32> to vector<64x32xf32>
    %cst_834 = arith.constant dense<0.000000e+00> : vector<6x32xf32>
    %1264 = tpu.matmul %1261, %1263, %cst_834 {dimension_numbers = #tpu.dot_dimension_numbers<[1], [0], [0], [1], [0, 0, 1, 1], [], []>} : vector<6x64xf32>, vector<64x32xf32>, vector<6x32xf32> -> vector<6x32xf32>
    %c33 = arith.constant 33 : index
    %c0_835 = arith.constant 0 : index
    %1265 = vector.load %arg6[%c33, %c0_835] : memref<34x64xf32, #tpu.memory_space<vmem>>, vector<1x32xf32>
    %1266 = vector.broadcast %1265 : vector<1x32xf32> to vector<6x32xf32>
    %1267 = arith.addf %1264, %1266 : vector<6x32xf32>
    %1268 = arith.addf %1229, %1267 : vector<6x32xf32>
    %c2_836 = arith.constant 2 : index
    %c0_837 = arith.constant 0 : index
    %1269 = vector.load %arg6[%c2_836, %c0_837] : memref<34x64xf32, #tpu.memory_space<vmem>>, vector<1x32xf32>
    %c3_838 = arith.constant 3 : index
    %c0_839 = arith.constant 0 : index
    %1270 = vector.load %arg6[%c3_838, %c0_839] : memref<34x64xf32, #tpu.memory_space<vmem>>, vector<1x32xf32>
    %cst_840 = arith.constant dense<0.000000e+00> : vector<6xf32>
    %1271 = vector.multi_reduction <add>, %1268, %cst_840 [1] : vector<6x32xf32> to vector<6xf32>
    %1272 = vector.shape_cast %1271 : vector<6xf32> to vector<6x1xf32>
    %1273 = arith.mulf %1268, %1268 : vector<6x32xf32>
    %cst_841 = arith.constant dense<0.000000e+00> : vector<6xf32>
    %1274 = vector.multi_reduction <add>, %1273, %cst_841 [1] : vector<6x32xf32> to vector<6xf32>
    %1275 = vector.shape_cast %1274 : vector<6xf32> to vector<6x1xf32>
    %cst_842 = arith.constant 3.125000e-02 : f32
    %1276 = vector.broadcast %cst_842 : f32 to vector<6x1xf32>
    %1277 = arith.mulf %1272, %1276 : vector<6x1xf32>
    %cst_843 = arith.constant 3.125000e-02 : f32
    %1278 = vector.broadcast %cst_843 : f32 to vector<6x1xf32>
    %1279 = arith.mulf %1275, %1278 : vector<6x1xf32>
    %1280 = arith.mulf %1277, %1277 : vector<6x1xf32>
    %1281 = arith.subf %1279, %1280 : vector<6x1xf32>
    %1282 = vector.broadcast %1277 : vector<6x1xf32> to vector<6x32xf32>
    %1283 = arith.subf %1268, %1282 : vector<6x32xf32>
    %cst_844 = arith.constant 9.99999974E-6 : f32
    %1284 = vector.broadcast %cst_844 : f32 to vector<6x1xf32>
    %1285 = arith.addf %1281, %1284 : vector<6x1xf32>
    %1286 = math.rsqrt %1285 : vector<6x1xf32>
    %1287 = vector.broadcast %1286 : vector<6x1xf32> to vector<6x32xf32>
    %1288 = arith.mulf %1283, %1287 : vector<6x32xf32>
    %1289 = vector.broadcast %1269 : vector<1x32xf32> to vector<6x32xf32>
    %1290 = arith.mulf %1288, %1289 : vector<6x32xf32>
    %1291 = vector.broadcast %1270 : vector<1x32xf32> to vector<6x32xf32>
    %1292 = arith.addf %1290, %1291 : vector<6x32xf32>
    %c0_845 = arith.constant 0 : index
    %c0_846 = arith.constant 0 : index
    %1293 = vector.load %arg7[%c0_845, %c0_846] : memref<6x32xf32, #tpu.memory_space<vmem>>, vector<6x32xf32>
    tpu.vector_store %arg7[%c0_845, %c0_846], %1292 {strides = array<i32>} : memref<6x32xf32, #tpu.memory_space<vmem>>, vector<6x32xf32>,
    return
  }
}

</mosaic_0001>

<bundles_post_ra>
// kernel: tpu_custom_call.1
= control target key start
LH: loop header
LB: loop body
LE: loop exit
PB: predicated region body
PF: predicated region fallthrough
CT: control target
= control target key end

     0   :  { %12 = vsyncpa [#allocation3], 0  ;;  %s18705_s0 = inlined_call_operand.vmem [shape: f32[6,32], index: 0, kind: input, shape index: {}]   ;;  %s18706_s1 = inlined_call_operand.vmem [shape: f32[16,32], index: 1, kind: input, shape index: {}]   ;;  %s18707_s2 = inlined_call_operand.vmem [shape: f32[2,6,16], index: 2, kind: input, shape index: {}]   ;;  %s18708_s3 = inlined_call_operand.hbm [shape: f32[24,32,32], index: 3, kind: input, shape index: {}]   ;;  %s18709_s4 = inlined_call_operand.vmem [shape: f32[3,96,64], index: 4, kind: input, shape index: {}]   ;;  %s18710_s5 = inlined_call_operand.vmem [shape: f32[18,4,8], index: 5, kind: input, shape index: {}]   ;;  %s18711_s6 = inlined_call_operand.vmem [shape: f32[34,64], index: 6, kind: input, shape index: {}]   ;;  %s18712_s7 = inlined_call_operand.hbm [shape: f32[6,32], index: 7, kind: output, shape index: {}]  }
   0x1   :  { %13 = vsyncpa [#allocation4], 0  ;;  %s16709_s24 = smov [#allocation2]   ;;  %s16661_s28 = scalar_lea.hbm %s18708_s3, 12288 }
   0x2   :  { %s25_s25 = sshll.u32 %s16709_s24, 4  ;;  %p16662_p0 = scmp.ne.s32.totalorder %s18708_s3, %s16661_s28  ;;  %s26_s25 = int_to_ptr.vmem [resolvable:$true] %s25_s25 }
   0x3   :  { %p16665_p1 = scmp.lt.u32.totalorder %s16661_s28, %s18708_s3 }
   0x5   :  { %p16667_p2 = pnand %p16665_p1, %p16662_p0 }
   0x7   :  { %16670 = shalt.err (!%p16667_p2)
}
   0x8   :  { %s16671_s10 = scalar_lea.vmem %s26_s25, 12288  ;;  %p16676_p4 = scmp.lt.s32.totalorder %s26_s25, %s26_s25 }
   0x9   :  { %p16672_p3 = scmp.ne.s32.totalorder %s26_s25, %s16671_s10  ;;  %p16677_p5 = scmp.lt.s32.totalorder %s16671_s10, %s16671_s10 }
   0xb   :  { %p16678_p6 = por %p16677_p5, %p16676_p4 }
   0xd   :  { %p16679_p7 = pnand %p16678_p6, %p16672_p3 }
   0xf   :  { %16682 = shalt.err (!%p16679_p7)
}
  0x10   :  { %s16710_s11 = smov 128   ;;  %s16711_s12 = smov 8  }
  0x11   :  { %31 = dma.hbm_to_vmem [thread:$0]  %s18708_s3, 12288, %s26_s25, [#allocation3], %s16710_s11, %s16710_s11, %s16711_s12  }
  0x12   :  { %16705 = dma.done.wait [#allocation3], 12288  }
  0x13   :  { %16706 = vsyncadd [#allocation3], 4294955008  ;;  %vm94_vm0 = vcmask 259072   ;;  %v16774_v0 = vld [vmem:[%s18705_s0] sm:$0x3f]  ;;  %v16783_v5 = vld [vmem:[#allocation2 + $0x8] sm:$0xff] }
  0x14   :  { %v95_v1 = vsel %vm94_vm0, %v16774_v0, 0.0  ;;  %v98_v2 = vmul.f32 %v16774_v0, %v16774_v0  ;;  %v16781_v4 = vld [vmem:[#allocation2] sm:$0xff]  ;;  %v16789_v8 = vld [vmem:[#allocation2 + $0x28] sm:$0xff]  ;;  %v16712_v9 = vmov 0.0|0.0   ;;  %v16796_v11 = vld [vmem:[#allocation2 + $0x10] sm:$0xff]  ;;  %vm16713_vm1 = vmmov 0  }
  0x15   :  { %96 = vadd.xlane.f32.xlu0 %v95_v1  ;;  %v15370_v6 = vpack.c.bf16 %v16783_v5, %v16781_v4  ;;  %v16787_v7 = vld [vmem:[#allocation2 + $0x20] sm:$0xff]  ;;  %15369 = vmatprep.subr.bf16.mxu0 %v16712_v9  ;;  %v16798_v12 = vld [vmem:[#allocation2 + $0x18] sm:$0xff]  ;;  %v16803_v14 = vld [vmem:[#allocation2 + $0x30] sm:$0xff]  ;;  %v16714_v17 = vmov 0.0   ;;  %vm49_vm2 = vcmask 261120   ;;  %vm366_vm3 = vcmask 64512  }
  0x16   :  { %v99_v3 = vsel %vm94_vm0, %v98_v2, 0.0  ;;  %15375 = vmatprep.subr.bf16.mxu1 %v16712_v9  ;;  %v15376_v10 = vpack.c.bf16 %v16789_v8, %v16787_v7  ;;  %v15373_v13 = vpack.c.bf16 %v16798_v12, %v16796_v11  ;;  %v16805_v15 = vld [vmem:[#allocation2 + $0x38] sm:$0xff]  ;;  %14087 = vmatprep.mubr.msk.f32.mxu0 %vm16713_vm1, %v16714_v17  ;;  %v13067_v27 = vld [vmem:[%s18711_s6 + $0x4] ss:$0 sm:$0xff]  ;;  %v131_v30 = vld [vmem:[#allocation2 + $0x48] sm:$0xff]  ;;  %vm461_vm4 = vcmask 1045504  }
  0x17   :  { %15371 = vmatpush3.bf16.msra.mxu0 %v15370_v6  ;;  %v15379_v16 = vpack.c.bf16 %v16805_v15, %v16803_v14  ;;  %14098 = vmatprep.mubr.msk.f32.mxu1 %vm16713_vm1, %v16714_v17  ;;  %v130_v29 = vld [vmem:[#allocation2 + $0x40] sm:$0xff]  ;;  %v16824_v35 = vld [vmem:[#allocation2 + $0x50] sm:$0xff]  ;;  %v16826_v36 = vld [vmem:[#allocation2 + $0x58] sm:$0xff]  ;;  %vm445_vm5 = vcmask 46080   ;;  %v16869_v56 = vpack.i.bf16 %v16783_v5, %v16781_v4  ;;  %s16715_s27 = smov 120   ;;  %v16875_v57 = vpack.i.bf16 %v16805_v15, %v16803_v14  ;;  %s16716_s11 = smov 112  }
  0x18   :  { %15377 = vmatpush3.bf16.msra.mxu1 %v15376_v10  ;;  %15372 = vmatprep.subr.bf16.mxu0 %v16712_v9  ;;  %v13068_v31 = vld [vmem:[%s18711_s6 + $0x5] ss:$0 sm:$0xff]  ;;  %v15382_v33 = vpack.c.bf16 %v131_v30, %v130_v29  ;;  %v15385_v37 = vpack.c.bf16 %v16826_v36, %v16824_v35  ;;  %v13073_v38 = vld [vmem:[%s18710_s5 + $0x4] ss:$0 sm:$0xff]  ;;  %v13071_v41 = vld [vmem:[%s18710_s5] ss:$0 sm:$0xff]  ;;  %v16881_v58 = vpack.i.bf16 %v16789_v8, %v16787_v7 }
  0x19   :  { %100 = vadd.xlane.f32.xlu0 %v99_v3  ;;  %15378 = vmatprep.subr.bf16.mxu1 %v16712_v9  ;;  %v13075_v46 = vld [vmem:[%s18710_s5 + $0x8] ss:$0 sm:$0xff]  ;;  %v16863_v51 = vld [vmem:[%s18707_s2] sm:$0x3f]  ;;  %v16885_v59 = vpack.i.bf16 %v131_v30, %v130_v29  ;;  %v16893_v6 = vpack.i.bf16 %v16798_v12, %v16796_v11  ;;  %v16899_v7 = vpack.i.bf16 %v16826_v36, %v16824_v35  ;;  %vm457_vm6 = vcmask 48128   ;;  %s16717_s3 = smov 104   ;;  %vm17142_vm7 = vmpackc.low %vm366_vm3, %vm366_vm3 }
  0x1a   :  { %vm2501_vm8 = vcmask 128000   ;;  %vm2513_vm9 = vcmask 130048   ;;  %vm4334_vm10 = vcmask 523264   ;;  %s16718_s29 = smov [#allocation5]  }
  0x1b   :  { %15374 = vmatpush3.bf16.msra.mxu0 %v15373_v13 }
  0x1c   :  { %15380 = vmatpush3.bf16.msra.mxu1 %v15379_v16  ;;  %15381 = vmatprep.subr.bf16.mxu0 %v16712_v9 }
  0x1d   :  { %14117 = vmatprep.subr.mxu1 %v16714_v17 }
  0x2f   :  { %15998 = vrot.lane.b32.xlu0 %v16881_v58, %s16715_s27 }
  0x33   :  { %16018 = vrot.lane.b32.xlu0 %v16885_v59, %s16715_s27 }
  0xa2   :  { %v97_v18 = vpop.xlane.xlu0 %96 }
  0xa3   :  { %v102_v19 = vmul.f32 0.03125, %v97_v18 }
  0xa5   :  { %v104_v21 = vmul.f32 %v102_v19, %v102_v19  ;;  %v106_v25 = vsub.f32 %v16774_v0, %v102_v19 }
  0xa6   :  { %v101_v20 = vpop.xlane.xlu0 %100 }
  0xa7   :  { %v103_v22 = vmul.f32 0.03125, %v101_v20 }
  0xa9   :  { %v105_v23 = vsub.f32 %v103_v22, %v104_v21 }
  0xaa   :  { %v15999_v10 = vpop.permute.xlu0 %15998 }
  0xab   :  { %v107_v24 = vadd.f32 1e-05, %v105_v23  ;;  %v16001_v20 = vunpack.i.h.bf16 %v15999_v10  ;;  %v16000_v21 = vunpack.i.l.bf16 %v15999_v10  ;;  %v135_v10 = vld [vmem:[#allocation2 + $0x60] sm:$0xff] }
  0xad   :  { %16537 = vrsqrt.f32 %v107_v24 }
  0xae   :  { %v16019_v14 = vpop.permute.xlu0 %16018 }
  0xaf   :  { %v16021_v11 = vunpack.i.h.bf16 %v16019_v14  ;;  %v16020_v12 = vunpack.i.l.bf16 %v16019_v14 }
  0xb1   :  { %v15400_v23 = vpack.c.bf16 %v16021_v11, %v16020_v12 }
  0xb7   :  { %v16538_v26 = vpop.eup %16537 }
  0xb8   :  { %v109_v28 = vmul.f32 %v16538_v26, %v106_v25 }
  0xba   :  { %v114_v32 = vmul.f32 %v13067_v27, %v109_v28  ;;  %v15394_v27 = vpack.c.bf16 %v16001_v20, %v16000_v21 }
  0xbc   :  { %v16822_v34 = vadd.f32 %v13068_v31, %v114_v32 }
  0xbe   :  { %14088 = vmatmul.mubr.msk.f32.vlgmr.msra.gmra.mrb[0].mxu0 %vm49_vm2, %v16822_v34  ;;  %14099 = vmatmul.mubr.msk.f32.vlgmr.msra.gmra.mrb[0].mxu1 %vm49_vm2, %v16822_v34 }
  0xbf   :  { %15383 = vmatpush3.bf16.msra.mxu0 %v15382_v33  ;;  %14109 = vmatprep.mubr.msk.f32.mxu0 %vm16713_vm1, %v16714_v17 }
  0xc0   :  { %15384 = vmatprep.subr.bf16.mxu0 %v16712_v9  ;;  %14119 = vmatprep.mubr.msk.f32.mxu1 %vm16713_vm1, %v16714_v17 }
  0xc3   :  { %15386 = vmatpush3.bf16.msra.mxu0 %v15385_v37 }
  0xc4   :  { %14112 = vmatprep.subr.mxu0 %v16714_v17 }
  0xc6   :  { %14110 = vmatmul.mubr.msk.f32.vlgmr.msra.gmra.mrb[2].mxu0 %vm49_vm2, %v16822_v34 }
  0xc7   :  { %14114 = vmatprep.mubr.msk.f32.mxu0 %vm16713_vm1, %v16714_v17 }
 0x191   :  { %v214_v39 = vpop.f32.mrb[0].mxu0  ;;  %v288_v40 = vpop.f32.mrb[0].mxu1 }
 0x192   :  { %v289_v42 = vadd.f32 %v13073_v38, %v288_v40  ;;  %v14089_v43 = vpop.f32.mrb[1].mxu0  ;;  %v14100_v44 = vpop.f32.mrb[1].mxu1  ;;  %v215_v45 = vadd.f32 %v13071_v41, %v214_v39  ;;  %v13085_v39 = vld [vmem:[%s18710_s5 + $0x5] ss:$0 sm:$0xff] }
 0x194   :  { %14113 = vmatpush3.xpose.msk.msra.mxu0 %vm366_vm3, %v289_v42  ;;  %v13083_v42 = vld [vmem:[%s18710_s5 + $0x1] ss:$0 sm:$0xff] }
 0x195   :  { %15387 = vmatprep.subr.bf16.mxu0 %v16712_v9 }
 0x197   :  { %14115 = vmatmul.mubr.msk.f32.vlgmr.msra.gmra.mrb[4].mxu0 %vm366_vm3, %v215_v45  ;;  %v13087_v45 = vld [vmem:[%s18710_s5 + $0x9] ss:$0 sm:$0xff] }
 0x198   :  { %14130 = vmatprep.mubr.msk.f32.mxu0 %vm16713_vm1, %v16714_v17 }
 0x199   :  { %v362_v47 = vpop.f32.mrb[2].mxu0 }
 0x19a   :  { %v363_v48 = vadd.f32 %v13075_v46, %v362_v47  ;;  %v14111_v49 = vpop.f32.mrb[3].mxu0 }
 0x19c   :  { %14118 = vmatpush3.msk.msra.mxu1 %vm461_vm4, %v363_v48 }
 0x19d   :  { %15393 = vmatprep.subr.bf16.mxu1 %v16712_v9 }
 0x26a   :  { %v439_v50 = vpop.f32.mrb[4].mxu0 }
 0x26b   :  { %v443_v52 = vmul.f32 0.35355338, %v439_v50  ;;  %v14116_v53 = vpop.f32.mrb[5].mxu0 }
 0x26d   :  { %v444_v54 = vadd.f32 %v443_v52, %v16863_v51 }
 0x26f   :  { %v446_v55 = vsel %vm445_vm5, %v444_v54, -inf }
 0x270   :  { %447 = vmax.xlane.f32.xlu1 %v446_v55 }
 0x281   :  { %16003 = vrot.lane.b32.xlu1 %v16869_v56, %s16715_s27 }
 0x285   :  { %16008 = vrot.lane.b32.xlu1 %v16875_v57, %s16715_s27 }
 0x2fd   :  { %v448_v60 = vpop.xlane.xlu1 %447 }
 0x2fe   :  { %v449_v61 = vsub.f32 %v444_v54, %v448_v60 }
 0x300   :  { %v450_v62 = vmul.f32 1.442695, %v449_v61 }
 0x301   :  { %v16004_v63 = vpop.permute.xlu1 %16003 }
 0x302   :  { %16539 = vpow2.f32 %v450_v62  ;;  %v16006_v1 = vunpack.i.h.bf16 %v16004_v63  ;;  %v16005_v2 = vunpack.i.l.bf16 %v16004_v63  ;;  %v535_v63 = vld [vmem:[#allocation2 + $0x68] sm:$0xff] }
 0x304   :  { %v15388_v3 = vpack.c.bf16 %v16006_v1, %v16005_v2 }
 0x305   :  { %v16009_v8 = vpop.permute.xlu1 %16008 }
 0x306   :  { %15389 = vmatpush3.bf16.msra.mxu0 %v15388_v3  ;;  %v16011_v29 = vunpack.i.h.bf16 %v16009_v8  ;;  %v16010_v30 = vunpack.i.l.bf16 %v16009_v8 }
 0x307   :  { %15390 = vmatprep.subr.bf16.mxu0 %v16712_v9 }
 0x308   :  { %v15397_v32 = vpack.c.bf16 %v16011_v29, %v16010_v30 }
 0x30c   :  { %v16540_v4 = vpop.eup %16539 }
 0x30d   :  { %v452_v5 = vsel %vm445_vm5, %v16540_v4, 0.0 }
 0x30e   :  { %453 = vadd.xlane.f32.xlu1 %v452_v5 }
 0x31f   :  { %16013 = vrot.lane.b32.xlu1 %v16893_v6, %s16715_s27 }
 0x323   :  { %16023 = vrot.lane.b32.xlu1 %v16899_v7, %s16715_s27 }
 0x39b   :  { %v454_v13 = vpop.xlane.xlu1 %453 }
 0x39c   :  { %16541 = vrcp.f32 %v454_v13 }
 0x39f   :  { %v16014_v15 = vpop.permute.xlu1 %16013 }
 0x3a0   :  { %v16016_v16 = vunpack.i.h.bf16 %v16014_v15  ;;  %v16015_v18 = vunpack.i.l.bf16 %v16014_v15 }
 0x3a2   :  { %v15391_v19 = vpack.c.bf16 %v16016_v16, %v16015_v18 }
 0x3a3   :  { %v16024_v22 = vpop.permute.xlu1 %16023 }
 0x3a4   :  { %15392 = vmatpush3.bf16.msra.mxu0 %v15391_v19  ;;  %v16026_v24 = vunpack.i.h.bf16 %v16024_v22  ;;  %v16025_v25 = vunpack.i.l.bf16 %v16024_v22 }
 0x3a5   :  { %15399 = vmatprep.subr.bf16.mxu0 %v16712_v9 }
 0x3a6   :  { %v16542_v26 = vpop.eup %16541  ;;  %v15403_v31 = vpack.c.bf16 %v16026_v24, %v16025_v25 }
 0x3a7   :  { %14131 = vmatmul.mubr.msk.f32.vlgmr.msra.gmra.mrb[6].mxu0 %vm49_vm2, %v16822_v34  ;;  %v456_v28 = vmul.f32 %v16542_v26, %v16540_v4 }
 0x3a8   :  { %15401 = vmatpush3.bf16.msra.mxu0 %v15400_v23  ;;  %14152 = vmatprep.mubr.msk.f32.mxu0 %vm16713_vm1, %v16714_v17 }
 0x3a9   :  { %14120 = vmatmul.mubr.msk.f32.vlgmr.msra.gmra.mrb[2].mxu1 %vm457_vm6, %v456_v28  ;;  %15402 = vmatprep.subr.bf16.mxu0 %v16712_v9 }
 0x3aa   :  { %15395 = vmatpush3.bf16.msra.mxu1 %v15394_v27  ;;  %14141 = vmatprep.mubr.msk.f32.mxu1 %vm16713_vm1, %v16714_v17 }
 0x3ab   :  { %15396 = vmatprep.subr.bf16.mxu1 %v16712_v9 }
 0x3ac   :  { %15404 = vmatpush3.bf16.msra.mxu0 %v15403_v31 }
 0x3ad   :  { %14165 = vmatprep.subr.mxu0 %v16714_v17 }
 0x3ae   :  { %15398 = vmatpush3.bf16.msra.mxu1 %v15397_v32 }
 0x3af   :  { %14153 = vmatmul.mubr.msk.f32.vlgmr.msra.gmra.mrb[8].mxu0 %vm49_vm2, %v16822_v34  ;;  %14155 = vmatprep.subr.mxu1 %v16714_v17 }
 0x3b0   :  { %14167 = vmatprep.mubr.msk.f32.mxu0 %vm16713_vm1, %v16714_v17  ;;  %14166 = vmatpush3.msra.mxu0 %v535_v63 }
 0x3b1   :  { %14142 = vmatmul.mubr.msk.f32.vlgmr.msra.gmra.mrb[4].mxu1 %vm49_vm2, %v16822_v34  ;;  %15405 = vmatprep.subr.bf16.mxu0 %v16712_v9 }
 0x3b2   :  { %14157 = vmatprep.mubr.msk.f32.mxu1 %vm16713_vm1, %v16714_v17 }
 0x47a   :  { %v625_v33 = vpop.f32.mrb[6].mxu0 }
 0x47b   :  { %v14132_v35 = vpop.f32.mrb[7].mxu0  ;;  %v626_v46 = vadd.f32 %v13083_v42, %v625_v33 }
 0x47c   :  { %v531_v36 = vpop.f32.mrb[2].mxu1 }
 0x47d   :  { %v14121_v37 = vpop.f32.mrb[3].mxu1 }
 0x482   :  { %v805_v38 = vpop.f32.mrb[8].mxu0 }
 0x483   :  { %v14154_v40 = vpop.f32.mrb[9].mxu0  ;;  %v806_v47 = vadd.f32 %v13087_v45, %v805_v38  ;;  %v13099_v38 = vld [vmem:[%s18710_s5 + $0x6] ss:$0 sm:$0xff]  ;;  %v13097_v45 = vld [vmem:[%s18710_s5 + $0x2] ss:$0 sm:$0xff] }
 0x484   :  { %v715_v41 = vpop.f32.mrb[4].mxu1 }
 0x485   :  { %v716_v43 = vadd.f32 %v13085_v39, %v715_v41  ;;  %v14143_v44 = vpop.f32.mrb[5].mxu1 }
 0x487   :  { %14156 = vmatpush3.xpose.msk.msra.mxu1 %vm366_vm3, %v716_v43 }
 0x488   :  { %14160 = vmatprep.subr.mxu1 %v16714_v17 }
 0x48a   :  { %14158 = vmatmul.mubr.msk.f32.vlgmr.msra.gmra.mrb[6].mxu1 %vm366_vm3, %v626_v46 }
 0x48b   :  { %14161 = vmatpush3.msk.msra.mxu1 %vm461_vm4, %v806_v47  ;;  %14162 = vmatprep.mubr.msk.f32.mxu1 %vm16713_vm1, %v16714_v17 }
 0x48c   :  { %14170 = vmatprep.subr.mxu1 %v16714_v17 }
 0x55d   :  { %v881_v48 = vpop.f32.mrb[6].mxu1 }
 0x55e   :  { %v885_v49 = vmul.f32 0.35355338, %v881_v48  ;;  %v14159_v50 = vpop.f32.mrb[7].mxu1 }
 0x560   :  { %v886_v52 = vadd.f32 %v885_v49, %v16863_v51  ;;  %v13101_v49 = vld [vmem:[%s18710_s5 + $0xa] ss:$0 sm:$0xff] }
 0x562   :  { %v887_v53 = vsel %vm445_vm5, %v886_v52, -inf }
 0x563   :  { %888 = vmax.xlane.f32.xlu0 %v887_v53 }
 0x579   :  { %16028 = vrot.lane.b32.xlu0 %v16881_v58, %s16716_s11 }
 0x57d   :  { %16038 = vrot.lane.b32.xlu0 %v16875_v57, %s16716_s11 }
 0x581   :  { %16048 = vrot.lane.b32.xlu0 %v16885_v59, %s16716_s11 }
 0x5f0   :  { %v889_v54 = vpop.xlane.xlu0 %888 }
 0x5f1   :  { %v890_v55 = vsub.f32 %v886_v52, %v889_v54 }
 0x5f3   :  { %v891_v60 = vmul.f32 1.442695, %v890_v55 }
 0x5f4   :  { %v16029_v2 = vpop.permute.xlu0 %16028 }
 0x5f5   :  { %16543 = vpow2.f32 %v891_v60  ;;  %v16031_v4 = vunpack.i.h.bf16 %v16029_v2  ;;  %v16030_v5 = vunpack.i.l.bf16 %v16029_v2 }
 0x5f7   :  { %v15412_v14 = vpack.c.bf16 %v16031_v4, %v16030_v5 }
 0x5f8   :  { %v16039_v13 = vpop.permute.xlu0 %16038 }
 0x5f9   :  { %v16041_v15 = vunpack.i.h.bf16 %v16039_v13  ;;  %v16040_v16 = vunpack.i.l.bf16 %v16039_v13 }
 0x5fb   :  { %v15415_v18 = vpack.c.bf16 %v16041_v15, %v16040_v16 }
 0x5fc   :  { %v16049_v24 = vpop.permute.xlu0 %16048 }
 0x5fd   :  { %v16051_v28 = vunpack.i.h.bf16 %v16049_v24  ;;  %v16050_v29 = vunpack.i.l.bf16 %v16049_v24 }
 0x5ff   :  { %v16544_v61 = vpop.eup %16543  ;;  %v15418_v33 = vpack.c.bf16 %v16051_v28, %v16050_v29 }
 0x600   :  { %v893_v62 = vsel %vm445_vm5, %v16544_v61, 0.0 }
 0x601   :  { %894 = vadd.xlane.f32.xlu1 %v893_v62 }
 0x612   :  { %16033 = vrot.lane.b32.xlu1 %v16869_v56, %s16716_s11 }
 0x616   :  { %16043 = vrot.lane.b32.xlu1 %v16893_v6, %s16716_s11 }
 0x61a   :  { %16053 = vrot.lane.b32.xlu1 %v16899_v7, %s16716_s11 }
 0x68e   :  { %v895_v1 = vpop.xlane.xlu1 %894 }
 0x68f   :  { %16545 = vrcp.f32 %v895_v1 }
 0x692   :  { %v16034_v11 = vpop.permute.xlu1 %16033 }
 0x693   :  { %v16036_v12 = vunpack.i.h.bf16 %v16034_v11  ;;  %v16035_v19 = vunpack.i.l.bf16 %v16034_v11 }
 0x695   :  { %v15406_v21 = vpack.c.bf16 %v16036_v12, %v16035_v19 }
 0x696   :  { %v16044_v20 = vpop.permute.xlu1 %16043 }
 0x697   :  { %v16046_v22 = vunpack.i.h.bf16 %v16044_v20  ;;  %v16045_v23 = vunpack.i.l.bf16 %v16044_v20 }
 0x699   :  { %v16546_v3 = vpop.eup %16545  ;;  %v15409_v27 = vpack.c.bf16 %v16046_v22, %v16045_v23 }
 0x69a   :  { %v897_v8 = vmul.f32 %v16546_v3, %v16544_v61  ;;  %v16054_v30 = vpop.permute.xlu1 %16053 }
 0x69b   :  { %v16056_v35 = vunpack.i.h.bf16 %v16054_v30 }
 0x69c   :  { %14163 = vmatmul.mubr.msk.f32.vlgmr.msra.gmra.mrb[8].mxu1 %vm457_vm6, %v897_v8 }
 0x69d   :  { %14171 = vmatpush3.msra.mxu1 %v135_v10  ;;  %14172 = vmatprep.mubr.msk.f32.mxu1 %vm16713_vm1, %v16714_v17 }
 0x69e   :  { %15411 = vmatprep.subr.bf16.mxu1 %v16712_v9 }
 0x6a0   :  { %14173 = vmatmul.mubr.msk.f32.vlgmr.msra.gmra.mrb[10].mxu1 %vm366_vm3, %v531_v36  ;;  %v16055_v36 = vunpack.i.l.bf16 %v16054_v30 }
 0x6a1   :  { %15413 = vmatpush3.bf16.msra.mxu1 %v15412_v14  ;;  %14194 = vmatprep.mubr.msk.f32.mxu1 %vm16713_vm1, %v16714_v17 }
 0x6a2   :  { %15414 = vmatprep.subr.bf16.mxu1 %v16712_v9  ;;  %v15421_v37 = vpack.c.bf16 %v16056_v35, %v16055_v36 }
 0x6a5   :  { %15416 = vmatpush3.bf16.msra.mxu1 %v15415_v18 }
 0x6a6   :  { %14208 = vmatprep.subr.mxu1 %v16714_v17 }
 0x6a8   :  { %14195 = vmatmul.mubr.msk.f32.vlgmr.msra.gmra.mrb[12].mxu1 %vm49_vm2, %v16822_v34 }
 0x6a9   :  { %14210 = vmatprep.mubr.msk.f32.mxu1 %vm16713_vm1, %v16714_v17 }
 0x76f   :  { %v970_v25 = vpop.f32.mrb[8].mxu1 }
 0x770   :  { %v14164_v26 = vpop.f32.mrb[9].mxu1  ;;  %14168 = vmatmul.mubr.msk.f32.vlgmr.msra.gmra.mrb[10].mxu0 %vm366_vm3, %v970_v25 }
 0x771   :  { %15407 = vmatpush3.bf16.msra.mxu0 %v15406_v21  ;;  %14183 = vmatprep.mubr.msk.f32.mxu0 %vm16713_vm1, %v16714_v17 }
 0x772   :  { %15408 = vmatprep.subr.bf16.mxu0 %v16712_v9 }
 0x773   :  { %v1116_v31 = vpop.f32.mrb[10].mxu1 }
 0x774   :  { %v14174_v32 = vpop.f32.mrb[11].mxu1 }
 0x775   :  { %15410 = vmatpush3.bf16.msra.mxu0 %v15409_v27 }
 0x776   :  { %15417 = vmatprep.subr.bf16.mxu0 %v16712_v9 }
 0x778   :  { %14184 = vmatmul.mubr.msk.f32.vlgmr.msra.gmra.mrb[12].mxu0 %vm49_vm2, %v16822_v34 }
 0x779   :  { %15419 = vmatpush3.bf16.msra.mxu0 %v15418_v33  ;;  %14205 = vmatprep.mubr.msk.f32.mxu0 %vm16713_vm1, %v16714_v17 }
 0x77a   :  { %15420 = vmatprep.subr.bf16.mxu0 %v16712_v9 }
 0x77b   :  { %v1292_v39 = vpop.f32.mrb[12].mxu1 }
 0x77c   :  { %v1293_v40 = vadd.f32 %v13099_v38, %v1292_v39  ;;  %v14196_v41 = vpop.f32.mrb[13].mxu1 }
 0x77d   :  { %15422 = vmatpush3.bf16.msra.mxu0 %v15421_v37  ;;  %v13112_v41 = vld [vmem:[%s18710_s5 + $0x7] ss:$0 sm:$0xff] }
 0x77e   :  { %14209 = vmatpush3.xpose.msk.msra.mxu1 %vm366_vm3, %v1293_v40  ;;  %14218 = vmatprep.subr.mxu0 %v16714_v17 }
 0x77f   :  { %14213 = vmatprep.subr.mxu1 %v16714_v17 }
 0x780   :  { %14206 = vmatmul.mubr.msk.f32.vlgmr.msra.gmra.mrb[14].mxu0 %vm49_vm2, %v16822_v34 }
 0x781   :  { %14220 = vmatprep.mubr.msk.f32.mxu0 %vm16713_vm1, %v16714_v17 }
 0x843   :  { %v1043_v42 = vpop.f32.mrb[10].mxu0 }
 0x844   :  { %v16988_v43 = vadd.f32 %v1116_v31, %v1043_v42  ;;  %v14169_v44 = vpop.f32.mrb[11].mxu0 }
 0x845   :  { %v13110_v44 = vld [vmem:[%s18710_s5 + $0x3] ss:$0 sm:$0xff] }
 0x84b   :  { %v1206_v46 = vpop.f32.mrb[12].mxu0 }
 0x84c   :  { %v1207_v47 = vadd.f32 %v13097_v45, %v1206_v46  ;;  %v14185_v48 = vpop.f32.mrb[13].mxu0  ;;  %v13114_v46 = vld [vmem:[%s18710_s5 + $0xb] ss:$0 sm:$0xff] }
 0x84e   :  { %14211 = vmatmul.mubr.msk.f32.vlgmr.msra.gmra.mrb[14].mxu1 %vm366_vm3, %v1207_v47 }
 0x84f   :  { %14215 = vmatprep.mubr.msk.f32.mxu1 %vm16713_vm1, %v16714_v17 }
 0x853   :  { %v1378_v50 = vpop.f32.mrb[14].mxu0 }
 0x854   :  { %v1379_v52 = vadd.f32 %v13101_v49, %v1378_v50  ;;  %v14207_v53 = vpop.f32.mrb[15].mxu0 }
 0x856   :  { %14214 = vmatpush3.msk.msra.mxu1 %vm461_vm4, %v1379_v52 }
 0x857   :  { %15423 = vmatprep.subr.bf16.mxu1 %v16712_v9 }
 0x921   :  { %v1454_v54 = vpop.f32.mrb[14].mxu1 }
 0x922   :  { %v1458_v55 = vmul.f32 0.35355338, %v1454_v54  ;;  %v14212_v60 = vpop.f32.mrb[15].mxu1 }
 0x924   :  { %v1459_v61 = vadd.f32 %v1458_v55, %v16863_v51 }
 0x926   :  { %v1460_v62 = vsel %vm445_vm5, %v1459_v61, -inf }
 0x927   :  { %1461 = vmax.xlane.f32.xlu0 %v1460_v62 }
 0x93d   :  { %16058 = vrot.lane.b32.xlu0 %v16881_v58, %s16717_s3 }
 0x941   :  { %16068 = vrot.lane.b32.xlu0 %v16875_v57, %s16717_s3  ;;  %v1120_v57 = vld [vmem:[#allocation2 + $0x70] sm:$0xff] }
 0x942   :  { %14219 = vmatpush3.msra.mxu0 %v1120_v57 }
 0x943   :  { %15429 = vmatprep.subr.bf16.mxu0 %v16712_v9 }
 0x945   :  { %16078 = vrot.lane.b32.xlu0 %v16885_v59, %s16717_s3 }
 0x9b4   :  { %v1462_v63 = vpop.xlane.xlu0 %1461 }
 0x9b5   :  { %v1463_v1 = vsub.f32 %v1459_v61, %v1462_v63  ;;  %v1621_v63 = vld [vmem:[#allocation2 + $0x78] sm:$0xff] }
 0x9b7   :  { %v1464_v2 = vmul.f32 1.442695, %v1463_v1 }
 0x9b8   :  { %v16059_v59 = vpop.permute.xlu0 %16058 }
 0x9b9   :  { %16547 = vpow2.f32 %v1464_v2  ;;  %v16061_v25 = vunpack.i.h.bf16 %v16059_v59  ;;  %v16060_v26 = vunpack.i.l.bf16 %v16059_v59 }
 0x9bb   :  { %v15430_v27 = vpack.c.bf16 %v16061_v25, %v16060_v26 }
 0x9bc   :  { %v16069_v8 = vpop.permute.xlu0 %16068 }
 0x9bd   :  { %v16071_v28 = vunpack.i.h.bf16 %v16069_v8  ;;  %v16070_v29 = vunpack.i.l.bf16 %v16069_v8 }
 0x9bf   :  { %v15433_v32 = vpack.c.bf16 %v16071_v28, %v16070_v29 }
 0x9c0   :  { %v16079_v11 = vpop.permute.xlu0 %16078 }
 0x9c1   :  { %v16081_v12 = vunpack.i.h.bf16 %v16079_v11  ;;  %v16080_v19 = vunpack.i.l.bf16 %v16079_v11 }
 0x9c3   :  { %v16548_v3 = vpop.eup %16547  ;;  %v15436_v21 = vpack.c.bf16 %v16081_v12, %v16080_v19 }
 0x9c4   :  { %v1466_v4 = vsel %vm445_vm5, %v16548_v3, 0.0 }
 0x9c5   :  { %1467 = vadd.xlane.f32.xlu1 %v1466_v4  ;;  %v46_v4 = vld [vmem:[%s18706_s1 + $0x8] sm:$0xff] }
 0x9c6   :  { %v53_v59 = vsel %vm49_vm2, %v46_v4, 0.0 }
 0x9d6   :  { %16063 = vrot.lane.b32.xlu1 %v16869_v56, %s16717_s3 }
 0x9da   :  { %16073 = vrot.lane.b32.xlu1 %v16893_v6, %s16717_s3 }
 0x9de   :  { %16083 = vrot.lane.b32.xlu1 %v16899_v7, %s16717_s3 }
 0xa52   :  { %v1468_v58 = vpop.xlane.xlu1 %1467 }
 0xa53   :  { %16549 = vrcp.f32 %v1468_v58  ;;  %v57_v58 = vmul.f32 %v46_v4, %v46_v4 }
 0xa55   :  { %v61_v8 = vsel %vm49_vm2, %v57_v58, 0.0 }
 0xa56   :  { %v16064_v5 = vpop.permute.xlu1 %16063 }
 0xa57   :  { %v16066_v10 = vunpack.i.h.bf16 %v16064_v5  ;;  %v16065_v13 = vunpack.i.l.bf16 %v16064_v5 }
 0xa59   :  { %v15424_v56 = vpack.c.bf16 %v16066_v10, %v16065_v13 }
 0xa5a   :  { %v16074_v14 = vpop.permute.xlu1 %16073 }
 0xa5b   :  { %v16076_v16 = vunpack.i.h.bf16 %v16074_v14  ;;  %v16075_v18 = vunpack.i.l.bf16 %v16074_v14 }
 0xa5d   :  { %v16550_v15 = vpop.eup %16549  ;;  %v15427_v7 = vpack.c.bf16 %v16076_v16, %v16075_v18  ;;  %v17079_v16 = vld [vmem:[#allocation2 + $0xa8] sm:$0xff]  ;;  %v17081_v18 = vld [vmem:[#allocation2 + $0xb0] sm:$0xff] }
 0xa5e   :  { %v1470_v6 = vmul.f32 %v16550_v15, %v16548_v3  ;;  %v16084_v20 = vpop.permute.xlu1 %16083 }
 0xa5f   :  { %v16086_v22 = vunpack.i.h.bf16 %v16084_v20  ;;  %v16085_v23 = vunpack.i.l.bf16 %v16084_v20 }
 0xa60   :  { %14216 = vmatmul.mubr.msk.f32.vlgmr.msra.gmra.mrb[16].mxu1 %vm457_vm6, %v1470_v6  ;;  %v17083_v6 = vld [vmem:[#allocation2 + $0xb8] sm:$0xff] }
 0xa61   :  { %15425 = vmatpush3.bf16.msra.mxu1 %v15424_v56  ;;  %14231 = vmatprep.mubr.msk.f32.mxu1 %vm16713_vm1, %v16714_v17  ;;  %v15439_v24 = vpack.c.bf16 %v16086_v22, %v16085_v23  ;;  %v17077_v56 = vld [vmem:[#allocation2 + $0xa0] sm:$0xff]  ;;  %v15451_v12 = vpack.c.bf16 %v17083_v6, %v17081_v18 }
 0xa62   :  { %15426 = vmatprep.subr.bf16.mxu1 %v16712_v9 }
 0xa65   :  { %15428 = vmatpush3.bf16.msra.mxu1 %v15427_v7  ;;  %v15447_v7 = vpack.c.bf16 %v17079_v16, %v17077_v56 }
 0xa66   :  { %15435 = vmatprep.subr.bf16.mxu1 %v16712_v9 }
 0xa68   :  { %14232 = vmatmul.mubr.msk.f32.vlgmr.msra.gmra.mrb[18].mxu1 %vm49_vm2, %v16822_v34 }
 0xa69   :  { %15437 = vmatpush3.bf16.msra.mxu1 %v15436_v21  ;;  %14253 = vmatprep.mubr.msk.f32.mxu1 %vm16713_vm1, %v16714_v17 }
 0xa6a   :  { %15438 = vmatprep.subr.bf16.mxu1 %v16712_v9 }
 0xa6d   :  { %15440 = vmatpush3.bf16.msra.mxu1 %v15439_v24 }
 0xa6e   :  { %14266 = vmatprep.subr.mxu1 %v16714_v17 }
 0xa70   :  { %14254 = vmatmul.mubr.msk.f32.vlgmr.msra.gmra.mrb[20].mxu1 %vm49_vm2, %v16822_v34 }
 0xa71   :  { %14268 = vmatprep.mubr.msk.f32.mxu1 %vm16713_vm1, %v16714_v17  ;;  %14267 = vmatpush3.msra.mxu1 %v1621_v63  ;;  %v17133_v63 = vld [vmem:[#allocation2 + $0xc8] sm:$0xff] }
 0xa72   :  { %15448 = vmatprep.subr.bf16.mxu1 %v15447_v7 }
 0xb33   :  { %v1543_v30 = vpop.f32.mrb[16].mxu1 }
 0xb34   :  { %v14217_v31 = vpop.f32.mrb[17].mxu1  ;;  %14221 = vmatmul.mubr.msk.f32.vlgmr.msra.gmra.mrb[16].mxu0 %vm366_vm3, %v1543_v30 }
 0xb35   :  { %15431 = vmatpush3.bf16.msra.mxu0 %v15430_v27  ;;  %14242 = vmatprep.mubr.msk.f32.mxu0 %vm16713_vm1, %v16714_v17 }
 0xb36   :  { %15432 = vmatprep.subr.bf16.mxu0 %v16712_v9 }
 0xb39   :  { %15434 = vmatpush3.bf16.msra.mxu0 %v15433_v32 }
 0xb3a   :  { %14256 = vmatprep.subr.mxu0 %v16714_v17 }
 0xb3b   :  { %v1707_v33 = vpop.f32.mrb[18].mxu1 }
 0xb3c   :  { %v14233_v35 = vpop.f32.mrb[19].mxu1  ;;  %14243 = vmatmul.mubr.msk.f32.vlgmr.msra.gmra.mrb[18].mxu0 %vm49_vm2, %v16822_v34 }
 0xb3d   :  { %14258 = vmatprep.mubr.msk.f32.mxu0 %vm16713_vm1, %v16714_v17 }
 0xb43   :  { %v1879_v36 = vpop.f32.mrb[20].mxu1 }
 0xb44   :  { %v14255_v37 = vpop.f32.mrb[21].mxu1  ;;  %v1880_v47 = vadd.f32 %v13114_v46, %v1879_v36  ;;  %v13121_v46 = vld [vmem:[%s18711_s6 + $0xa] ss:$0 sm:$0xff] }
 0xb45   :  { %v13065_v37 = vld [vmem:[%s18711_s6] ss:$0 sm:$0xff] }
 0xc07   :  { %v1616_v38 = vpop.f32.mrb[16].mxu0 }
 0xc08   :  { %v17042_v39 = vadd.f32 %v1616_v38, %v16988_v43  ;;  %v14222_v40 = vpop.f32.mrb[17].mxu0  ;;  %v1708_v43 = vadd.f32 %v13110_v44, %v1707_v33 }
 0xc0f   :  { %v1793_v42 = vpop.f32.mrb[18].mxu0 }
 0xc10   :  { %v1794_v34 = vadd.f32 %v13112_v41, %v1793_v42  ;;  %v14244_v45 = vpop.f32.mrb[19].mxu0  ;;  %v13066_v41 = vld [vmem:[%s18711_s6 + $0x1] ss:$0 sm:$0xff] }
 0xc12   :  { %14257 = vmatpush3.xpose.msk.msra.mxu0 %vm366_vm3, %v1794_v34 }
 0xc13   :  { %14261 = vmatprep.subr.mxu0 %v16714_v17 }
 0xc15   :  { %14259 = vmatmul.mubr.msk.f32.vlgmr.msra.gmra.mrb[20].mxu0 %vm366_vm3, %v1708_v43 }
 0xc16   :  { %14262 = vmatpush3.msk.msra.mxu0 %vm461_vm4, %v1880_v47  ;;  %14263 = vmatprep.mubr.msk.f32.mxu0 %vm16713_vm1, %v16714_v17 }
 0xc17   :  { %15441 = vmatprep.subr.bf16.mxu0 %v16712_v9 }
 0xce8   :  { %v1955_v48 = vpop.f32.mrb[20].mxu0 }
 0xce9   :  { %v1959_v49 = vmul.f32 0.35355338, %v1955_v48  ;;  %v14260_v50 = vpop.f32.mrb[21].mxu0 }
 0xceb   :  { %v1960_v52 = vadd.f32 %v1959_v49, %v16863_v51  ;;  %v45_v51 = vld [vmem:[%s18706_s1] sm:$0xff] }
 0xcec   :  { %v50_v57 = vsel %vm49_vm2, %v45_v51, 0.0  ;;  %v56_v5 = vmul.f32 %v45_v51, %v45_v51 }
 0xced   :  { %v1961_v53 = vsel %vm445_vm5, %v1960_v52, -inf }
 0xcee   :  { %1962 = vmax.xlane.f32.xlu0 %v1961_v53  ;;  %v58_v10 = vsel %vm49_vm2, %v56_v5, 0.0 }
 0xcf2   :  { %51 = vadd.xlane.f32.xlu0 %v50_v57 }
 0xcf6   :  { %54 = vadd.xlane.f32.xlu0 %v53_v59 }
 0xcfa   :  { %59 = vadd.xlane.f32.xlu0 %v58_v10 }
 0xd7b   :  { %v1963_v54 = vpop.xlane.xlu0 %1962 }
 0xd7c   :  { %v1964_v55 = vsub.f32 %v1960_v52, %v1963_v54  ;;  %v17118_v54 = vld [vmem:[#allocation2 + $0x80] sm:$0xff] }
 0xd7e   :  { %v1965_v60 = vmul.f32 1.442695, %v1964_v55  ;;  %v17120_v55 = vld [vmem:[#allocation2 + $0x88] sm:$0xff] }
 0xd7f   :  { %v52_v15 = vpop.xlane.xlu0 %51 }
 0xd80   :  { %16551 = vpow2.f32 %v1965_v60  ;;  %v64_v19 = vmul.f32 0.03125, %v52_v15  ;;  %v17127_v60 = vld [vmem:[#allocation2 + $0x98] sm:$0xff] }
 0xd82   :  { %v68_v23 = vmul.f32 %v64_v19, %v64_v19  ;;  %v72_v32 = vsub.f32 %v45_v51, %v64_v19  ;;  %v13122_v19 = vld [vmem:[%s18711_s6 + $0x6] ss:$0 sm:$0xff] }
 0xd83   :  { %v55_v20 = vpop.xlane.xlu0 %54 }
 0xd84   :  { %v65_v21 = vmul.f32 0.03125, %v55_v20 }
 0xd86   :  { %v69_v24 = vmul.f32 %v65_v21, %v65_v21  ;;  %v73_v31 = vsub.f32 %v46_v4, %v65_v21  ;;  %v13123_v21 = vld [vmem:[%s18711_s6 + $0x7] ss:$0 sm:$0xff] }
 0xd87   :  { %v60_v25 = vpop.xlane.xlu0 %59 }
 0xd88   :  { %v66_v26 = vmul.f32 0.03125, %v60_v25 }
 0xd8a   :  { %v16552_v61 = vpop.eup %16551  ;;  %v70_v28 = vsub.f32 %v66_v26, %v68_v23  ;;  %v2170_v23 = vld [vmem:[#allocation2 + $0xd8] sm:$0xff] }
 0xd8b   :  { %v1967_v62 = vsel %vm445_vm5, %v16552_v61, 0.0 }
 0xd8c   :  { %1968 = vadd.xlane.f32.xlu1 %v1967_v62  ;;  %v74_v30 = vadd.f32 1e-05, %v70_v28  ;;  %v17131_v62 = vld [vmem:[#allocation2 + $0xc0] sm:$0xff] }
 0xd90   :  { %62 = vadd.xlane.f32.xlu1 %v61_v8 }
 0xe19   :  { %v1969_v1 = vpop.xlane.xlu1 %1968 }
 0xe1a   :  { %16553 = vrcp.f32 %v1969_v1  ;;  %v15455_v1 = vpack.c.bf16 %v17133_v63, %v17131_v62 }
 0xe1d   :  { %v63_v11 = vpop.xlane.xlu1 %62 }
 0xe1e   :  { %v67_v22 = vmul.f32 0.03125, %v63_v11 }
 0xe20   :  { %v71_v27 = vsub.f32 %v67_v22, %v69_v24  ;;  %v2169_v22 = vld [vmem:[#allocation2 + $0xd0] sm:$0xff] }
 0xe21   :  { %v15459_v26 = vpack.c.bf16 %v2170_v23, %v2169_v22 }
 0xe22   :  { %v75_v29 = vadd.f32 1e-05, %v71_v27  ;;  %v13127_v27 = vld [vmem:[%s18710_s5 + $0xc] ss:$0 sm:$0xff] }
 0xe24   :  { %v16554_v2 = vpop.eup %16553  ;;  %16555 = vrsqrt.f32 %v75_v29 }
 0xe25   :  { %v1971_v3 = vmul.f32 %v16554_v2, %v16552_v61  ;;  %16557 = vrsqrt.f32 %v74_v30  ;;  %v13129_v2 = vld [vmem:[%s18710_s5 + $0x10] ss:$0 sm:$0xff] }
 0xe27   :  { %14264 = vmatmul.mubr.msk.f32.vlgmr.msra.gmra.mrb[22].mxu0 %vm457_vm6, %v1971_v3 }
 0xe28   :  { %14279 = vmatprep.mubr.msk.f32.mxu0 %vm16713_vm1, %v16714_v17 }
 0xe2e   :  { %v16556_v33 = vpop.eup %16555 }
 0xe2f   :  { %v79_v35 = vmul.f32 %v16556_v33, %v73_v31  ;;  %v16558_v36 = vpop.eup %16557  ;;  %v13132_v31 = vld [vmem:[%s18710_s5 + $0x14] ss:$0 sm:$0xff] }
 0xe30   :  { %v78_v38 = vmul.f32 %v16558_v36, %v72_v32 }
 0xe31   :  { %v85_v40 = vmul.f32 %v13065_v37, %v79_v35 }
 0xe32   :  { %v84_v42 = vmul.f32 %v13065_v37, %v78_v38  ;;  %v17178_v38 = vpack.i.bf16 %v17083_v6, %v17081_v18  ;;  %v17191_v18 = vpack.i.bf16 %v17079_v16, %v17077_v56  ;;  %v17197_v6 = vpack.i.bf16 %v17133_v63, %v17131_v62 }
 0xe33   :  { %v17096_v44 = vadd.f32 %v13066_v41, %v85_v40  ;;  %v17204_v56 = vpack.i.bf16 %v17120_v55, %v17118_v54 }
 0xe34   :  { %v17098_v34 = vadd.f32 %v13066_v41, %v84_v42  ;;  %v17185_v41 = vld [vmem:[%s18707_s2 + $0x8] sm:$0x3f] }
 0xefa   :  { %v2044_v13 = vpop.f32.mrb[22].mxu0 }
 0xefb   :  { %v14265_v14 = vpop.f32.mrb[23].mxu0  ;;  %14269 = vmatmul.mubr.msk.f32.vlgmr.msra.gmra.mrb[22].mxu1 %vm366_vm3, %v2044_v13 }
 0xefc   :  { %15450 = vmatpush3.bf16.msra.mxu1 %v15447_v7  ;;  %14290 = vmatprep.mubr.msk.f32.mxu1 %vm49_vm2, %v17098_v34 }
 0xefd   :  { %15452 = vmatprep.subr.bf16.mxu1 %v15451_v12 }
 0xf00   :  { %15454 = vmatpush3.bf16.msra.mxu1 %v15451_v12 }
 0xf01   :  { %15463 = vmatprep.subr.bf16.mxu1 %v16712_v9 }
 0xf03   :  { %14291 = vmatmul.mubr.msk.f32.vlgmr.msra.gmra.mrb[24].mxu1 %vm49_vm2, %v17096_v44 }
 0xf04   :  { %14308 = vmatprep.mubr.msk.f32.mxu1 %vm16713_vm1, %v16714_v17 }
 0xfce   :  { %v2117_v45 = vpop.f32.mrb[22].mxu1 }
 0xfcf   :  { %v2121_v43 = vadd.f32 %v2117_v45, %v17042_v39  ;;  %v14270_v47 = vpop.f32.mrb[23].mxu1  ;;  %v15442_v39 = vpack.c.bf16 %v17120_v55, %v17118_v54 }
 0xfd1   :  { %v2127_v48 = vadd.f32 %v13121_v46, %v2121_v43  ;;  %15443 = vmatpush3.bf16.msra.mxu0 %v15442_v39 }
 0xfd2   :  { %15444 = vmatprep.subr.bf16.mxu0 %v16712_v9 }
 0xfd3   :  { %v17111_v49 = vadd.f32 %v2127_v48, %v16774_v0  ;;  %v17125_v0 = vld [vmem:[#allocation2 + $0x90] sm:$0xff] }
 0xfd4   :  { %v15445_v61 = vpack.c.bf16 %v17127_v60, %v17125_v0  ;;  %v17210_v16 = vpack.i.bf16 %v17127_v60, %v17125_v0 }
 0xfd5   :  { %v2131_v50 = vsel %vm94_vm0, %v17111_v49, 0.0  ;;  %v2134_v52 = vmul.f32 %v17111_v49, %v17111_v49 }
 0xfd6   :  { %2132 = vadd.xlane.f32.xlu0 %v2131_v50  ;;  %15446 = vmatpush3.bf16.msra.mxu0 %v15445_v61  ;;  %v14292_v3 = vpop.f32.mrb[24].mxu1  ;;  %v17214_v61 = vpack.i.bf16 %v2170_v23, %v2169_v22 }
 0xfd7   :  { %v2135_v53 = vsel %vm94_vm0, %v2134_v52, 0.0  ;;  %15456 = vmatprep.subr.bf16.mxu0 %v15455_v1  ;;  %v2338_v51 = vadd.f32 %v14292_v3, %v13129_v2  ;;  %v2332_v4 = vpop.f32.mrb[25].mxu1 }
 0xfd8   :  { %2136 = vadd.xlane.f32.xlu1 %v2135_v53  ;;  %v2333_v57 = vadd.f32 %v13129_v2, %v2332_v4 }
 0xfda   :  { %v15464_v59 = vpack.c.bf16 %v2338_v51, %v2333_v57 }
 0xfdc   :  { %15466 = vmatpush3.bf16.xpose.msk.msra.mxu1 %vm17142_vm7, %v15464_v59 }
 0xfdd   :  { %15470 = vmatprep.subr.bf16.mxu1 %v16712_v9 }
 0xfe9   :  { %16093 = vrot.lane.b32.xlu1 %v17178_v38, %s16715_s27 }
0x1063   :  { %v2133_v5 = vpop.xlane.xlu0 %2132 }
0x1064   :  { %v2138_v8 = vmul.f32 0.03125, %v2133_v5 }
0x1065   :  { %v2137_v10 = vpop.xlane.xlu1 %2136 }
0x1066   :  { %v2140_v13 = vmul.f32 %v2138_v8, %v2138_v8  ;;  %v2139_v14 = vmul.f32 0.03125, %v2137_v10  ;;  %v2142_v7 = vsub.f32 %v17111_v49, %v2138_v8 }
0x1068   :  { %v2141_v15 = vsub.f32 %v2139_v14, %v2140_v13 }
0x1069   :  { %v16094_v55 = vpop.permute.xlu1 %16093 }
0x106a   :  { %v2143_v11 = vadd.f32 1e-05, %v2141_v15  ;;  %v16096_v10 = vunpack.i.h.bf16 %v16094_v55  ;;  %v16095_v13 = vunpack.i.l.bf16 %v16094_v55 }
0x106c   :  { %16559 = vrsqrt.f32 %v2143_v11 }
0x1076   :  { %v16560_v12 = vpop.eup %16559 }
0x1077   :  { %v2145_v20 = vmul.f32 %v16560_v12, %v2142_v7 }
0x1079   :  { %v2150_v24 = vmul.f32 %v13122_v19, %v2145_v20 }
0x107b   :  { %v17156_v25 = vadd.f32 %v13123_v21, %v2150_v24  ;;  %v15480_v21 = vpack.c.bf16 %v16096_v10, %v16095_v13 }
0x107d   :  { %14280 = vmatmul.mubr.msk.f32.vlgmr.msra.gmra.mrb[24].mxu0 %vm49_vm2, %v17156_v25 }
0x107e   :  { %15458 = vmatpush3.bf16.msra.mxu0 %v15455_v1  ;;  %14301 = vmatprep.mubr.msk.f32.mxu0 %vm49_vm2, %v17098_v34 }
0x107f   :  { %15460 = vmatprep.subr.bf16.mxu0 %v15459_v26 }
0x1082   :  { %15462 = vmatpush3.bf16.msra.mxu0 %v15459_v26 }
0x1083   :  { %15467 = vmatprep.subr.bf16.mxu0 %v16712_v9 }
0x1085   :  { %14302 = vmatmul.mubr.msk.f32.vlgmr.msra.gmra.mrb[26].mxu0 %vm49_vm2, %v17096_v44 }
0x1086   :  { %14315 = vmatprep.mubr.msk.f32.mxu0 %vm16713_vm1, %v16714_v17 }
0x1150   :  { %v2252_v28 = vpop.f32.mrb[24].mxu0 }
0x1151   :  { %v2253_v29 = vadd.f32 %v13127_v27, %v2252_v28  ;;  %v14281_v30 = vpop.f32.mrb[25].mxu0  ;;  %v13144_v28 = vld [vmem:[%s18710_s5 + $0x11] ss:$0 sm:$0xff] }
0x1152   :  { %v13147_v30 = vld [vmem:[%s18710_s5 + $0x15] ss:$0 sm:$0xff] }
0x1153   :  { %14309 = vmatmul.mubr.msk.f32.vlgmr.msra.gmra.mrb[26].mxu1 %vm366_vm3, %v2253_v29 }
0x1154   :  { %14326 = vmatprep.mubr.msk.f32.mxu1 %vm16713_vm1, %v16714_v17 }
0x1158   :  { %v14303_v32 = vpop.f32.mrb[26].mxu0 }
0x1159   :  { %v2417_v33 = vadd.f32 %v14303_v32, %v13132_v31  ;;  %v2411_v35 = vpop.f32.mrb[27].mxu0 }
0x115a   :  { %v2412_v36 = vadd.f32 %v13132_v31, %v2411_v35 }
0x115c   :  { %v15468_v37 = vpack.c.bf16 %v2417_v33, %v2412_v36 }
0x115e   :  { %15469 = vmatpush3.bf16.msra.mxu0 %v15468_v37 }
0x1226   :  { %v2495_v40 = vpop.f32.mrb[26].mxu1 }
0x1227   :  { %v2499_v42 = vmul.f32 0.35355338, %v2495_v40  ;;  %v14310_v45 = vpop.f32.mrb[27].mxu1 }
0x1229   :  { %v2500_v46 = vadd.f32 %v17185_v41, %v2499_v42 }
0x122b   :  { %v2502_v43 = vsel %vm2501_vm8, %v2500_v46, -inf }
0x122c   :  { %2503 = vmax.xlane.f32.xlu0 %v2502_v43 }
0x1242   :  { %16088 = vrot.lane.b32.xlu0 %v17191_v18, %s16715_s27 }
0x1246   :  { %16108 = vrot.lane.b32.xlu0 %v17197_v6, %s16715_s27 }
0x12b9   :  { %v2504_v47 = vpop.xlane.xlu0 %2503 }
0x12ba   :  { %v2505_v48 = vsub.f32 %v2500_v46, %v2504_v47  ;;  %v13142_v46 = vld [vmem:[%s18710_s5 + $0xd] ss:$0 sm:$0xff] }
0x12bc   :  { %v2506_v50 = vmul.f32 1.442695, %v2505_v48 }
0x12bd   :  { %v16089_v39 = vpop.permute.xlu0 %16088 }
0x12be   :  { %16561 = vpow2.f32 %v2506_v50  ;;  %v16091_v62 = vunpack.i.h.bf16 %v16089_v39  ;;  %v16090_v63 = vunpack.i.l.bf16 %v16089_v39 }
0x12c0   :  { %v15476_v54 = vpack.c.bf16 %v16091_v62, %v16090_v63 }
0x12c1   :  { %v16109_v2 = vpop.permute.xlu0 %16108 }
0x12c2   :  { %15477 = vmatprep.subr.bf16.mxu0 %v15476_v54  ;;  %v16111_v51 = vunpack.i.h.bf16 %v16109_v2  ;;  %v16110_v4 = vunpack.i.l.bf16 %v16109_v2 }
0x12c4   :  { %v15484_v14 = vpack.c.bf16 %v16111_v51, %v16110_v4 }
0x12c8   :  { %v16562_v52 = vpop.eup %16561 }
0x12c9   :  { %v2508_v53 = vsel %vm2501_vm8, %v16562_v52, 0.0 }
0x12ca   :  { %2509 = vadd.xlane.f32.xlu1 %v2508_v53 }
0x12db   :  { %16098 = vrot.lane.b32.xlu1 %v17204_v56, %s16715_s27 }
0x12df   :  { %16103 = vrot.lane.b32.xlu1 %v17210_v16, %s16715_s27 }
0x12e3   :  { %16113 = vrot.lane.b32.xlu1 %v17214_v61, %s16715_s27 }
0x1357   :  { %v2510_v1 = vpop.xlane.xlu1 %2509 }
0x1358   :  { %16563 = vrcp.f32 %v2510_v1  ;;  %v2587_v1 = vld [vmem:[#allocation2 + $0xe8] sm:$0xff] }
0x135b   :  { %v16099_v3 = vpop.permute.xlu1 %16098 }
0x135c   :  { %v16101_v0 = vunpack.i.h.bf16 %v16099_v3  ;;  %v16100_v60 = vunpack.i.l.bf16 %v16099_v3 }
0x135e   :  { %v15471_v57 = vpack.c.bf16 %v16101_v0, %v16100_v60 }
0x135f   :  { %v16104_v59 = vpop.permute.xlu1 %16103 }
0x1360   :  { %v16106_v5 = vunpack.i.h.bf16 %v16104_v59  ;;  %v16105_v8 = vunpack.i.l.bf16 %v16104_v59  ;;  %15472 = vmatpush3.bf16.msra.mxu1 %v15471_v57 }
0x1361   :  { %15473 = vmatprep.subr.bf16.mxu1 %v16712_v9 }
0x1362   :  { %v16564_v15 = vpop.eup %16563  ;;  %v15474_v11 = vpack.c.bf16 %v16106_v5, %v16105_v8  ;;  %v2172_v8 = vld [vmem:[#allocation2 + $0xe0] sm:$0xff] }
0x1363   :  { %v2512_v7 = vmul.f32 %v16564_v15, %v16562_v52  ;;  %v16114_v12 = vpop.permute.xlu1 %16113 }
0x1364   :  { %15475 = vmatpush3.bf16.msra.mxu1 %v15474_v11  ;;  %v16116_v19 = vunpack.i.h.bf16 %v16114_v12  ;;  %v16115_v20 = vunpack.i.l.bf16 %v16114_v12 }
0x1365   :  { %14316 = vmatmul.mubr.msk.f32.vlgmr.msra.gmra.mrb[28].mxu0 %vm2513_vm9, %v2512_v7  ;;  %15485 = vmatprep.subr.bf16.mxu1 %v15484_v14 }
0x1366   :  { %15479 = vmatpush3.bf16.msra.mxu0 %v15476_v54  ;;  %14337 = vmatprep.mubr.msk.f32.mxu0 %vm49_vm2, %v17098_v34  ;;  %v15488_v22 = vpack.c.bf16 %v16116_v19, %v16115_v20 }
0x1367   :  { %15481 = vmatprep.subr.bf16.mxu0 %v15480_v21  ;;  %14327 = vmatmul.mubr.msk.f32.vlgmr.msra.gmra.mrb[28].mxu1 %vm49_vm2, %v17156_v25 }
0x1368   :  { %15487 = vmatpush3.bf16.msra.mxu1 %v15484_v14  ;;  %14348 = vmatprep.mubr.msk.f32.mxu1 %vm49_vm2, %v17098_v34 }
0x1369   :  { %15489 = vmatprep.subr.bf16.mxu1 %v15488_v22 }
0x136a   :  { %15483 = vmatpush3.bf16.msra.mxu0 %v15480_v21 }
0x136b   :  { %15492 = vmatprep.subr.bf16.mxu0 %v16712_v9 }
0x136c   :  { %15491 = vmatpush3.bf16.msra.mxu1 %v15488_v22 }
0x136d   :  { %14338 = vmatmul.mubr.msk.f32.vlgmr.msra.gmra.mrb[30].mxu0 %vm49_vm2, %v17096_v44  ;;  %15496 = vmatprep.subr.bf16.mxu1 %v16712_v9 }
0x136e   :  { %14355 = vmatprep.mubr.msk.f32.mxu0 %vm16713_vm1, %v16714_v17 }
0x136f   :  { %14349 = vmatmul.mubr.msk.f32.vlgmr.msra.gmra.mrb[30].mxu1 %vm49_vm2, %v17096_v44 }
0x1370   :  { %14362 = vmatprep.mubr.msk.f32.mxu1 %vm16713_vm1, %v16714_v17 }
0x1438   :  { %v17236_v23 = vpop.f32.mrb[28].mxu0 }
0x1439   :  { %v14317_v24 = vpop.f32.mrb[29].mxu0 }
0x143a   :  { %v2677_v26 = vpop.f32.mrb[28].mxu1 }
0x143b   :  { %v14328_v27 = vpop.f32.mrb[29].mxu1  ;;  %v2678_v43 = vadd.f32 %v13142_v46, %v2677_v26 }
0x1440   :  { %v14339_v29 = vpop.f32.mrb[30].mxu0 }
0x1441   :  { %v2773_v31 = vadd.f32 %v14339_v29, %v13144_v28  ;;  %v2767_v32 = vpop.f32.mrb[31].mxu0 }
0x1442   :  { %v2768_v33 = vadd.f32 %v13144_v28, %v2767_v32  ;;  %v14350_v35 = vpop.f32.mrb[30].mxu1 }
0x1443   :  { %v2868_v36 = vadd.f32 %v14350_v35, %v13147_v30  ;;  %v2862_v37 = vpop.f32.mrb[31].mxu1 }
0x1444   :  { %v15493_v40 = vpack.c.bf16 %v2773_v31, %v2768_v33  ;;  %v2863_v42 = vadd.f32 %v13147_v30, %v2862_v37 }
0x1446   :  { %v15497_v45 = vpack.c.bf16 %v2868_v36, %v2863_v42  ;;  %15495 = vmatpush3.bf16.xpose.msk.msra.mxu0 %vm17142_vm7, %v15493_v40  ;;  %v13161_v36 = vld [vmem:[%s18710_s5 + $0x12] ss:$0 sm:$0xff] }
0x1447   :  { %14365 = vmatprep.subr.mxu0 %v16714_v17 }
0x1448   :  { %15498 = vmatpush3.bf16.msra.mxu1 %v15497_v45 }
0x1449   :  { %14370 = vmatprep.subr.mxu1 %v16714_v17 }
0x144d   :  { %14356 = vmatmul.mubr.msk.f32.vlgmr.msra.gmra.mrb[32].mxu0 %vm366_vm3, %v2678_v43 }
0x144e   :  { %14367 = vmatprep.mubr.msk.f32.mxu0 %vm16713_vm1, %v16714_v17  ;;  %14366 = vmatpush3.msra.mxu0 %v2587_v1 }
0x144f   :  { %15499 = vmatprep.subr.bf16.mxu0 %v16712_v9 }
0x1520   :  { %v2946_v47 = vpop.f32.mrb[32].mxu0 }
0x1521   :  { %v2950_v48 = vmul.f32 0.35355338, %v2946_v47  ;;  %v14357_v50 = vpop.f32.mrb[33].mxu0 }
0x1522   :  { %v13159_v50 = vld [vmem:[%s18710_s5 + $0xe] ss:$0 sm:$0xff] }
0x1523   :  { %v2951_v52 = vadd.f32 %v17185_v41, %v2950_v48 }
0x1525   :  { %v2952_v53 = vsel %vm2501_vm8, %v2951_v52, -inf }
0x1526   :  { %2953 = vmax.xlane.f32.xlu0 %v2952_v53 }
0x153c   :  { %16118 = vrot.lane.b32.xlu0 %v17191_v18, %s16716_s11 }
0x1540   :  { %16128 = vrot.lane.b32.xlu0 %v17204_v56, %s16716_s11 }
0x1544   :  { %16138 = vrot.lane.b32.xlu0 %v17197_v6, %s16716_s11 }
0x15b3   :  { %v2954_v39 = vpop.xlane.xlu0 %2953 }
0x15b4   :  { %v2955_v62 = vsub.f32 %v2951_v52, %v2954_v39 }
0x15b6   :  { %v2956_v63 = vmul.f32 1.442695, %v2955_v62  ;;  %v13164_v62 = vld [vmem:[%s18710_s5 + $0x16] ss:$0 sm:$0xff] }
0x15b7   :  { %v16119_v3 = vpop.permute.xlu0 %16118 }
0x15b8   :  { %16565 = vpow2.f32 %v2956_v63  ;;  %v16121_v0 = vunpack.i.h.bf16 %v16119_v3  ;;  %v16120_v60 = vunpack.i.l.bf16 %v16119_v3 }
0x15ba   :  { %v15505_v10 = vpack.c.bf16 %v16121_v0, %v16120_v60 }
0x15bb   :  { %v16129_v14 = vpop.permute.xlu0 %16128 }
0x15bc   :  { %v16131_v15 = vunpack.i.h.bf16 %v16129_v14  ;;  %v16130_v11 = vunpack.i.l.bf16 %v16129_v14 }
0x15be   :  { %v15500_v19 = vpack.c.bf16 %v16131_v15, %v16130_v11 }
0x15bf   :  { %v16139_v12 = vpop.permute.xlu0 %16138 }
0x15c0   :  { %v16141_v22 = vunpack.i.h.bf16 %v16139_v12 }
0x15c2   :  { %v16566_v54 = vpop.eup %16565 }
0x15c3   :  { %v2958_v55 = vsel %vm2501_vm8, %v16566_v54, 0.0 }
0x15c4   :  { %2959 = vadd.xlane.f32.xlu1 %v2958_v55 }
0x15d5   :  { %16123 = vrot.lane.b32.xlu1 %v17178_v38, %s16716_s11 }
0x15d9   :  { %16133 = vrot.lane.b32.xlu1 %v17210_v16, %s16716_s11 }
0x15dd   :  { %16143 = vrot.lane.b32.xlu1 %v17214_v61, %s16716_s11 }
0x1651   :  { %v2960_v2 = vpop.xlane.xlu1 %2959 }
0x1652   :  { %16567 = vrcp.f32 %v2960_v2 }
0x1655   :  { %v16124_v51 = vpop.permute.xlu1 %16123 }
0x1656   :  { %v16126_v59 = vunpack.i.h.bf16 %v16124_v51  ;;  %v16125_v5 = vunpack.i.l.bf16 %v16124_v51 }
0x1658   :  { %v15509_v13 = vpack.c.bf16 %v16126_v59, %v16125_v5 }
0x1659   :  { %v16134_v7 = vpop.permute.xlu1 %16133 }
0x165a   :  { %v16136_v20 = vunpack.i.h.bf16 %v16134_v7  ;;  %v16135_v21 = vunpack.i.l.bf16 %v16134_v7 }
0x165c   :  { %v16568_v4 = vpop.eup %16567  ;;  %v15503_v28 = vpack.c.bf16 %v16136_v20, %v16135_v21 }
0x165d   :  { %v2962_v57 = vmul.f32 %v16568_v4, %v16566_v54  ;;  %v16144_v26 = vpop.permute.xlu1 %16143 }
0x165e   :  { %v16146_v29 = vunpack.i.h.bf16 %v16144_v26  ;;  %v16145_v30 = vunpack.i.l.bf16 %v16144_v26 }
0x165f   :  { %14363 = vmatmul.mubr.msk.f32.vlgmr.msra.gmra.mrb[32].mxu1 %vm2513_vm9, %v2962_v57 }
0x1660   :  { %14371 = vmatpush3.msra.mxu1 %v2172_v8  ;;  %14372 = vmatprep.mubr.msk.f32.mxu1 %vm16713_vm1, %v16714_v17  ;;  %v15517_v35 = vpack.c.bf16 %v16146_v29, %v16145_v30 }
0x1661   :  { %15506 = vmatprep.subr.bf16.mxu1 %v15505_v10 }
0x1663   :  { %14373 = vmatmul.mubr.msk.f32.vlgmr.msra.gmra.mrb[34].mxu1 %vm366_vm3, %v17236_v23  ;;  %v16140_v23 = vunpack.i.l.bf16 %v16139_v12 }
0x1664   :  { %15508 = vmatpush3.bf16.msra.mxu1 %v15505_v10  ;;  %14394 = vmatprep.mubr.msk.f32.mxu1 %vm49_vm2, %v17098_v34 }
0x1665   :  { %15510 = vmatprep.subr.bf16.mxu1 %v15509_v13  ;;  %v15513_v31 = vpack.c.bf16 %v16141_v22, %v16140_v23 }
0x1668   :  { %15512 = vmatpush3.bf16.msra.mxu1 %v15509_v13 }
0x1669   :  { %15521 = vmatprep.subr.bf16.mxu1 %v16712_v9 }
0x166b   :  { %14395 = vmatmul.mubr.msk.f32.vlgmr.msra.gmra.mrb[36].mxu1 %vm49_vm2, %v17096_v44 }
0x166c   :  { %14412 = vmatprep.mubr.msk.f32.mxu1 %vm16713_vm1, %v16714_v17 }
0x1732   :  { %v3032_v24 = vpop.f32.mrb[32].mxu1 }
0x1733   :  { %v14364_v27 = vpop.f32.mrb[33].mxu1  ;;  %14368 = vmatmul.mubr.msk.f32.vlgmr.msra.gmra.mrb[34].mxu0 %vm366_vm3, %v3032_v24 }
0x1734   :  { %15501 = vmatpush3.bf16.msra.mxu0 %v15500_v19  ;;  %14383 = vmatprep.mubr.msk.f32.mxu0 %vm16713_vm1, %v16714_v17 }
0x1735   :  { %15502 = vmatprep.subr.bf16.mxu0 %v16712_v9 }
0x1736   :  { %v3178_v32 = vpop.f32.mrb[34].mxu1 }
0x1737   :  { %v14374_v33 = vpop.f32.mrb[35].mxu1 }
0x1738   :  { %15504 = vmatpush3.bf16.msra.mxu0 %v15503_v28 }
0x1739   :  { %15514 = vmatprep.subr.bf16.mxu0 %v15513_v31 }
0x173b   :  { %14384 = vmatmul.mubr.msk.f32.vlgmr.msra.gmra.mrb[36].mxu0 %vm49_vm2, %v17156_v25 }
0x173c   :  { %15516 = vmatpush3.bf16.msra.mxu0 %v15513_v31  ;;  %14405 = vmatprep.mubr.msk.f32.mxu0 %vm49_vm2, %v17098_v34 }
0x173d   :  { %15518 = vmatprep.subr.bf16.mxu0 %v15517_v35 }
0x173e   :  { %v14396_v37 = vpop.f32.mrb[36].mxu1 }
0x173f   :  { %v3360_v40 = vadd.f32 %v14396_v37, %v13161_v36  ;;  %v3354_v42 = vpop.f32.mrb[37].mxu1 }
0x1740   :  { %v3355_v45 = vadd.f32 %v13161_v36, %v3354_v42  ;;  %15520 = vmatpush3.bf16.msra.mxu0 %v15517_v35 }
0x1741   :  { %15525 = vmatprep.subr.bf16.mxu0 %v16712_v9 }
0x1742   :  { %v15522_v46 = vpack.c.bf16 %v3360_v40, %v3355_v45  ;;  %v13180_v45 = vld [vmem:[%s18710_s5 + $0x17] ss:$0 sm:$0xff] }
0x1743   :  { %14406 = vmatmul.mubr.msk.f32.vlgmr.msra.gmra.mrb[38].mxu0 %vm49_vm2, %v17096_v44 }
0x1744   :  { %15524 = vmatpush3.bf16.xpose.msk.msra.mxu1 %vm17142_vm7, %v15522_v46  ;;  %14419 = vmatprep.mubr.msk.f32.mxu0 %vm16713_vm1, %v16714_v17 }
0x1745   :  { %14422 = vmatprep.subr.mxu1 %v16714_v17 }
0x1806   :  { %v3105_v43 = vpop.f32.mrb[34].mxu0 }
0x1807   :  { %v17301_v47 = vadd.f32 %v3178_v32, %v3105_v43  ;;  %v14369_v48 = vpop.f32.mrb[35].mxu0 }
0x180e   :  { %v3268_v52 = vpop.f32.mrb[36].mxu0 }
0x180f   :  { %v3269_v53 = vadd.f32 %v13159_v50, %v3268_v52  ;;  %v14385_v39 = vpop.f32.mrb[37].mxu0 }
0x1811   :  { %14413 = vmatmul.mubr.msk.f32.vlgmr.msra.gmra.mrb[38].mxu1 %vm366_vm3, %v3269_v53 }
0x1812   :  { %14424 = vmatprep.mubr.msk.f32.mxu1 %vm16713_vm1, %v16714_v17 }
0x1816   :  { %v14407_v63 = vpop.f32.mrb[38].mxu0 }
0x1817   :  { %v3451_v54 = vadd.f32 %v14407_v63, %v13164_v62  ;;  %v3445_v55 = vpop.f32.mrb[39].mxu0  ;;  %v13177_v63 = vld [vmem:[%s18710_s5 + $0x13] ss:$0 sm:$0xff] }
0x1818   :  { %v3446_v1 = vadd.f32 %v13164_v62, %v3445_v55 }
0x181a   :  { %v15526_v2 = vpack.c.bf16 %v3451_v54, %v3446_v1 }
0x181c   :  { %15527 = vmatpush3.bf16.msra.mxu0 %v15526_v2 }
0x181d   :  { %15528 = vmatprep.subr.bf16.mxu0 %v16712_v9 }
0x18e4   :  { %v3529_v3 = vpop.f32.mrb[38].mxu1 }
0x18e5   :  { %v3533_v0 = vmul.f32 0.35355338, %v3529_v3  ;;  %v14414_v60 = vpop.f32.mrb[39].mxu1 }
0x18e7   :  { %v3534_v51 = vadd.f32 %v17185_v41, %v3533_v0  ;;  %v13175_v0 = vld [vmem:[%s18710_s5 + $0xf] ss:$0 sm:$0xff] }
0x18e9   :  { %v3535_v4 = vsel %vm2501_vm8, %v3534_v51, -inf }
0x18ea   :  { %3536 = vmax.xlane.f32.xlu0 %v3535_v4 }
0x1900   :  { %16148 = vrot.lane.b32.xlu0 %v17191_v18, %s16717_s3  ;;  %v3182_v18 = vld [vmem:[#allocation2 + $0xf0] sm:$0xff] }
0x1901   :  { %14423 = vmatpush3.msra.mxu1 %v3182_v18 }
0x1904   :  { %16158 = vrot.lane.b32.xlu0 %v17204_v56, %s16717_s3 }
0x1908   :  { %16168 = vrot.lane.b32.xlu0 %v17197_v6, %s16717_s3 }
0x1977   :  { %v3537_v57 = vpop.xlane.xlu0 %3536 }
0x1978   :  { %v3538_v59 = vsub.f32 %v3534_v51, %v3537_v57 }
0x197a   :  { %v3539_v5 = vmul.f32 1.442695, %v3538_v59 }
0x197b   :  { %v16149_v6 = vpop.permute.xlu0 %16148 }
0x197c   :  { %16569 = vpow2.f32 %v3539_v5  ;;  %v16151_v30 = vunpack.i.h.bf16 %v16149_v6  ;;  %v16150_v31 = vunpack.i.l.bf16 %v16149_v6 }
0x197e   :  { %v15534_v32 = vpack.c.bf16 %v16151_v30, %v16150_v31  ;;  %v4322_v30 = vld [vmem:[%s18709_s4 + $0x28] sm:$0xff]  ;;  %v4323_v31 = vld [vmem:[%s18709_s4 + $0x30] sm:$0xff] }
0x197f   :  { %v16159_v14 = vpop.permute.xlu0 %16158 }
0x1980   :  { %v16161_v15 = vunpack.i.h.bf16 %v16159_v14  ;;  %v16160_v11 = vunpack.i.l.bf16 %v16159_v14  ;;  %15535 = vmatprep.subr.bf16.mxu1 %v15534_v32 }
0x1982   :  { %v15529_v20 = vpack.c.bf16 %v16161_v15, %v16160_v11 }
0x1983   :  { %v16169_v12 = vpop.permute.xlu0 %16168 }
0x1984   :  { %v16170_v23 = vunpack.i.l.bf16 %v16169_v12 }
0x1986   :  { %v16570_v8 = vpop.eup %16569 }
0x1987   :  { %v3541_v10 = vsel %vm2501_vm8, %v16570_v8, 0.0 }
0x1988   :  { %3542 = vadd.xlane.f32.xlu1 %v3541_v10 }
0x1999   :  { %16153 = vrot.lane.b32.xlu1 %v17178_v38, %s16717_s3 }
0x199d   :  { %16163 = vrot.lane.b32.xlu1 %v17210_v16, %s16717_s3  ;;  %v16171_v16 = vunpack.i.h.bf16 %v16169_v12  ;;  %v13188_v12 = vld [vmem:[%s18711_s6 + $0xb] ss:$0 sm:$0xff] }
0x199f   :  { %v15542_v28 = vpack.c.bf16 %v16171_v16, %v16170_v23 }
0x19a1   :  { %16173 = vrot.lane.b32.xlu1 %v17214_v61, %s16717_s3 }
0x1a15   :  { %v3543_v56 = vpop.xlane.xlu1 %3542 }
0x1a16   :  { %16571 = vrcp.f32 %v3543_v56  ;;  %v3693_v56 = vld [vmem:[#allocation2 + $0xf8] sm:$0xff] }
0x1a19   :  { %v16154_v13 = vpop.permute.xlu1 %16153 }
0x1a1a   :  { %v16156_v33 = vunpack.i.h.bf16 %v16154_v13 }
0x1a1d   :  { %v16164_v7 = vpop.permute.xlu1 %16163 }
0x1a1e   :  { %v16166_v38 = vunpack.i.h.bf16 %v16164_v7  ;;  %v16165_v21 = vunpack.i.l.bf16 %v16164_v7 }
0x1a20   :  { %v16572_v19 = vpop.eup %16571  ;;  %v15532_v61 = vpack.c.bf16 %v16166_v38, %v16165_v21 }
0x1a21   :  { %v3545_v22 = vmul.f32 %v16572_v19, %v16570_v8  ;;  %v16174_v24 = vpop.permute.xlu1 %16173 }
0x1a22   :  { %v16176_v26 = vunpack.i.h.bf16 %v16174_v24  ;;  %v16175_v27 = vunpack.i.l.bf16 %v16174_v24  ;;  %v4238_v24 = vld [vmem:[%s18709_s4] sm:$0xff] }
0x1a23   :  { %14420 = vmatmul.mubr.msk.f32.vlgmr.msra.gmra.mrb[40].mxu0 %vm2513_vm9, %v3545_v22 }
0x1a24   :  { %15530 = vmatpush3.bf16.msra.mxu0 %v15529_v20  ;;  %14435 = vmatprep.mubr.msk.f32.mxu0 %vm16713_vm1, %v16714_v17  ;;  %v15546_v29 = vpack.c.bf16 %v16176_v26, %v16175_v27  ;;  %v4240_v26 = vld [vmem:[%s18709_s4 + $0x10] sm:$0xff]  ;;  %v4241_v27 = vld [vmem:[%s18709_s4 + $0x18] sm:$0xff] }
0x1a25   :  { %15531 = vmatprep.subr.bf16.mxu0 %v16712_v9 }
0x1a28   :  { %15533 = vmatpush3.bf16.msra.mxu0 %v15532_v61  ;;  %v4239_v61 = vld [vmem:[%s18709_s4 + $0x8] sm:$0xff] }
0x1a29   :  { %15543 = vmatprep.subr.bf16.mxu0 %v15542_v28 }
0x1a2b   :  { %14436 = vmatmul.mubr.msk.f32.vlgmr.msra.gmra.mrb[42].mxu0 %vm49_vm2, %v17156_v25  ;;  %v16155_v25 = vunpack.i.l.bf16 %v16154_v13 }
0x1a2c   :  { %15545 = vmatpush3.bf16.msra.mxu0 %v15542_v28  ;;  %14457 = vmatprep.mubr.msk.f32.mxu0 %vm49_vm2, %v17098_v34  ;;  %v15561_v28 = vpack.c.bf16 %v4241_v27, %v4240_v26 }
0x1a2d   :  { %15547 = vmatprep.subr.bf16.mxu0 %v15546_v29  ;;  %v15538_v35 = vpack.c.bf16 %v16156_v33, %v16155_v25  ;;  %v4324_v33 = vld [vmem:[%s18709_s4 + $0x38] sm:$0xff] }
0x1a2e   :  { %v15567_v25 = vpack.c.bf16 %v4324_v33, %v4323_v31  ;;  %v4443_v33 = vld [vmem:[#allocation2 + $0x128] sm:$0xff] }
0x1a30   :  { %15549 = vmatpush3.bf16.msra.mxu0 %v15546_v29  ;;  %v4321_v29 = vld [vmem:[%s18709_s4 + $0x20] sm:$0xff] }
0x1a31   :  { %15554 = vmatprep.subr.bf16.mxu0 %v16712_v9 }
0x1a33   :  { %14458 = vmatmul.mubr.msk.f32.vlgmr.msra.gmra.mrb[44].mxu0 %vm49_vm2, %v17096_v44 }
0x1a34   :  { %14471 = vmatprep.mubr.msk.f32.mxu0 %vm16713_vm1, %v16714_v17 }
0x1af6   :  { %v3615_v36 = vpop.f32.mrb[40].mxu0 }
0x1af7   :  { %v14421_v37 = vpop.f32.mrb[41].mxu0  ;;  %14425 = vmatmul.mubr.msk.f32.vlgmr.msra.gmra.mrb[40].mxu1 %vm366_vm3, %v3615_v36  ;;  %v4326_v36 = vld [vmem:[%s18709_s4 + $0x48] sm:$0xff] }
0x1af8   :  { %15537 = vmatpush3.bf16.msra.mxu1 %v15534_v32  ;;  %14446 = vmatprep.mubr.msk.f32.mxu1 %vm49_vm2, %v17098_v34  ;;  %v15564_v32 = vpack.c.bf16 %v4322_v30, %v4321_v29  ;;  %v13195_v30 = vld [vmem:[%s18711_s6 + $0xe] ss:$0 sm:$0xff] }
0x1af9   :  { %15539 = vmatprep.subr.bf16.mxu1 %v15538_v35 }
0x1afc   :  { %15541 = vmatpush3.bf16.msra.mxu1 %v15538_v35  ;;  %v4325_v35 = vld [vmem:[%s18709_s4 + $0x40] sm:$0xff] }
0x1afd   :  { %15550 = vmatprep.subr.bf16.mxu1 %v16712_v9  ;;  %v15570_v37 = vpack.c.bf16 %v4326_v36, %v4325_v35 }
0x1afe   :  { %v3779_v40 = vpop.f32.mrb[42].mxu0 }
0x1aff   :  { %v14437_v42 = vpop.f32.mrb[43].mxu0  ;;  %14447 = vmatmul.mubr.msk.f32.vlgmr.msra.gmra.mrb[42].mxu1 %vm49_vm2, %v17096_v44 }
0x1b00   :  { %14464 = vmatprep.mubr.msk.f32.mxu1 %vm16713_vm1, %v16714_v17 }
0x1b06   :  { %v14459_v46 = vpop.f32.mrb[44].mxu0 }
0x1b07   :  { %v3962_v43 = vadd.f32 %v14459_v46, %v13180_v45  ;;  %v3956_v48 = vpop.f32.mrb[45].mxu0 }
0x1b08   :  { %v3957_v50 = vadd.f32 %v13180_v45, %v3956_v48 }
0x1b0a   :  { %v15555_v52 = vpack.c.bf16 %v3962_v43, %v3957_v50 }
0x1b0c   :  { %15556 = vmatpush3.bf16.msra.mxu0 %v15555_v52 }
0x1b0d   :  { %15557 = vmatprep.subr.bf16.mxu0 %v16712_v9 }
0x1bca   :  { %v3688_v53 = vpop.f32.mrb[40].mxu1 }
0x1bcb   :  { %v3692_v39 = vadd.f32 %v3688_v53, %v17301_v47  ;;  %v14426_v62 = vpop.f32.mrb[41].mxu1  ;;  %v3780_v47 = vadd.f32 %v13175_v0, %v3779_v40  ;;  %v13191_v0 = vld [vmem:[%s18711_s6 + $0xc] ss:$0 sm:$0xff] }
0x1bd2   :  { %v14448_v54 = vpop.f32.mrb[42].mxu1 }
0x1bd3   :  { %v3871_v55 = vadd.f32 %v14448_v54, %v13177_v63  ;;  %v3865_v1 = vpop.f32.mrb[43].mxu1 }
0x1bd4   :  { %v3866_v2 = vadd.f32 %v13177_v63, %v3865_v1  ;;  %v13190_v63 = vld [vmem:[%s18711_s6 + $0x9] ss:$0 sm:$0xff]  ;;  %v4327_v1 = vld [vmem:[%s18709_s4 + $0x50] sm:$0xff] }
0x1bd6   :  { %v15551_v3 = vpack.c.bf16 %v3871_v55, %v3866_v2  ;;  %v4328_v2 = vld [vmem:[%s18709_s4 + $0x58] sm:$0xff] }
0x1bd8   :  { %15553 = vmatpush3.bf16.xpose.msk.msra.mxu1 %vm17142_vm7, %v15551_v3  ;;  %v15573_v3 = vpack.c.bf16 %v4328_v2, %v4327_v1 }
0x1bd9   :  { %14474 = vmatprep.subr.mxu1 %v16714_v17 }
0x1bdf   :  { %14465 = vmatmul.mubr.msk.f32.vlgmr.msra.gmra.mrb[44].mxu1 %vm366_vm3, %v3780_v47 }
0x1be0   :  { %14476 = vmatprep.mubr.msk.f32.mxu1 %vm16713_vm1, %v16714_v17  ;;  %14475 = vmatpush3.msra.mxu1 %v3693_v56 }
0x1be1   :  { %15563 = vmatprep.subr.bf16.mxu1 %v16712_v9 }
0x1cb2   :  { %v4040_v60 = vpop.f32.mrb[44].mxu1 }
0x1cb3   :  { %v4044_v51 = vmul.f32 0.35355338, %v4040_v60  ;;  %v14466_v4 = vpop.f32.mrb[45].mxu1 }
0x1cb5   :  { %v4045_v57 = vadd.f32 %v17185_v41, %v4044_v51 }
0x1cb7   :  { %v4046_v59 = vsel %vm2501_vm8, %v4045_v57, -inf }
0x1cb8   :  { %4047 = vmax.xlane.f32.xlu0 %v4046_v59 }
0x1d45   :  { %v4048_v5 = vpop.xlane.xlu0 %4047 }
0x1d46   :  { %v4049_v8 = vsub.f32 %v4045_v57, %v4048_v5  ;;  %v13193_v57 = vld [vmem:[%s18711_s6 + $0xd] ss:$0 sm:$0xff] }
0x1d48   :  { %v4050_v10 = vmul.f32 1.442695, %v4049_v8 }
0x1d4a   :  { %16573 = vpow2.f32 %v4050_v10 }
0x1d54   :  { %v16574_v18 = vpop.eup %16573 }
0x1d55   :  { %v4052_v6 = vsel %vm2501_vm8, %v16574_v18, 0.0 }
0x1d56   :  { %4053 = vadd.xlane.f32.xlu1 %v4052_v6 }
0x1de3   :  { %v4054_v13 = vpop.xlane.xlu1 %4053 }
0x1de4   :  { %16575 = vrcp.f32 %v4054_v13  ;;  %v17456_v13 = vld [vmem:[#allocation2 + $0x100] sm:$0xff] }
0x1dee   :  { %v16576_v14 = vpop.eup %16575 }
0x1def   :  { %v4056_v15 = vmul.f32 %v16576_v14, %v16574_v18  ;;  %v17458_v14 = vld [vmem:[#allocation2 + $0x108] sm:$0xff] }
0x1df0   :  { %v17525_v2 = vpack.i.bf16 %v17458_v14, %v17456_v13 }
0x1df1   :  { %14472 = vmatmul.mubr.msk.f32.vlgmr.msra.gmra.mrb[46].mxu0 %vm2513_vm9, %v4056_v15  ;;  %v15576_v15 = vpack.c.bf16 %v17458_v14, %v17456_v13 }
0x1df2   :  { %14487 = vmatprep.mubr.msk.f32.mxu0 %vm16713_vm1, %v16714_v17 }
0x1ec4   :  { %v4126_v41 = vpop.f32.mrb[46].mxu0 }
0x1ec5   :  { %v14473_v11 = vpop.f32.mrb[47].mxu0  ;;  %14477 = vmatmul.mubr.msk.f32.vlgmr.msra.gmra.mrb[46].mxu1 %vm366_vm3, %v4126_v41  ;;  %v17462_v41 = vld [vmem:[#allocation2 + $0x140] sm:$0xff] }
0x1ec6   :  { %14506 = vmatprep.mubr.msk.f32.mxu1 %vm16713_vm1, %v16714_v17  ;;  %15565 = vmatpush3.bf16.msra.mxu1 %v15564_v32  ;;  %v17464_v11 = vld [vmem:[#allocation2 + $0x148] sm:$0xff]  ;;  %v4442_v32 = vld [vmem:[#allocation2 + $0x120] sm:$0xff] }
0x1ec7   :  { %15566 = vmatprep.subr.bf16.mxu1 %v16712_v9  ;;  %v15582_v36 = vpack.c.bf16 %v4443_v33, %v4442_v32 }
0x1eca   :  { %15568 = vmatpush3.bf16.msra.mxu1 %v15567_v25  ;;  %v13196_v25 = vld [vmem:[%s18711_s6 + $0xf] ss:$0 sm:$0xff] }
0x1ecb   :  { %15569 = vmatprep.subr.bf16.mxu1 %v16712_v9 }
0x1ece   :  { %15571 = vmatpush3.bf16.msra.mxu1 %v15570_v37 }
0x1ecf   :  { %15572 = vmatprep.subr.bf16.mxu1 %v16712_v9 }
0x1ed2   :  { %15574 = vmatpush3.bf16.msra.mxu1 %v15573_v3 }
0x1ed3   :  { %15587 = vmatprep.subr.bf16.mxu1 %v16712_v9 }
0x1f98   :  { %v4199_v7 = vpop.f32.mrb[46].mxu1 }
0x1f99   :  { %v4203_v19 = vadd.f32 %v4199_v7, %v3692_v39  ;;  %v14478_v20 = vpop.f32.mrb[47].mxu1  ;;  %v13189_v39 = vld [vmem:[%s18711_s6 + $0x8] ss:$0 sm:$0xff]  ;;  %v15588_v7 = vpack.c.bf16 %v17464_v11, %v17462_v41 }
0x1f9b   :  { %v4209_v38 = vadd.f32 %v13188_v12, %v4203_v19  ;;  %v17469_v12 = vld [vmem:[#allocation2 + $0x110] sm:$0xff]  ;;  %v17471_v19 = vld [vmem:[#allocation2 + $0x118] sm:$0xff] }
0x1f9c   :  { %v15579_v20 = vpack.c.bf16 %v17471_v19, %v17469_v12 }
0x1f9d   :  { %v17380_v21 = vadd.f32 %v4209_v38, %v17111_v49  ;;  %v15558_v49 = vpack.c.bf16 %v4239_v61, %v4238_v24  ;;  %v17476_v38 = vld [vmem:[#allocation2 + $0x150] sm:$0xff] }
0x1f9f   :  { %v4213_v22 = vsel %vm94_vm0, %v17380_v21, 0.0  ;;  %v4216_v16 = vmul.f32 %v17380_v21, %v17380_v21  ;;  %15559 = vmatpush3.bf16.msra.mxu0 %v15558_v49 }
0x1fa0   :  { %4214 = vadd.xlane.f32.xlu0 %v4213_v22  ;;  %15560 = vmatprep.subr.bf16.mxu0 %v16712_v9 }
0x1fa1   :  { %v4217_v23 = vsel %vm94_vm0, %v4216_v16, 0.0 }
0x1fa3   :  { %15562 = vmatpush3.bf16.msra.mxu0 %v15561_v28 }
0x1fa4   :  { %4218 = vadd.xlane.f32.xlu0 %v4217_v23  ;;  %15575 = vmatprep.subr.bf16.mxu0 %v16712_v9 }
0x202d   :  { %v4215_v40 = vpop.xlane.xlu0 %4214 }
0x202e   :  { %v4220_v42 = vmul.f32 0.03125, %v4215_v40  ;;  %v4444_v40 = vld [vmem:[#allocation2 + $0x130] sm:$0xff] }
0x2030   :  { %v4222_v46 = vmul.f32 %v4220_v42, %v4220_v42  ;;  %v4224_v52 = vsub.f32 %v17380_v21, %v4220_v42  ;;  %v4445_v42 = vld [vmem:[#allocation2 + $0x138] sm:$0xff] }
0x2031   :  { %v4219_v45 = vpop.xlane.xlu0 %4218  ;;  %v17529_v3 = vpack.i.bf16 %v4445_v42, %v4444_v40 }
0x2032   :  { %v4221_v43 = vmul.f32 0.03125, %v4219_v45  ;;  %v15585_v45 = vpack.c.bf16 %v4445_v42, %v4444_v40 }
0x2034   :  { %v4223_v48 = vsub.f32 %v4221_v43, %v4222_v46  ;;  %v13204_v46 = vld [vmem:[%s18710_s5 + $0x20] ss:$0 sm:$0xff] }
0x2036   :  { %v4225_v50 = vadd.f32 1e-05, %v4223_v48 }
0x2038   :  { %16577 = vrsqrt.f32 %v4225_v50 }
0x2042   :  { %v16578_v53 = vpop.eup %16577 }
0x2043   :  { %v4227_v62 = vmul.f32 %v16578_v53, %v4224_v52 }
0x2045   :  { %v4232_v54 = vmul.f32 %v13189_v39, %v4227_v62  ;;  %v13202_v39 = vld [vmem:[%s18710_s5 + $0x1c] ss:$0 sm:$0xff] }
0x2047   :  { %v4237_v55 = vadd.f32 %v13190_v63, %v4232_v54  ;;  %v13200_v63 = vld [vmem:[%s18710_s5 + $0x18] ss:$0 sm:$0xff] }
0x2049   :  { %14488 = vmatmul.mubr.msk.f32.vlgmr.msra.gmra.mrb[48].mxu0 %vm49_vm2, %v4237_v55 }
0x204a   :  { %14517 = vmatprep.mubr.msk.f32.mxu0 %vm16713_vm1, %v16714_v17  ;;  %15577 = vmatpush3.bf16.msra.mxu0 %v15576_v15 }
0x204b   :  { %15578 = vmatprep.subr.bf16.mxu0 %v16712_v9 }
0x204e   :  { %15580 = vmatpush3.bf16.msra.mxu0 %v15579_v20 }
0x204f   :  { %15581 = vmatprep.subr.bf16.mxu0 %v16712_v9 }
0x211c   :  { %v4316_v47 = vpop.f32.mrb[48].mxu0 }
0x211d   :  { %v4317_v60 = vadd.f32 %v13191_v0, %v4316_v47  ;;  %v14489_v51 = vpop.f32.mrb[49].mxu0 }
0x211e   :  { %v17536_v51 = vld [vmem:[%s18707_s2] sm:$0x3f] }
0x211f   :  { %v4320_v4 = vmax.f32 %v4317_v60, 0.0 }
0x2121   :  { %14507 = vmatmul.mubr.msk.f32.vlgmr.msra.gmra.mrb[48].mxu1 %vm4334_vm10, %v4320_v4 }
0x2122   :  { %14539 = vmatprep.mubr.msk.f32.mxu1 %vm16713_vm1, %v16714_v17  ;;  %15589 = vmatpush3.bf16.msra.mxu1 %v15588_v7 }
0x2123   :  { %15590 = vmatprep.subr.bf16.mxu1 %v16712_v9 }
0x21f4   :  { %v4404_v59 = vpop.f32.mrb[48].mxu1 }
0x21f5   :  { %v4405_v5 = vadd.f32 %v13193_v57, %v4404_v59  ;;  %v14508_v8 = vpop.f32.mrb[49].mxu1  ;;  %v17540_v59 = vpack.i.bf16 %v4443_v33, %v4442_v32 }
0x21f7   :  { %v17449_v10 = vadd.f32 %v4405_v5, %v17380_v21  ;;  %v17478_v21 = vld [vmem:[#allocation2 + $0x158] sm:$0xff]  ;;  %v17546_v5 = vpack.i.bf16 %v17464_v11, %v17462_v41  ;;  %v17554_v41 = vpack.i.bf16 %v17471_v19, %v17469_v12 }
0x21f8   :  { %v15591_v22 = vpack.c.bf16 %v17478_v21, %v17476_v38  ;;  %v17560_v11 = vpack.i.bf16 %v17478_v21, %v17476_v38 }
0x21f9   :  { %v4411_v18 = vsel %vm94_vm0, %v17449_v10, 0.0  ;;  %v4414_v6 = vmul.f32 %v17449_v10, %v17449_v10 }
0x21fa   :  { %4412 = vadd.xlane.f32.xlu0 %v4411_v18  ;;  %15592 = vmatpush3.bf16.msra.mxu1 %v15591_v22 }
0x21fb   :  { %v4415_v56 = vsel %vm94_vm0, %v4414_v6, 0.0  ;;  %14547 = vmatprep.subr.mxu1 %v16714_v17 }
0x21fc   :  { %4416 = vadd.xlane.f32.xlu1 %v4415_v56 }
0x220d   :  { %16183 = vrot.lane.b32.xlu1 %v17525_v2, %s16715_s27 }
0x2211   :  { %16188 = vrot.lane.b32.xlu1 %v17529_v3, %s16715_s27 }
0x2287   :  { %v4413_v16 = vpop.xlane.xlu0 %4412 }
0x2288   :  { %v4418_v23 = vmul.f32 0.03125, %v4413_v16 }
0x2289   :  { %v4417_v24 = vpop.xlane.xlu1 %4416 }
0x228a   :  { %v4420_v61 = vmul.f32 %v4418_v23, %v4418_v23  ;;  %v4419_v49 = vmul.f32 0.03125, %v4417_v24  ;;  %v4422_v28 = vsub.f32 %v17449_v10, %v4418_v23 }
0x228c   :  { %v4421_v26 = vsub.f32 %v4419_v49, %v4420_v61 }
0x228d   :  { %v16184_v8 = vpop.permute.xlu1 %16183 }
0x228e   :  { %v4423_v27 = vadd.f32 1e-05, %v4421_v26  ;;  %v16186_v18 = vunpack.i.h.bf16 %v16184_v8  ;;  %v16185_v6 = vunpack.i.l.bf16 %v16184_v8 }
0x2290   :  { %16579 = vrsqrt.f32 %v4423_v27  ;;  %v15594_v56 = vpack.c.bf16 %v16186_v18, %v16185_v6 }
0x2291   :  { %v16189_v22 = vpop.permute.xlu1 %16188 }
0x229a   :  { %v16580_v29 = vpop.eup %16579 }
0x229b   :  { %v4425_v31 = vmul.f32 %v16580_v29, %v4422_v28 }
0x229d   :  { %v4430_v35 = vmul.f32 %v13195_v30, %v4425_v31 }
0x229f   :  { %v17491_v37 = vadd.f32 %v13196_v25, %v4430_v35  ;;  %v16191_v35 = vunpack.i.h.bf16 %v16189_v22 }
0x22a1   :  { %14518 = vmatmul.mubr.msk.f32.vlgmr.msra.gmra.mrb[50].mxu0 %vm49_vm2, %v17491_v37  ;;  %14540 = vmatmul.mubr.msk.f32.vlgmr.msra.gmra.mrb[50].mxu1 %vm49_vm2, %v17491_v37 }
0x22a2   :  { %15583 = vmatpush3.bf16.msra.mxu0 %v15582_v36  ;;  %14528 = vmatprep.mubr.msk.f32.mxu0 %vm16713_vm1, %v16714_v17  ;;  %v16190_v36 = vunpack.i.l.bf16 %v16189_v22 }
0x22a3   :  { %15584 = vmatprep.subr.bf16.mxu0 %v16712_v9  ;;  %14549 = vmatprep.mubr.msk.f32.mxu1 %vm16713_vm1, %v16714_v17 }
0x22a4   :  { %v15603_v42 = vpack.c.bf16 %v16191_v35, %v16190_v36 }
0x22a6   :  { %15586 = vmatpush3.bf16.msra.mxu0 %v15585_v45 }
0x22a7   :  { %14542 = vmatprep.subr.mxu0 %v16714_v17 }
0x22a9   :  { %14529 = vmatmul.mubr.msk.f32.vlgmr.msra.gmra.mrb[52].mxu0 %vm49_vm2, %v17491_v37 }
0x22aa   :  { %14544 = vmatprep.mubr.msk.f32.mxu0 %vm16713_vm1, %v16714_v17 }
0x2374   :  { %v4532_v43 = vpop.f32.mrb[50].mxu0  ;;  %v4680_v48 = vpop.f32.mrb[50].mxu1 }
0x2375   :  { %v4681_v50 = vadd.f32 %v13204_v46, %v4680_v48  ;;  %v14519_v52 = vpop.f32.mrb[51].mxu0  ;;  %v14541_v53 = vpop.f32.mrb[51].mxu1  ;;  %v4533_v1 = vadd.f32 %v13200_v63, %v4532_v43 }
0x2376   :  { %v13215_v52 = vld [vmem:[%s18710_s5 + $0x1d] ss:$0 sm:$0xff] }
0x2377   :  { %14548 = vmatpush3.msk.msra.mxu1 %vm461_vm4, %v4681_v50 }
0x2378   :  { %15599 = vmatprep.subr.bf16.mxu1 %v16712_v9 }
0x237c   :  { %v4606_v62 = vpop.f32.mrb[52].mxu0 }
0x237d   :  { %v4607_v54 = vadd.f32 %v13202_v39, %v4606_v62  ;;  %v14530_v55 = vpop.f32.mrb[53].mxu0  ;;  %v13213_v62 = vld [vmem:[%s18710_s5 + $0x19] ss:$0 sm:$0xff] }
0x237e   :  { %v13217_v55 = vld [vmem:[%s18710_s5 + $0x21] ss:$0 sm:$0xff] }
0x237f   :  { %14543 = vmatpush3.xpose.msk.msra.mxu0 %vm366_vm3, %v4607_v54 }
0x2380   :  { %15593 = vmatprep.subr.bf16.mxu0 %v16712_v9 }
0x2382   :  { %14545 = vmatmul.mubr.msk.f32.vlgmr.msra.gmra.mrb[54].mxu0 %vm366_vm3, %v4533_v1 }
0x2383   :  { %14560 = vmatprep.mubr.msk.f32.mxu0 %vm16713_vm1, %v16714_v17  ;;  %15595 = vmatpush3.bf16.msra.mxu0 %v15594_v56 }
0x2384   :  { %15596 = vmatprep.subr.bf16.mxu0 %v16712_v9 }
0x2455   :  { %v4756_v0 = vpop.f32.mrb[54].mxu0 }
0x2456   :  { %v4760_v47 = vmul.f32 0.35355338, %v4756_v0  ;;  %v14546_v60 = vpop.f32.mrb[55].mxu0 }
0x2458   :  { %v4761_v4 = vadd.f32 %v17536_v51, %v4760_v47 }
0x245a   :  { %v4762_v57 = vsel %vm445_vm5, %v4761_v4, -inf }
0x245b   :  { %4763 = vmax.xlane.f32.xlu0 %v4762_v57 }
0x2471   :  { %16178 = vrot.lane.b32.xlu0 %v17540_v59, %s16715_s27 }
0x2475   :  { %16198 = vrot.lane.b32.xlu0 %v17546_v5, %s16715_s27 }
0x24e8   :  { %v4764_v13 = vpop.xlane.xlu0 %4763 }
0x24e9   :  { %v4765_v14 = vsub.f32 %v4761_v4, %v4764_v13 }
0x24eb   :  { %v4766_v15 = vmul.f32 1.442695, %v4765_v14 }
0x24ec   :  { %v16179_v16 = vpop.permute.xlu0 %16178 }
0x24ed   :  { %16581 = vpow2.f32 %v4766_v15  ;;  %v16181_v28 = vunpack.i.h.bf16 %v16179_v16  ;;  %v16180_v29 = vunpack.i.l.bf16 %v16179_v16  ;;  %v4849_v15 = vld [vmem:[#allocation2 + $0x168] sm:$0xff] }
0x24ef   :  { %v15600_v33 = vpack.c.bf16 %v16181_v28, %v16180_v29 }
0x24f0   :  { %v16199_v24 = vpop.permute.xlu0 %16198 }
0x24f1   :  { %v16201_v12 = vunpack.i.h.bf16 %v16199_v24  ;;  %v16200_v19 = vunpack.i.l.bf16 %v16199_v24 }
0x24f3   :  { %v15606_v31 = vpack.c.bf16 %v16201_v12, %v16200_v19 }
0x24f7   :  { %v16582_v7 = vpop.eup %16581 }
0x24f8   :  { %v4768_v20 = vsel %vm445_vm5, %v16582_v7, 0.0 }
0x24f9   :  { %4769 = vadd.xlane.f32.xlu1 %v4768_v20 }
0x250a   :  { %16193 = vrot.lane.b32.xlu1 %v17554_v41, %s16715_s27 }
0x250e   :  { %16203 = vrot.lane.b32.xlu1 %v17560_v11, %s16715_s27 }
0x2586   :  { %v4770_v23 = vpop.xlane.xlu1 %4769 }
0x2587   :  { %16583 = vrcp.f32 %v4770_v23 }
0x258a   :  { %v16194_v61 = vpop.permute.xlu1 %16193 }
0x258b   :  { %v16196_v49 = vunpack.i.h.bf16 %v16194_v61  ;;  %v16195_v26 = vunpack.i.l.bf16 %v16194_v61  ;;  %v4452_v61 = vld [vmem:[#allocation2 + $0x160] sm:$0xff] }
0x258d   :  { %v15597_v27 = vpack.c.bf16 %v16196_v49, %v16195_v26 }
0x258e   :  { %v16204_v30 = vpop.permute.xlu1 %16203 }
0x258f   :  { %15598 = vmatpush3.bf16.msra.mxu0 %v15597_v27  ;;  %v16206_v38 = vunpack.i.h.bf16 %v16204_v30  ;;  %v16205_v21 = vunpack.i.l.bf16 %v16204_v30 }
0x2590   :  { %15605 = vmatprep.subr.bf16.mxu0 %v16712_v9 }
0x2591   :  { %v16584_v32 = vpop.eup %16583  ;;  %v15609_v40 = vpack.c.bf16 %v16206_v38, %v16205_v21 }
0x2592   :  { %14561 = vmatmul.mubr.msk.f32.vlgmr.msra.gmra.mrb[56].mxu0 %vm49_vm2, %v17491_v37  ;;  %v4772_v25 = vmul.f32 %v16584_v32, %v16582_v7 }
0x2593   :  { %15607 = vmatpush3.bf16.msra.mxu0 %v15606_v31  ;;  %14582 = vmatprep.mubr.msk.f32.mxu0 %vm16713_vm1, %v16714_v17 }
0x2594   :  { %14550 = vmatmul.mubr.msk.f32.vlgmr.msra.gmra.mrb[52].mxu1 %vm457_vm6, %v4772_v25  ;;  %15608 = vmatprep.subr.bf16.mxu0 %v16712_v9 }
0x2595   :  { %15601 = vmatpush3.bf16.msra.mxu1 %v15600_v33  ;;  %14571 = vmatprep.mubr.msk.f32.mxu1 %vm16713_vm1, %v16714_v17 }
0x2596   :  { %15602 = vmatprep.subr.bf16.mxu1 %v16712_v9 }
0x2597   :  { %15610 = vmatpush3.bf16.msra.mxu0 %v15609_v40 }
0x2598   :  { %14595 = vmatprep.subr.mxu0 %v16714_v17 }
0x2599   :  { %15604 = vmatpush3.bf16.msra.mxu1 %v15603_v42 }
0x259a   :  { %14583 = vmatmul.mubr.msk.f32.vlgmr.msra.gmra.mrb[58].mxu0 %vm49_vm2, %v17491_v37  ;;  %14585 = vmatprep.subr.mxu1 %v16714_v17 }
0x259b   :  { %14597 = vmatprep.mubr.msk.f32.mxu0 %vm16713_vm1, %v16714_v17  ;;  %14596 = vmatpush3.msra.mxu0 %v4849_v15 }
0x259c   :  { %14572 = vmatmul.mubr.msk.f32.vlgmr.msra.gmra.mrb[54].mxu1 %vm49_vm2, %v17491_v37  ;;  %15611 = vmatprep.subr.bf16.mxu0 %v16712_v9 }
0x259d   :  { %14587 = vmatprep.mubr.msk.f32.mxu1 %vm16713_vm1, %v16714_v17 }
0x2665   :  { %v4939_v45 = vpop.f32.mrb[56].mxu0 }
0x2666   :  { %v14562_v46 = vpop.f32.mrb[57].mxu0  ;;  %v4940_v1 = vadd.f32 %v13213_v62, %v4939_v45 }
0x2667   :  { %v4845_v43 = vpop.f32.mrb[52].mxu1 }
0x2668   :  { %v14551_v48 = vpop.f32.mrb[53].mxu1 }
0x266d   :  { %v5119_v50 = vpop.f32.mrb[58].mxu0 }
0x266e   :  { %v14584_v53 = vpop.f32.mrb[59].mxu0  ;;  %v5120_v0 = vadd.f32 %v13217_v55, %v5119_v50 }
0x266f   :  { %v5029_v39 = vpop.f32.mrb[54].mxu1 }
0x2670   :  { %v5030_v63 = vadd.f32 %v13215_v52, %v5029_v39  ;;  %v14573_v54 = vpop.f32.mrb[55].mxu1  ;;  %v13230_v39 = vld [vmem:[%s18710_s5 + $0x1e] ss:$0 sm:$0xff] }
0x2672   :  { %14586 = vmatpush3.xpose.msk.msra.mxu1 %vm366_vm3, %v5030_v63 }
0x2673   :  { %14590 = vmatprep.subr.mxu1 %v16714_v17 }
0x2675   :  { %14588 = vmatmul.mubr.msk.f32.vlgmr.msra.gmra.mrb[56].mxu1 %vm366_vm3, %v4940_v1 }
0x2676   :  { %14591 = vmatpush3.msk.msra.mxu1 %vm461_vm4, %v5120_v0  ;;  %14592 = vmatprep.mubr.msk.f32.mxu1 %vm16713_vm1, %v16714_v17 }
0x2677   :  { %14600 = vmatprep.subr.mxu1 %v16714_v17 }
0x2748   :  { %v5195_v47 = vpop.f32.mrb[56].mxu1 }
0x2749   :  { %v5199_v60 = vmul.f32 0.35355338, %v5195_v47  ;;  %v14589_v4 = vpop.f32.mrb[57].mxu1  ;;  %v13228_v47 = vld [vmem:[%s18710_s5 + $0x1a] ss:$0 sm:$0xff] }
0x274b   :  { %v5200_v57 = vadd.f32 %v17536_v51, %v5199_v60 }
0x274d   :  { %v5201_v8 = vsel %vm445_vm5, %v5200_v57, -inf }
0x274e   :  { %5202 = vmax.xlane.f32.xlu0 %v5201_v8  ;;  %v13232_v8 = vld [vmem:[%s18710_s5 + $0x22] ss:$0 sm:$0xff] }
0x2764   :  { %16208 = vrot.lane.b32.xlu0 %v17540_v59, %s16716_s11 }
0x2768   :  { %16218 = vrot.lane.b32.xlu0 %v17529_v3, %s16716_s11 }
0x276c   :  { %16228 = vrot.lane.b32.xlu0 %v17546_v5, %s16716_s11 }
0x27db   :  { %v5203_v18 = vpop.xlane.xlu0 %5202 }
0x27dc   :  { %v5204_v6 = vsub.f32 %v5200_v57, %v5203_v18 }
0x27de   :  { %v5205_v56 = vmul.f32 1.442695, %v5204_v6 }
0x27df   :  { %v16209_v20 = vpop.permute.xlu0 %16208 }
0x27e0   :  { %16585 = vpow2.f32 %v5205_v56  ;;  %v16211_v16 = vunpack.i.h.bf16 %v16209_v20  ;;  %v16210_v23 = vunpack.i.l.bf16 %v16209_v20 }
0x27e2   :  { %v15618_v26 = vpack.c.bf16 %v16211_v16, %v16210_v23 }
0x27e3   :  { %v16219_v49 = vpop.permute.xlu0 %16218 }
0x27e4   :  { %v16221_v12 = vunpack.i.h.bf16 %v16219_v49  ;;  %v16220_v19 = vunpack.i.l.bf16 %v16219_v49 }
0x27e6   :  { %v15621_v27 = vpack.c.bf16 %v16221_v12, %v16220_v19 }
0x27e7   :  { %v16229_v33 = vpop.permute.xlu0 %16228 }
0x27e8   :  { %v16231_v40 = vunpack.i.h.bf16 %v16229_v33  ;;  %v16230_v42 = vunpack.i.l.bf16 %v16229_v33 }
0x27ea   :  { %v16586_v13 = vpop.eup %16585  ;;  %v15624_v48 = vpack.c.bf16 %v16231_v40, %v16230_v42 }
0x27eb   :  { %v5207_v14 = vsel %vm445_vm5, %v16586_v13, 0.0 }
0x27ec   :  { %5208 = vadd.xlane.f32.xlu1 %v5207_v14 }
0x27fd   :  { %16213 = vrot.lane.b32.xlu1 %v17525_v2, %s16716_s11 }
0x2801   :  { %16223 = vrot.lane.b32.xlu1 %v17554_v41, %s16716_s11 }
0x2805   :  { %16233 = vrot.lane.b32.xlu1 %v17560_v11, %s16716_s11 }
0x2879   :  { %v5209_v7 = vpop.xlane.xlu1 %5208 }
0x287a   :  { %16587 = vrcp.f32 %v5209_v7 }
0x287d   :  { %v16214_v28 = vpop.permute.xlu1 %16213 }
0x287e   :  { %v16216_v29 = vunpack.i.h.bf16 %v16214_v28  ;;  %v16215_v30 = vunpack.i.l.bf16 %v16214_v28 }
0x2880   :  { %v15612_v38 = vpack.c.bf16 %v16216_v29, %v16215_v30 }
0x2881   :  { %v16224_v31 = vpop.permute.xlu1 %16223 }
0x2882   :  { %v16226_v21 = vunpack.i.h.bf16 %v16224_v31  ;;  %v16225_v32 = vunpack.i.l.bf16 %v16224_v31 }
0x2884   :  { %v16588_v22 = vpop.eup %16587  ;;  %v15615_v36 = vpack.c.bf16 %v16226_v21, %v16225_v32 }
0x2885   :  { %v5211_v24 = vmul.f32 %v16588_v22, %v16586_v13  ;;  %v16234_v45 = vpop.permute.xlu1 %16233 }
0x2886   :  { %v16236_v50 = vunpack.i.h.bf16 %v16234_v45  ;;  %v16235_v52 = vunpack.i.l.bf16 %v16234_v45 }
0x2887   :  { %14593 = vmatmul.mubr.msk.f32.vlgmr.msra.gmra.mrb[58].mxu1 %vm457_vm6, %v5211_v24 }
0x2888   :  { %14601 = vmatpush3.msra.mxu1 %v4452_v61  ;;  %14602 = vmatprep.mubr.msk.f32.mxu1 %vm16713_vm1, %v16714_v17  ;;  %v15627_v53 = vpack.c.bf16 %v16236_v50, %v16235_v52 }
0x2889   :  { %15617 = vmatprep.subr.bf16.mxu1 %v16712_v9 }
0x288b   :  { %14603 = vmatmul.mubr.msk.f32.vlgmr.msra.gmra.mrb[60].mxu1 %vm366_vm3, %v4845_v43 }
0x288c   :  { %15619 = vmatpush3.bf16.msra.mxu1 %v15618_v26  ;;  %14624 = vmatprep.mubr.msk.f32.mxu1 %vm16713_vm1, %v16714_v17 }
0x288d   :  { %15620 = vmatprep.subr.bf16.mxu1 %v16712_v9 }
0x2890   :  { %15622 = vmatpush3.bf16.msra.mxu1 %v15621_v27 }
0x2891   :  { %14638 = vmatprep.subr.mxu1 %v16714_v17 }
0x2893   :  { %14625 = vmatmul.mubr.msk.f32.vlgmr.msra.gmra.mrb[62].mxu1 %vm49_vm2, %v17491_v37 }
0x2894   :  { %14640 = vmatprep.mubr.msk.f32.mxu1 %vm16713_vm1, %v16714_v17 }
0x295a   :  { %v5284_v25 = vpop.f32.mrb[58].mxu1 }
0x295b   :  { %v14594_v35 = vpop.f32.mrb[59].mxu1  ;;  %14598 = vmatmul.mubr.msk.f32.vlgmr.msra.gmra.mrb[60].mxu0 %vm366_vm3, %v5284_v25 }
0x295c   :  { %15613 = vmatpush3.bf16.msra.mxu0 %v15612_v38  ;;  %14613 = vmatprep.mubr.msk.f32.mxu0 %vm16713_vm1, %v16714_v17 }
0x295d   :  { %15614 = vmatprep.subr.bf16.mxu0 %v16712_v9 }
0x295e   :  { %v5430_v46 = vpop.f32.mrb[60].mxu1 }
0x295f   :  { %v14604_v43 = vpop.f32.mrb[61].mxu1 }
0x2960   :  { %15616 = vmatpush3.bf16.msra.mxu0 %v15615_v36 }
0x2961   :  { %15623 = vmatprep.subr.bf16.mxu0 %v16712_v9 }
0x2963   :  { %14614 = vmatmul.mubr.msk.f32.vlgmr.msra.gmra.mrb[62].mxu0 %vm49_vm2, %v17491_v37 }
0x2964   :  { %15625 = vmatpush3.bf16.msra.mxu0 %v15624_v48  ;;  %14635 = vmatprep.mubr.msk.f32.mxu0 %vm16713_vm1, %v16714_v17 }
0x2965   :  { %15626 = vmatprep.subr.bf16.mxu0 %v16712_v9 }
0x2966   :  { %v5606_v62 = vpop.f32.mrb[62].mxu1 }
0x2967   :  { %v5607_v63 = vadd.f32 %v13230_v39, %v5606_v62  ;;  %v14626_v54 = vpop.f32.mrb[63].mxu1 }
0x2968   :  { %15628 = vmatpush3.bf16.msra.mxu0 %v15627_v53 }
0x2969   :  { %14639 = vmatpush3.xpose.msk.msra.mxu1 %vm366_vm3, %v5607_v63  ;;  %14648 = vmatprep.subr.mxu0 %v16714_v17 }
0x296a   :  { %14643 = vmatprep.subr.mxu1 %v16714_v17 }
0x296b   :  { %14636 = vmatmul.mubr.msk.f32.vlgmr.msra.gmra.mrb[64].mxu0 %vm49_vm2, %v17491_v37 }
0x296c   :  { %14650 = vmatprep.mubr.msk.f32.mxu0 %vm16713_vm1, %v16714_v17 }
0x2a2e   :  { %v5357_v55 = vpop.f32.mrb[60].mxu0 }
0x2a2f   :  { %v17649_v1 = vadd.f32 %v5430_v46, %v5357_v55  ;;  %v14599_v0 = vpop.f32.mrb[61].mxu0 }
0x2a36   :  { %v5520_v60 = vpop.f32.mrb[62].mxu0 }
0x2a37   :  { %v5521_v4 = vadd.f32 %v13228_v47, %v5520_v60  ;;  %v14615_v57 = vpop.f32.mrb[63].mxu0  ;;  %v13244_v47 = vld [vmem:[%s18710_s5 + $0x1f] ss:$0 sm:$0xff] }
0x2a39   :  { %14641 = vmatmul.mubr.msk.f32.vlgmr.msra.gmra.mrb[64].mxu1 %vm366_vm3, %v5521_v4  ;;  %v13242_v4 = vld [vmem:[%s18710_s5 + $0x1b] ss:$0 sm:$0xff] }
0x2a3a   :  { %14645 = vmatprep.mubr.msk.f32.mxu1 %vm16713_vm1, %v16714_v17 }
0x2a3e   :  { %v5692_v18 = vpop.f32.mrb[64].mxu0 }
0x2a3f   :  { %v5693_v6 = vadd.f32 %v13232_v8, %v5692_v18  ;;  %v14637_v56 = vpop.f32.mrb[65].mxu0  ;;  %v13246_v8 = vld [vmem:[%s18710_s5 + $0x23] ss:$0 sm:$0xff] }
0x2a41   :  { %14644 = vmatpush3.msk.msra.mxu1 %vm461_vm4, %v5693_v6 }
0x2a42   :  { %15629 = vmatprep.subr.bf16.mxu1 %v16712_v9 }
0x2b0c   :  { %v5768_v13 = vpop.f32.mrb[64].mxu1 }
0x2b0d   :  { %v5772_v14 = vmul.f32 0.35355338, %v5768_v13  ;;  %v14642_v15 = vpop.f32.mrb[65].mxu1 }
0x2b0f   :  { %v5773_v7 = vadd.f32 %v17536_v51, %v5772_v14 }
0x2b11   :  { %v5774_v20 = vsel %vm445_vm5, %v5773_v7, -inf }
0x2b12   :  { %5775 = vmax.xlane.f32.xlu0 %v5774_v20 }
0x2b28   :  { %16238 = vrot.lane.b32.xlu0 %v17540_v59, %s16717_s3 }
0x2b2c   :  { %16248 = vrot.lane.b32.xlu0 %v17529_v3, %s16717_s3  ;;  %v5434_v3 = vld [vmem:[#allocation2 + $0x170] sm:$0xff] }
0x2b2d   :  { %14649 = vmatpush3.msra.mxu0 %v5434_v3 }
0x2b2e   :  { %15635 = vmatprep.subr.bf16.mxu0 %v16712_v9 }
0x2b30   :  { %16258 = vrot.lane.b32.xlu0 %v17546_v5, %s16717_s3 }
0x2b9f   :  { %v5776_v22 = vpop.xlane.xlu0 %5775 }
0x2ba0   :  { %v5777_v16 = vsub.f32 %v5773_v7, %v5776_v22 }
0x2ba2   :  { %v5778_v23 = vmul.f32 1.442695, %v5777_v16 }
0x2ba3   :  { %v16239_v5 = vpop.permute.xlu0 %16238 }
0x2ba4   :  { %16589 = vpow2.f32 %v5778_v23  ;;  %v16241_v40 = vunpack.i.h.bf16 %v16239_v5  ;;  %v16240_v42 = vunpack.i.l.bf16 %v16239_v5  ;;  %v17727_v5 = vld [vmem:[#allocation2 + $0x1a8] sm:$0xff] }
0x2ba6   :  { %v15636_v45 = vpack.c.bf16 %v16241_v40, %v16240_v42 }
0x2ba7   :  { %v16249_v26 = vpop.permute.xlu0 %16248 }
0x2ba8   :  { %v16251_v46 = vunpack.i.h.bf16 %v16249_v26  ;;  %v16250_v43 = vunpack.i.l.bf16 %v16249_v26  ;;  %v17731_v26 = vld [vmem:[#allocation2 + $0x1b0] sm:$0xff] }
0x2baa   :  { %v15639_v52 = vpack.c.bf16 %v16251_v46, %v16250_v43  ;;  %v17769_v43 = vld [vmem:[#allocation2 + $0x190] sm:$0xff] }
0x2bab   :  { %v16259_v31 = vpop.permute.xlu0 %16258 }
0x2bac   :  { %v16261_v38 = vunpack.i.h.bf16 %v16259_v31  ;;  %v16260_v21 = vunpack.i.l.bf16 %v16259_v31 }
0x2bae   :  { %v16590_v24 = vpop.eup %16589  ;;  %v15642_v33 = vpack.c.bf16 %v16261_v38, %v16260_v21  ;;  %v13261_v38 = vld [vmem:[%s18710_s5 + $0x28] ss:$0 sm:$0xff] }
0x2baf   :  { %v5780_v61 = vsel %vm445_vm5, %v16590_v24, 0.0 }
0x2bb0   :  { %5781 = vadd.xlane.f32.xlu1 %v5780_v61 }
0x2bc1   :  { %16243 = vrot.lane.b32.xlu1 %v17525_v2, %s16717_s3 }
0x2bc5   :  { %16253 = vrot.lane.b32.xlu1 %v17554_v41, %s16717_s3 }
0x2bc9   :  { %16263 = vrot.lane.b32.xlu1 %v17560_v11, %s16717_s3 }
0x2c3d   :  { %v5782_v59 = vpop.xlane.xlu1 %5781 }
0x2c3e   :  { %16591 = vrcp.f32 %v5782_v59 }
0x2c41   :  { %v16244_v49 = vpop.permute.xlu1 %16243 }
0x2c42   :  { %v16246_v12 = vunpack.i.h.bf16 %v16244_v49  ;;  %v16245_v19 = vunpack.i.l.bf16 %v16244_v49 }
0x2c44   :  { %v15630_v2 = vpack.c.bf16 %v16246_v12, %v16245_v19  ;;  %v17733_v12 = vld [vmem:[#allocation2 + $0x1b8] sm:$0xff] }
0x2c45   :  { %v16254_v27 = vpop.permute.xlu1 %16253  ;;  %v15657_v19 = vpack.c.bf16 %v17733_v12, %v17731_v26 }
0x2c46   :  { %v16256_v29 = vunpack.i.h.bf16 %v16254_v27  ;;  %v16255_v30 = vunpack.i.l.bf16 %v16254_v27 }
0x2c48   :  { %v16592_v28 = vpop.eup %16591  ;;  %v15633_v11 = vpack.c.bf16 %v16256_v29, %v16255_v30  ;;  %v13253_v29 = vld [vmem:[%s18711_s6 + $0x14] ss:$0 sm:$0xff] }
0x2c49   :  { %v5784_v41 = vmul.f32 %v16592_v28, %v16590_v24  ;;  %v16264_v32 = vpop.permute.xlu1 %16263  ;;  %v5935_v24 = vld [vmem:[#allocation2 + $0x178] sm:$0xff] }
0x2c4a   :  { %v16266_v25 = vunpack.i.h.bf16 %v16264_v32  ;;  %v16265_v35 = vunpack.i.l.bf16 %v16264_v32 }
0x2c4b   :  { %14646 = vmatmul.mubr.msk.f32.vlgmr.msra.gmra.mrb[66].mxu1 %vm457_vm6, %v5784_v41 }
0x2c4c   :  { %15631 = vmatpush3.bf16.msra.mxu1 %v15630_v2  ;;  %14661 = vmatprep.mubr.msk.f32.mxu1 %vm16713_vm1, %v16714_v17  ;;  %v15645_v36 = vpack.c.bf16 %v16266_v25, %v16265_v35 }
0x2c4d   :  { %15632 = vmatprep.subr.bf16.mxu1 %v16712_v9 }
0x2c50   :  { %15634 = vmatpush3.bf16.msra.mxu1 %v15633_v11 }
0x2c51   :  { %15641 = vmatprep.subr.bf16.mxu1 %v16712_v9 }
0x2c53   :  { %14662 = vmatmul.mubr.msk.f32.vlgmr.msra.gmra.mrb[68].mxu1 %vm49_vm2, %v17491_v37 }
0x2c54   :  { %15643 = vmatpush3.bf16.msra.mxu1 %v15642_v33  ;;  %14683 = vmatprep.mubr.msk.f32.mxu1 %vm16713_vm1, %v16714_v17 }
0x2c55   :  { %15644 = vmatprep.subr.bf16.mxu1 %v16712_v9 }
0x2c58   :  { %15646 = vmatpush3.bf16.msra.mxu1 %v15645_v36 }
0x2c59   :  { %14696 = vmatprep.subr.mxu1 %v16714_v17 }
0x2c5b   :  { %14684 = vmatmul.mubr.msk.f32.vlgmr.msra.gmra.mrb[70].mxu1 %vm49_vm2, %v17491_v37 }
0x2c5c   :  { %14698 = vmatprep.mubr.msk.f32.mxu1 %vm16713_vm1, %v16714_v17  ;;  %14697 = vmatpush3.msra.mxu1 %v5935_v24 }
0x2d1e   :  { %v5857_v48 = vpop.f32.mrb[66].mxu1 }
0x2d1f   :  { %v14647_v50 = vpop.f32.mrb[67].mxu1  ;;  %14651 = vmatmul.mubr.msk.f32.vlgmr.msra.gmra.mrb[66].mxu0 %vm366_vm3, %v5857_v48  ;;  %v17771_v48 = vld [vmem:[#allocation2 + $0x198] sm:$0xff] }
0x2d20   :  { %15637 = vmatpush3.bf16.msra.mxu0 %v15636_v45  ;;  %14672 = vmatprep.mubr.msk.f32.mxu0 %vm16713_vm1, %v16714_v17  ;;  %v17764_v45 = vld [vmem:[#allocation2 + $0x188] sm:$0xff]  ;;  %v6481_v50 = vld [vmem:[#allocation2 + $0x1c0] sm:$0xff] }
0x2d21   :  { %15638 = vmatprep.subr.bf16.mxu0 %v16712_v9 }
0x2d24   :  { %15640 = vmatpush3.bf16.msra.mxu0 %v15639_v52  ;;  %v15651_v52 = vpack.c.bf16 %v17771_v48, %v17769_v43 }
0x2d25   :  { %14686 = vmatprep.subr.mxu0 %v16714_v17 }
0x2d26   :  { %v6021_v53 = vpop.f32.mrb[68].mxu1 }
0x2d27   :  { %v14663_v39 = vpop.f32.mrb[69].mxu1  ;;  %14673 = vmatmul.mubr.msk.f32.vlgmr.msra.gmra.mrb[68].mxu0 %vm49_vm2, %v17491_v37  ;;  %v6022_v18 = vadd.f32 %v13242_v4, %v6021_v53  ;;  %v6482_v53 = vld [vmem:[#allocation2 + $0x1c8] sm:$0xff] }
0x2d28   :  { %14688 = vmatprep.mubr.msk.f32.mxu0 %vm16713_vm1, %v16714_v17  ;;  %v15661_v39 = vpack.c.bf16 %v6482_v53, %v6481_v50 }
0x2d2e   :  { %v6193_v62 = vpop.f32.mrb[70].mxu1 }
0x2d2f   :  { %v14685_v63 = vpop.f32.mrb[71].mxu1 }
0x2df2   :  { %v5930_v54 = vpop.f32.mrb[66].mxu0 }
0x2df3   :  { %v5934_v55 = vadd.f32 %v5930_v54, %v17649_v1  ;;  %v14652_v0 = vpop.f32.mrb[67].mxu0  ;;  %v6194_v1 = vadd.f32 %v13246_v8, %v6193_v62 }
0x2dfa   :  { %v6107_v60 = vpop.f32.mrb[68].mxu0 }
0x2dfb   :  { %v6108_v57 = vadd.f32 %v13244_v47, %v6107_v60  ;;  %v14674_v37 = vpop.f32.mrb[69].mxu0 }
0x2dfc   :  { %v13254_v37 = vld [vmem:[%s18711_s6 + $0x10] ss:$0 sm:$0xff] }
0x2dfd   :  { %14687 = vmatpush3.xpose.msk.msra.mxu0 %vm366_vm3, %v6108_v57 }
0x2dfe   :  { %14691 = vmatprep.subr.mxu0 %v16714_v17 }
0x2e00   :  { %14689 = vmatmul.mubr.msk.f32.vlgmr.msra.gmra.mrb[70].mxu0 %vm366_vm3, %v6022_v18  ;;  %v13255_v18 = vld [vmem:[%s18711_s6 + $0x11] ss:$0 sm:$0xff] }
0x2e01   :  { %14692 = vmatpush3.msk.msra.mxu0 %vm461_vm4, %v6194_v1  ;;  %14693 = vmatprep.mubr.msk.f32.mxu0 %vm16713_vm1, %v16714_v17  ;;  %v6483_v1 = vld [vmem:[#allocation2 + $0x1d0] sm:$0xff] }
0x2e02   :  { %15647 = vmatprep.subr.bf16.mxu0 %v16712_v9 }
0x2ed3   :  { %v6269_v6 = vpop.f32.mrb[70].mxu0 }
0x2ed4   :  { %v6273_v56 = vmul.f32 0.35355338, %v6269_v6  ;;  %v14690_v13 = vpop.f32.mrb[71].mxu0  ;;  %v6484_v6 = vld [vmem:[#allocation2 + $0x1d8] sm:$0xff] }
0x2ed6   :  { %v6274_v14 = vadd.f32 %v17536_v51, %v6273_v56  ;;  %v17725_v51 = vld [vmem:[#allocation2 + $0x1a0] sm:$0xff] }
0x2ed7   :  { %v15653_v49 = vpack.c.bf16 %v17727_v5, %v17725_v51 }
0x2ed8   :  { %v6275_v15 = vsel %vm445_vm5, %v6274_v14, -inf }
0x2ed9   :  { %6276 = vmax.xlane.f32.xlu0 %v6275_v15  ;;  %15654 = vmatprep.subr.bf16.mxu1 %v15653_v49  ;;  %v13259_v15 = vld [vmem:[%s18710_s5 + $0x24] ss:$0 sm:$0xff] }
0x2f66   :  { %v6277_v7 = vpop.xlane.xlu0 %6276 }
0x2f67   :  { %v6278_v20 = vsub.f32 %v6274_v14, %v6277_v7  ;;  %v15665_v14 = vpack.c.bf16 %v6484_v6, %v6483_v1 }
0x2f69   :  { %v6279_v22 = vmul.f32 1.442695, %v6278_v20 }
0x2f6b   :  { %16593 = vpow2.f32 %v6279_v22 }
0x2f75   :  { %v16594_v16 = vpop.eup %16593 }
0x2f76   :  { %v6281_v23 = vsel %vm445_vm5, %v16594_v16, 0.0 }
0x2f77   :  { %6282 = vadd.xlane.f32.xlu1 %v6281_v23 }
0x3004   :  { %v6283_v61 = vpop.xlane.xlu1 %6282 }
0x3005   :  { %16595 = vrcp.f32 %v6283_v61 }
0x300f   :  { %v16596_v3 = vpop.eup %16595 }
0x3010   :  { %v6285_v59 = vmul.f32 %v16596_v3, %v16594_v16  ;;  %v13264_v16 = vld [vmem:[%s18710_s5 + $0x2c] ss:$0 sm:$0xff] }
0x3012   :  { %14694 = vmatmul.mubr.msk.f32.vlgmr.msra.gmra.mrb[72].mxu0 %vm457_vm6, %v6285_v59 }
0x3013   :  { %14709 = vmatprep.mubr.msk.f32.mxu0 %vm16713_vm1, %v16714_v17 }
0x30e5   :  { %v6358_v27 = vpop.f32.mrb[72].mxu0 }
0x30e6   :  { %v14695_v28 = vpop.f32.mrb[73].mxu0  ;;  %14699 = vmatmul.mubr.msk.f32.vlgmr.msra.gmra.mrb[72].mxu1 %vm366_vm3, %v6358_v27 }
0x30e7   :  { %15656 = vmatpush3.bf16.msra.mxu1 %v15653_v49  ;;  %14720 = vmatprep.mubr.msk.f32.mxu1 %vm49_vm2, %v17098_v34  ;;  %v17804_v49 = vpack.i.bf16 %v17733_v12, %v17731_v26  ;;  %v17817_v26 = vpack.i.bf16 %v17727_v5, %v17725_v51  ;;  %v17821_v12 = vpack.i.bf16 %v6482_v53, %v6481_v50 }
0x30e8   :  { %15658 = vmatprep.subr.bf16.mxu1 %v15657_v19  ;;  %v17834_v5 = vpack.i.bf16 %v17771_v48, %v17769_v43 }
0x30e9   :  { %16273 = vrot.lane.b32.xlu1 %v17804_v49, %s16715_s27 }
0x30eb   :  { %15660 = vmatpush3.bf16.msra.mxu1 %v15657_v19 }
0x30ec   :  { %15669 = vmatprep.subr.bf16.mxu1 %v16712_v9 }
0x30ee   :  { %14721 = vmatmul.mubr.msk.f32.vlgmr.msra.gmra.mrb[74].mxu1 %vm49_vm2, %v17096_v44 }
0x30ef   :  { %14738 = vmatprep.mubr.msk.f32.mxu1 %vm16713_vm1, %v16714_v17 }
0x31b9   :  { %v6431_v2 = vpop.f32.mrb[72].mxu1 }
0x31ba   :  { %v6435_v30 = vadd.f32 %v6431_v2, %v5934_v55  ;;  %v14700_v41 = vpop.f32.mrb[73].mxu1  ;;  %v17811_v2 = vld [vmem:[%s18707_s2 + $0x8] sm:$0x3f] }
0x31bc   :  { %v6441_v31 = vadd.f32 %v13253_v29, %v6435_v30 }
0x31be   :  { %v17749_v11 = vadd.f32 %v6441_v31, %v17449_v10  ;;  %v17762_v10 = vld [vmem:[#allocation2 + $0x180] sm:$0xff] }
0x31bf   :  { %v15648_v46 = vpack.c.bf16 %v17764_v45, %v17762_v10  ;;  %v17828_v51 = vpack.i.bf16 %v17764_v45, %v17762_v10 }
0x31c0   :  { %v6445_v21 = vsel %vm94_vm0, %v17749_v11, 0.0  ;;  %v6448_v32 = vmul.f32 %v17749_v11, %v17749_v11 }
0x31c1   :  { %v14722_v33 = vpop.f32.mrb[74].mxu1  ;;  %6446 = vadd.xlane.f32.xlu0 %v6445_v21  ;;  %15649 = vmatpush3.bf16.msra.mxu0 %v15648_v46 }
0x31c2   :  { %v6646_v25 = vadd.f32 %v14722_v33, %v13261_v38  ;;  %v6640_v35 = vpop.f32.mrb[75].mxu1  ;;  %v6449_v40 = vsel %vm94_vm0, %v6448_v32, 0.0  ;;  %15650 = vmatprep.subr.bf16.mxu0 %v16712_v9  ;;  %v17838_v33 = vpack.i.bf16 %v6484_v6, %v6483_v1 }
0x31c3   :  { %v6641_v36 = vadd.f32 %v13261_v38, %v6640_v35 }
0x31c5   :  { %v15670_v42 = vpack.c.bf16 %v6646_v25, %v6641_v36  ;;  %6450 = vadd.xlane.f32.xlu0 %v6449_v40  ;;  %15652 = vmatpush3.bf16.msra.mxu0 %v15651_v52 }
0x31c6   :  { %15662 = vmatprep.subr.bf16.mxu0 %v15661_v39 }
0x31c7   :  { %15672 = vmatpush3.bf16.xpose.msk.msra.mxu1 %vm17142_vm7, %v15670_v42  ;;  %v16274_v42 = vpop.permute.xlu1 %16273 }
0x31c8   :  { %15676 = vmatprep.subr.bf16.mxu1 %v16712_v9 }
0x324e   :  { %v6447_v62 = vpop.xlane.xlu0 %6446 }
0x324f   :  { %v6452_v63 = vmul.f32 0.03125, %v6447_v62 }
0x3251   :  { %v6454_v55 = vmul.f32 %v6452_v63, %v6452_v63  ;;  %v6456_v4 = vsub.f32 %v17749_v11, %v6452_v63 }
0x3252   :  { %v6451_v54 = vpop.xlane.xlu0 %6450 }
0x3253   :  { %v6453_v0 = vmul.f32 0.03125, %v6451_v54  ;;  %v16276_v54 = vunpack.i.h.bf16 %v16274_v42 }
0x3255   :  { %v6455_v47 = vsub.f32 %v6453_v0, %v6454_v55  ;;  %v16275_v55 = vunpack.i.l.bf16 %v16274_v42 }
0x3257   :  { %v6457_v60 = vadd.f32 1e-05, %v6455_v47 }
0x3259   :  { %16597 = vrsqrt.f32 %v6457_v60 }
0x3263   :  { %v16598_v57 = vpop.eup %16597 }
0x3264   :  { %v6459_v8 = vmul.f32 %v16598_v57, %v6456_v4 }
0x3266   :  { %v6464_v56 = vmul.f32 %v13254_v37, %v6459_v8 }
0x3268   :  { %v17782_v13 = vadd.f32 %v13255_v18, %v6464_v56  ;;  %v15686_v18 = vpack.c.bf16 %v16276_v54, %v16275_v55  ;;  %v6486_v54 = vld [vmem:[#allocation2 + $0x1e0] sm:$0xff] }
0x326a   :  { %14710 = vmatmul.mubr.msk.f32.vlgmr.msra.gmra.mrb[74].mxu0 %vm49_vm2, %v17782_v13 }
0x326b   :  { %15664 = vmatpush3.bf16.msra.mxu0 %v15661_v39  ;;  %14731 = vmatprep.mubr.msk.f32.mxu0 %vm49_vm2, %v17098_v34 }
0x326c   :  { %15666 = vmatprep.subr.bf16.mxu0 %v15665_v14 }
0x326f   :  { %15668 = vmatpush3.bf16.msra.mxu0 %v15665_v14 }
0x3270   :  { %15673 = vmatprep.subr.bf16.mxu0 %v16712_v9 }
0x3272   :  { %14732 = vmatmul.mubr.msk.f32.vlgmr.msra.gmra.mrb[76].mxu0 %vm49_vm2, %v17096_v44 }
0x3273   :  { %14745 = vmatprep.mubr.msk.f32.mxu0 %vm16713_vm1, %v16714_v17 }
0x333d   :  { %v6566_v7 = vpop.f32.mrb[74].mxu0 }
0x333e   :  { %v6567_v20 = vadd.f32 %v13259_v15, %v6566_v7  ;;  %v14711_v22 = vpop.f32.mrb[75].mxu0  ;;  %v13276_v7 = vld [vmem:[%s18710_s5 + $0x29] ss:$0 sm:$0xff] }
0x333f   :  { %v13279_v22 = vld [vmem:[%s18710_s5 + $0x2d] ss:$0 sm:$0xff] }
0x3340   :  { %14739 = vmatmul.mubr.msk.f32.vlgmr.msra.gmra.mrb[76].mxu1 %vm366_vm3, %v6567_v20 }
0x3341   :  { %14756 = vmatprep.mubr.msk.f32.mxu1 %vm16713_vm1, %v16714_v17 }
0x3345   :  { %v14733_v23 = vpop.f32.mrb[76].mxu0 }
0x3346   :  { %v6725_v24 = vadd.f32 %v14733_v23, %v13264_v16  ;;  %v6719_v61 = vpop.f32.mrb[77].mxu0 }
0x3347   :  { %v6720_v3 = vadd.f32 %v13264_v16, %v6719_v61 }
0x3349   :  { %v15674_v59 = vpack.c.bf16 %v6725_v24, %v6720_v3 }
0x334b   :  { %15675 = vmatpush3.bf16.msra.mxu0 %v15674_v59 }
0x3413   :  { %v6803_v19 = vpop.f32.mrb[76].mxu1 }
0x3414   :  { %v6807_v27 = vmul.f32 0.35355338, %v6803_v19  ;;  %v14740_v28 = vpop.f32.mrb[77].mxu1 }
0x3416   :  { %v6808_v29 = vadd.f32 %v17811_v2, %v6807_v27 }
0x3418   :  { %v6809_v30 = vsel %vm2501_vm8, %v6808_v29, -inf }
0x3419   :  { %6810 = vmax.xlane.f32.xlu0 %v6809_v30 }
0x342f   :  { %16268 = vrot.lane.b32.xlu0 %v17817_v26, %s16715_s27 }
0x3433   :  { %16288 = vrot.lane.b32.xlu0 %v17821_v12, %s16715_s27 }
0x34a6   :  { %v6811_v41 = vpop.xlane.xlu0 %6810 }
0x34a7   :  { %v6812_v31 = vsub.f32 %v6808_v29, %v6811_v41  ;;  %v13274_v29 = vld [vmem:[%s18710_s5 + $0x25] ss:$0 sm:$0xff] }
0x34a9   :  { %v6813_v38 = vmul.f32 1.442695, %v6812_v31 }
0x34aa   :  { %v16269_v25 = vpop.permute.xlu0 %16268 }
0x34ab   :  { %16599 = vpow2.f32 %v6813_v38  ;;  %v16271_v35 = vunpack.i.h.bf16 %v16269_v25  ;;  %v16270_v36 = vunpack.i.l.bf16 %v16269_v25 }
0x34ad   :  { %v15682_v40 = vpack.c.bf16 %v16271_v35, %v16270_v36 }
0x34ae   :  { %v16289_v45 = vpop.permute.xlu0 %16288 }
0x34af   :  { %15683 = vmatprep.subr.bf16.mxu0 %v15682_v40  ;;  %v16291_v50 = vunpack.i.h.bf16 %v16289_v45  ;;  %v16290_v52 = vunpack.i.l.bf16 %v16289_v45 }
0x34b1   :  { %v15690_v0 = vpack.c.bf16 %v16291_v50, %v16290_v52 }
0x34b5   :  { %v16600_v21 = vpop.eup %16599 }
0x34b6   :  { %v6815_v32 = vsel %vm2501_vm8, %v16600_v21, 0.0 }
0x34b7   :  { %6816 = vadd.xlane.f32.xlu1 %v6815_v32 }
0x34c8   :  { %16278 = vrot.lane.b32.xlu1 %v17828_v51, %s16715_s27 }
0x34cc   :  { %16283 = vrot.lane.b32.xlu1 %v17834_v5, %s16715_s27 }
0x34d0   :  { %16293 = vrot.lane.b32.xlu1 %v17838_v33, %s16715_s27 }
0x3544   :  { %v6817_v10 = vpop.xlane.xlu1 %6816 }
0x3545   :  { %16601 = vrcp.f32 %v6817_v10  ;;  %v6893_v10 = vld [vmem:[#allocation2 + $0x1e8] sm:$0xff] }
0x3548   :  { %v16279_v46 = vpop.permute.xlu1 %16278 }
0x3549   :  { %v16281_v43 = vunpack.i.h.bf16 %v16279_v46  ;;  %v16280_v48 = vunpack.i.l.bf16 %v16279_v46 }
0x354b   :  { %v15677_v53 = vpack.c.bf16 %v16281_v43, %v16280_v48 }
0x354c   :  { %v16284_v39 = vpop.permute.xlu1 %16283 }
0x354d   :  { %v16286_v62 = vunpack.i.h.bf16 %v16284_v39  ;;  %v16285_v63 = vunpack.i.l.bf16 %v16284_v39  ;;  %15678 = vmatpush3.bf16.msra.mxu1 %v15677_v53 }
0x354e   :  { %15679 = vmatprep.subr.bf16.mxu1 %v16712_v9 }
0x354f   :  { %v16602_v47 = vpop.eup %16601  ;;  %v15680_v60 = vpack.c.bf16 %v16286_v62, %v16285_v63 }
0x3550   :  { %v6819_v4 = vmul.f32 %v16602_v47, %v16600_v21  ;;  %v16294_v57 = vpop.permute.xlu1 %16293 }
0x3551   :  { %15681 = vmatpush3.bf16.msra.mxu1 %v15680_v60  ;;  %v16296_v37 = vunpack.i.h.bf16 %v16294_v57  ;;  %v16295_v8 = vunpack.i.l.bf16 %v16294_v57 }
0x3552   :  { %14746 = vmatmul.mubr.msk.f32.vlgmr.msra.gmra.mrb[78].mxu0 %vm2513_vm9, %v6819_v4  ;;  %15691 = vmatprep.subr.bf16.mxu1 %v15690_v0 }
0x3553   :  { %15685 = vmatpush3.bf16.msra.mxu0 %v15682_v40  ;;  %14767 = vmatprep.mubr.msk.f32.mxu0 %vm49_vm2, %v17098_v34  ;;  %v15694_v1 = vpack.c.bf16 %v16296_v37, %v16295_v8 }
0x3554   :  { %15687 = vmatprep.subr.bf16.mxu0 %v15686_v18  ;;  %14757 = vmatmul.mubr.msk.f32.vlgmr.msra.gmra.mrb[78].mxu1 %vm49_vm2, %v17782_v13 }
0x3555   :  { %15693 = vmatpush3.bf16.msra.mxu1 %v15690_v0  ;;  %14778 = vmatprep.mubr.msk.f32.mxu1 %vm49_vm2, %v17098_v34 }
0x3556   :  { %15695 = vmatprep.subr.bf16.mxu1 %v15694_v1 }
0x3557   :  { %15689 = vmatpush3.bf16.msra.mxu0 %v15686_v18 }
0x3558   :  { %15698 = vmatprep.subr.bf16.mxu0 %v16712_v9 }
0x3559   :  { %15697 = vmatpush3.bf16.msra.mxu1 %v15694_v1 }
0x355a   :  { %14768 = vmatmul.mubr.msk.f32.vlgmr.msra.gmra.mrb[80].mxu0 %vm49_vm2, %v17096_v44  ;;  %15702 = vmatprep.subr.bf16.mxu1 %v16712_v9 }
0x355b   :  { %14785 = vmatprep.mubr.msk.f32.mxu0 %vm16713_vm1, %v16714_v17 }
0x355c   :  { %14779 = vmatmul.mubr.msk.f32.vlgmr.msra.gmra.mrb[80].mxu1 %vm49_vm2, %v17096_v44 }
0x355d   :  { %14792 = vmatprep.mubr.msk.f32.mxu1 %vm16713_vm1, %v16714_v17 }
0x3625   :  { %v17860_v6 = vpop.f32.mrb[78].mxu0 }
0x3626   :  { %v14747_v56 = vpop.f32.mrb[79].mxu0 }
0x3627   :  { %v6983_v14 = vpop.f32.mrb[78].mxu1 }
0x3628   :  { %v14758_v15 = vpop.f32.mrb[79].mxu1  ;;  %v6984_v30 = vadd.f32 %v13274_v29, %v6983_v14 }
0x362d   :  { %v14769_v20 = vpop.f32.mrb[80].mxu0 }
0x362e   :  { %v7079_v16 = vadd.f32 %v14769_v20, %v13276_v7  ;;  %v7073_v23 = vpop.f32.mrb[81].mxu0 }
0x362f   :  { %v7074_v24 = vadd.f32 %v13276_v7, %v7073_v23  ;;  %v14780_v61 = vpop.f32.mrb[80].mxu1 }
0x3630   :  { %v7174_v3 = vadd.f32 %v14780_v61, %v13279_v22  ;;  %v7168_v59 = vpop.f32.mrb[81].mxu1 }
0x3631   :  { %v15699_v19 = vpack.c.bf16 %v7079_v16, %v7074_v24  ;;  %v7169_v27 = vadd.f32 %v13279_v22, %v7168_v59 }
0x3633   :  { %v15703_v28 = vpack.c.bf16 %v7174_v3, %v7169_v27  ;;  %15701 = vmatpush3.bf16.xpose.msk.msra.mxu0 %vm17142_vm7, %v15699_v19  ;;  %v13293_v3 = vld [vmem:[%s18710_s5 + $0x2a] ss:$0 sm:$0xff] }
0x3634   :  { %14795 = vmatprep.subr.mxu0 %v16714_v17 }
0x3635   :  { %15704 = vmatpush3.bf16.msra.mxu1 %v15703_v28 }
0x3636   :  { %14800 = vmatprep.subr.mxu1 %v16714_v17 }
0x363a   :  { %14786 = vmatmul.mubr.msk.f32.vlgmr.msra.gmra.mrb[82].mxu0 %vm366_vm3, %v6984_v30 }
0x363b   :  { %14797 = vmatprep.mubr.msk.f32.mxu0 %vm16713_vm1, %v16714_v17  ;;  %14796 = vmatpush3.msra.mxu0 %v6893_v10 }
0x363c   :  { %15705 = vmatprep.subr.bf16.mxu0 %v16712_v9 }
0x370d   :  { %v7252_v41 = vpop.f32.mrb[82].mxu0 }
0x370e   :  { %v7256_v31 = vmul.f32 0.35355338, %v7252_v41  ;;  %v14787_v38 = vpop.f32.mrb[83].mxu0 }
0x370f   :  { %v13291_v38 = vld [vmem:[%s18710_s5 + $0x26] ss:$0 sm:$0xff] }
0x3710   :  { %v7257_v21 = vadd.f32 %v17811_v2, %v7256_v31 }
0x3712   :  { %v7258_v32 = vsel %vm2501_vm8, %v7257_v21, -inf }
0x3713   :  { %7259 = vmax.xlane.f32.xlu0 %v7258_v32 }
0x3729   :  { %16298 = vrot.lane.b32.xlu0 %v17817_v26, %s16716_s11 }
0x372d   :  { %16308 = vrot.lane.b32.xlu0 %v17828_v51, %s16716_s11 }
0x3731   :  { %16318 = vrot.lane.b32.xlu0 %v17821_v12, %s16716_s11 }
0x37a0   :  { %v7260_v25 = vpop.xlane.xlu0 %7259 }
0x37a1   :  { %v7261_v35 = vsub.f32 %v7257_v21, %v7260_v25 }
0x37a3   :  { %v7262_v36 = vmul.f32 1.442695, %v7261_v35  ;;  %v13296_v35 = vld [vmem:[%s18710_s5 + $0x2e] ss:$0 sm:$0xff] }
0x37a4   :  { %v16299_v46 = vpop.permute.xlu0 %16298 }
0x37a5   :  { %16603 = vpow2.f32 %v7262_v36  ;;  %v16301_v43 = vunpack.i.h.bf16 %v16299_v46  ;;  %v16300_v48 = vunpack.i.l.bf16 %v16299_v46 }
0x37a7   :  { %v15711_v39 = vpack.c.bf16 %v16301_v43, %v16300_v48 }
0x37a8   :  { %v16309_v0 = vpop.permute.xlu0 %16308 }
0x37a9   :  { %v16311_v47 = vunpack.i.h.bf16 %v16309_v0  ;;  %v16310_v60 = vunpack.i.l.bf16 %v16309_v0  ;;  %v7488_v0 = vld [vmem:[#allocation2 + $0x1f0] sm:$0xff] }
0x37ab   :  { %v15706_v37 = vpack.c.bf16 %v16311_v47, %v16310_v60 }
0x37ac   :  { %v16319_v57 = vpop.permute.xlu0 %16318 }
0x37ad   :  { %v16321_v1 = vunpack.i.h.bf16 %v16319_v57 }
0x37af   :  { %v16604_v40 = vpop.eup %16603 }
0x37b0   :  { %v7264_v42 = vsel %vm2501_vm8, %v16604_v40, 0.0 }
0x37b1   :  { %7265 = vadd.xlane.f32.xlu1 %v7264_v42 }
0x37c2   :  { %16303 = vrot.lane.b32.xlu1 %v17804_v49, %s16716_s11 }
0x37c6   :  { %16313 = vrot.lane.b32.xlu1 %v17834_v5, %s16716_s11 }
0x37ca   :  { %16323 = vrot.lane.b32.xlu1 %v17838_v33, %s16716_s11 }
0x383e   :  { %v7266_v45 = vpop.xlane.xlu1 %7265 }
0x383f   :  { %16605 = vrcp.f32 %v7266_v45 }
0x3842   :  { %v16304_v50 = vpop.permute.xlu1 %16303 }
0x3843   :  { %v16306_v62 = vunpack.i.h.bf16 %v16304_v50  ;;  %v16305_v63 = vunpack.i.l.bf16 %v16304_v50 }
0x3845   :  { %v15715_v55 = vpack.c.bf16 %v16306_v62, %v16305_v63 }
0x3846   :  { %v16314_v4 = vpop.permute.xlu1 %16313 }
0x3847   :  { %v16316_v8 = vunpack.i.h.bf16 %v16314_v4  ;;  %v16315_v18 = vunpack.i.l.bf16 %v16314_v4 }
0x3849   :  { %v16606_v52 = vpop.eup %16605  ;;  %v15709_v7 = vpack.c.bf16 %v16316_v8, %v16315_v18 }
0x384a   :  { %v7268_v53 = vmul.f32 %v16606_v52, %v16604_v40  ;;  %v16324_v14 = vpop.permute.xlu1 %16323 }
0x384b   :  { %v16326_v22 = vunpack.i.h.bf16 %v16324_v14  ;;  %v16325_v16 = vunpack.i.l.bf16 %v16324_v14 }
0x384c   :  { %14793 = vmatmul.mubr.msk.f32.vlgmr.msra.gmra.mrb[82].mxu1 %vm2513_vm9, %v7268_v53 }
0x384d   :  { %14801 = vmatpush3.msra.mxu1 %v6486_v54  ;;  %14802 = vmatprep.mubr.msk.f32.mxu1 %vm16713_vm1, %v16714_v17  ;;  %v15723_v61 = vpack.c.bf16 %v16326_v22, %v16325_v16 }
0x384e   :  { %15712 = vmatprep.subr.bf16.mxu1 %v15711_v39 }
0x3850   :  { %14803 = vmatmul.mubr.msk.f32.vlgmr.msra.gmra.mrb[84].mxu1 %vm366_vm3, %v17860_v6  ;;  %v16320_v6 = vunpack.i.l.bf16 %v16319_v57 }
0x3851   :  { %15714 = vmatpush3.bf16.msra.mxu1 %v15711_v39  ;;  %14824 = vmatprep.mubr.msk.f32.mxu1 %vm49_vm2, %v17098_v34 }
0x3852   :  { %15716 = vmatprep.subr.bf16.mxu1 %v15715_v55  ;;  %v15719_v20 = vpack.c.bf16 %v16321_v1, %v16320_v6 }
0x3855   :  { %15718 = vmatpush3.bf16.msra.mxu1 %v15715_v55 }
0x3856   :  { %15727 = vmatprep.subr.bf16.mxu1 %v16712_v9 }
0x3858   :  { %14825 = vmatmul.mubr.msk.f32.vlgmr.msra.gmra.mrb[86].mxu1 %vm49_vm2, %v17096_v44 }
0x3859   :  { %14842 = vmatprep.mubr.msk.f32.mxu1 %vm16713_vm1, %v16714_v17 }
0x391f   :  { %v7338_v56 = vpop.f32.mrb[82].mxu1 }
0x3920   :  { %v14794_v15 = vpop.f32.mrb[83].mxu1  ;;  %14798 = vmatmul.mubr.msk.f32.vlgmr.msra.gmra.mrb[84].mxu0 %vm366_vm3, %v7338_v56 }
0x3921   :  { %15707 = vmatpush3.bf16.msra.mxu0 %v15706_v37  ;;  %14813 = vmatprep.mubr.msk.f32.mxu0 %vm16713_vm1, %v16714_v17 }
0x3922   :  { %15708 = vmatprep.subr.bf16.mxu0 %v16712_v9 }
0x3923   :  { %v7484_v23 = vpop.f32.mrb[84].mxu1 }
0x3924   :  { %v14804_v24 = vpop.f32.mrb[85].mxu1 }
0x3925   :  { %15710 = vmatpush3.bf16.msra.mxu0 %v15709_v7 }
0x3926   :  { %15720 = vmatprep.subr.bf16.mxu0 %v15719_v20 }
0x3928   :  { %14814 = vmatmul.mubr.msk.f32.vlgmr.msra.gmra.mrb[86].mxu0 %vm49_vm2, %v17782_v13 }
0x3929   :  { %15722 = vmatpush3.bf16.msra.mxu0 %v15719_v20  ;;  %14835 = vmatprep.mubr.msk.f32.mxu0 %vm49_vm2, %v17098_v34 }
0x392a   :  { %15724 = vmatprep.subr.bf16.mxu0 %v15723_v61 }
0x392b   :  { %v14826_v59 = vpop.f32.mrb[86].mxu1 }
0x392c   :  { %v7666_v19 = vadd.f32 %v14826_v59, %v13293_v3  ;;  %v7660_v27 = vpop.f32.mrb[87].mxu1 }
0x392d   :  { %v7661_v28 = vadd.f32 %v13293_v3, %v7660_v27  ;;  %15726 = vmatpush3.bf16.msra.mxu0 %v15723_v61 }
0x392e   :  { %15731 = vmatprep.subr.bf16.mxu0 %v16712_v9 }
0x392f   :  { %v15728_v29 = vpack.c.bf16 %v7666_v19, %v7661_v28  ;;  %v13312_v28 = vld [vmem:[%s18710_s5 + $0x2f] ss:$0 sm:$0xff] }
0x3930   :  { %14836 = vmatmul.mubr.msk.f32.vlgmr.msra.gmra.mrb[88].mxu0 %vm49_vm2, %v17096_v44 }
0x3931   :  { %15730 = vmatpush3.bf16.xpose.msk.msra.mxu1 %vm17142_vm7, %v15728_v29  ;;  %14849 = vmatprep.mubr.msk.f32.mxu0 %vm16713_vm1, %v16714_v17 }
0x3932   :  { %14852 = vmatprep.subr.mxu1 %v16714_v17 }
0x39f3   :  { %v7411_v30 = vpop.f32.mrb[84].mxu0 }
0x39f4   :  { %v17925_v41 = vadd.f32 %v7484_v23, %v7411_v30  ;;  %v14799_v31 = vpop.f32.mrb[85].mxu0 }
0x39fb   :  { %v7574_v21 = vpop.f32.mrb[86].mxu0 }
0x39fc   :  { %v7575_v32 = vadd.f32 %v13291_v38, %v7574_v21  ;;  %v14815_v25 = vpop.f32.mrb[87].mxu0 }
0x39fe   :  { %14843 = vmatmul.mubr.msk.f32.vlgmr.msra.gmra.mrb[88].mxu1 %vm366_vm3, %v7575_v32 }
0x39ff   :  { %14854 = vmatprep.mubr.msk.f32.mxu1 %vm16713_vm1, %v16714_v17  ;;  %14853 = vmatpush3.msra.mxu1 %v7488_v0 }
0x3a03   :  { %v14837_v36 = vpop.f32.mrb[88].mxu0 }
0x3a04   :  { %v7757_v40 = vadd.f32 %v14837_v36, %v13296_v35  ;;  %v7751_v42 = vpop.f32.mrb[89].mxu0  ;;  %v13309_v36 = vld [vmem:[%s18710_s5 + $0x2b] ss:$0 sm:$0xff] }
0x3a05   :  { %v7752_v10 = vadd.f32 %v13296_v35, %v7751_v42 }
0x3a07   :  { %v15732_v45 = vpack.c.bf16 %v7757_v40, %v7752_v10 }
0x3a09   :  { %15733 = vmatpush3.bf16.msra.mxu0 %v15732_v45 }
0x3a0a   :  { %15734 = vmatprep.subr.bf16.mxu0 %v16712_v9 }
0x3ad1   :  { %v7835_v46 = vpop.f32.mrb[88].mxu1 }
0x3ad2   :  { %v7839_v43 = vmul.f32 0.35355338, %v7835_v46  ;;  %v14844_v48 = vpop.f32.mrb[89].mxu1 }
0x3ad4   :  { %v7840_v50 = vadd.f32 %v17811_v2, %v7839_v43  ;;  %v13307_v43 = vld [vmem:[%s18710_s5 + $0x27] ss:$0 sm:$0xff] }
0x3ad6   :  { %v7841_v52 = vsel %vm2501_vm8, %v7840_v50, -inf }
0x3ad7   :  { %7842 = vmax.xlane.f32.xlu0 %v7841_v52 }
0x3aed   :  { %16328 = vrot.lane.b32.xlu0 %v17817_v26, %s16717_s3 }
0x3af1   :  { %16338 = vrot.lane.b32.xlu0 %v17828_v51, %s16717_s3 }
0x3af5   :  { %16348 = vrot.lane.b32.xlu0 %v17821_v12, %s16717_s3 }
0x3b64   :  { %v7843_v53 = vpop.xlane.xlu0 %7842 }
0x3b65   :  { %v7844_v39 = vsub.f32 %v7840_v50, %v7843_v53 }
0x3b67   :  { %v7845_v62 = vmul.f32 1.442695, %v7844_v39 }
0x3b68   :  { %v16329_v26 = vpop.permute.xlu0 %16328 }
0x3b69   :  { %16607 = vpow2.f32 %v7845_v62  ;;  %v16331_v51 = vunpack.i.h.bf16 %v16329_v26  ;;  %v16330_v12 = vunpack.i.l.bf16 %v16329_v26 }
0x3b6b   :  { %v15740_v55 = vpack.c.bf16 %v16331_v51, %v16330_v12  ;;  %v7999_v12 = vld [vmem:[#allocation2 + $0x1f8] sm:$0xff] }
0x3b6c   :  { %v16339_v4 = vpop.permute.xlu0 %16338 }
0x3b6d   :  { %15741 = vmatprep.subr.bf16.mxu1 %v15740_v55  ;;  %v16341_v57 = vunpack.i.h.bf16 %v16339_v4  ;;  %v16340_v37 = vunpack.i.l.bf16 %v16339_v4 }
0x3b70   :  { %v16349_v8 = vpop.permute.xlu0 %16348 }
0x3b71   :  { %v16351_v56 = vunpack.i.h.bf16 %v16349_v8  ;;  %v16350_v14 = vunpack.i.l.bf16 %v16349_v8 }
0x3b73   :  { %v16608_v63 = vpop.eup %16607  ;;  %v15748_v20 = vpack.c.bf16 %v16351_v56, %v16350_v14  ;;  %v13324_v56 = vld [vmem:[%s18709_s4 + $0x68] sm:$0xff]  ;;  %v13325_v14 = vld [vmem:[%s18709_s4 + $0x70] sm:$0xff] }
0x3b74   :  { %v7847_v54 = vsel %vm2501_vm8, %v16608_v63, 0.0 }
0x3b75   :  { %7848 = vadd.xlane.f32.xlu1 %v7847_v54 }
0x3b86   :  { %16333 = vrot.lane.b32.xlu1 %v17804_v49, %s16717_s3 }
0x3b8a   :  { %16343 = vrot.lane.b32.xlu1 %v17834_v5, %s16717_s3  ;;  %v15735_v5 = vpack.c.bf16 %v16341_v57, %v16340_v37  ;;  %v13320_v57 = vld [vmem:[%s18711_s6 + $0x15] ss:$0 sm:$0xff] }
0x3b8e   :  { %16353 = vrot.lane.b32.xlu1 %v17838_v33, %s16717_s3 }
0x3c02   :  { %v7849_v47 = vpop.xlane.xlu1 %7848 }
0x3c03   :  { %16609 = vrcp.f32 %v7849_v47 }
0x3c06   :  { %v16334_v60 = vpop.permute.xlu1 %16333 }
0x3c07   :  { %v16336_v24 = vunpack.i.h.bf16 %v16334_v60  ;;  %v16335_v61 = vunpack.i.l.bf16 %v16334_v60 }
0x3c09   :  { %v15744_v3 = vpack.c.bf16 %v16336_v24, %v16335_v61  ;;  %v13332_v24 = vld [vmem:[%s18709_s4 + $0x98] sm:$0xff] }
0x3c0a   :  { %v16344_v49 = vpop.permute.xlu1 %16343 }
0x3c0b   :  { %v16346_v1 = vunpack.i.h.bf16 %v16344_v49  ;;  %v16345_v6 = vunpack.i.l.bf16 %v16344_v49 }
0x3c0d   :  { %v16610_v18 = vpop.eup %16609  ;;  %v15738_v7 = vpack.c.bf16 %v16346_v1, %v16345_v6 }
0x3c0e   :  { %v7851_v33 = vmul.f32 %v16610_v18, %v16608_v63  ;;  %v16354_v15 = vpop.permute.xlu1 %16353 }
0x3c0f   :  { %v16356_v22 = vunpack.i.h.bf16 %v16354_v15  ;;  %v16355_v16 = vunpack.i.l.bf16 %v16354_v15  ;;  %v13326_v15 = vld [vmem:[%s18709_s4 + $0x78] sm:$0xff] }
0x3c10   :  { %14850 = vmatmul.mubr.msk.f32.vlgmr.msra.gmra.mrb[90].mxu0 %vm2513_vm9, %v7851_v33  ;;  %v13323_v33 = vld [vmem:[%s18709_s4 + $0x60] sm:$0xff] }
0x3c11   :  { %15736 = vmatpush3.bf16.msra.mxu0 %v15735_v5  ;;  %14865 = vmatprep.mubr.msk.f32.mxu0 %vm16713_vm1, %v16714_v17  ;;  %v15752_v23 = vpack.c.bf16 %v16356_v22, %v16355_v16  ;;  %v13330_v22 = vld [vmem:[%s18709_s4 + $0x88] sm:$0xff]  ;;  %v13331_v16 = vld [vmem:[%s18709_s4 + $0x90] sm:$0xff] }
0x3c12   :  { %15737 = vmatprep.subr.bf16.mxu0 %v16712_v9  ;;  %v15773_v61 = vpack.c.bf16 %v13332_v24, %v13331_v16  ;;  %v8749_v24 = vld [vmem:[#allocation2 + $0x228] sm:$0xff] }
0x3c15   :  { %15739 = vmatpush3.bf16.msra.mxu0 %v15738_v7  ;;  %v15767_v7 = vpack.c.bf16 %v13326_v15, %v13325_v14 }
0x3c16   :  { %15749 = vmatprep.subr.bf16.mxu0 %v15748_v20 }
0x3c18   :  { %14866 = vmatmul.mubr.msk.f32.vlgmr.msra.gmra.mrb[92].mxu0 %vm49_vm2, %v17782_v13 }
0x3c19   :  { %15751 = vmatpush3.bf16.msra.mxu0 %v15748_v20  ;;  %14887 = vmatprep.mubr.msk.f32.mxu0 %vm49_vm2, %v17098_v34  ;;  %v13329_v20 = vld [vmem:[%s18709_s4 + $0x80] sm:$0xff] }
0x3c1a   :  { %15753 = vmatprep.subr.bf16.mxu0 %v15752_v23 }
0x3c1d   :  { %15755 = vmatpush3.bf16.msra.mxu0 %v15752_v23  ;;  %v15770_v23 = vpack.c.bf16 %v13330_v22, %v13329_v20  ;;  %v13339_v22 = vld [vmem:[%s18711_s6 + $0x18] ss:$0 sm:$0xff] }
0x3c1e   :  { %15760 = vmatprep.subr.bf16.mxu0 %v16712_v9 }
0x3c20   :  { %14888 = vmatmul.mubr.msk.f32.vlgmr.msra.gmra.mrb[94].mxu0 %vm49_vm2, %v17096_v44 }
0x3c21   :  { %14901 = vmatprep.mubr.msk.f32.mxu0 %vm16713_vm1, %v16714_v17 }
0x3ce3   :  { %v7921_v59 = vpop.f32.mrb[90].mxu0 }
0x3ce4   :  { %v14851_v19 = vpop.f32.mrb[91].mxu0  ;;  %14855 = vmatmul.mubr.msk.f32.vlgmr.msra.gmra.mrb[90].mxu1 %vm366_vm3, %v7921_v59  ;;  %v13334_v59 = vld [vmem:[%s18709_s4 + $0xa8] sm:$0xff] }
0x3ce5   :  { %15743 = vmatpush3.bf16.msra.mxu1 %v15740_v55  ;;  %14876 = vmatprep.mubr.msk.f32.mxu1 %vm49_vm2, %v17098_v34 }
0x3ce6   :  { %15745 = vmatprep.subr.bf16.mxu1 %v15744_v3 }
0x3ce9   :  { %15747 = vmatpush3.bf16.msra.mxu1 %v15744_v3  ;;  %v13333_v3 = vld [vmem:[%s18709_s4 + $0xa0] sm:$0xff] }
0x3cea   :  { %15756 = vmatprep.subr.bf16.mxu1 %v16712_v9  ;;  %v15776_v19 = vpack.c.bf16 %v13334_v59, %v13333_v3 }
0x3ceb   :  { %v8085_v13 = vpop.f32.mrb[92].mxu0 }
0x3cec   :  { %v14867_v27 = vpop.f32.mrb[93].mxu0  ;;  %14877 = vmatmul.mubr.msk.f32.vlgmr.msra.gmra.mrb[92].mxu1 %vm49_vm2, %v17096_v44 }
0x3ced   :  { %14894 = vmatprep.mubr.msk.f32.mxu1 %vm16713_vm1, %v16714_v17 }
0x3cf3   :  { %v14889_v29 = vpop.f32.mrb[94].mxu0 }
0x3cf4   :  { %v8268_v30 = vadd.f32 %v14889_v29, %v13312_v28  ;;  %v8262_v31 = vpop.f32.mrb[95].mxu0 }
0x3cf5   :  { %v8263_v38 = vadd.f32 %v13312_v28, %v8262_v31 }
0x3cf7   :  { %v15761_v21 = vpack.c.bf16 %v8268_v30, %v8263_v38 }
0x3cf9   :  { %15762 = vmatpush3.bf16.msra.mxu0 %v15761_v21 }
0x3cfa   :  { %15763 = vmatprep.subr.bf16.mxu0 %v16712_v9 }
0x3db7   :  { %v7994_v32 = vpop.f32.mrb[90].mxu1 }
0x3db8   :  { %v7998_v25 = vadd.f32 %v7994_v32, %v17925_v41  ;;  %v14856_v35 = vpop.f32.mrb[91].mxu1  ;;  %v8086_v41 = vadd.f32 %v13307_v43, %v8085_v13  ;;  %v13327_v43 = vld [vmem:[%s18711_s6 + $0x16] ss:$0 sm:$0xff] }
0x3dbf   :  { %v14878_v40 = vpop.f32.mrb[92].mxu1 }
0x3dc0   :  { %v8177_v42 = vadd.f32 %v14878_v40, %v13309_v36  ;;  %v8171_v10 = vpop.f32.mrb[93].mxu1 }
0x3dc1   :  { %v8172_v45 = vadd.f32 %v13309_v36, %v8171_v10  ;;  %v13322_v36 = vld [vmem:[%s18711_s6 + $0x13] ss:$0 sm:$0xff] }
0x3dc2   :  { %v13335_v10 = vld [vmem:[%s18709_s4 + $0xb0] sm:$0xff] }
0x3dc3   :  { %v15757_v46 = vpack.c.bf16 %v8177_v42, %v8172_v45  ;;  %v13336_v45 = vld [vmem:[%s18709_s4 + $0xb8] sm:$0xff] }
0x3dc5   :  { %15759 = vmatpush3.bf16.xpose.msk.msra.mxu1 %vm17142_vm7, %v15757_v46  ;;  %v15779_v46 = vpack.c.bf16 %v13336_v45, %v13335_v10 }
0x3dc6   :  { %14904 = vmatprep.subr.mxu1 %v16714_v17 }
0x3dcc   :  { %14895 = vmatmul.mubr.msk.f32.vlgmr.msra.gmra.mrb[94].mxu1 %vm366_vm3, %v8086_v41 }
0x3dcd   :  { %14906 = vmatprep.mubr.msk.f32.mxu1 %vm16713_vm1, %v16714_v17  ;;  %14905 = vmatpush3.msra.mxu1 %v7999_v12 }
0x3dce   :  { %15769 = vmatprep.subr.bf16.mxu1 %v16712_v9 }
0x3e9f   :  { %v8346_v48 = vpop.f32.mrb[94].mxu1 }
0x3ea0   :  { %v8350_v50 = vmul.f32 0.35355338, %v8346_v48  ;;  %v14896_v52 = vpop.f32.mrb[95].mxu1 }
0x3ea2   :  { %v8351_v53 = vadd.f32 %v17811_v2, %v8350_v50 }
0x3ea4   :  { %v8352_v39 = vsel %vm2501_vm8, %v8351_v53, -inf }
0x3ea5   :  { %8353 = vmax.xlane.f32.xlu0 %v8352_v39 }
0x3f32   :  { %v8354_v62 = vpop.xlane.xlu0 %8353 }
0x3f33   :  { %v8355_v63 = vsub.f32 %v8351_v53, %v8354_v62  ;;  %v13337_v53 = vld [vmem:[%s18711_s6 + $0x17] ss:$0 sm:$0xff] }
0x3f35   :  { %v8356_v54 = vmul.f32 1.442695, %v8355_v63 }
0x3f37   :  { %16611 = vpow2.f32 %v8356_v54 }
0x3f41   :  { %v16612_v26 = vpop.eup %16611 }
0x3f42   :  { %v8358_v51 = vsel %vm2501_vm8, %v16612_v26, 0.0 }
0x3f43   :  { %8359 = vadd.xlane.f32.xlu1 %v8358_v51 }
0x3fd0   :  { %v8360_v55 = vpop.xlane.xlu1 %8359 }
0x3fd1   :  { %16613 = vrcp.f32 %v8360_v55  ;;  %v18080_v55 = vld [vmem:[#allocation2 + $0x200] sm:$0xff] }
0x3fdb   :  { %v16614_v0 = vpop.eup %16613 }
0x3fdc   :  { %v8362_v47 = vmul.f32 %v16614_v0, %v16612_v26  ;;  %v18082_v0 = vld [vmem:[#allocation2 + $0x208] sm:$0xff] }
0x3fdd   :  { %v18149_v45 = vpack.i.bf16 %v18082_v0, %v18080_v55 }
0x3fde   :  { %14902 = vmatmul.mubr.msk.f32.vlgmr.msra.gmra.mrb[96].mxu0 %vm2513_vm9, %v8362_v47  ;;  %v15782_v47 = vpack.c.bf16 %v18082_v0, %v18080_v55 }
0x3fdf   :  { %14917 = vmatprep.mubr.msk.f32.mxu0 %vm16713_vm1, %v16714_v17 }
0x40b1   :  { %v8432_v2 = vpop.f32.mrb[96].mxu0 }
0x40b2   :  { %v14903_v60 = vpop.f32.mrb[97].mxu0  ;;  %14907 = vmatmul.mubr.msk.f32.vlgmr.msra.gmra.mrb[96].mxu1 %vm366_vm3, %v8432_v2  ;;  %v18086_v2 = vld [vmem:[#allocation2 + $0x240] sm:$0xff] }
0x40b3   :  { %14936 = vmatprep.mubr.msk.f32.mxu1 %vm16713_vm1, %v16714_v17  ;;  %15771 = vmatpush3.bf16.msra.mxu1 %v15770_v23  ;;  %v18088_v60 = vld [vmem:[#allocation2 + $0x248] sm:$0xff]  ;;  %v8748_v23 = vld [vmem:[#allocation2 + $0x220] sm:$0xff] }
0x40b4   :  { %15772 = vmatprep.subr.bf16.mxu1 %v16712_v9  ;;  %v15788_v59 = vpack.c.bf16 %v8749_v24, %v8748_v23 }
0x40b7   :  { %15774 = vmatpush3.bf16.msra.mxu1 %v15773_v61  ;;  %v13340_v61 = vld [vmem:[%s18711_s6 + $0x19] ss:$0 sm:$0xff] }
0x40b8   :  { %15775 = vmatprep.subr.bf16.mxu1 %v16712_v9 }
0x40bb   :  { %15777 = vmatpush3.bf16.msra.mxu1 %v15776_v19 }
0x40bc   :  { %15778 = vmatprep.subr.bf16.mxu1 %v16712_v9 }
0x40bf   :  { %15780 = vmatpush3.bf16.msra.mxu1 %v15779_v46 }
0x40c0   :  { %15793 = vmatprep.subr.bf16.mxu1 %v16712_v9 }
0x4185   :  { %v8505_v4 = vpop.f32.mrb[96].mxu1 }
0x4186   :  { %v8509_v37 = vadd.f32 %v8505_v4, %v7998_v25  ;;  %v14908_v49 = vpop.f32.mrb[97].mxu1  ;;  %v13321_v25 = vld [vmem:[%s18711_s6 + $0x12] ss:$0 sm:$0xff]  ;;  %v15794_v4 = vpack.c.bf16 %v18088_v60, %v18086_v2 }
0x4188   :  { %v8515_v8 = vadd.f32 %v13320_v57, %v8509_v37  ;;  %v18093_v57 = vld [vmem:[#allocation2 + $0x210] sm:$0xff]  ;;  %v18095_v37 = vld [vmem:[#allocation2 + $0x218] sm:$0xff] }
0x4189   :  { %v15785_v49 = vpack.c.bf16 %v18095_v37, %v18093_v57 }
0x418a   :  { %v18004_v18 = vadd.f32 %v8515_v8, %v17749_v11  ;;  %v15764_v11 = vpack.c.bf16 %v13324_v56, %v13323_v33  ;;  %v18100_v8 = vld [vmem:[#allocation2 + $0x250] sm:$0xff] }
0x418c   :  { %v8519_v5 = vsel %vm94_vm0, %v18004_v18, 0.0  ;;  %v8522_v1 = vmul.f32 %v18004_v18, %v18004_v18  ;;  %15765 = vmatpush3.bf16.msra.mxu0 %v15764_v11 }
0x418d   :  { %8520 = vadd.xlane.f32.xlu0 %v8519_v5  ;;  %15766 = vmatprep.subr.bf16.mxu0 %v16712_v9 }
0x418e   :  { %v8523_v6 = vsel %vm94_vm0, %v8522_v1, 0.0 }
0x4190   :  { %15768 = vmatpush3.bf16.msra.mxu0 %v15767_v7 }
0x4191   :  { %8524 = vadd.xlane.f32.xlu0 %v8523_v6  ;;  %15781 = vmatprep.subr.bf16.mxu0 %v16712_v9 }
0x421a   :  { %v8521_v13 = vpop.xlane.xlu0 %8520 }
0x421b   :  { %v8526_v27 = vmul.f32 0.03125, %v8521_v13  ;;  %v8750_v13 = vld [vmem:[#allocation2 + $0x230] sm:$0xff] }
0x421d   :  { %v8528_v29 = vmul.f32 %v8526_v27, %v8526_v27  ;;  %v8530_v21 = vsub.f32 %v18004_v18, %v8526_v27  ;;  %v8751_v27 = vld [vmem:[#allocation2 + $0x238] sm:$0xff] }
0x421e   :  { %v8525_v28 = vpop.xlane.xlu0 %8524  ;;  %v18153_v46 = vpack.i.bf16 %v8751_v27, %v8750_v13 }
0x421f   :  { %v8527_v30 = vmul.f32 0.03125, %v8525_v28  ;;  %v15791_v28 = vpack.c.bf16 %v8751_v27, %v8750_v13 }
0x4221   :  { %v8529_v31 = vsub.f32 %v8527_v30, %v8528_v29  ;;  %v13348_v29 = vld [vmem:[%s18710_s5 + $0x38] ss:$0 sm:$0xff] }
0x4223   :  { %v8531_v38 = vadd.f32 1e-05, %v8529_v31 }
0x4225   :  { %16615 = vrsqrt.f32 %v8531_v38 }
0x422f   :  { %v16616_v32 = vpop.eup %16615 }
0x4230   :  { %v8533_v35 = vmul.f32 %v16616_v32, %v8530_v21 }
0x4232   :  { %v8538_v40 = vmul.f32 %v13321_v25, %v8533_v35  ;;  %v13346_v25 = vld [vmem:[%s18710_s5 + $0x34] ss:$0 sm:$0xff] }
0x4234   :  { %v8543_v42 = vadd.f32 %v13322_v36, %v8538_v40  ;;  %v13344_v36 = vld [vmem:[%s18710_s5 + $0x30] ss:$0 sm:$0xff] }
0x4236   :  { %14918 = vmatmul.mubr.msk.f32.vlgmr.msra.gmra.mrb[98].mxu0 %vm49_vm2, %v8543_v42 }
0x4237   :  { %14947 = vmatprep.mubr.msk.f32.mxu0 %vm16713_vm1, %v16714_v17  ;;  %15783 = vmatpush3.bf16.msra.mxu0 %v15782_v47 }
0x4238   :  { %15784 = vmatprep.subr.bf16.mxu0 %v16712_v9 }
0x423b   :  { %15786 = vmatpush3.bf16.msra.mxu0 %v15785_v49 }
0x423c   :  { %15787 = vmatprep.subr.bf16.mxu0 %v16712_v9 }
0x4309   :  { %v8623_v41 = vpop.f32.mrb[98].mxu0 }
0x430a   :  { %v8624_v48 = vadd.f32 %v13327_v43, %v8623_v41  ;;  %v14919_v50 = vpop.f32.mrb[99].mxu0 }
0x430b   :  { %v18160_v50 = vld [vmem:[%s18707_s2] sm:$0x3f] }
0x430c   :  { %v8627_v52 = vmax.f32 %v8624_v48, 0.0 }
0x430e   :  { %14937 = vmatmul.mubr.msk.f32.vlgmr.msra.gmra.mrb[98].mxu1 %vm4334_vm10, %v8627_v52 }
0x430f   :  { %14969 = vmatprep.mubr.msk.f32.mxu1 %vm16713_vm1, %v16714_v17  ;;  %15795 = vmatpush3.bf16.msra.mxu1 %v15794_v4 }
0x4310   :  { %15796 = vmatprep.subr.bf16.mxu1 %v16712_v9 }
0x43e1   :  { %v8710_v39 = vpop.f32.mrb[98].mxu1 }
0x43e2   :  { %v8711_v62 = vadd.f32 %v13337_v53, %v8710_v39  ;;  %v14938_v63 = vpop.f32.mrb[99].mxu1  ;;  %v18164_v39 = vpack.i.bf16 %v8749_v24, %v8748_v23 }
0x43e4   :  { %v18073_v54 = vadd.f32 %v8711_v62, %v18004_v18  ;;  %v18102_v18 = vld [vmem:[#allocation2 + $0x258] sm:$0xff]  ;;  %v18170_v62 = vpack.i.bf16 %v18088_v60, %v18086_v2  ;;  %v18178_v2 = vpack.i.bf16 %v18095_v37, %v18093_v57 }
0x43e5   :  { %v15797_v5 = vpack.c.bf16 %v18102_v18, %v18100_v8  ;;  %v18184_v60 = vpack.i.bf16 %v18102_v18, %v18100_v8 }
0x43e6   :  { %v8717_v26 = vsel %vm94_vm0, %v18073_v54, 0.0  ;;  %v8720_v51 = vmul.f32 %v18073_v54, %v18073_v54 }
0x43e7   :  { %8718 = vadd.xlane.f32.xlu0 %v8717_v26  ;;  %15798 = vmatpush3.bf16.msra.mxu1 %v15797_v5 }
0x43e8   :  { %v8721_v12 = vsel %vm94_vm0, %v8720_v51, 0.0  ;;  %14977 = vmatprep.subr.mxu1 %v16714_v17 }
0x43e9   :  { %8722 = vadd.xlane.f32.xlu1 %v8721_v12 }
0x43fa   :  { %16363 = vrot.lane.b32.xlu1 %v18149_v45, %s16715_s27 }
0x43fe   :  { %16368 = vrot.lane.b32.xlu1 %v18153_v46, %s16715_s27 }
0x4474   :  { %v8719_v1 = vpop.xlane.xlu0 %8718 }
0x4475   :  { %v8724_v6 = vmul.f32 0.03125, %v8719_v1 }
0x4476   :  { %v8723_v33 = vpop.xlane.xlu1 %8722 }
0x4477   :  { %v8726_v56 = vmul.f32 %v8724_v6, %v8724_v6  ;;  %v8725_v11 = vmul.f32 0.03125, %v8723_v33  ;;  %v8728_v7 = vsub.f32 %v18073_v54, %v8724_v6 }
0x4479   :  { %v8727_v14 = vsub.f32 %v8725_v11, %v8726_v56 }
0x447a   :  { %v16364_v63 = vpop.permute.xlu1 %16363 }
0x447b   :  { %v8729_v15 = vadd.f32 1e-05, %v8727_v14  ;;  %v16366_v26 = vunpack.i.h.bf16 %v16364_v63  ;;  %v16365_v51 = vunpack.i.l.bf16 %v16364_v63 }
0x447d   :  { %16617 = vrsqrt.f32 %v8729_v15  ;;  %v15800_v12 = vpack.c.bf16 %v16366_v26, %v16365_v51 }
0x447e   :  { %v16369_v5 = vpop.permute.xlu1 %16368 }
0x4487   :  { %v16618_v20 = vpop.eup %16617 }
0x4488   :  { %v8731_v16 = vmul.f32 %v16618_v20, %v8728_v7 }
0x448a   :  { %v8736_v3 = vmul.f32 %v13339_v22, %v8731_v16 }
0x448c   :  { %v18115_v19 = vadd.f32 %v13340_v61, %v8736_v3  ;;  %v16371_v3 = vunpack.i.h.bf16 %v16369_v5 }
0x448e   :  { %14948 = vmatmul.mubr.msk.f32.vlgmr.msra.gmra.mrb[100].mxu0 %vm49_vm2, %v18115_v19  ;;  %14970 = vmatmul.mubr.msk.f32.vlgmr.msra.gmra.mrb[100].mxu1 %vm49_vm2, %v18115_v19 }
0x448f   :  { %15789 = vmatpush3.bf16.msra.mxu0 %v15788_v59  ;;  %14958 = vmatprep.mubr.msk.f32.mxu0 %vm16713_vm1, %v16714_v17  ;;  %v16370_v59 = vunpack.i.l.bf16 %v16369_v5 }
0x4490   :  { %15790 = vmatprep.subr.bf16.mxu0 %v16712_v9  ;;  %14979 = vmatprep.mubr.msk.f32.mxu1 %vm16713_vm1, %v16714_v17 }
0x4491   :  { %v15809_v27 = vpack.c.bf16 %v16371_v3, %v16370_v59 }
0x4493   :  { %15792 = vmatpush3.bf16.msra.mxu0 %v15791_v28 }
0x4494   :  { %14972 = vmatprep.subr.mxu0 %v16714_v17 }
0x4496   :  { %14959 = vmatmul.mubr.msk.f32.vlgmr.msra.gmra.mrb[102].mxu0 %vm49_vm2, %v18115_v19 }
0x4497   :  { %14974 = vmatprep.mubr.msk.f32.mxu0 %vm16713_vm1, %v16714_v17 }
0x4561   :  { %v8838_v30 = vpop.f32.mrb[100].mxu0  ;;  %v8986_v31 = vpop.f32.mrb[100].mxu1 }
0x4562   :  { %v8987_v38 = vadd.f32 %v13348_v29, %v8986_v31  ;;  %v14949_v21 = vpop.f32.mrb[101].mxu0  ;;  %v14971_v32 = vpop.f32.mrb[101].mxu1  ;;  %v8839_v10 = vadd.f32 %v13344_v36, %v8838_v30 }
0x4563   :  { %v13359_v21 = vld [vmem:[%s18710_s5 + $0x35] ss:$0 sm:$0xff] }
0x4564   :  { %14978 = vmatpush3.msk.msra.mxu1 %vm461_vm4, %v8987_v38 }
0x4565   :  { %15805 = vmatprep.subr.bf16.mxu1 %v16712_v9 }
0x4569   :  { %v8912_v35 = vpop.f32.mrb[102].mxu0 }
0x456a   :  { %v8913_v40 = vadd.f32 %v13346_v25, %v8912_v35  ;;  %v14960_v42 = vpop.f32.mrb[103].mxu0  ;;  %v13357_v35 = vld [vmem:[%s18710_s5 + $0x31] ss:$0 sm:$0xff] }
0x456b   :  { %v13361_v42 = vld [vmem:[%s18710_s5 + $0x39] ss:$0 sm:$0xff] }
0x456c   :  { %14973 = vmatpush3.xpose.msk.msra.mxu0 %vm366_vm3, %v8913_v40 }
0x456d   :  { %15799 = vmatprep.subr.bf16.mxu0 %v16712_v9 }
0x456f   :  { %14975 = vmatmul.mubr.msk.f32.vlgmr.msra.gmra.mrb[104].mxu0 %vm366_vm3, %v8839_v10 }
0x4570   :  { %14990 = vmatprep.mubr.msk.f32.mxu0 %vm16713_vm1, %v16714_v17  ;;  %15801 = vmatpush3.bf16.msra.mxu0 %v15800_v12 }
0x4571   :  { %15802 = vmatprep.subr.bf16.mxu0 %v16712_v9 }
0x4642   :  { %v9062_v43 = vpop.f32.mrb[104].mxu0 }
0x4643   :  { %v9066_v41 = vmul.f32 0.35355338, %v9062_v43  ;;  %v14976_v48 = vpop.f32.mrb[105].mxu0 }
0x4645   :  { %v9067_v52 = vadd.f32 %v18160_v50, %v9066_v41 }
0x4647   :  { %v9068_v53 = vsel %vm445_vm5, %v9067_v52, -inf }
0x4648   :  { %9069 = vmax.xlane.f32.xlu0 %v9068_v53 }
0x465e   :  { %16358 = vrot.lane.b32.xlu0 %v18164_v39, %s16715_s27 }
0x4662   :  { %16378 = vrot.lane.b32.xlu0 %v18170_v62, %s16715_s27 }
0x46d5   :  { %v9070_v55 = vpop.xlane.xlu0 %9069 }
0x46d6   :  { %v9071_v0 = vsub.f32 %v9067_v52, %v9070_v55 }
0x46d8   :  { %v9072_v47 = vmul.f32 1.442695, %v9071_v0 }
0x46d9   :  { %v16359_v1 = vpop.permute.xlu0 %16358 }
0x46da   :  { %16619 = vpow2.f32 %v9072_v47  ;;  %v16361_v7 = vunpack.i.h.bf16 %v16359_v1  ;;  %v16360_v20 = vunpack.i.l.bf16 %v16359_v1  ;;  %v9155_v47 = vld [vmem:[#allocation2 + $0x268] sm:$0xff] }
0x46dc   :  { %v15806_v24 = vpack.c.bf16 %v16361_v7, %v16360_v20 }
0x46dd   :  { %v16379_v33 = vpop.permute.xlu0 %16378 }
0x46de   :  { %v16381_v57 = vunpack.i.h.bf16 %v16379_v33  ;;  %v16380_v37 = vunpack.i.l.bf16 %v16379_v33 }
0x46e0   :  { %v15812_v16 = vpack.c.bf16 %v16381_v57, %v16380_v37 }
0x46e4   :  { %v16620_v4 = vpop.eup %16619 }
0x46e5   :  { %v9074_v49 = vsel %vm445_vm5, %v16620_v4, 0.0 }
0x46e6   :  { %9075 = vadd.xlane.f32.xlu1 %v9074_v49 }
0x46f7   :  { %16373 = vrot.lane.b32.xlu1 %v18178_v2, %s16715_s27 }
0x46fb   :  { %16383 = vrot.lane.b32.xlu1 %v18184_v60, %s16715_s27 }
0x4773   :  { %v9076_v6 = vpop.xlane.xlu1 %9075 }
0x4774   :  { %16621 = vrcp.f32 %v9076_v6 }
0x4777   :  { %v16374_v56 = vpop.permute.xlu1 %16373 }
0x4778   :  { %v16376_v11 = vunpack.i.h.bf16 %v16374_v56  ;;  %v16375_v14 = vunpack.i.l.bf16 %v16374_v56  ;;  %v8758_v56 = vld [vmem:[#allocation2 + $0x260] sm:$0xff] }
0x477a   :  { %v15803_v15 = vpack.c.bf16 %v16376_v11, %v16375_v14 }
0x477b   :  { %v16384_v22 = vpop.permute.xlu1 %16383 }
0x477c   :  { %15804 = vmatpush3.bf16.msra.mxu0 %v15803_v15  ;;  %v16386_v8 = vunpack.i.h.bf16 %v16384_v22  ;;  %v16385_v18 = vunpack.i.l.bf16 %v16384_v22 }
0x477d   :  { %15811 = vmatprep.subr.bf16.mxu0 %v16712_v9 }
0x477e   :  { %v16622_v23 = vpop.eup %16621  ;;  %v15815_v13 = vpack.c.bf16 %v16386_v8, %v16385_v18 }
0x477f   :  { %v9078_v61 = vmul.f32 %v16622_v23, %v16620_v4  ;;  %14991 = vmatmul.mubr.msk.f32.vlgmr.msra.gmra.mrb[106].mxu0 %vm49_vm2, %v18115_v19 }
0x4780   :  { %15813 = vmatpush3.bf16.msra.mxu0 %v15812_v16  ;;  %15012 = vmatprep.mubr.msk.f32.mxu0 %vm16713_vm1, %v16714_v17 }
0x4781   :  { %14980 = vmatmul.mubr.msk.f32.vlgmr.msra.gmra.mrb[102].mxu1 %vm457_vm6, %v9078_v61  ;;  %15814 = vmatprep.subr.bf16.mxu0 %v16712_v9 }
0x4782   :  { %15807 = vmatpush3.bf16.msra.mxu1 %v15806_v24  ;;  %15001 = vmatprep.mubr.msk.f32.mxu1 %vm16713_vm1, %v16714_v17 }
0x4783   :  { %15808 = vmatprep.subr.bf16.mxu1 %v16712_v9 }
0x4784   :  { %15816 = vmatpush3.bf16.msra.mxu0 %v15815_v13 }
0x4785   :  { %15025 = vmatprep.subr.mxu0 %v16714_v17 }
0x4786   :  { %15810 = vmatpush3.bf16.msra.mxu1 %v15809_v27 }
0x4787   :  { %15013 = vmatmul.mubr.msk.f32.vlgmr.msra.gmra.mrb[108].mxu0 %vm49_vm2, %v18115_v19  ;;  %15015 = vmatprep.subr.mxu1 %v16714_v17 }
0x4788   :  { %15027 = vmatprep.mubr.msk.f32.mxu0 %vm16713_vm1, %v16714_v17  ;;  %15026 = vmatpush3.msra.mxu0 %v9155_v47 }
0x4789   :  { %15002 = vmatmul.mubr.msk.f32.vlgmr.msra.gmra.mrb[104].mxu1 %vm49_vm2, %v18115_v19  ;;  %15817 = vmatprep.subr.bf16.mxu0 %v16712_v9 }
0x478a   :  { %15017 = vmatprep.mubr.msk.f32.mxu1 %vm16713_vm1, %v16714_v17 }
0x4852   :  { %v9245_v28 = vpop.f32.mrb[106].mxu0 }
0x4853   :  { %v14992_v29 = vpop.f32.mrb[107].mxu0  ;;  %v9246_v10 = vadd.f32 %v13357_v35, %v9245_v28 }
0x4854   :  { %v9151_v30 = vpop.f32.mrb[102].mxu1 }
0x4855   :  { %v14981_v31 = vpop.f32.mrb[103].mxu1 }
0x485a   :  { %v9425_v38 = vpop.f32.mrb[108].mxu0 }
0x485b   :  { %v15014_v32 = vpop.f32.mrb[109].mxu0  ;;  %v9426_v43 = vadd.f32 %v13361_v42, %v9425_v38 }
0x485c   :  { %v9335_v25 = vpop.f32.mrb[104].mxu1 }
0x485d   :  { %v9336_v36 = vadd.f32 %v13359_v21, %v9335_v25  ;;  %v15003_v40 = vpop.f32.mrb[105].mxu1  ;;  %v13374_v25 = vld [vmem:[%s18710_s5 + $0x36] ss:$0 sm:$0xff] }
0x485f   :  { %15016 = vmatpush3.xpose.msk.msra.mxu1 %vm366_vm3, %v9336_v36 }
0x4860   :  { %15020 = vmatprep.subr.mxu1 %v16714_v17 }
0x4862   :  { %15018 = vmatmul.mubr.msk.f32.vlgmr.msra.gmra.mrb[106].mxu1 %vm366_vm3, %v9246_v10 }
0x4863   :  { %15021 = vmatpush3.msk.msra.mxu1 %vm461_vm4, %v9426_v43  ;;  %15022 = vmatprep.mubr.msk.f32.mxu1 %vm16713_vm1, %v16714_v17 }
0x4864   :  { %15030 = vmatprep.subr.mxu1 %v16714_v17 }
0x4935   :  { %v9501_v41 = vpop.f32.mrb[106].mxu1 }
0x4936   :  { %v9505_v48 = vmul.f32 0.35355338, %v9501_v41  ;;  %v15019_v52 = vpop.f32.mrb[107].mxu1  ;;  %v13372_v41 = vld [vmem:[%s18710_s5 + $0x32] ss:$0 sm:$0xff] }
0x4938   :  { %v9506_v53 = vadd.f32 %v18160_v50, %v9505_v48 }
0x493a   :  { %v9507_v63 = vsel %vm445_vm5, %v9506_v53, -inf }
0x493b   :  { %9508 = vmax.xlane.f32.xlu0 %v9507_v63  ;;  %v13376_v63 = vld [vmem:[%s18710_s5 + $0x3a] ss:$0 sm:$0xff] }
0x4951   :  { %16388 = vrot.lane.b32.xlu0 %v18164_v39, %s16716_s11 }
0x4955   :  { %16398 = vrot.lane.b32.xlu0 %v18153_v46, %s16716_s11 }
0x4959   :  { %16408 = vrot.lane.b32.xlu0 %v18170_v62, %s16716_s11 }
0x49c8   :  { %v9509_v26 = vpop.xlane.xlu0 %9508 }
0x49c9   :  { %v9510_v51 = vsub.f32 %v9506_v53, %v9509_v26 }
0x49cb   :  { %v9511_v12 = vmul.f32 1.442695, %v9510_v51 }
0x49cc   :  { %v16389_v49 = vpop.permute.xlu0 %16388 }
0x49cd   :  { %16623 = vpow2.f32 %v9511_v12  ;;  %v16391_v1 = vunpack.i.h.bf16 %v16389_v49  ;;  %v16390_v6 = vunpack.i.l.bf16 %v16389_v49 }
0x49cf   :  { %v15824_v14 = vpack.c.bf16 %v16391_v1, %v16390_v6 }
0x49d0   :  { %v16399_v11 = vpop.permute.xlu0 %16398 }
0x49d1   :  { %v16401_v57 = vunpack.i.h.bf16 %v16399_v11  ;;  %v16400_v37 = vunpack.i.l.bf16 %v16399_v11 }
0x49d3   :  { %v15827_v15 = vpack.c.bf16 %v16401_v57, %v16400_v37 }
0x49d4   :  { %v16409_v24 = vpop.permute.xlu0 %16408 }
0x49d5   :  { %v16411_v13 = vunpack.i.h.bf16 %v16409_v24  ;;  %v16410_v27 = vunpack.i.l.bf16 %v16409_v24 }
0x49d7   :  { %v16624_v55 = vpop.eup %16623  ;;  %v15830_v31 = vpack.c.bf16 %v16411_v13, %v16410_v27 }
0x49d8   :  { %v9513_v0 = vsel %vm445_vm5, %v16624_v55, 0.0 }
0x49d9   :  { %9514 = vadd.xlane.f32.xlu1 %v9513_v0 }
0x49ea   :  { %16393 = vrot.lane.b32.xlu1 %v18149_v45, %s16716_s11 }
0x49ee   :  { %16403 = vrot.lane.b32.xlu1 %v18178_v2, %s16716_s11 }
0x49f2   :  { %16413 = vrot.lane.b32.xlu1 %v18184_v60, %s16716_s11 }
0x4a66   :  { %v9515_v4 = vpop.xlane.xlu1 %9514 }
0x4a67   :  { %16625 = vrcp.f32 %v9515_v4 }
0x4a6a   :  { %v16394_v7 = vpop.permute.xlu1 %16393 }
0x4a6b   :  { %v16396_v20 = vunpack.i.h.bf16 %v16394_v7  ;;  %v16395_v22 = vunpack.i.l.bf16 %v16394_v7 }
0x4a6d   :  { %v15818_v8 = vpack.c.bf16 %v16396_v20, %v16395_v22 }
0x4a6e   :  { %v16404_v16 = vpop.permute.xlu1 %16403 }
0x4a6f   :  { %v16406_v18 = vunpack.i.h.bf16 %v16404_v16  ;;  %v16405_v23 = vunpack.i.l.bf16 %v16404_v16 }
0x4a71   :  { %v16626_v5 = vpop.eup %16625  ;;  %v15821_v59 = vpack.c.bf16 %v16406_v18, %v16405_v23 }
0x4a72   :  { %v9517_v33 = vmul.f32 %v16626_v5, %v16624_v55  ;;  %v16414_v28 = vpop.permute.xlu1 %16413 }
0x4a73   :  { %v16416_v38 = vunpack.i.h.bf16 %v16414_v28  ;;  %v16415_v21 = vunpack.i.l.bf16 %v16414_v28 }
0x4a74   :  { %15023 = vmatmul.mubr.msk.f32.vlgmr.msra.gmra.mrb[108].mxu1 %vm457_vm6, %v9517_v33 }
0x4a75   :  { %15031 = vmatpush3.msra.mxu1 %v8758_v56  ;;  %15032 = vmatprep.mubr.msk.f32.mxu1 %vm16713_vm1, %v16714_v17  ;;  %v15833_v32 = vpack.c.bf16 %v16416_v38, %v16415_v21 }
0x4a76   :  { %15823 = vmatprep.subr.bf16.mxu1 %v16712_v9 }
0x4a78   :  { %15033 = vmatmul.mubr.msk.f32.vlgmr.msra.gmra.mrb[110].mxu1 %vm366_vm3, %v9151_v30 }
0x4a79   :  { %15825 = vmatpush3.bf16.msra.mxu1 %v15824_v14  ;;  %15054 = vmatprep.mubr.msk.f32.mxu1 %vm16713_vm1, %v16714_v17 }
0x4a7a   :  { %15826 = vmatprep.subr.bf16.mxu1 %v16712_v9 }
0x4a7d   :  { %15828 = vmatpush3.bf16.msra.mxu1 %v15827_v15 }
0x4a7e   :  { %15068 = vmatprep.subr.mxu1 %v16714_v17 }
0x4a80   :  { %15055 = vmatmul.mubr.msk.f32.vlgmr.msra.gmra.mrb[112].mxu1 %vm49_vm2, %v18115_v19 }
0x4a81   :  { %15070 = vmatprep.mubr.msk.f32.mxu1 %vm16713_vm1, %v16714_v17 }
0x4b47   :  { %v9590_v61 = vpop.f32.mrb[108].mxu1 }
0x4b48   :  { %v15024_v3 = vpop.f32.mrb[109].mxu1  ;;  %15028 = vmatmul.mubr.msk.f32.vlgmr.msra.gmra.mrb[110].mxu0 %vm366_vm3, %v9590_v61 }
0x4b49   :  { %15819 = vmatpush3.bf16.msra.mxu0 %v15818_v8  ;;  %15043 = vmatprep.mubr.msk.f32.mxu0 %vm16713_vm1, %v16714_v17 }
0x4b4a   :  { %15820 = vmatprep.subr.bf16.mxu0 %v16712_v9 }
0x4b4b   :  { %v9736_v29 = vpop.f32.mrb[110].mxu1 }
0x4b4c   :  { %v15034_v30 = vpop.f32.mrb[111].mxu1 }
0x4b4d   :  { %15822 = vmatpush3.bf16.msra.mxu0 %v15821_v59 }
0x4b4e   :  { %15829 = vmatprep.subr.bf16.mxu0 %v16712_v9 }
0x4b50   :  { %15044 = vmatmul.mubr.msk.f32.vlgmr.msra.gmra.mrb[112].mxu0 %vm49_vm2, %v18115_v19 }
0x4b51   :  { %15831 = vmatpush3.bf16.msra.mxu0 %v15830_v31  ;;  %15065 = vmatprep.mubr.msk.f32.mxu0 %vm16713_vm1, %v16714_v17 }
0x4b52   :  { %15832 = vmatprep.subr.bf16.mxu0 %v16712_v9 }
0x4b53   :  { %v9912_v35 = vpop.f32.mrb[112].mxu1 }
0x4b54   :  { %v9913_v36 = vadd.f32 %v13374_v25, %v9912_v35  ;;  %v15056_v40 = vpop.f32.mrb[113].mxu1 }
0x4b55   :  { %15834 = vmatpush3.bf16.msra.mxu0 %v15833_v32 }
0x4b56   :  { %15069 = vmatpush3.xpose.msk.msra.mxu1 %vm366_vm3, %v9913_v36  ;;  %15078 = vmatprep.subr.mxu0 %v16714_v17 }
0x4b57   :  { %15073 = vmatprep.subr.mxu1 %v16714_v17 }
0x4b58   :  { %15066 = vmatmul.mubr.msk.f32.vlgmr.msra.gmra.mrb[114].mxu0 %vm49_vm2, %v18115_v19 }
0x4b59   :  { %15080 = vmatprep.mubr.msk.f32.mxu0 %vm16713_vm1, %v16714_v17 }
0x4c1b   :  { %v9663_v42 = vpop.f32.mrb[110].mxu0 }
0x4c1c   :  { %v18273_v10 = vadd.f32 %v9736_v29, %v9663_v42  ;;  %v15029_v43 = vpop.f32.mrb[111].mxu0 }
0x4c23   :  { %v9826_v48 = vpop.f32.mrb[112].mxu0 }
0x4c24   :  { %v9827_v52 = vadd.f32 %v13372_v41, %v9826_v48  ;;  %v15045_v53 = vpop.f32.mrb[113].mxu0  ;;  %v13388_v41 = vld [vmem:[%s18710_s5 + $0x37] ss:$0 sm:$0xff] }
0x4c26   :  { %15071 = vmatmul.mubr.msk.f32.vlgmr.msra.gmra.mrb[114].mxu1 %vm366_vm3, %v9827_v52  ;;  %v13386_v52 = vld [vmem:[%s18710_s5 + $0x33] ss:$0 sm:$0xff] }
0x4c27   :  { %15075 = vmatprep.mubr.msk.f32.mxu1 %vm16713_vm1, %v16714_v17 }
0x4c2b   :  { %v9998_v26 = vpop.f32.mrb[114].mxu0 }
0x4c2c   :  { %v9999_v51 = vadd.f32 %v13376_v63, %v9998_v26  ;;  %v15067_v12 = vpop.f32.mrb[115].mxu0  ;;  %v13390_v63 = vld [vmem:[%s18710_s5 + $0x3b] ss:$0 sm:$0xff] }
0x4c2e   :  { %15074 = vmatpush3.msk.msra.mxu1 %vm461_vm4, %v9999_v51 }
0x4c2f   :  { %15835 = vmatprep.subr.bf16.mxu1 %v16712_v9 }
0x4cf9   :  { %v10074_v55 = vpop.f32.mrb[114].mxu1 }
0x4cfa   :  { %v10078_v0 = vmul.f32 0.35355338, %v10074_v55  ;;  %v15072_v47 = vpop.f32.mrb[115].mxu1 }
0x4cfc   :  { %v10079_v4 = vadd.f32 %v18160_v50, %v10078_v0 }
0x4cfe   :  { %v10080_v49 = vsel %vm445_vm5, %v10079_v4, -inf }
0x4cff   :  { %10081 = vmax.xlane.f32.xlu0 %v10080_v49 }
0x4d15   :  { %16418 = vrot.lane.b32.xlu0 %v18164_v39, %s16717_s3 }
0x4d19   :  { %16428 = vrot.lane.b32.xlu0 %v18153_v46, %s16717_s3  ;;  %v9740_v46 = vld [vmem:[#allocation2 + $0x270] sm:$0xff] }
0x4d1a   :  { %15079 = vmatpush3.msra.mxu0 %v9740_v46 }
0x4d1b   :  { %15841 = vmatprep.subr.bf16.mxu0 %v16712_v9 }
0x4d1d   :  { %16438 = vrot.lane.b32.xlu0 %v18170_v62, %s16717_s3 }
0x4d8c   :  { %v10082_v5 = vpop.xlane.xlu0 %10081 }
0x4d8d   :  { %v10083_v1 = vsub.f32 %v10079_v4, %v10082_v5 }
0x4d8f   :  { %v10084_v6 = vmul.f32 1.442695, %v10083_v1 }
0x4d90   :  { %v16419_v62 = vpop.permute.xlu0 %16418 }
0x4d91   :  { %16627 = vpow2.f32 %v10084_v6  ;;  %v16421_v13 = vunpack.i.h.bf16 %v16419_v62  ;;  %v16420_v27 = vunpack.i.l.bf16 %v16419_v62  ;;  %v18351_v62 = vld [vmem:[#allocation2 + $0x2a8] sm:$0xff] }
0x4d93   :  { %v15842_v28 = vpack.c.bf16 %v16421_v13, %v16420_v27 }
0x4d94   :  { %v16429_v14 = vpop.permute.xlu0 %16428 }
0x4d95   :  { %v16431_v29 = vunpack.i.h.bf16 %v16429_v14  ;;  %v16430_v30 = vunpack.i.l.bf16 %v16429_v14  ;;  %v18355_v14 = vld [vmem:[#allocation2 + $0x2b0] sm:$0xff] }
0x4d97   :  { %v15845_v21 = vpack.c.bf16 %v16431_v29, %v16430_v30  ;;  %v18393_v30 = vld [vmem:[#allocation2 + $0x290] sm:$0xff] }
0x4d98   :  { %v16439_v16 = vpop.permute.xlu0 %16438 }
0x4d99   :  { %v16441_v8 = vunpack.i.h.bf16 %v16439_v16  ;;  %v16440_v18 = vunpack.i.l.bf16 %v16439_v16 }
0x4d9b   :  { %v16628_v33 = vpop.eup %16627  ;;  %v15848_v24 = vpack.c.bf16 %v16441_v8, %v16440_v18  ;;  %v13405_v8 = vld [vmem:[%s18710_s5 + $0x40] ss:$0 sm:$0xff] }
0x4d9c   :  { %v10086_v56 = vsel %vm445_vm5, %v16628_v33, 0.0 }
0x4d9d   :  { %10087 = vadd.xlane.f32.xlu1 %v10086_v56 }
0x4dae   :  { %16423 = vrot.lane.b32.xlu1 %v18149_v45, %s16717_s3 }
0x4db2   :  { %16433 = vrot.lane.b32.xlu1 %v18178_v2, %s16717_s3 }
0x4db6   :  { %16443 = vrot.lane.b32.xlu1 %v18184_v60, %s16717_s3 }
0x4e2a   :  { %v10088_v39 = vpop.xlane.xlu1 %10087 }
0x4e2b   :  { %16629 = vrcp.f32 %v10088_v39 }
0x4e2e   :  { %v16424_v11 = vpop.permute.xlu1 %16423 }
0x4e2f   :  { %v16426_v57 = vunpack.i.h.bf16 %v16424_v11  ;;  %v16425_v37 = vunpack.i.l.bf16 %v16424_v11 }
0x4e31   :  { %v15836_v45 = vpack.c.bf16 %v16426_v57, %v16425_v37  ;;  %v18357_v57 = vld [vmem:[#allocation2 + $0x2b8] sm:$0xff] }
0x4e32   :  { %v16434_v15 = vpop.permute.xlu1 %16433  ;;  %v15863_v37 = vpack.c.bf16 %v18357_v57, %v18355_v14 }
0x4e33   :  { %v16436_v20 = vunpack.i.h.bf16 %v16434_v15  ;;  %v16435_v22 = vunpack.i.l.bf16 %v16434_v15 }
0x4e35   :  { %v16630_v7 = vpop.eup %16629  ;;  %v15839_v60 = vpack.c.bf16 %v16436_v20, %v16435_v22  ;;  %v13397_v20 = vld [vmem:[%s18711_s6 + $0x1e] ss:$0 sm:$0xff] }
0x4e36   :  { %v10090_v2 = vmul.f32 %v16630_v7, %v16628_v33  ;;  %v16444_v23 = vpop.permute.xlu1 %16443  ;;  %v10241_v33 = vld [vmem:[#allocation2 + $0x278] sm:$0xff] }
0x4e37   :  { %v16446_v61 = vunpack.i.h.bf16 %v16444_v23  ;;  %v16445_v3 = vunpack.i.l.bf16 %v16444_v23 }
0x4e38   :  { %15076 = vmatmul.mubr.msk.f32.vlgmr.msra.gmra.mrb[116].mxu1 %vm457_vm6, %v10090_v2 }
0x4e39   :  { %15837 = vmatpush3.bf16.msra.mxu1 %v15836_v45  ;;  %15091 = vmatprep.mubr.msk.f32.mxu1 %vm16713_vm1, %v16714_v17  ;;  %v15851_v59 = vpack.c.bf16 %v16446_v61, %v16445_v3 }
0x4e3a   :  { %15838 = vmatprep.subr.bf16.mxu1 %v16712_v9 }
0x4e3d   :  { %15840 = vmatpush3.bf16.msra.mxu1 %v15839_v60 }
0x4e3e   :  { %15847 = vmatprep.subr.bf16.mxu1 %v16712_v9 }
0x4e40   :  { %15092 = vmatmul.mubr.msk.f32.vlgmr.msra.gmra.mrb[118].mxu1 %vm49_vm2, %v18115_v19 }
0x4e41   :  { %15849 = vmatpush3.bf16.msra.mxu1 %v15848_v24  ;;  %15113 = vmatprep.mubr.msk.f32.mxu1 %vm16713_vm1, %v16714_v17 }
0x4e42   :  { %15850 = vmatprep.subr.bf16.mxu1 %v16712_v9 }
0x4e45   :  { %15852 = vmatpush3.bf16.msra.mxu1 %v15851_v59 }
0x4e46   :  { %15126 = vmatprep.subr.mxu1 %v16714_v17 }
0x4e48   :  { %15114 = vmatmul.mubr.msk.f32.vlgmr.msra.gmra.mrb[120].mxu1 %vm49_vm2, %v18115_v19 }
0x4e49   :  { %15128 = vmatprep.mubr.msk.f32.mxu1 %vm16713_vm1, %v16714_v17  ;;  %15127 = vmatpush3.msra.mxu1 %v10241_v33 }
0x4f0b   :  { %v10163_v31 = vpop.f32.mrb[116].mxu1 }
0x4f0c   :  { %v15077_v38 = vpop.f32.mrb[117].mxu1  ;;  %15081 = vmatmul.mubr.msk.f32.vlgmr.msra.gmra.mrb[116].mxu0 %vm366_vm3, %v10163_v31  ;;  %v18395_v31 = vld [vmem:[#allocation2 + $0x298] sm:$0xff] }
0x4f0d   :  { %15843 = vmatpush3.bf16.msra.mxu0 %v15842_v28  ;;  %15102 = vmatprep.mubr.msk.f32.mxu0 %vm16713_vm1, %v16714_v17  ;;  %v18388_v28 = vld [vmem:[#allocation2 + $0x288] sm:$0xff]  ;;  %v10787_v38 = vld [vmem:[#allocation2 + $0x2c0] sm:$0xff] }
0x4f0e   :  { %15844 = vmatprep.subr.bf16.mxu0 %v16712_v9 }
0x4f11   :  { %15846 = vmatpush3.bf16.msra.mxu0 %v15845_v21  ;;  %v15857_v21 = vpack.c.bf16 %v18395_v31, %v18393_v30 }
0x4f12   :  { %15116 = vmatprep.subr.mxu0 %v16714_v17 }
0x4f13   :  { %v10327_v32 = vpop.f32.mrb[118].mxu1 }
0x4f14   :  { %v15093_v25 = vpop.f32.mrb[119].mxu1  ;;  %15103 = vmatmul.mubr.msk.f32.vlgmr.msra.gmra.mrb[118].mxu0 %vm49_vm2, %v18115_v19  ;;  %v10328_v26 = vadd.f32 %v13386_v52, %v10327_v32  ;;  %v10788_v32 = vld [vmem:[#allocation2 + $0x2c8] sm:$0xff] }
0x4f15   :  { %15118 = vmatprep.mubr.msk.f32.mxu0 %vm16713_vm1, %v16714_v17  ;;  %v15867_v25 = vpack.c.bf16 %v10788_v32, %v10787_v38 }
0x4f1b   :  { %v10499_v35 = vpop.f32.mrb[120].mxu1 }
0x4f1c   :  { %v15115_v36 = vpop.f32.mrb[121].mxu1 }
0x4fdf   :  { %v10236_v40 = vpop.f32.mrb[116].mxu0 }
0x4fe0   :  { %v10240_v42 = vadd.f32 %v10236_v40, %v18273_v10  ;;  %v15082_v43 = vpop.f32.mrb[117].mxu0  ;;  %v10500_v10 = vadd.f32 %v13390_v63, %v10499_v35 }
0x4fe7   :  { %v10413_v48 = vpop.f32.mrb[118].mxu0 }
0x4fe8   :  { %v10414_v53 = vadd.f32 %v13388_v41, %v10413_v48  ;;  %v15104_v19 = vpop.f32.mrb[119].mxu0 }
0x4fe9   :  { %v13398_v19 = vld [vmem:[%s18711_s6 + $0x1a] ss:$0 sm:$0xff] }
0x4fea   :  { %15117 = vmatpush3.xpose.msk.msra.mxu0 %vm366_vm3, %v10414_v53 }
0x4feb   :  { %15121 = vmatprep.subr.mxu0 %v16714_v17 }
0x4fed   :  { %15119 = vmatmul.mubr.msk.f32.vlgmr.msra.gmra.mrb[120].mxu0 %vm366_vm3, %v10328_v26  ;;  %v13399_v26 = vld [vmem:[%s18711_s6 + $0x1b] ss:$0 sm:$0xff] }
0x4fee   :  { %15122 = vmatpush3.msk.msra.mxu0 %vm461_vm4, %v10500_v10  ;;  %15123 = vmatprep.mubr.msk.f32.mxu0 %vm16713_vm1, %v16714_v17  ;;  %v10789_v10 = vld [vmem:[#allocation2 + $0x2d0] sm:$0xff] }
0x4fef   :  { %15853 = vmatprep.subr.bf16.mxu0 %v16712_v9 }
0x50c0   :  { %v10575_v51 = vpop.f32.mrb[120].mxu0 }
0x50c1   :  { %v10579_v12 = vmul.f32 0.35355338, %v10575_v51  ;;  %v15120_v55 = vpop.f32.mrb[121].mxu0  ;;  %v10790_v51 = vld [vmem:[#allocation2 + $0x2d8] sm:$0xff] }
0x50c3   :  { %v10580_v0 = vadd.f32 %v18160_v50, %v10579_v12  ;;  %v18349_v50 = vld [vmem:[#allocation2 + $0x2a0] sm:$0xff] }
0x50c4   :  { %v15859_v11 = vpack.c.bf16 %v18351_v62, %v18349_v50 }
0x50c5   :  { %v10581_v47 = vsel %vm445_vm5, %v10580_v0, -inf }
0x50c6   :  { %10582 = vmax.xlane.f32.xlu0 %v10581_v47  ;;  %15860 = vmatprep.subr.bf16.mxu1 %v15859_v11  ;;  %v13403_v47 = vld [vmem:[%s18710_s5 + $0x3c] ss:$0 sm:$0xff] }
0x5153   :  { %v10583_v4 = vpop.xlane.xlu0 %10582 }
0x5154   :  { %v10584_v49 = vsub.f32 %v10580_v0, %v10583_v4  ;;  %v15871_v0 = vpack.c.bf16 %v10790_v51, %v10789_v10 }
0x5156   :  { %v10585_v5 = vmul.f32 1.442695, %v10584_v49 }
0x5158   :  { %16631 = vpow2.f32 %v10585_v5 }
0x5162   :  { %v16632_v1 = vpop.eup %16631 }
0x5163   :  { %v10587_v6 = vsel %vm445_vm5, %v16632_v1, 0.0 }
0x5164   :  { %10588 = vadd.xlane.f32.xlu1 %v10587_v6 }
0x51f1   :  { %v10589_v56 = vpop.xlane.xlu1 %10588 }
0x51f2   :  { %16633 = vrcp.f32 %v10589_v56 }
0x51fc   :  { %v16634_v46 = vpop.eup %16633 }
0x51fd   :  { %v10591_v39 = vmul.f32 %v16634_v46, %v16632_v1  ;;  %v13408_v1 = vld [vmem:[%s18710_s5 + $0x44] ss:$0 sm:$0xff] }
0x51ff   :  { %15124 = vmatmul.mubr.msk.f32.vlgmr.msra.gmra.mrb[122].mxu0 %vm457_vm6, %v10591_v39 }
0x5200   :  { %15139 = vmatprep.mubr.msk.f32.mxu0 %vm16713_vm1, %v16714_v17 }
0x52d2   :  { %v10664_v15 = vpop.f32.mrb[122].mxu0 }
0x52d3   :  { %v15125_v7 = vpop.f32.mrb[123].mxu0  ;;  %15129 = vmatmul.mubr.msk.f32.vlgmr.msra.gmra.mrb[122].mxu1 %vm366_vm3, %v10664_v15 }
0x52d4   :  { %15862 = vmatpush3.bf16.msra.mxu1 %v15859_v11  ;;  %15150 = vmatprep.mubr.msk.f32.mxu1 %vm49_vm2, %v17098_v34  ;;  %v18428_v11 = vpack.i.bf16 %v18357_v57, %v18355_v14  ;;  %v18441_v14 = vpack.i.bf16 %v18351_v62, %v18349_v50  ;;  %v18445_v57 = vpack.i.bf16 %v10788_v32, %v10787_v38 }
0x52d5   :  { %15864 = vmatprep.subr.bf16.mxu1 %v15863_v37  ;;  %v18458_v62 = vpack.i.bf16 %v18395_v31, %v18393_v30 }
0x52d6   :  { %16453 = vrot.lane.b32.xlu1 %v18428_v11, %s16715_s27 }
0x52d8   :  { %15866 = vmatpush3.bf16.msra.mxu1 %v15863_v37 }
0x52d9   :  { %15875 = vmatprep.subr.bf16.mxu1 %v16712_v9 }
0x52db   :  { %15151 = vmatmul.mubr.msk.f32.vlgmr.msra.gmra.mrb[124].mxu1 %vm49_vm2, %v17096_v44 }
0x52dc   :  { %15168 = vmatprep.mubr.msk.f32.mxu1 %vm16713_vm1, %v16714_v17 }
0x53a6   :  { %v10737_v45 = vpop.f32.mrb[122].mxu1 }
0x53a7   :  { %v10741_v22 = vadd.f32 %v10737_v45, %v10240_v42  ;;  %v15130_v2 = vpop.f32.mrb[123].mxu1  ;;  %v18435_v45 = vld [vmem:[%s18707_s2 + $0x8] sm:$0x3f]  ;;  %s13055_s2 = sshll.u32 %s16718_s29, 4  ;;  %s13056_s2 = int_to_ptr.vmem [resolvable:$true] %s13055_s2 }
0x53a8   :  { %p16688_p9 = scmp.lt.s32.totalorder %s13056_s2, %s13056_s2 }
0x53a9   :  { %v10747_v16 = vadd.f32 %v13397_v20, %v10741_v22 }
0x53ab   :  { %v18373_v60 = vadd.f32 %v10747_v16, %v18073_v54  ;;  %v18386_v54 = vld [vmem:[#allocation2 + $0x280] sm:$0xff] }
0x53ac   :  { %v15854_v29 = vpack.c.bf16 %v18388_v28, %v18386_v54  ;;  %v18452_v50 = vpack.i.bf16 %v18388_v28, %v18386_v54 }
0x53ad   :  { %v10751_v18 = vsel %vm94_vm0, %v18373_v60, 0.0  ;;  %v10754_v23 = vmul.f32 %v18373_v60, %v18373_v60 }
0x53ae   :  { %v15152_v24 = vpop.f32.mrb[124].mxu1  ;;  %10752 = vadd.xlane.f32.xlu0 %v10751_v18  ;;  %15855 = vmatpush3.bf16.msra.mxu0 %v15854_v29 }
0x53af   :  { %v10952_v61 = vadd.f32 %v15152_v24, %v13405_v8  ;;  %v10946_v3 = vpop.f32.mrb[125].mxu1  ;;  %v10755_v13 = vsel %vm94_vm0, %v10754_v23, 0.0  ;;  %15856 = vmatprep.subr.bf16.mxu0 %v16712_v9  ;;  %v18462_v24 = vpack.i.bf16 %v10790_v51, %v10789_v10 }
0x53b0   :  { %v10947_v59 = vadd.f32 %v13405_v8, %v10946_v3 }
0x53b2   :  { %v15876_v27 = vpack.c.bf16 %v10952_v61, %v10947_v59  ;;  %10756 = vadd.xlane.f32.xlu0 %v10755_v13  ;;  %15858 = vmatpush3.bf16.msra.mxu0 %v15857_v21 }
0x53b3   :  { %15868 = vmatprep.subr.bf16.mxu0 %v15867_v25 }
0x53b4   :  { %15878 = vmatpush3.bf16.xpose.msk.msra.mxu1 %vm17142_vm7, %v15876_v27  ;;  %v16454_v27 = vpop.permute.xlu1 %16453 }
0x53b5   :  { %15882 = vmatprep.subr.bf16.mxu1 %v16712_v9 }
0x543b   :  { %v10753_v35 = vpop.xlane.xlu0 %10752 }
0x543c   :  { %v10758_v36 = vmul.f32 0.03125, %v10753_v35 }
0x543e   :  { %v10760_v42 = vmul.f32 %v10758_v36, %v10758_v36  ;;  %v10762_v52 = vsub.f32 %v18373_v60, %v10758_v36 }
0x543f   :  { %v10757_v40 = vpop.xlane.xlu0 %10756 }
0x5440   :  { %v10759_v43 = vmul.f32 0.03125, %v10757_v40  ;;  %v16456_v40 = vunpack.i.h.bf16 %v16454_v27 }
0x5442   :  { %v10761_v41 = vsub.f32 %v10759_v43, %v10760_v42  ;;  %v16455_v42 = vunpack.i.l.bf16 %v16454_v27 }
0x5444   :  { %v10763_v48 = vadd.f32 1e-05, %v10761_v41 }
0x5446   :  { %16635 = vrsqrt.f32 %v10763_v48 }
0x5450   :  { %v16636_v53 = vpop.eup %16635 }
0x5451   :  { %v10765_v63 = vmul.f32 %v16636_v53, %v10762_v52 }
0x5453   :  { %v10770_v12 = vmul.f32 %v13398_v19, %v10765_v63 }
0x5455   :  { %v18406_v55 = vadd.f32 %v13399_v26, %v10770_v12  ;;  %v15892_v26 = vpack.c.bf16 %v16456_v40, %v16455_v42  ;;  %v10792_v40 = vld [vmem:[#allocation2 + $0x2e0] sm:$0xff] }
0x5457   :  { %15140 = vmatmul.mubr.msk.f32.vlgmr.msra.gmra.mrb[124].mxu0 %vm49_vm2, %v18406_v55 }
0x5458   :  { %15870 = vmatpush3.bf16.msra.mxu0 %v15867_v25  ;;  %15161 = vmatprep.mubr.msk.f32.mxu0 %vm49_vm2, %v17098_v34 }
0x5459   :  { %15872 = vmatprep.subr.bf16.mxu0 %v15871_v0 }
0x545c   :  { %15874 = vmatpush3.bf16.msra.mxu0 %v15871_v0 }
0x545d   :  { %15879 = vmatprep.subr.bf16.mxu0 %v16712_v9 }
0x545f   :  { %15162 = vmatmul.mubr.msk.f32.vlgmr.msra.gmra.mrb[126].mxu0 %vm49_vm2, %v17096_v44 }
0x5460   :  { %15175 = vmatprep.mubr.msk.f32.mxu0 %vm16713_vm1, %v16714_v17 }
0x552a   :  { %v10872_v4 = vpop.f32.mrb[124].mxu0 }
0x552b   :  { %v10873_v49 = vadd.f32 %v13403_v47, %v10872_v4  ;;  %v15141_v5 = vpop.f32.mrb[125].mxu0  ;;  %v13420_v4 = vld [vmem:[%s18710_s5 + $0x41] ss:$0 sm:$0xff] }
0x552c   :  { %v13423_v5 = vld [vmem:[%s18710_s5 + $0x45] ss:$0 sm:$0xff] }
0x552d   :  { %15169 = vmatmul.mubr.msk.f32.vlgmr.msra.gmra.mrb[126].mxu1 %vm366_vm3, %v10873_v49 }
0x552e   :  { %15186 = vmatprep.mubr.msk.f32.mxu1 %vm16713_vm1, %v16714_v17 }
0x5532   :  { %v15163_v6 = vpop.f32.mrb[126].mxu0 }
0x5533   :  { %v11031_v33 = vadd.f32 %v15163_v6, %v13408_v1  ;;  %v11025_v56 = vpop.f32.mrb[127].mxu0 }
0x5534   :  { %v11026_v46 = vadd.f32 %v13408_v1, %v11025_v56 }
0x5536   :  { %v15880_v39 = vpack.c.bf16 %v11031_v33, %v11026_v46 }
0x5538   :  { %15881 = vmatpush3.bf16.msra.mxu0 %v15880_v39 }
0x5600   :  { %v11109_v37 = vpop.f32.mrb[126].mxu1 }
0x5601   :  { %v11113_v15 = vmul.f32 0.35355338, %v11109_v37  ;;  %v15170_v7 = vpop.f32.mrb[127].mxu1 }
0x5603   :  { %v11114_v20 = vadd.f32 %v18435_v45, %v11113_v15 }
0x5605   :  { %v11115_v22 = vsel %vm2501_vm8, %v11114_v20, -inf }
0x5606   :  { %11116 = vmax.xlane.f32.xlu0 %v11115_v22 }
0x561c   :  { %16448 = vrot.lane.b32.xlu0 %v18441_v14, %s16715_s27 }
0x5620   :  { %16468 = vrot.lane.b32.xlu0 %v18445_v57, %s16715_s27 }
0x5693   :  { %v11117_v2 = vpop.xlane.xlu0 %11116 }
0x5694   :  { %v11118_v16 = vsub.f32 %v11114_v20, %v11117_v2  ;;  %v13418_v20 = vld [vmem:[%s18710_s5 + $0x3d] ss:$0 sm:$0xff] }
0x5696   :  { %v11119_v8 = vmul.f32 1.442695, %v11118_v16 }
0x5697   :  { %v16449_v61 = vpop.permute.xlu0 %16448 }
0x5698   :  { %16637 = vpow2.f32 %v11119_v8  ;;  %v16451_v3 = vunpack.i.h.bf16 %v16449_v61  ;;  %v16450_v59 = vunpack.i.l.bf16 %v16449_v61 }
0x569a   :  { %v15888_v13 = vpack.c.bf16 %v16451_v3, %v16450_v59 }
0x569b   :  { %v16469_v28 = vpop.permute.xlu0 %16468 }
0x569c   :  { %15889 = vmatprep.subr.bf16.mxu0 %v15888_v13  ;;  %v16471_v38 = vunpack.i.h.bf16 %v16469_v28  ;;  %v16470_v21 = vunpack.i.l.bf16 %v16469_v28 }
0x569e   :  { %v15896_v43 = vpack.c.bf16 %v16471_v38, %v16470_v21 }
0x56a2   :  { %v16638_v18 = vpop.eup %16637 }
0x56a3   :  { %v11121_v23 = vsel %vm2501_vm8, %v16638_v18, 0.0 }
0x56a4   :  { %11122 = vadd.xlane.f32.xlu1 %v11121_v23 }
0x56b5   :  { %16458 = vrot.lane.b32.xlu1 %v18452_v50, %s16715_s27 }
0x56b9   :  { %16463 = vrot.lane.b32.xlu1 %v18458_v62, %s16715_s27 }
0x56bd   :  { %16473 = vrot.lane.b32.xlu1 %v18462_v24, %s16715_s27  ;;  %s16683_s27 = scalar_lea.vmem %s13056_s2, 128 }
0x56be   :  { %p16684_p8 = scmp.ne.s32.totalorder %s13056_s2, %s16683_s27  ;;  %p16689_p10 = scmp.lt.s32.totalorder %s16683_s27, %s16683_s27 }
0x56c0   :  { %p16690_p11 = por %p16689_p10, %p16688_p9 }
0x56c2   :  { %p16691_p12 = pnand %p16690_p11, %p16684_p8 }
0x5731   :  { %v11123_v54 = vpop.xlane.xlu1 %11122 }
0x5732   :  { %16639 = vrcp.f32 %v11123_v54  ;;  %v11199_v54 = vld [vmem:[#allocation2 + $0x2e8] sm:$0xff] }
0x5735   :  { %v16459_v29 = vpop.permute.xlu1 %16458 }
0x5736   :  { %v16461_v30 = vunpack.i.h.bf16 %v16459_v29  ;;  %v16460_v31 = vunpack.i.l.bf16 %v16459_v29 }
0x5738   :  { %v15883_v32 = vpack.c.bf16 %v16461_v30, %v16460_v31 }
0x5739   :  { %v16464_v25 = vpop.permute.xlu1 %16463 }
0x573a   :  { %v16466_v35 = vunpack.i.h.bf16 %v16464_v25  ;;  %v16465_v36 = vunpack.i.l.bf16 %v16464_v25  ;;  %15884 = vmatpush3.bf16.msra.mxu1 %v15883_v32 }
0x573b   :  { %15885 = vmatprep.subr.bf16.mxu1 %v16712_v9 }
0x573c   :  { %v16640_v41 = vpop.eup %16639  ;;  %v15886_v48 = vpack.c.bf16 %v16466_v35, %v16465_v36 }
0x573d   :  { %v11125_v52 = vmul.f32 %v16640_v41, %v16638_v18  ;;  %v16474_v53 = vpop.permute.xlu1 %16473 }
0x573e   :  { %15887 = vmatpush3.bf16.msra.mxu1 %v15886_v48  ;;  %v16476_v19 = vunpack.i.h.bf16 %v16474_v53  ;;  %v16475_v63 = vunpack.i.l.bf16 %v16474_v53 }
0x573f   :  { %15176 = vmatmul.mubr.msk.f32.vlgmr.msra.gmra.mrb[128].mxu0 %vm2513_vm9, %v11125_v52  ;;  %15897 = vmatprep.subr.bf16.mxu1 %v15896_v43 }
0x5740   :  { %15891 = vmatpush3.bf16.msra.mxu0 %v15888_v13  ;;  %15197 = vmatprep.mubr.msk.f32.mxu0 %vm49_vm2, %v17098_v34  ;;  %v15900_v10 = vpack.c.bf16 %v16476_v19, %v16475_v63 }
0x5741   :  { %15893 = vmatprep.subr.bf16.mxu0 %v15892_v26  ;;  %15187 = vmatmul.mubr.msk.f32.vlgmr.msra.gmra.mrb[128].mxu1 %vm49_vm2, %v18406_v55 }
0x5742   :  { %15899 = vmatpush3.bf16.msra.mxu1 %v15896_v43  ;;  %15208 = vmatprep.mubr.msk.f32.mxu1 %vm49_vm2, %v17098_v34 }
0x5743   :  { %15901 = vmatprep.subr.bf16.mxu1 %v15900_v10 }
0x5744   :  { %15895 = vmatpush3.bf16.msra.mxu0 %v15892_v26 }
0x5745   :  { %15904 = vmatprep.subr.bf16.mxu0 %v16712_v9 }
0x5746   :  { %15903 = vmatpush3.bf16.msra.mxu1 %v15900_v10 }
0x5747   :  { %15198 = vmatmul.mubr.msk.f32.vlgmr.msra.gmra.mrb[130].mxu0 %vm49_vm2, %v17096_v44  ;;  %15908 = vmatprep.subr.bf16.mxu1 %v16712_v9 }
0x5748   :  { %15215 = vmatprep.mubr.msk.f32.mxu0 %vm16713_vm1, %v16714_v17 }
0x5749   :  { %15209 = vmatmul.mubr.msk.f32.vlgmr.msra.gmra.mrb[130].mxu1 %vm49_vm2, %v17096_v44 }
0x574a   :  { %15222 = vmatprep.mubr.msk.f32.mxu1 %vm16713_vm1, %v16714_v17 }
0x5812   :  { %v18484_v51 = vpop.f32.mrb[128].mxu0 }
0x5813   :  { %v15177_v12 = vpop.f32.mrb[129].mxu0 }
0x5814   :  { %v11289_v0 = vpop.f32.mrb[128].mxu1 }
0x5815   :  { %v15188_v47 = vpop.f32.mrb[129].mxu1  ;;  %v11290_v22 = vadd.f32 %v13418_v20, %v11289_v0 }
0x581a   :  { %v15199_v49 = vpop.f32.mrb[130].mxu0 }
0x581b   :  { %v11385_v1 = vadd.f32 %v15199_v49, %v13420_v4  ;;  %v11379_v6 = vpop.f32.mrb[131].mxu0 }
0x581c   :  { %v11380_v33 = vadd.f32 %v13420_v4, %v11379_v6  ;;  %v15210_v56 = vpop.f32.mrb[130].mxu1 }
0x581d   :  { %v11480_v46 = vadd.f32 %v15210_v56, %v13423_v5  ;;  %v11474_v39 = vpop.f32.mrb[131].mxu1 }
0x581e   :  { %v15905_v37 = vpack.c.bf16 %v11385_v1, %v11380_v33  ;;  %v11475_v15 = vadd.f32 %v13423_v5, %v11474_v39 }
0x5820   :  { %v15909_v7 = vpack.c.bf16 %v11480_v46, %v11475_v15  ;;  %15907 = vmatpush3.bf16.xpose.msk.msra.mxu0 %vm17142_vm7, %v15905_v37  ;;  %v13437_v46 = vld [vmem:[%s18710_s5 + $0x42] ss:$0 sm:$0xff] }
0x5821   :  { %15225 = vmatprep.subr.mxu0 %v16714_v17 }
0x5822   :  { %15910 = vmatpush3.bf16.msra.mxu1 %v15909_v7 }
0x5823   :  { %15230 = vmatprep.subr.mxu1 %v16714_v17 }
0x5827   :  { %15216 = vmatmul.mubr.msk.f32.vlgmr.msra.gmra.mrb[132].mxu0 %vm366_vm3, %v11290_v22 }
0x5828   :  { %15227 = vmatprep.mubr.msk.f32.mxu0 %vm16713_vm1, %v16714_v17  ;;  %15226 = vmatpush3.msra.mxu0 %v11199_v54 }
0x5829   :  { %15911 = vmatprep.subr.bf16.mxu0 %v16712_v9 }
0x58fa   :  { %v11558_v2 = vpop.f32.mrb[132].mxu0 }
0x58fb   :  { %v11562_v16 = vmul.f32 0.35355338, %v11558_v2  ;;  %v15217_v8 = vpop.f32.mrb[133].mxu0 }
0x58fc   :  { %v13435_v8 = vld [vmem:[%s18710_s5 + $0x3e] ss:$0 sm:$0xff] }
0x58fd   :  { %v11563_v18 = vadd.f32 %v18435_v45, %v11562_v16 }
0x58ff   :  { %v11564_v23 = vsel %vm2501_vm8, %v11563_v18, -inf }
0x5900   :  { %11565 = vmax.xlane.f32.xlu0 %v11564_v23 }
0x5916   :  { %16478 = vrot.lane.b32.xlu0 %v18441_v14, %s16716_s11 }
0x591a   :  { %16488 = vrot.lane.b32.xlu0 %v18452_v50, %s16716_s11 }
0x591e   :  { %16498 = vrot.lane.b32.xlu0 %v18445_v57, %s16716_s11 }
0x598d   :  { %v11566_v61 = vpop.xlane.xlu0 %11565 }
0x598e   :  { %v11567_v3 = vsub.f32 %v11563_v18, %v11566_v61 }
0x5990   :  { %v11568_v59 = vmul.f32 1.442695, %v11567_v3  ;;  %v13440_v3 = vld [vmem:[%s18710_s5 + $0x46] ss:$0 sm:$0xff] }
0x5991   :  { %v16479_v29 = vpop.permute.xlu0 %16478 }
0x5992   :  { %16641 = vpow2.f32 %v11568_v59  ;;  %v16481_v30 = vunpack.i.h.bf16 %v16479_v29  ;;  %v16480_v31 = vunpack.i.l.bf16 %v16479_v29 }
0x5994   :  { %v15917_v25 = vpack.c.bf16 %v16481_v30, %v16480_v31 }
0x5995   :  { %v16489_v43 = vpop.permute.xlu0 %16488 }
0x5996   :  { %v16491_v41 = vunpack.i.h.bf16 %v16489_v43  ;;  %v16490_v48 = vunpack.i.l.bf16 %v16489_v43  ;;  %v11794_v43 = vld [vmem:[#allocation2 + $0x2f0] sm:$0xff] }
0x5998   :  { %v15912_v19 = vpack.c.bf16 %v16491_v41, %v16490_v48 }
0x5999   :  { %v16499_v53 = vpop.permute.xlu0 %16498 }
0x599a   :  { %v16501_v10 = vunpack.i.h.bf16 %v16499_v53 }
0x599c   :  { %v16642_v13 = vpop.eup %16641 }
0x599d   :  { %v11570_v27 = vsel %vm2501_vm8, %v16642_v13, 0.0 }
0x599e   :  { %11571 = vadd.xlane.f32.xlu1 %v11570_v27 }
0x59af   :  { %16483 = vrot.lane.b32.xlu1 %v18428_v11, %s16716_s11 }
0x59b3   :  { %16493 = vrot.lane.b32.xlu1 %v18458_v62, %s16716_s11 }
0x59b7   :  { %16503 = vrot.lane.b32.xlu1 %v18462_v24, %s16716_s11 }
0x5a2b   :  { %v11572_v28 = vpop.xlane.xlu1 %11571 }
0x5a2c   :  { %16643 = vrcp.f32 %v11572_v28 }
0x5a2f   :  { %v16484_v38 = vpop.permute.xlu1 %16483 }
0x5a30   :  { %v16486_v35 = vunpack.i.h.bf16 %v16484_v38  ;;  %v16485_v36 = vunpack.i.l.bf16 %v16484_v38 }
0x5a32   :  { %v15921_v42 = vpack.c.bf16 %v16486_v35, %v16485_v36 }
0x5a33   :  { %v16494_v52 = vpop.permute.xlu1 %16493 }
0x5a34   :  { %v16496_v63 = vunpack.i.h.bf16 %v16494_v52  ;;  %v16495_v26 = vunpack.i.l.bf16 %v16494_v52 }
0x5a36   :  { %v16644_v21 = vpop.eup %16643  ;;  %v15915_v4 = vpack.c.bf16 %v16496_v63, %v16495_v26 }
0x5a37   :  { %v11574_v32 = vmul.f32 %v16644_v21, %v16642_v13  ;;  %v16504_v0 = vpop.permute.xlu1 %16503 }
0x5a38   :  { %v16506_v5 = vunpack.i.h.bf16 %v16504_v0  ;;  %v16505_v1 = vunpack.i.l.bf16 %v16504_v0 }
0x5a39   :  { %15223 = vmatmul.mubr.msk.f32.vlgmr.msra.gmra.mrb[132].mxu1 %vm2513_vm9, %v11574_v32 }
0x5a3a   :  { %15231 = vmatpush3.msra.mxu1 %v10792_v40  ;;  %15232 = vmatprep.mubr.msk.f32.mxu1 %vm16713_vm1, %v16714_v17  ;;  %v15929_v56 = vpack.c.bf16 %v16506_v5, %v16505_v1 }
0x5a3b   :  { %15918 = vmatprep.subr.bf16.mxu1 %v15917_v25 }
0x5a3d   :  { %15233 = vmatmul.mubr.msk.f32.vlgmr.msra.gmra.mrb[134].mxu1 %vm366_vm3, %v18484_v51  ;;  %v16500_v51 = vunpack.i.l.bf16 %v16499_v53 }
0x5a3e   :  { %15920 = vmatpush3.bf16.msra.mxu1 %v15917_v25  ;;  %15254 = vmatprep.mubr.msk.f32.mxu1 %vm49_vm2, %v17098_v34 }
0x5a3f   :  { %15922 = vmatprep.subr.bf16.mxu1 %v15921_v42  ;;  %v15925_v49 = vpack.c.bf16 %v16501_v10, %v16500_v51 }
0x5a42   :  { %15924 = vmatpush3.bf16.msra.mxu1 %v15921_v42 }
0x5a43   :  { %15933 = vmatprep.subr.bf16.mxu1 %v16712_v9 }
0x5a45   :  { %15255 = vmatmul.mubr.msk.f32.vlgmr.msra.gmra.mrb[136].mxu1 %vm49_vm2, %v17096_v44 }
0x5a46   :  { %15272 = vmatprep.mubr.msk.f32.mxu1 %vm16713_vm1, %v16714_v17 }
0x5b0c   :  { %v11644_v12 = vpop.f32.mrb[132].mxu1 }
0x5b0d   :  { %v15224_v47 = vpop.f32.mrb[133].mxu1  ;;  %15228 = vmatmul.mubr.msk.f32.vlgmr.msra.gmra.mrb[134].mxu0 %vm366_vm3, %v11644_v12 }
0x5b0e   :  { %15913 = vmatpush3.bf16.msra.mxu0 %v15912_v19  ;;  %15243 = vmatprep.mubr.msk.f32.mxu0 %vm16713_vm1, %v16714_v17 }
0x5b0f   :  { %15914 = vmatprep.subr.bf16.mxu0 %v16712_v9 }
0x5b10   :  { %v11790_v6 = vpop.f32.mrb[134].mxu1 }
0x5b11   :  { %v15234_v33 = vpop.f32.mrb[135].mxu1 }
0x5b12   :  { %15916 = vmatpush3.bf16.msra.mxu0 %v15915_v4 }
0x5b13   :  { %15926 = vmatprep.subr.bf16.mxu0 %v15925_v49 }
0x5b15   :  { %15244 = vmatmul.mubr.msk.f32.vlgmr.msra.gmra.mrb[136].mxu0 %vm49_vm2, %v18406_v55 }
0x5b16   :  { %15928 = vmatpush3.bf16.msra.mxu0 %v15925_v49  ;;  %15265 = vmatprep.mubr.msk.f32.mxu0 %vm49_vm2, %v17098_v34 }
0x5b17   :  { %15930 = vmatprep.subr.bf16.mxu0 %v15929_v56 }
0x5b18   :  { %v15256_v39 = vpop.f32.mrb[136].mxu1 }
0x5b19   :  { %v11972_v37 = vadd.f32 %v15256_v39, %v13437_v46  ;;  %v11966_v15 = vpop.f32.mrb[137].mxu1 }
0x5b1a   :  { %v11967_v7 = vadd.f32 %v13437_v46, %v11966_v15  ;;  %15932 = vmatpush3.bf16.msra.mxu0 %v15929_v56 }
0x5b1b   :  { %15937 = vmatprep.subr.bf16.mxu0 %v16712_v9 }
0x5b1c   :  { %v15934_v20 = vpack.c.bf16 %v11972_v37, %v11967_v7  ;;  %v13456_v7 = vld [vmem:[%s18710_s5 + $0x47] ss:$0 sm:$0xff] }
0x5b1d   :  { %15266 = vmatmul.mubr.msk.f32.vlgmr.msra.gmra.mrb[138].mxu0 %vm49_vm2, %v17096_v44 }
0x5b1e   :  { %15936 = vmatpush3.bf16.xpose.msk.msra.mxu1 %vm17142_vm7, %v15934_v20  ;;  %15279 = vmatprep.mubr.msk.f32.mxu0 %vm16713_vm1, %v16714_v17 }
0x5b1f   :  { %15282 = vmatprep.subr.mxu1 %v16714_v17 }
0x5be0   :  { %v11717_v22 = vpop.f32.mrb[134].mxu0 }
0x5be1   :  { %v18549_v2 = vadd.f32 %v11790_v6, %v11717_v22  ;;  %v15229_v16 = vpop.f32.mrb[135].mxu0 }
0x5be8   :  { %v11880_v18 = vpop.f32.mrb[136].mxu0 }
0x5be9   :  { %v11881_v23 = vadd.f32 %v13435_v8, %v11880_v18  ;;  %v15245_v61 = vpop.f32.mrb[137].mxu0 }
0x5beb   :  { %15273 = vmatmul.mubr.msk.f32.vlgmr.msra.gmra.mrb[138].mxu1 %vm366_vm3, %v11881_v23 }
0x5bec   :  { %15284 = vmatprep.mubr.msk.f32.mxu1 %vm16713_vm1, %v16714_v17  ;;  %15283 = vmatpush3.msra.mxu1 %v11794_v43 }
0x5bf0   :  { %v15267_v59 = vpop.f32.mrb[138].mxu0 }
0x5bf1   :  { %v12063_v13 = vadd.f32 %v15267_v59, %v13440_v3  ;;  %v12057_v27 = vpop.f32.mrb[139].mxu0 }
0x5bf2   :  { %v12058_v54 = vadd.f32 %v13440_v3, %v12057_v27 }
0x5bf4   :  { %v15938_v28 = vpack.c.bf16 %v12063_v13, %v12058_v54 }
0x5bf6   :  { %15939 = vmatpush3.bf16.msra.mxu0 %v15938_v28  ;;  %v13451_v28 = vld [vmem:[%s18710_s5 + $0x3f] ss:$0 sm:$0xff] }
0x5bf7   :  { %15940 = vmatprep.subr.bf16.mxu0 %v16712_v9 }
0x5cbe   :  { %v12141_v29 = vpop.f32.mrb[138].mxu1 }
0x5cbf   :  { %v12145_v30 = vmul.f32 0.35355338, %v12141_v29  ;;  %v15274_v31 = vpop.f32.mrb[139].mxu1 }
0x5cc1   :  { %v12146_v38 = vadd.f32 %v18435_v45, %v12145_v30 }
0x5cc3   :  { %v12147_v21 = vsel %vm2501_vm8, %v12146_v38, -inf }
0x5cc4   :  { %12148 = vmax.xlane.f32.xlu0 %v12147_v21 }
0x5cda   :  { %16508 = vrot.lane.b32.xlu0 %v18441_v14, %s16717_s3 }
0x5cde   :  { %16518 = vrot.lane.b32.xlu0 %v18452_v50, %s16717_s3 }
0x5ce2   :  { %16528 = vrot.lane.b32.xlu0 %v18445_v57, %s16717_s3 }
0x5d51   :  { %v12149_v32 = vpop.xlane.xlu0 %12148 }
0x5d52   :  { %v12150_v25 = vsub.f32 %v12146_v38, %v12149_v32 }
0x5d54   :  { %v12151_v35 = vmul.f32 1.442695, %v12150_v25 }
0x5d55   :  { %v16509_v14 = vpop.permute.xlu0 %16508 }
0x5d56   :  { %16645 = vpow2.f32 %v12151_v35  ;;  %v16511_v50 = vunpack.i.h.bf16 %v16509_v14  ;;  %v16510_v57 = vunpack.i.l.bf16 %v16509_v14 }
0x5d58   :  { %v15946_v42 = vpack.c.bf16 %v16511_v50, %v16510_v57 }
0x5d59   :  { %v16519_v52 = vpop.permute.xlu0 %16518 }
0x5d5a   :  { %15947 = vmatprep.subr.bf16.mxu1 %v15946_v42  ;;  %v16521_v53 = vunpack.i.h.bf16 %v16519_v52  ;;  %v16520_v19 = vunpack.i.l.bf16 %v16519_v52 }
0x5d5d   :  { %v16529_v63 = vpop.permute.xlu0 %16528 }
0x5d5e   :  { %v16531_v12 = vunpack.i.h.bf16 %v16529_v63  ;;  %v16530_v0 = vunpack.i.l.bf16 %v16529_v63 }
0x5d60   :  { %v16646_v36 = vpop.eup %16645  ;;  %v15954_v49 = vpack.c.bf16 %v16531_v12, %v16530_v0  ;;  %v13473_v12 = vld [vmem:[%s18709_s4 + $0xe0] sm:$0xff]  ;;  %v13474_v0 = vld [vmem:[%s18709_s4 + $0xe8] sm:$0xff] }
0x5d61   :  { %v12153_v40 = vsel %vm2501_vm8, %v16646_v36, 0.0 }
0x5d62   :  { %12154 = vadd.xlane.f32.xlu1 %v12153_v40  ;;  %v12305_v40 = vld [vmem:[#allocation2 + $0x2f8] sm:$0xff] }
0x5d73   :  { %16513 = vrot.lane.b32.xlu1 %v18428_v11, %s16717_s3 }
0x5d77   :  { %16523 = vrot.lane.b32.xlu1 %v18458_v62, %s16717_s3  ;;  %v15941_v62 = vpack.c.bf16 %v16521_v53, %v16520_v19 }
0x5d7b   :  { %16533 = vrot.lane.b32.xlu1 %v18462_v24, %s16717_s3 }
0x5def   :  { %v12155_v41 = vpop.xlane.xlu1 %12154 }
0x5df0   :  { %16647 = vrcp.f32 %v12155_v41  ;;  %v13464_v41 = vld [vmem:[%s18711_s6 + $0x1f] ss:$0 sm:$0xff] }
0x5df3   :  { %v16514_v48 = vpop.permute.xlu1 %16513 }
0x5df4   :  { %v16516_v33 = vunpack.i.h.bf16 %v16514_v48  ;;  %v16515_v56 = vunpack.i.l.bf16 %v16514_v48 }
0x5df6   :  { %v15950_v46 = vpack.c.bf16 %v16516_v33, %v16515_v56 }
0x5df7   :  { %v16524_v11 = vpop.permute.xlu1 %16523 }
0x5df8   :  { %v16526_v10 = vunpack.i.h.bf16 %v16524_v11  ;;  %v16525_v51 = vunpack.i.l.bf16 %v16524_v11 }
0x5dfa   :  { %v16648_v26 = vpop.eup %16647  ;;  %v15944_v4 = vpack.c.bf16 %v16526_v10, %v16525_v51  ;;  %v13470_v51 = vld [vmem:[%s18709_s4 + $0xd8] sm:$0xff] }
0x5dfb   :  { %v12157_v24 = vmul.f32 %v16648_v26, %v16646_v36  ;;  %v16534_v47 = vpop.permute.xlu1 %16533 }
0x5dfc   :  { %v16536_v5 = vunpack.i.h.bf16 %v16534_v47  ;;  %v16535_v1 = vunpack.i.l.bf16 %v16534_v47  ;;  %v13475_v47 = vld [vmem:[%s18709_s4 + $0xf0] sm:$0xff] }
0x5dfd   :  { %15280 = vmatmul.mubr.msk.f32.vlgmr.msra.gmra.mrb[140].mxu0 %vm2513_vm9, %v12157_v24 }
0x5dfe   :  { %15942 = vmatpush3.bf16.msra.mxu0 %v15941_v62  ;;  %15295 = vmatprep.mubr.msk.f32.mxu0 %vm16713_vm1, %v16714_v17  ;;  %v15958_v6 = vpack.c.bf16 %v16536_v5, %v16535_v1  ;;  %v13468_v62 = vld [vmem:[%s18709_s4 + $0xc8] sm:$0xff]  ;;  %v13477_v1 = vld [vmem:[%s18709_s4 + $0x100] sm:$0xff] }
0x5dff   :  { %15943 = vmatprep.subr.bf16.mxu0 %v16712_v9 }
0x5e02   :  { %15945 = vmatpush3.bf16.msra.mxu0 %v15944_v4  ;;  %v15976_v4 = vpack.c.bf16 %v13474_v0, %v13473_v12 }
0x5e03   :  { %15955 = vmatprep.subr.bf16.mxu0 %v15954_v49 }
0x5e05   :  { %15296 = vmatmul.mubr.msk.f32.vlgmr.msra.gmra.mrb[142].mxu0 %vm49_vm2, %v18406_v55 }
0x5e06   :  { %15957 = vmatpush3.bf16.msra.mxu0 %v15954_v49  ;;  %15317 = vmatprep.mubr.msk.f32.mxu0 %vm49_vm2, %v17098_v34  ;;  %v13476_v49 = vld [vmem:[%s18709_s4 + $0xf8] sm:$0xff] }
0x5e07   :  { %15959 = vmatprep.subr.bf16.mxu0 %v15958_v6  ;;  %v15979_v5 = vpack.c.bf16 %v13476_v49, %v13475_v47 }
0x5e0a   :  { %15961 = vmatpush3.bf16.msra.mxu0 %v15958_v6  ;;  %v13478_v6 = vld [vmem:[%s18709_s4 + $0x108] sm:$0xff] }
0x5e0b   :  { %15966 = vmatprep.subr.bf16.mxu0 %v16712_v9  ;;  %v15982_v33 = vpack.c.bf16 %v13478_v6, %v13477_v1 }
0x5e0d   :  { %15318 = vmatmul.mubr.msk.f32.vlgmr.msra.gmra.mrb[144].mxu0 %vm49_vm2, %v17096_v44 }
0x5e0e   :  { %15331 = vmatprep.mubr.msk.f32.mxu0 %vm16713_vm1, %v16714_v17 }
0x5ed0   :  { %v12227_v39 = vpop.f32.mrb[140].mxu0 }
0x5ed1   :  { %v15281_v37 = vpop.f32.mrb[141].mxu0  ;;  %15285 = vmatmul.mubr.msk.f32.vlgmr.msra.gmra.mrb[140].mxu1 %vm366_vm3, %v12227_v39 }
0x5ed2   :  { %15949 = vmatpush3.bf16.msra.mxu1 %v15946_v42  ;;  %15306 = vmatprep.mubr.msk.f32.mxu1 %vm49_vm2, %v17098_v34 }
0x5ed3   :  { %15951 = vmatprep.subr.bf16.mxu1 %v15950_v46 }
0x5ed6   :  { %15953 = vmatpush3.bf16.msra.mxu1 %v15950_v46 }
0x5ed7   :  { %15962 = vmatprep.subr.bf16.mxu1 %v16712_v9 }
0x5ed8   :  { %v12391_v55 = vpop.f32.mrb[142].mxu0 }
0x5ed9   :  { %v15297_v15 = vpop.f32.mrb[143].mxu0  ;;  %15307 = vmatmul.mubr.msk.f32.vlgmr.msra.gmra.mrb[142].mxu1 %vm49_vm2, %v17096_v44  ;;  %v13453_v44 = vld [vmem:[%s18710_s5 + $0x43] ss:$0 sm:$0xff] }
0x5eda   :  { %15324 = vmatprep.mubr.msk.f32.mxu1 %vm16713_vm1, %v16714_v17 }
0x5ee0   :  { %v15319_v20 = vpop.f32.mrb[144].mxu0 }
0x5ee1   :  { %v12574_v22 = vadd.f32 %v15319_v20, %v13456_v7  ;;  %v12568_v16 = vpop.f32.mrb[145].mxu0 }
0x5ee2   :  { %v12569_v34 = vadd.f32 %v13456_v7, %v12568_v16  ;;  %v13465_v16 = vld [vmem:[%s18711_s6 + $0x1c] ss:$0 sm:$0xff] }
0x5ee4   :  { %v15967_v8 = vpack.c.bf16 %v12574_v22, %v12569_v34 }
0x5ee6   :  { %15968 = vmatpush3.bf16.msra.mxu0 %v15967_v8  ;;  %v13466_v8 = vld [vmem:[%s18711_s6 + $0x1d] ss:$0 sm:$0xff] }
0x5ee7   :  { %15969 = vmatprep.subr.bf16.mxu0 %v16712_v9 }
0x5fa4   :  { %v12300_v18 = vpop.f32.mrb[140].mxu1 }
0x5fa5   :  { %v12304_v23 = vadd.f32 %v12300_v18, %v18549_v2  ;;  %v15286_v61 = vpop.f32.mrb[141].mxu1  ;;  %v12392_v2 = vadd.f32 %v13451_v28, %v12391_v55  ;;  %v13481_v28 = vld [vmem:[%s18711_s6 + $0x21] ss:$0 sm:$0xff] }
0x5fa6   :  { %v13480_v61 = vld [vmem:[%s18709_s4 + $0x118] sm:$0xff] }
0x5fac   :  { %v15308_v3 = vpop.f32.mrb[142].mxu1 }
0x5fad   :  { %v12483_v59 = vadd.f32 %v15308_v3, %v13453_v44  ;;  %v12477_v13 = vpop.f32.mrb[143].mxu1  ;;  %v13471_v3 = vld [vmem:[%s18711_s6 + $0x20] ss:$0 sm:$0xff] }
0x5fae   :  { %v12478_v27 = vadd.f32 %v13453_v44, %v12477_v13 }
0x5fb0   :  { %v15963_v54 = vpack.c.bf16 %v12483_v59, %v12478_v27 }
0x5fb2   :  { %15965 = vmatpush3.bf16.xpose.msk.msra.mxu1 %vm17142_vm7, %v15963_v54 }
0x5fb3   :  { %15334 = vmatprep.subr.mxu1 %v16714_v17 }
0x5fb9   :  { %15325 = vmatmul.mubr.msk.f32.vlgmr.msra.gmra.mrb[144].mxu1 %vm366_vm3, %v12392_v2 }
0x5fba   :  { %15336 = vmatprep.mubr.msk.f32.mxu1 %vm16713_vm1, %v16714_v17  ;;  %15335 = vmatpush3.msra.mxu1 %v12305_v40 }
0x5fbb   :  { %15975 = vmatprep.subr.bf16.mxu1 %v16712_v9 }
0x608c   :  { %v12652_v29 = vpop.f32.mrb[144].mxu1 }
0x608d   :  { %v12656_v30 = vmul.f32 0.35355338, %v12652_v29  ;;  %v15326_v31 = vpop.f32.mrb[145].mxu1 }
0x608f   :  { %v12657_v38 = vadd.f32 %v18435_v45, %v12656_v30 }
0x6091   :  { %v12658_v58 = vsel %vm2501_vm8, %v12657_v38, -inf }
0x6092   :  { %12659 = vmax.xlane.f32.xlu0 %v12658_v58 }
0x611f   :  { %v12660_v21 = vpop.xlane.xlu0 %12659 }
0x6120   :  { %v12661_v32 = vsub.f32 %v12657_v38, %v12660_v21 }
0x6122   :  { %v12662_v25 = vmul.f32 1.442695, %v12661_v32 }
0x6124   :  { %16649 = vpow2.f32 %v12662_v25 }
0x612e   :  { %v16650_v35 = vpop.eup %16649 }
0x612f   :  { %v12664_v36 = vsel %vm2501_vm8, %v16650_v35, 0.0 }
0x6130   :  { %12665 = vadd.xlane.f32.xlu1 %v12664_v36 }
0x61bd   :  { %v12666_v14 = vpop.xlane.xlu1 %12665 }
0x61be   :  { %16651 = vrcp.f32 %v12666_v14 }
0x61c8   :  { %v16652_v50 = vpop.eup %16651 }
0x61c9   :  { %v12668_v57 = vmul.f32 %v16652_v50, %v16650_v35 }
0x61cb   :  { %15332 = vmatmul.mubr.msk.f32.vlgmr.msra.gmra.mrb[146].mxu0 %vm2513_vm9, %v12668_v57 }
0x61cc   :  { %15347 = vmatprep.mubr.msk.f32.mxu0 %vm16713_vm1, %v16714_v17 }
0x629e   :  { %v12738_v45 = vpop.f32.mrb[146].mxu0 }
0x629f   :  { %v15333_v42 = vpop.f32.mrb[147].mxu0  ;;  %15337 = vmatmul.mubr.msk.f32.vlgmr.msra.gmra.mrb[146].mxu1 %vm366_vm3, %v12738_v45 }
0x62a0   :  { %15366 = vmatprep.mubr.msk.f32.mxu1 %vm16713_vm1, %v16714_v17  ;;  %v13467_v17 = vld [vmem:[%s18709_s4 + $0xc0] sm:$0xff]  ;;  %15977 = vmatpush3.bf16.msra.mxu1 %v15976_v4 }
0x62a1   :  { %v15970_v10 = vpack.c.bf16 %v13468_v62, %v13467_v17  ;;  %15978 = vmatprep.subr.bf16.mxu1 %v16712_v9  ;;  %v13483_v42 = vld [vmem:[%s18711_s6 + $0x2] ss:$0 sm:$0xff] }
0x62a3   :  { %15971 = vmatpush3.bf16.msra.mxu0 %v15970_v10 }
0x62a4   :  { %15972 = vmatprep.subr.bf16.mxu0 %v16712_v9  ;;  %15980 = vmatpush3.bf16.msra.mxu1 %v15979_v5 }
0x62a5   :  { %15981 = vmatprep.subr.bf16.mxu1 %v16712_v9 }
0x62a8   :  { %15983 = vmatpush3.bf16.msra.mxu1 %v15982_v33 }
0x62a9   :  { %15984 = vmatprep.subr.bf16.mxu1 %v16712_v9 }
0x6372   :  { %v12811_v43 = vpop.f32.mrb[146].mxu1 }
0x6373   :  { %v12815_v48 = vadd.f32 %v12811_v43, %v12304_v23  ;;  %v15338_v52 = vpop.f32.mrb[147].mxu1  ;;  %v13479_v23 = vld [vmem:[%s18709_s4 + $0x110] sm:$0xff] }
0x6374   :  { %v15985_v44 = vpack.c.bf16 %v13480_v61, %v13479_v23 }
0x6375   :  { %v12821_v53 = vadd.f32 %v13464_v41, %v12815_v48  ;;  %v13484_v41 = vld [vmem:[%s18711_s6 + $0x3] ss:$0 sm:$0xff] }
0x6376   :  { %15986 = vmatpush3.bf16.msra.mxu1 %v15985_v44 }
0x6377   :  { %v12822_v19 = vadd.f32 %v12821_v53, %v18373_v60  ;;  %v13469_v60 = vld [vmem:[%s18709_s4 + $0xd0] sm:$0xff] }
0x6378   :  { %v15973_v24 = vpack.c.bf16 %v13470_v51, %v13469_v60 }
0x6379   :  { %v12825_v11 = vsel %vm94_vm0, %v12822_v19, 0.0  ;;  %v12828_v63 = vmul.f32 %v12822_v19, %v12822_v19 }
0x637a   :  { %12826 = vadd.xlane.f32.xlu0 %v12825_v11  ;;  %15974 = vmatpush3.bf16.msra.mxu0 %v15973_v24 }
0x637b   :  { %v12829_v26 = vsel %vm94_vm0, %v12828_v63, 0.0 }
0x637e   :  { %12830 = vadd.xlane.f32.xlu0 %v12829_v26 }
0x6407   :  { %v12827_v56 = vpop.xlane.xlu0 %12826 }
0x6408   :  { %v12832_v46 = vmul.f32 0.03125, %v12827_v56 }
0x640a   :  { %v12834_v37 = vmul.f32 %v12832_v46, %v12832_v46  ;;  %v12836_v20 = vsub.f32 %v12822_v19, %v12832_v46 }
0x640b   :  { %v12831_v39 = vpop.xlane.xlu0 %12830 }
0x640c   :  { %v12833_v55 = vmul.f32 0.03125, %v12831_v39 }
0x640e   :  { %v12835_v15 = vsub.f32 %v12833_v55, %v12834_v37 }
0x6410   :  { %v12837_v7 = vadd.f32 1e-05, %v12835_v15 }
0x6412   :  { %16653 = vrsqrt.f32 %v12837_v7 }
0x641c   :  { %v16654_v22 = vpop.eup %16653 }
0x641d   :  { %v12839_v34 = vmul.f32 %v16654_v22, %v12836_v20 }
0x641f   :  { %v12844_v9 = vmul.f32 %v13465_v16, %v12839_v34 }
0x6421   :  { %v12849_v18 = vadd.f32 %v13466_v8, %v12844_v9 }
0x6423   :  { %15348 = vmatmul.mubr.msk.f32.vlgmr.msra.gmra.mrb[148].mxu0 %vm49_vm2, %v12849_v18 }
0x64f6   :  { %v12929_v59 = vpop.f32.mrb[148].mxu0 }
0x64f7   :  { %v12930_v13 = vadd.f32 %v13471_v3, %v12929_v59  ;;  %v15349_v27 = vpop.f32.mrb[149].mxu0 }
0x64f9   :  { %v12933_v54 = vmax.f32 %v12930_v13, 0.0 }
0x64fb   :  { %15367 = vmatmul.mubr.msk.f32.vlgmr.msra.gmra.mrb[148].mxu1 %vm4334_vm10, %v12933_v54 }
0x65ce   :  { %v13016_v2 = vpop.f32.mrb[148].mxu1 }
0x65cf   :  { %v13017_v29 = vadd.f32 %v13481_v28, %v13016_v2  ;;  %v15368_v30 = vpop.f32.mrb[149].mxu1 }
0x65d1   :  { %v13020_v31 = vadd.f32 %v13017_v29, %v12822_v19 }
0x65d3   :  { %v13023_v38 = vsel %vm94_vm0, %v13020_v31, 0.0  ;;  %v13026_v58 = vmul.f32 %v13020_v31, %v13020_v31 }
0x65d4   :  { %13024 = vadd.xlane.f32.xlu0 %v13023_v38 }
0x65d5   :  { %v13027_v21 = vsel %vm94_vm0, %v13026_v58, 0.0 }
0x65d6   :  { %13028 = vadd.xlane.f32.xlu1 %v13027_v21 }
0x6661   :  { %v13025_v32 = vpop.xlane.xlu0 %13024 }
0x6662   :  { %v13030_v25 = vmul.f32 0.03125, %v13025_v32 }
0x6663   :  { %v13029_v35 = vpop.xlane.xlu1 %13028 }
0x6664   :  { %v13032_v36 = vmul.f32 %v13030_v25, %v13030_v25  ;;  %v13031_v40 = vmul.f32 0.03125, %v13029_v35  ;;  %v13034_v57 = vsub.f32 %v13020_v31, %v13030_v25 }
0x6666   :  { %v13033_v14 = vsub.f32 %v13031_v40, %v13032_v36 }
0x6668   :  { %v13035_v50 = vadd.f32 1e-05, %v13033_v14 }
0x666a   :  { %16655 = vrsqrt.f32 %v13035_v50 }
0x6674   :  { %v16656_v45 = vpop.eup %16655 }
0x6675   :  { %v13037_v43 = vmul.f32 %v16656_v45, %v13034_v57 }
0x6677   :  { %v13042_v48 = vmul.f32 %v13483_v42, %v13037_v43 }
0x6679   :  { %v13047_v52 = vadd.f32 %v13484_v41, %v13042_v48 }
0x667b   :  { %13048 = vst.msk [vmem:[#allocation5] sm:$0x3f] %vm94_vm0, %v13047_v52 }
0x667c   :  { %16694 = shalt.err (!%p16691_p12)
}
0x667d   :  { %s16695_s9 = scalar_lea.hbm %s18712_s7, 128 }
0x667e   :  { %p16696_p13 = scmp.ne.s32.totalorder %s18712_s7, %s16695_s9  ;;  %p16699_p0 = scmp.lt.u32.totalorder %s16695_s9, %s18712_s7 }
0x6680   :  { %p16701_p1 = pnand %p16699_p0, %p16696_p13 }
0x6682   :  { %16704 = shalt.err (!%p16701_p1)
}
0x6683   :  { %13058 = dma.vmem_to_hbm [thread:$0]  %s13056_s2, 128, %s18712_s7, [#allocation4]  }
0x6684   :  { %16707 = dma.done.wait [#allocation4], 128  }
0x6685   :  { %16708 = vsyncadd [#allocation4], 4294967168 }
0x6686   :  { %13062 = vsyncpa [#allocation3], 1 }
0x6687   :  { %13063 = vsyncpa [#allocation4], 1 }

</bundles_post_ra>
